<compile_context>
chip_gen: v6e
topology: v6e:2x2x1
jax: 0.10.0
libtpu: 0.0.40
codegen_flags: <defaults>
</compile_context>

<pallas_src>
import functools
from math import sqrt

import jax
import jax.numpy as jnp
from jax import lax
from jax.experimental import pallas as pl
from jax.experimental.pallas import tpu as pltpu


# ----------------------------- helpers ------------------------------------ #

def _layernorm(x, gamma, beta, eps):
    mu = jnp.mean(x, axis=-1, keepdims=True)
    var = jnp.mean((x - mu) ** 2, axis=-1, keepdims=True)
    return (x - mu) * lax.rsqrt(var + eps) * gamma + beta


def skew_jax(t):
    """Reference replica of the PyTorch skew (pad-left / reshape / drop / reshape)."""
    S, L = t.shape[-2], t.shape[-1]
    padded = jnp.pad(t, [(0, 0)] * (t.ndim - 1) + [(1, 0)])
    srel = padded.reshape(-1, L + 1, S)
    srel = srel[:, 1:]
    return srel.reshape(t.shape)


def get_required_embeddings(E, seq_len_k, max_len):
    """Mirrors MultiHeadAttention.get_required_embeddings (pure glue)."""
    n_extra = max(seq_len_k - max_len, 0)
    tail = E[max(max_len - seq_len_k, 0):max_len]
    if n_extra > 0:
        return jnp.concatenate([jnp.tile(E[0:1], (n_extra, 1)), tail], axis=0)
    return tail


# --------------------------- fused Pallas kernel --------------------------- #

def _decoder_layer_kernel(
        tgt_ref,                              # (1, S, D)
        ln1_g_ref, ln1_b_ref,                 # (1, D)
        w_qkv_t_ref,                          # (3D, D)  rows = [Wq^T*inv ; Wk^T ; Wv^T]
        b_qkv_t_ref,                          # (3D, 1)  [bq*inv ; bk ; bv]
        e_t_ref,                              # (H, dp, S_k)
        mask_bias_ref,                        # (S, S_k) already scaled by -1e9
        wo_ref, bo_ref,                       # (D, D), (1, D)
        ln2_g_ref, ln2_b_ref,                 # (1, D)
        w1_ref, f1_b_ref,                     # (D, F), (1, F)
        w2_ref, f2_b_ref,                     # (F, D), (1, D)
        out_ref,                              # (1, S, D)
        *, num_heads, eps, causal_mask):
    f32 = jnp.float32
    H = num_heads

    x = tgt_ref[0]                            # (S, D) lane-dense
    S, D = x.shape
    dp = D // H
    S_k = e_t_ref.shape[2]

    # ---- LayerNorm 1 ------------------------------------------------------ #
    xn = _layernorm(x, ln1_g_ref[...], ln1_b_ref[...], eps)

    # ---- merged, transposed QKV projection (one full-width MXU pass) ------ #
    # (3D, D) @ (D, S): M=3D, K=D, N=S -> full lane width and full systolic
    # depth; the (3D, S) result is already head-major on sublanes, so the
    # per-head K/V views below are free reshapes/slices (no relayout).
    xn_t = xn.T                                                     # (D, S)
    qkv_t = (jnp.dot(w_qkv_t_ref[...], xn_t, preferred_element_type=f32)
             + b_qkv_t_ref[...])                                    # (3D, S)
    qkv_t = qkv_t.reshape(3 * H, dp, S)                             # free split
    q_t = qkv_t[0 * H:1 * H]                                        # (H, dp, S)
    k_t = qkv_t[1 * H:2 * H]                                        # (H, dp, S)
    v_t = qkv_t[2 * H:3 * H]                                        # (H, dp, S)

    # Q back to (H, S, dp) via eight tiny 2-D tile transposes (XLU) so the
    # score matmul is a fully canonical batched dot (no lhs-transposed dots,
    # no rank-3 transposes).  Bounded 8 KiB temporaries per iteration.
    q = jnp.stack([q_t[h].T for h in range(H)], axis=0)             # (H, S, dp)

    # ---- fused QK^T / QE^T: K and E share the Q feed along the N dim ------- #
    ke_t = jnp.concatenate([k_t, e_t_ref[...]], axis=2)             # (H, dp, 2*S_k)
    scores = jnp.einsum('hsd,hdt->hst', q, ke_t,
                        preferred_element_type=f32)                 # (H, S, 2*S_k)
    qkt = scores[:, :, :S_k]
    qet = scores[:, :, S_k:]

    # ---- in-kernel "skew" (Music-Transformer pad/reshape trick) ----------- #
    # For square (S == S_k) logits the PyTorch skew is equivalent to a per-row
    # lane rotate: rolled[a, b] = QE^T[a, (b - a - 1) mod S_k].  One strided
    # roll over the flat (H*S, S_k) slab handles all heads at once (the
    # accumulated shift 1 + h*S + a is congruent to 1 + a mod S_k).
    rolled = pltpu.roll(qet.reshape(H * S, S_k), shift=1, axis=1,
                        stride=1, stride_axis=0).reshape(H, S, S_k)
    if causal_mask:
        # Junk upper-triangular entries are annihilated by the -1e9 mask, so
        # the rolled tensor is Srel as far as the softmax is concerned.
        srel = rolled
    else:
        # Exact general path:
        #   Srel[a, b<=a] = rolled[a, b]; Srel[a, a+1] = 0;
        #   Srel[a, b>a+1] = rolled[a+1, b]  (per head).
        rolled_up = jnp.concatenate([rolled[:, 1:], rolled[:, :1]], axis=1)
        row = lax.broadcasted_iota(jnp.int32, (H, S, S_k), 1)
        col = lax.broadcasted_iota(jnp.int32, (H, S, S_k), 2)
        srel = jnp.where(col <= row, rolled,
                         jnp.where(col == row + 1, 0.0, rolled_up))

    # ---- masked softmax (1/sqrt(dp) folded into Wq/bq, mask pre-scaled) ---- #
    logits = qkt + srel + mask_bias_ref[...]
    mmax = jnp.max(logits, axis=-1, keepdims=True)
    p = jnp.exp(logits - mmax)
    denom = jnp.sum(p, axis=-1, keepdims=True)
    r = pl.reciprocal(denom, approx=True)          # EUP slot (VALU stays free)
    r = r * (2.0 - denom * r)                      # one Newton step -> f32-exact
    p = p * r

    # ---- PV directly in head-transposed layout, then one full-width Wo ----- #
    # attn_t[h, d, s] = sum_t v_t[h, d, t] * p[h, s, t]   (rhs-transposed dot)
    attn_t = jnp.einsum('hdt,hst->hds', v_t, p,
                        preferred_element_type=f32)                 # (H, dp, S)
    attn = attn_t.reshape(D, S).T                                   # (S, D) = concat_heads
    proj = jnp.dot(attn, wo_ref[...], preferred_element_type=f32) + bo_ref[...]
    attn_out = x + proj                                             # residual 1

    # ---- LayerNorm 2 + FFN + residual 2 ------------------------------------ #
    xn2 = _layernorm(attn_out, ln2_g_ref[...], ln2_b_ref[...], eps)
    h1 = jnp.maximum(
        jnp.dot(xn2, w1_ref[...], preferred_element_type=f32) + f1_b_ref[...],
        0.0)
    ffn = jnp.dot(h1, w2_ref[...], preferred_element_type=f32) + f2_b_ref[...]
    out_ref[0] = attn_out + ffn                                     # residual 2


# ------------------------------ wrapper ------------------------------------ #

def decoder_layer_forward(tgt, params, mask=None, *, num_heads, max_rel_dist,
                          eps=1e-6, assume_causal_mask=False):
    B, S, D = tgt.shape
    H = num_heads
    dp = D // H
    F_ = params['w1'].shape[1]
    S_k = S                                    # self-attention
    # The in-kernel skew (per-row rotate) is only the PyTorch skew for square
    # logits; this is always the case for the DecoderLayer's self-attention.
    assert S == S_k, "in-kernel skew requires S == S_k (self-attention)"

    inv = 1.0 / sqrt(dp)                       # folded into Wq / bq

    # Relative embeddings (glue, mirrors get_required_embeddings), transposed
    # so the head (sublane-major) layout is free inside the kernel.
    e_used = get_required_embeddings(params['E'], S_k, max_rel_dist)   # (S_k, D)
    e_t = e_used.T.reshape(H, dp, S_k)                                 # (H, dp, S_k)

    # Merged, transposed projection weights: rows = [Wq^T * inv ; Wk^T ; Wv^T].
    w_qkv_t = jnp.concatenate([(params['wq'] * inv).T,
                               params['wk'].T,
                               params['wv'].T], axis=0)                # (3D, D)
    b_qkv_t = jnp.concatenate([params['bq'] * inv,
                               params['bk'],
                               params['bv']], axis=0)[:, None]         # (3D, 1)

    if mask is None:
        mask_bias = jnp.zeros((S, S_k), jnp.float32)
        assume_causal_mask = False             # general skew path (exact)
    else:
        mask_bias = mask.astype(jnp.float32) * (-1000000000.0)

    kernel = functools.partial(_decoder_layer_kernel, num_heads=H, eps=eps,
                               causal_mask=bool(assume_causal_mask))
    const = lambda b: (0, 0)
    const3 = lambda b: (0, 0, 0)

    out = pl.pallas_call(
        kernel,
        out_shape=jax.ShapeDtypeStruct((B, S, D), jnp.float32),
        grid_spec=pltpu.PrefetchScalarGridSpec(
            num_scalar_prefetch=0,
            grid=(B,),
            in_specs=[
                pl.BlockSpec((1, S, D), lambda b: (b, 0, 0)),      # tgt
                pl.BlockSpec((1, D), const),                       # ln1 gamma
                pl.BlockSpec((1, D), const),                       # ln1 beta
                pl.BlockSpec((3 * D, D), const),                   # Wqkv^T (q pre-scaled)
                pl.BlockSpec((3 * D, 1), const),                   # bqkv^T
                pl.BlockSpec((H, dp, S_k), const3),                # E^T per head
                pl.BlockSpec((S, S_k), const),                     # additive mask bias
                pl.BlockSpec((D, D), const),                       # Wo
                pl.BlockSpec((1, D), const),                       # bo
                pl.BlockSpec((1, D), const),                       # ln2 gamma
                pl.BlockSpec((1, D), const),                       # ln2 beta
                pl.BlockSpec((D, F_), const),                      # ffn w1
                pl.BlockSpec((1, F_), const),                      # ffn b1
                pl.BlockSpec((F_, D), const),                      # ffn w2
                pl.BlockSpec((1, D), const),                       # ffn b2
            ],
            out_specs=pl.BlockSpec((1, S, D), lambda b: (b, 0, 0)),
        ),
        compiler_params=pltpu.CompilerParams(
            dimension_semantics=("parallel",),
            vmem_limit_bytes=48 * 1024 * 1024),
    )(tgt,
      params['ln1_g'][None], params['ln1_b'][None],
      w_qkv_t, b_qkv_t,
      e_t, mask_bias,
      params['wo'], params['bo'][None],
      params['ln2_g'][None], params['ln2_b'][None],
      params['w1'], params['b1'][None], params['w2'], params['b2'][None])
    return out


# --------------------------- pure-JAX reference ----------------------------- #

def decoder_layer_reference(tgt, params, mask, num_heads, max_rel_dist, eps=1e-6):
    B, S, D = tgt.shape
    H, dp = num_heads, D // num_heads

    def ln(x, g, b):
        mu = x.mean(-1, keepdims=True)
        var = ((x - mu) ** 2).mean(-1, keepdims=True)
        return (x - mu) / jnp.sqrt(var + eps) * g + b

    x = ln(tgt, params['ln1_g'], params['ln1_b'])
    q = x @ params['wq'] + params['bq']
    k = x @ params['wk'] + params['bk']
    v = x @ params['wv'] + params['bv']
    e_used = get_required_embeddings(params['E'], S, max_rel_dist)

    def split(z):
        return z.reshape(*z.shape[:-1], H, dp).swapaxes(-2, -3)

    qh, kh, vh, eh = split(q), split(k), split(v), split(e_used)
    qkt = qh @ kh.swapaxes(-1, -2)
    srel = skew_jax(qh @ eh.swapaxes(-1, -2))
    logits = (qkt + srel) / sqrt(dp)
    if mask is not None:
        logits = logits + mask * -1000000000.0
    p = jax.nn.softmax(logits, axis=-1)
    attn = (p @ vh).swapaxes(-2, -3).reshape(B, S, D)
    attn = attn @ params['wo'] + params['bo']
    attn_out = tgt + attn
    x2 = ln(attn_out, params['ln2_g'], params['ln2_b'])
    ffn = jnp.maximum(x2 @ params['w1'] + params['b1'], 0.0) @ params['w2'] + params['b2']
    return attn_out + ffn


# --------------------------------- main ------------------------------------- #

if __name__ == "__main__":
    # 128-aligned small shapes; MRD < S exercises the E[0]-replication branch.
    B, S, D, H, F_, MRD = 2, 128, 128, 8, 256, 96

    key = jax.random.PRNGKey(0)
    ks = jax.random.split(key, 16)

    def init(k, shape, scale=0.05):
        return jax.random.normal(k, shape, jnp.float32) * scale

    params = {
        'wq': init(ks[0], (D, D)), 'bq': init(ks[1], (D,)),
        'wk': init(ks[2], (D, D)), 'bk': init(ks[3], (D,)),
        'wv': init(ks[4], (D, D)), 'bv': init(ks[5], (D,)),
        'wo': init(ks[6], (D, D)), 'bo': init(ks[7], (D,)),
        'E': init(ks[8], (MRD, D), 0.1),
        'w1': init(ks[9], (D, F_)), 'b1': init(ks[10], (F_,)),
        'w2': init(ks[11], (F_, D)), 'b2': init(ks[12], (D,)),
        'ln1_g': 1.0 + 0.1 * init(ks[13], (D,), 1.0), 'ln1_b': init(ks[13], (D,)),
        'ln2_g': 1.0 + 0.1 * init(ks[14], (D,), 1.0), 'ln2_b': init(ks[14], (D,)),
    }

    tgt = jax.random.normal(ks[15], (B, S, D), jnp.float32)
    causal_mask = jnp.triu(jnp.ones((S, S), jnp.float32), k=1)   # 1 where masked

    out = decoder_layer_forward(tgt, params, causal_mask,
                                num_heads=H, max_rel_dist=MRD, eps=1e-6,
                                assume_causal_mask=True)
    out = jax.block_until_ready(out)

    ref = decoder_layer_reference(tgt, params, causal_mask, H, MRD, eps=1e-6)
    assert out.shape == (B, S, D)
    max_err = float(jnp.max(jnp.abs(out - ref)))
    assert bool(jnp.allclose(out, ref, atol=5e-4, rtol=5e-4)), max_err

    print("KERNEL_OK")
</pallas_src>

<mosaic_0001>
module attributes {stable_mosaic.version = 11 : i64} {
  func.func @_decoder_layer_kernel(%arg0: i32, %arg1: memref<1x128x128xf32, #tpu.memory_space<vmem>>, %arg2: memref<1x128xf32, #tpu.memory_space<vmem>>, %arg3: memref<1x128xf32, #tpu.memory_space<vmem>>, %arg4: memref<384x128xf32, #tpu.memory_space<vmem>>, %arg5: memref<384x1xf32, #tpu.memory_space<vmem>>, %arg6: memref<8x16x128xf32, #tpu.memory_space<vmem>>, %arg7: memref<128x128xf32, #tpu.memory_space<vmem>>, %arg8: memref<128x128xf32, #tpu.memory_space<vmem>>, %arg9: memref<1x128xf32, #tpu.memory_space<vmem>>, %arg10: memref<1x128xf32, #tpu.memory_space<vmem>>, %arg11: memref<1x128xf32, #tpu.memory_space<vmem>>, %arg12: memref<128x256xf32, #tpu.memory_space<vmem>>, %arg13: memref<1x256xf32, #tpu.memory_space<vmem>>, %arg14: memref<256x128xf32, #tpu.memory_space<vmem>>, %arg15: memref<1x128xf32, #tpu.memory_space<vmem>>, %arg16: memref<1x128x128xf32, #tpu.memory_space<vmem>>) attributes {dimension_semantics = [#tpu.dimension_semantics<parallel>], iteration_bounds = array<i64: 2>, scalar_prefetch = 0 : i64, scratch_operands = 0 : i64, tpu.core_type = #tpu.core_type<tc>, window_params = [{transform_indices = @transform_0, window_bounds = array<i64: 1, 128, 128>}, {pipeline_mode = #tpu.pipeline_mode<synchronous>, transform_indices = @transform_1, window_bounds = array<i64: 1, 128>}, {pipeline_mode = #tpu.pipeline_mode<synchronous>, transform_indices = @transform_2, window_bounds = array<i64: 1, 128>}, {pipeline_mode = #tpu.pipeline_mode<synchronous>, transform_indices = @transform_3, window_bounds = array<i64: 384, 128>}, {pipeline_mode = #tpu.pipeline_mode<synchronous>, transform_indices = @transform_4, window_bounds = array<i64: 384, 1>}, {pipeline_mode = #tpu.pipeline_mode<synchronous>, transform_indices = @transform_5, window_bounds = array<i64: 8, 16, 128>}, {pipeline_mode = #tpu.pipeline_mode<synchronous>, transform_indices = @transform_6, window_bounds = array<i64: 128, 128>}, {pipeline_mode = #tpu.pipeline_mode<synchronous>, transform_indices = @transform_7, window_bounds = array<i64: 128, 128>}, {pipeline_mode = #tpu.pipeline_mode<synchronous>, transform_indices = @transform_8, window_bounds = array<i64: 1, 128>}, {pipeline_mode = #tpu.pipeline_mode<synchronous>, transform_indices = @transform_9, window_bounds = array<i64: 1, 128>}, {pipeline_mode = #tpu.pipeline_mode<synchronous>, transform_indices = @transform_10, window_bounds = array<i64: 1, 128>}, {pipeline_mode = #tpu.pipeline_mode<synchronous>, transform_indices = @transform_11, window_bounds = array<i64: 128, 256>}, {pipeline_mode = #tpu.pipeline_mode<synchronous>, transform_indices = @transform_12, window_bounds = array<i64: 1, 256>}, {pipeline_mode = #tpu.pipeline_mode<synchronous>, transform_indices = @transform_13, window_bounds = array<i64: 256, 128>}, {pipeline_mode = #tpu.pipeline_mode<synchronous>, transform_indices = @transform_14, window_bounds = array<i64: 1, 128>}, {transform_indices = @transform_15, window_bounds = array<i64: 1, 128, 128>}]} {
    %c0 = arith.constant 0 : index
    %c0_0 = arith.constant 0 : index
    %c0_1 = arith.constant 0 : index
    %0 = vector.load %arg1[%c0, %c0_0, %c0_1] : memref<1x128x128xf32, #tpu.memory_space<vmem>>, vector<1x128x128xf32>
    %1 = vector.shape_cast %0 : vector<1x128x128xf32> to vector<128x128xf32>
    %c0_2 = arith.constant 0 : index
    %c0_3 = arith.constant 0 : index
    %2 = vector.load %arg2[%c0_2, %c0_3] : memref<1x128xf32, #tpu.memory_space<vmem>>, vector<1x128xf32>
    %c0_4 = arith.constant 0 : index
    %c0_5 = arith.constant 0 : index
    %3 = vector.load %arg3[%c0_4, %c0_5] : memref<1x128xf32, #tpu.memory_space<vmem>>, vector<1x128xf32>
    %cst = arith.constant dense<0.000000e+00> : vector<128xf32>
    %4 = vector.multi_reduction <add>, %1, %cst [1] : vector<128x128xf32> to vector<128xf32>
    %5 = vector.shape_cast %4 : vector<128xf32> to vector<128x1xf32>
    %cst_6 = arith.constant 1.280000e+02 : f32
    %6 = vector.broadcast %cst_6 : f32 to vector<128x1xf32>
    %7 = arith.divf %5, %6 : vector<128x1xf32>
    %8 = vector.broadcast %7 : vector<128x1xf32> to vector<128x128xf32>
    %9 = arith.subf %1, %8 : vector<128x128xf32>
    %10 = arith.mulf %9, %9 : vector<128x128xf32>
    %cst_7 = arith.constant dense<0.000000e+00> : vector<128xf32>
    %11 = vector.multi_reduction <add>, %10, %cst_7 [1] : vector<128x128xf32> to vector<128xf32>
    %12 = vector.shape_cast %11 : vector<128xf32> to vector<128x1xf32>
    %cst_8 = arith.constant 1.280000e+02 : f32
    %13 = vector.broadcast %cst_8 : f32 to vector<128x1xf32>
    %14 = arith.divf %12, %13 : vector<128x1xf32>
    %15 = vector.broadcast %7 : vector<128x1xf32> to vector<128x128xf32>
    %16 = arith.subf %1, %15 : vector<128x128xf32>
    %cst_9 = arith.constant 9.99999997E-7 : f32
    %17 = vector.broadcast %cst_9 : f32 to vector<128x1xf32>
    %18 = arith.addf %14, %17 : vector<128x1xf32>
    %19 = math.rsqrt %18 : vector<128x1xf32>
    %20 = vector.broadcast %19 : vector<128x1xf32> to vector<128x128xf32>
    %21 = arith.mulf %16, %20 : vector<128x128xf32>
    %22 = vector.broadcast %2 : vector<1x128xf32> to vector<128x128xf32>
    %23 = arith.mulf %21, %22 : vector<128x128xf32>
    %24 = vector.broadcast %3 : vector<1x128xf32> to vector<128x128xf32>
    %25 = arith.addf %23, %24 : vector<128x128xf32>
    %26 = tpu.transpose %25, [1, 0] : vector<128x128xf32> -> vector<128x128xf32>
    %c0_10 = arith.constant 0 : index
    %c0_11 = arith.constant 0 : index
    %27 = vector.load %arg4[%c0_10, %c0_11] : memref<384x128xf32, #tpu.memory_space<vmem>>, vector<384x128xf32>
    %cst_12 = arith.constant dense<0.000000e+00> : vector<384x128xf32>
    %28 = tpu.matmul %27, %26, %cst_12 {dimension_numbers = #tpu.dot_dimension_numbers<[1], [0], [0], [1], [0, 0, 1, 1], [], []>} : vector<384x128xf32>, vector<128x128xf32>, vector<384x128xf32> -> vector<384x128xf32>
    %c0_13 = arith.constant 0 : index
    %c0_14 = arith.constant 0 : index
    %29 = vector.load %arg5[%c0_13, %c0_14] : memref<384x1xf32, #tpu.memory_space<vmem>>, vector<384x1xf32>
    %30 = vector.broadcast %29 : vector<384x1xf32> to vector<384x128xf32>
    %31 = arith.addf %28, %30 : vector<384x128xf32>
    %32 = vector.shape_cast %31 : vector<384x128xf32> to vector<24x16x128xf32>
    %33 = vector.extract_strided_slice %32 {offsets = [0, 0, 0], sizes = [8, 16, 128], strides = [1, 1, 1]} : vector<24x16x128xf32> to vector<8x16x128xf32>
    %34 = vector.extract_strided_slice %32 {offsets = [8, 0, 0], sizes = [8, 16, 128], strides = [1, 1, 1]} : vector<24x16x128xf32> to vector<8x16x128xf32>
    %35 = vector.extract_strided_slice %32 {offsets = [16, 0, 0], sizes = [8, 16, 128], strides = [1, 1, 1]} : vector<24x16x128xf32> to vector<8x16x128xf32>
    %36 = vector.extract_strided_slice %33 {offsets = [0, 0, 0], sizes = [1, 16, 128], strides = [1, 1, 1]} : vector<8x16x128xf32> to vector<1x16x128xf32>
    %37 = vector.shape_cast %36 : vector<1x16x128xf32> to vector<16x128xf32>
    %38 = tpu.transpose %37, [1, 0] : vector<16x128xf32> -> vector<128x16xf32>
    %39 = vector.extract_strided_slice %33 {offsets = [1, 0, 0], sizes = [1, 16, 128], strides = [1, 1, 1]} : vector<8x16x128xf32> to vector<1x16x128xf32>
    %40 = vector.shape_cast %39 : vector<1x16x128xf32> to vector<16x128xf32>
    %41 = tpu.transpose %40, [1, 0] : vector<16x128xf32> -> vector<128x16xf32>
    %42 = vector.extract_strided_slice %33 {offsets = [2, 0, 0], sizes = [1, 16, 128], strides = [1, 1, 1]} : vector<8x16x128xf32> to vector<1x16x128xf32>
    %43 = vector.shape_cast %42 : vector<1x16x128xf32> to vector<16x128xf32>
    %44 = tpu.transpose %43, [1, 0] : vector<16x128xf32> -> vector<128x16xf32>
    %45 = vector.extract_strided_slice %33 {offsets = [3, 0, 0], sizes = [1, 16, 128], strides = [1, 1, 1]} : vector<8x16x128xf32> to vector<1x16x128xf32>
    %46 = vector.shape_cast %45 : vector<1x16x128xf32> to vector<16x128xf32>
    %47 = tpu.transpose %46, [1, 0] : vector<16x128xf32> -> vector<128x16xf32>
    %48 = vector.extract_strided_slice %33 {offsets = [4, 0, 0], sizes = [1, 16, 128], strides = [1, 1, 1]} : vector<8x16x128xf32> to vector<1x16x128xf32>
    %49 = vector.shape_cast %48 : vector<1x16x128xf32> to vector<16x128xf32>
    %50 = tpu.transpose %49, [1, 0] : vector<16x128xf32> -> vector<128x16xf32>
    %51 = vector.extract_strided_slice %33 {offsets = [5, 0, 0], sizes = [1, 16, 128], strides = [1, 1, 1]} : vector<8x16x128xf32> to vector<1x16x128xf32>
    %52 = vector.shape_cast %51 : vector<1x16x128xf32> to vector<16x128xf32>
    %53 = tpu.transpose %52, [1, 0] : vector<16x128xf32> -> vector<128x16xf32>
    %54 = vector.extract_strided_slice %33 {offsets = [6, 0, 0], sizes = [1, 16, 128], strides = [1, 1, 1]} : vector<8x16x128xf32> to vector<1x16x128xf32>
    %55 = vector.shape_cast %54 : vector<1x16x128xf32> to vector<16x128xf32>
    %56 = tpu.transpose %55, [1, 0] : vector<16x128xf32> -> vector<128x16xf32>
    %57 = vector.extract_strided_slice %33 {offsets = [7, 0, 0], sizes = [1, 16, 128], strides = [1, 1, 1]} : vector<8x16x128xf32> to vector<1x16x128xf32>
    %58 = vector.shape_cast %57 : vector<1x16x128xf32> to vector<16x128xf32>
    %59 = tpu.transpose %58, [1, 0] : vector<16x128xf32> -> vector<128x16xf32>
    %60 = vector.shape_cast %38 : vector<128x16xf32> to vector<1x128x16xf32>
    %61 = vector.shape_cast %41 : vector<128x16xf32> to vector<1x128x16xf32>
    %62 = vector.shape_cast %44 : vector<128x16xf32> to vector<1x128x16xf32>
    %63 = vector.shape_cast %47 : vector<128x16xf32> to vector<1x128x16xf32>
    %64 = vector.shape_cast %50 : vector<128x16xf32> to vector<1x128x16xf32>
    %65 = vector.shape_cast %53 : vector<128x16xf32> to vector<1x128x16xf32>
    %66 = vector.shape_cast %56 : vector<128x16xf32> to vector<1x128x16xf32>
    %67 = vector.shape_cast %59 : vector<128x16xf32> to vector<1x128x16xf32>
    %68 = tpu.concatenate %60, %61, %62, %63, %64, %65, %66, %67 in 0 : vector<1x128x16xf32>, vector<1x128x16xf32>, vector<1x128x16xf32>, vector<1x128x16xf32>, vector<1x128x16xf32>, vector<1x128x16xf32>, vector<1x128x16xf32>, vector<1x128x16xf32> -> vector<8x128x16xf32>
    %c0_15 = arith.constant 0 : index
    %c0_16 = arith.constant 0 : index
    %c0_17 = arith.constant 0 : index
    %69 = vector.load %arg6[%c0_15, %c0_16, %c0_17] : memref<8x16x128xf32, #tpu.memory_space<vmem>>, vector<8x16x128xf32>
    %70 = tpu.concatenate %34, %69 in 2 : vector<8x16x128xf32>, vector<8x16x128xf32> -> vector<8x16x256xf32>
    "tpu.trace_start"() <{level = 10 : i32, message = "hsd,hdt->hst"}> : () -> ()
    %cst_18 = arith.constant dense<0.000000e+00> : vector<8x128x256xf32>
    %71 = tpu.matmul %68, %70, %cst_18 {dimension_numbers = #tpu.dot_dimension_numbers<[2], [1], [1], [2], [0, 0, 0, 1, 1, 2], [0], [0]>} : vector<8x128x16xf32>, vector<8x16x256xf32>, vector<8x128x256xf32> -> vector<8x128x256xf32>
    "tpu.trace_stop"() : () -> ()
    %72 = vector.extract_strided_slice %71 {offsets = [0, 0, 0], sizes = [8, 128, 128], strides = [1, 1, 1]} : vector<8x128x256xf32> to vector<8x128x128xf32>
    %73 = vector.extract_strided_slice %71 {offsets = [0, 0, 128], sizes = [8, 128, 128], strides = [1, 1, 1]} : vector<8x128x256xf32> to vector<8x128x128xf32>
    %74 = vector.shape_cast %73 : vector<8x128x128xf32> to vector<1024x128xf32>
    %c1_i32 = arith.constant 1 : i32
    %75 = tpu.dynamic_rotate %74 by %c1_i32 dim 1 {stride = 1 : si32, stride_dimension = 0 : si32} : vector<1024x128xf32>, i32 -> vector<1024x128xf32>
    %76 = vector.shape_cast %75 : vector<1024x128xf32> to vector<8x128x128xf32>
    %77 = arith.addf %72, %76 : vector<8x128x128xf32>
    %c0_19 = arith.constant 0 : index
    %c0_20 = arith.constant 0 : index
    %78 = vector.load %arg7[%c0_19, %c0_20] : memref<128x128xf32, #tpu.memory_space<vmem>>, vector<128x128xf32>
    %79 = vector.shape_cast %78 : vector<128x128xf32> to vector<1x128x128xf32>
    %80 = vector.broadcast %79 : vector<1x128x128xf32> to vector<8x128x128xf32>
    %81 = arith.addf %77, %80 : vector<8x128x128xf32>
    %cst_21 = arith.constant dense<0xFF800000> : vector<8x128xf32>
    %82 = vector.multi_reduction <maximumf>, %81, %cst_21 [2] : vector<8x128x128xf32> to vector<8x128xf32>
    %83 = vector.shape_cast %82 : vector<8x128xf32> to vector<8x128x1xf32>
    %84 = vector.broadcast %83 : vector<8x128x1xf32> to vector<8x128x128xf32>
    %85 = arith.subf %81, %84 : vector<8x128x128xf32>
    %86 = math.exp %85 : vector<8x128x128xf32>
    %cst_22 = arith.constant dense<0.000000e+00> : vector<8x128xf32>
    %87 = vector.multi_reduction <add>, %86, %cst_22 [2] : vector<8x128x128xf32> to vector<8x128xf32>
    %88 = vector.shape_cast %87 : vector<8x128xf32> to vector<8x128x1xf32>
    %89 = tpu.reciprocal %88 {approx = true} : vector<8x128x1xf32> -> vector<8x128x1xf32>
    %90 = arith.mulf %88, %89 : vector<8x128x1xf32>
    %cst_23 = arith.constant 2.000000e+00 : f32
    %91 = vector.broadcast %cst_23 : f32 to vector<8x128x1xf32>
    %92 = arith.subf %91, %90 : vector<8x128x1xf32>
    %93 = arith.mulf %89, %92 : vector<8x128x1xf32>
    %94 = vector.broadcast %93 : vector<8x128x1xf32> to vector<8x128x128xf32>
    %95 = arith.mulf %86, %94 : vector<8x128x128xf32>
    "tpu.trace_start"() <{level = 10 : i32, message = "hdt,hst->hds"}> : () -> ()
    %cst_24 = arith.constant dense<0.000000e+00> : vector<8x16x128xf32>
    %96 = tpu.matmul %35, %95, %cst_24 {dimension_numbers = #tpu.dot_dimension_numbers<[2], [2], [1], [1], [0, 0, 0, 1, 1, 1], [0], [0]>} : vector<8x16x128xf32>, vector<8x128x128xf32>, vector<8x16x128xf32> -> vector<8x16x128xf32>
    "tpu.trace_stop"() : () -> ()
    %97 = vector.shape_cast %96 : vector<8x16x128xf32> to vector<128x128xf32>
    %98 = tpu.transpose %97, [1, 0] : vector<128x128xf32> -> vector<128x128xf32>
    %c0_25 = arith.constant 0 : index
    %c0_26 = arith.constant 0 : index
    %99 = vector.load %arg8[%c0_25, %c0_26] : memref<128x128xf32, #tpu.memory_space<vmem>>, vector<128x128xf32>
    %cst_27 = arith.constant dense<0.000000e+00> : vector<128x128xf32>
    %100 = tpu.matmul %98, %99, %cst_27 {dimension_numbers = #tpu.dot_dimension_numbers<[1], [0], [0], [1], [0, 0, 1, 1], [], []>} : vector<128x128xf32>, vector<128x128xf32>, vector<128x128xf32> -> vector<128x128xf32>
    %c0_28 = arith.constant 0 : index
    %c0_29 = arith.constant 0 : index
    %101 = vector.load %arg9[%c0_28, %c0_29] : memref<1x128xf32, #tpu.memory_space<vmem>>, vector<1x128xf32>
    %102 = vector.broadcast %101 : vector<1x128xf32> to vector<128x128xf32>
    %103 = arith.addf %100, %102 : vector<128x128xf32>
    %104 = arith.addf %1, %103 : vector<128x128xf32>
    %c0_30 = arith.constant 0 : index
    %c0_31 = arith.constant 0 : index
    %105 = vector.load %arg10[%c0_30, %c0_31] : memref<1x128xf32, #tpu.memory_space<vmem>>, vector<1x128xf32>
    %c0_32 = arith.constant 0 : index
    %c0_33 = arith.constant 0 : index
    %106 = vector.load %arg11[%c0_32, %c0_33] : memref<1x128xf32, #tpu.memory_space<vmem>>, vector<1x128xf32>
    %cst_34 = arith.constant dense<0.000000e+00> : vector<128xf32>
    %107 = vector.multi_reduction <add>, %104, %cst_34 [1] : vector<128x128xf32> to vector<128xf32>
    %108 = vector.shape_cast %107 : vector<128xf32> to vector<128x1xf32>
    %cst_35 = arith.constant 1.280000e+02 : f32
    %109 = vector.broadcast %cst_35 : f32 to vector<128x1xf32>
    %110 = arith.divf %108, %109 : vector<128x1xf32>
    %111 = vector.broadcast %110 : vector<128x1xf32> to vector<128x128xf32>
    %112 = arith.subf %104, %111 : vector<128x128xf32>
    %113 = arith.mulf %112, %112 : vector<128x128xf32>
    %cst_36 = arith.constant dense<0.000000e+00> : vector<128xf32>
    %114 = vector.multi_reduction <add>, %113, %cst_36 [1] : vector<128x128xf32> to vector<128xf32>
    %115 = vector.shape_cast %114 : vector<128xf32> to vector<128x1xf32>
    %cst_37 = arith.constant 1.280000e+02 : f32
    %116 = vector.broadcast %cst_37 : f32 to vector<128x1xf32>
    %117 = arith.divf %115, %116 : vector<128x1xf32>
    %118 = vector.broadcast %110 : vector<128x1xf32> to vector<128x128xf32>
    %119 = arith.subf %104, %118 : vector<128x128xf32>
    %cst_38 = arith.constant 9.99999997E-7 : f32
    %120 = vector.broadcast %cst_38 : f32 to vector<128x1xf32>
    %121 = arith.addf %117, %120 : vector<128x1xf32>
    %122 = math.rsqrt %121 : vector<128x1xf32>
    %123 = vector.broadcast %122 : vector<128x1xf32> to vector<128x128xf32>
    %124 = arith.mulf %119, %123 : vector<128x128xf32>
    %125 = vector.broadcast %105 : vector<1x128xf32> to vector<128x128xf32>
    %126 = arith.mulf %124, %125 : vector<128x128xf32>
    %127 = vector.broadcast %106 : vector<1x128xf32> to vector<128x128xf32>
    %128 = arith.addf %126, %127 : vector<128x128xf32>
    %c0_39 = arith.constant 0 : index
    %c0_40 = arith.constant 0 : index
    %129 = vector.load %arg12[%c0_39, %c0_40] : memref<128x256xf32, #tpu.memory_space<vmem>>, vector<128x256xf32>
    %cst_41 = arith.constant dense<0.000000e+00> : vector<128x256xf32>
    %130 = tpu.matmul %128, %129, %cst_41 {dimension_numbers = #tpu.dot_dimension_numbers<[1], [0], [0], [1], [0, 0, 1, 1], [], []>} : vector<128x128xf32>, vector<128x256xf32>, vector<128x256xf32> -> vector<128x256xf32>
    %c0_42 = arith.constant 0 : index
    %c0_43 = arith.constant 0 : index
    %131 = vector.load %arg13[%c0_42, %c0_43] : memref<1x256xf32, #tpu.memory_space<vmem>>, vector<1x256xf32>
    %132 = vector.broadcast %131 : vector<1x256xf32> to vector<128x256xf32>
    %133 = arith.addf %130, %132 : vector<128x256xf32>
    %cst_44 = arith.constant 0.000000e+00 : f32
    %134 = vector.broadcast %cst_44 : f32 to vector<128x256xf32>
    %135 = arith.maximumf %133, %134 : vector<128x256xf32>
    %c0_45 = arith.constant 0 : index
    %c0_46 = arith.constant 0 : index
    %136 = vector.load %arg14[%c0_45, %c0_46] : memref<256x128xf32, #tpu.memory_space<vmem>>, vector<256x128xf32>
    %cst_47 = arith.constant dense<0.000000e+00> : vector<128x128xf32>
    %137 = tpu.matmul %135, %136, %cst_47 {dimension_numbers = #tpu.dot_dimension_numbers<[1], [0], [0], [1], [0, 0, 1, 1], [], []>} : vector<128x256xf32>, vector<256x128xf32>, vector<128x128xf32> -> vector<128x128xf32>
    %c0_48 = arith.constant 0 : index
    %c0_49 = arith.constant 0 : index
    %138 = vector.load %arg15[%c0_48, %c0_49] : memref<1x128xf32, #tpu.memory_space<vmem>>, vector<1x128xf32>
    %139 = vector.broadcast %138 : vector<1x128xf32> to vector<128x128xf32>
    %140 = arith.addf %137, %139 : vector<128x128xf32>
    %141 = arith.addf %104, %140 : vector<128x128xf32>
    %c0_50 = arith.constant 0 : index
    %c0_51 = arith.constant 0 : index
    %c0_52 = arith.constant 0 : index
    %142 = vector.load %arg16[%c0_50, %c0_51, %c0_52] : memref<1x128x128xf32, #tpu.memory_space<vmem>>, vector<1x128x128xf32>
    %143 = vector.shape_cast %142 : vector<1x128x128xf32> to vector<128x128xf32>
    %144 = vector.shape_cast %141 : vector<128x128xf32> to vector<1x128x128xf32>
    tpu.vector_store %arg16[%c0_50, %c0_51, %c0_52], %144 {strides = array<i32>} : memref<1x128x128xf32, #tpu.memory_space<vmem>>, vector<1x128x128xf32>,
    return
  }
  func.func @transform_0(%arg0: i32) -> (i32, i32, i32) {
    %c0_i32 = arith.constant 0 : i32
    %c0_i32_0 = arith.constant 0 : i32
    %c0_i32_1 = arith.constant 0 : i32
    return %arg0, %c0_i32, %c0_i32_0 : i32, i32, i32
  }
  func.func @transform_1(%arg0: i32) -> (i32, i32) {
    %c0_i32 = arith.constant 0 : i32
    %c0_i32_0 = arith.constant 0 : i32
    %c0_i32_1 = arith.constant 0 : i32
    return %c0_i32, %c0_i32_0 : i32, i32
  }
  func.func @transform_2(%arg0: i32) -> (i32, i32) {
    %c0_i32 = arith.constant 0 : i32
    %c0_i32_0 = arith.constant 0 : i32
    %c0_i32_1 = arith.constant 0 : i32
    return %c0_i32, %c0_i32_0 : i32, i32
  }
  func.func @transform_3(%arg0: i32) -> (i32, i32) {
    %c0_i32 = arith.constant 0 : i32
    %c0_i32_0 = arith.constant 0 : i32
    %c0_i32_1 = arith.constant 0 : i32
    return %c0_i32, %c0_i32_0 : i32, i32
  }
  func.func @transform_4(%arg0: i32) -> (i32, i32) {
    %c0_i32 = arith.constant 0 : i32
    %c0_i32_0 = arith.constant 0 : i32
    %c0_i32_1 = arith.constant 0 : i32
    return %c0_i32, %c0_i32_0 : i32, i32
  }
  func.func @transform_5(%arg0: i32) -> (i32, i32, i32) {
    %c0_i32 = arith.constant 0 : i32
    %c0_i32_0 = arith.constant 0 : i32
    %c0_i32_1 = arith.constant 0 : i32
    %c0_i32_2 = arith.constant 0 : i32
    return %c0_i32, %c0_i32_0, %c0_i32_1 : i32, i32, i32
  }
  func.func @transform_6(%arg0: i32) -> (i32, i32) {
    %c0_i32 = arith.constant 0 : i32
    %c0_i32_0 = arith.constant 0 : i32
    %c0_i32_1 = arith.constant 0 : i32
    return %c0_i32, %c0_i32_0 : i32, i32
  }
  func.func @transform_7(%arg0: i32) -> (i32, i32) {
    %c0_i32 = arith.constant 0 : i32
    %c0_i32_0 = arith.constant 0 : i32
    %c0_i32_1 = arith.constant 0 : i32
    return %c0_i32, %c0_i32_0 : i32, i32
  }
  func.func @transform_8(%arg0: i32) -> (i32, i32) {
    %c0_i32 = arith.constant 0 : i32
    %c0_i32_0 = arith.constant 0 : i32
    %c0_i32_1 = arith.constant 0 : i32
    return %c0_i32, %c0_i32_0 : i32, i32
  }
  func.func @transform_9(%arg0: i32) -> (i32, i32) {
    %c0_i32 = arith.constant 0 : i32
    %c0_i32_0 = arith.constant 0 : i32
    %c0_i32_1 = arith.constant 0 : i32
    return %c0_i32, %c0_i32_0 : i32, i32
  }
  func.func @transform_10(%arg0: i32) -> (i32, i32) {
    %c0_i32 = arith.constant 0 : i32
    %c0_i32_0 = arith.constant 0 : i32
    %c0_i32_1 = arith.constant 0 : i32
    return %c0_i32, %c0_i32_0 : i32, i32
  }
  func.func @transform_11(%arg0: i32) -> (i32, i32) {
    %c0_i32 = arith.constant 0 : i32
    %c0_i32_0 = arith.constant 0 : i32
    %c0_i32_1 = arith.constant 0 : i32
    return %c0_i32, %c0_i32_0 : i32, i32
  }
  func.func @transform_12(%arg0: i32) -> (i32, i32) {
    %c0_i32 = arith.constant 0 : i32
    %c0_i32_0 = arith.constant 0 : i32
    %c0_i32_1 = arith.constant 0 : i32
    return %c0_i32, %c0_i32_0 : i32, i32
  }
  func.func @transform_13(%arg0: i32) -> (i32, i32) {
    %c0_i32 = arith.constant 0 : i32
    %c0_i32_0 = arith.constant 0 : i32
    %c0_i32_1 = arith.constant 0 : i32
    return %c0_i32, %c0_i32_0 : i32, i32
  }
  func.func @transform_14(%arg0: i32) -> (i32, i32) {
    %c0_i32 = arith.constant 0 : i32
    %c0_i32_0 = arith.constant 0 : i32
    %c0_i32_1 = arith.constant 0 : i32
    return %c0_i32, %c0_i32_0 : i32, i32
  }
  func.func @transform_15(%arg0: i32) -> (i32, i32, i32) {
    %c0_i32 = arith.constant 0 : i32
    %c0_i32_0 = arith.constant 0 : i32
    %c0_i32_1 = arith.constant 0 : i32
    return %arg0, %c0_i32, %c0_i32_0 : i32, i32, i32
  }
}

</mosaic_0001>

<bundles_post_ra>
// kernel: tpu_custom_call.1
= control target key start
LH: loop header
LB: loop body
LE: loop exit
PB: predicated region body
PF: predicated region fallthrough
CT: control target
= control target key end

     0   :  { %s14004_s0 = inlined_call_operand.hbm [shape: f32[2,128,128], index: 0, kind: input, shape index: {}]   ;;  %s14005_s1 = inlined_call_operand.vmem [shape: f32[1,128], index: 1, kind: input, shape index: {}]   ;;  %s14006_s2 = inlined_call_operand.vmem [shape: f32[1,128], index: 2, kind: input, shape index: {}]   ;;  %s14007_s3 = inlined_call_operand.vmem [shape: f32[384,128], index: 3, kind: input, shape index: {}]   ;;  %s14008_s4 = inlined_call_operand.vmem [shape: f32[384,1], index: 4, kind: input, shape index: {}]   ;;  %s14009_s5 = inlined_call_operand.hbm [shape: f32[8,16,128], index: 5, kind: input, shape index: {}]   ;;  %s14010_s6 = inlined_call_operand.hbm [shape: f32[128,128], index: 6, kind: input, shape index: {}]   ;;  %s14011_s7 = inlined_call_operand.hbm [shape: f32[128,128], index: 7, kind: input, shape index: {}]   ;;  %s14012_s8 = inlined_call_operand.vmem [shape: f32[1,128], index: 8, kind: input, shape index: {}]   ;;  %s14013_s9 = inlined_call_operand.vmem [shape: f32[1,128], index: 9, kind: input, shape index: {}]   ;;  %s14014_s10 = inlined_call_operand.vmem [shape: f32[1,128], index: 10, kind: input, shape index: {}]   ;;  %s14015_s11 = inlined_call_operand.hbm [shape: f32[128,256], index: 11, kind: input, shape index: {}]   ;;  %s14016_s12 = inlined_call_operand.vmem [shape: f32[1,256], index: 12, kind: input, shape index: {}]   ;;  %s14017_s13 = inlined_call_operand.hbm [shape: f32[256,128], index: 13, kind: input, shape index: {}]   ;;  %s14018_s14 = inlined_call_operand.vmem [shape: f32[1,128], index: 14, kind: input, shape index: {}]   ;;  %s14019_s15 = inlined_call_operand.hbm [shape: f32[2,128,128], index: 15, kind: output, shape index: {}]  }
   0x1   :  { %14244 = sst [smem:[#allocation217_spill]] %s14009_s5 }
   0x2   :  { %14245 = sst [smem:[#allocation218_spill]] %s14010_s6 }
   0x3   :  { %14246 = sst [smem:[#allocation219_spill]] %s14011_s7 }
   0x4   :  { %14247 = sst [smem:[#allocation220_spill]] %s14015_s11 }
   0x5   :  { %14248 = sst [smem:[#allocation221_spill]] %s14017_s13 }
   0x6   :  { %14249 = sst [smem:[#allocation222_spill]] %s14018_s14 }
   0x7   :  { %14250 = sst [smem:[#allocation223_spill]] %s14019_s15 }
   0x8   :  { %20 = vsyncpa [#allocation3], 0 }
   0x9   :  { %22 = vsyncpa [#allocation3 + $0x1], 0 }
   0xa   :  { %23 = vsyncpa [#allocation6], 0 }
   0xb   :  { %24 = vsyncpa [#allocation9], 0 }
   0xc   :  { %25 = vsyncpa [#allocation12], 0 }
   0xd   :  { %26 = vsyncpa [#allocation4], 0 }
   0xe   :  { %28 = vsyncpa [#allocation4 + $0x1], 0  ;;  %s9360_s18 = smov 0   ;;  %s9362_s19 = smov 0  }
   0xf   :  { %s9364_s20 = smov 0   ;;  %s9366_s21 = smov 0  }
  0x10 LB: > { %14251 = sst [smem:[#allocation19_spill]] %s9243_s20  ;;  %s9249_s22 = smov [#allocation5]   ;;  %s9247_s21 = sphi %s9366_s21, %s15181_s21   ;;  %s9243_s20 = sphi %s9364_s20, %s15183_s20   ;;  %s9239_s19 = sphi %s9362_s19, %s15185_s19   ;;  %s9235_s18 = sphi %s9360_s18, %s15184_s18  }
  0x11   : > { %s409_s23 = sshll.u32 %s9249_s22, 4  ;;  %s9381_s24 = sadd.s32 4294967295, %s9247_s21   ;;  %s410_s23 = int_to_ptr.vmem [resolvable:$true] %s409_s23 }
  0x12   : > { %p7358_p0 = scmp.ge.s32.totalorder %s9247_s21, 1  ;;  %p14024_p1 = scmp.eq.s32.totalorder %s9381_s24, 0 }
  0x13   : > { %p385_p2 = scmp.lt.s32.totalorder %s9247_s21, 3  ;;  %s9250_s26 = smov [#allocation8]  }
  0x14   : > { %s435_s27 = sshll.u32 %s9250_s26, 4  ;;  %s9251_s29 = smov [#allocation7]   ;;  %s9399_s27 = int_to_ptr.vmem [resolvable:$true] %s435_s27 }
  0x15   : > { %p9386_p3 = pnand %p7358_p0, %p385_p2  ;;  %s422_s30 = sshll.u32 %s9251_s29, 4  ;;  %s9401_s30 = int_to_ptr.vmem [resolvable:$true] %s422_s30 }
  0x16   : > { %s9024_s17 = scalar_lea.vmem %s410_s23, 2048  ;;  %p9032_p11 = scmp.lt.s32.totalorder %s410_s23, %s410_s23 }
  0x17   : > { %s14252_s25 = scalar_select %p9386_p3, 1, 0 }
  0x18   : > { %p8301_p5 = pneg %p9386_p3  ;;  %p9025_p8 = scmp.ne.s32.totalorder %s410_s23, %s9024_s17 }
  0x19   : > { %p9033_p12 = scmp.lt.s32.totalorder %s9024_s17, %s9024_s17 }
  0x1a   : > { %p9395_p6 = pnand %p8301_p5, %p14024_p1 }
  0x1b   : > { %p9034_p13 = por %p9033_p12, %p9032_p11 }
  0x1c   : > { %p9405_p7 = pneg %p9395_p6 }
  0x1e   : > { %p9027_p9 = pnand %p9025_p8, %p9405_p7 }
  0x20   : > { %p9028_p10 = pneg %p9027_p9 }
  0x22   : > { %p9035_p0 = pnand %p9034_p13, %p9028_p10 }
  0x24   : > { %9038 = shalt.err (!%p9035_p0)
}
  0x25   : > { %s14021_s22 = smov 128   ;;  %s14023_s26 = smov 8  }
  0x26   : > { %s14255_s5 = sld [smem:[#allocation217_spill]]  ;;  %s9050_s14 = scalar_lea.vmem %s9399_s27, 2048 }
  0x27   : > { %p9051_p2 = scmp.ne.s32.totalorder %s9399_s27, %s9050_s14  ;;  %p9058_p9 = scmp.lt.s32.totalorder %s9399_s27, %s9399_s27 }
  0x28   : > { %p9059_p10 = scmp.lt.s32.totalorder %s9050_s14, %s9050_s14 }
  0x29   : > { %p9053_p5 = pnand %p9051_p2, %p9405_p7 }
  0x2a   : > { %p9060_p11 = por %p9059_p10, %p9058_p9 }
  0x2b   : > { %p9054_p8 = pneg %p9053_p5 }
  0x2c   : > { %8304 = dma.hbm_to_vmem [thread:$0]  (!%p9395_p6), %s14255_s5, 2048, %s410_s23, [#allocation6], %s14021_s22, %s14021_s22, %s14023_s26  }
  0x2d   : > { %p9061_p12 = pnand %p9060_p11, %p9054_p8 }
  0x2f   : > { %9064 = shalt.err (!%p9061_p12)
}
  0x30   : > { %s14256_s7 = sld [smem:[#allocation219_spill]]  ;;  %s9076_s23 = scalar_lea.vmem %s9401_s30, 2048 }
  0x31   : > { %p9077_p13 = scmp.ne.s32.totalorder %s9401_s30, %s9076_s23  ;;  %p9084_p5 = scmp.lt.s32.totalorder %s9401_s30, %s9401_s30 }
  0x32   : > { %p9085_p8 = scmp.lt.s32.totalorder %s9076_s23, %s9076_s23 }
  0x33   : > { %p9079_p0 = pnand %p9077_p13, %p9405_p7 }
  0x34   : > { %p9086_p9 = por %p9085_p8, %p9084_p5 }
  0x35   : > { %p9080_p2 = pneg %p9079_p0 }
  0x36   : > { %8310 = dma.hbm_to_vmem [thread:$0]  (!%p9395_p6), %s14256_s7, 2048, %s9399_s27, [#allocation9], %s14021_s22, %s14021_s22, %s14023_s26  }
  0x37   : > { %p9087_p10 = pnand %p9086_p9, %p9080_p2 }
  0x39   : > { %9090 = shalt.err (!%p9087_p10)
}
  0x3a   : > { %s14257_s6 = sld [smem:[#allocation218_spill]]  ;;  %s9254_s27 = smov [#allocation10]  }
  0x3b   : > { %s457_s17 = sshll.u32 %s9254_s27, 4  ;;  %s458_s17 = int_to_ptr.vmem [resolvable:$true] %s457_s17 }
  0x3c   : > { %s9102_s15 = scalar_lea.vmem %s458_s17, 4096  ;;  %p9110_p0 = scmp.lt.s32.totalorder %s458_s17, %s458_s17 }
  0x3d   : > { %p9103_p11 = scmp.ne.s32.totalorder %s458_s17, %s9102_s15  ;;  %p9111_p2 = scmp.lt.s32.totalorder %s9102_s15, %s9102_s15 }
  0x3f   : > { %p9105_p12 = pnand %p9103_p11, %p9405_p7  ;;  %p9112_p5 = por %p9111_p2, %p9110_p0 }
  0x40   : > { %8307 = dma.hbm_to_vmem [thread:$0]  (!%p9395_p6), %s14257_s6, 2048, %s9401_s30, [#allocation6], %s14021_s22, %s14021_s22, %s14023_s26  }
  0x41   : > { %p9106_p13 = pneg %p9105_p12 }
  0x43   : > { %p9113_p8 = pnand %p9112_p5, %p9106_p13 }
  0x45   : > { %9116 = shalt.err (!%p9113_p8)
}
  0x46   : > { %s9255_s23 = smov 256   ;;  %s9256_s5 = smov 16  }
  0x47   : > { %s14258_s11 = sld [smem:[#allocation220_spill]]  ;;  %s9257_s29 = smov [#allocation11]  }
  0x48   : > { %s473_s27 = sshll.u32 %s9257_s29, 4  ;;  %s474_s27 = int_to_ptr.vmem [resolvable:$true] %s473_s27 }
  0x49   : > { %s9128_s22 = scalar_lea.vmem %s474_s27, 4096  ;;  %p9136_p12 = scmp.lt.s32.totalorder %s474_s27, %s474_s27 }
  0x4a   : > { %p9129_p9 = scmp.ne.s32.totalorder %s474_s27, %s9128_s22  ;;  %p9137_p13 = scmp.lt.s32.totalorder %s9128_s22, %s9128_s22 }
  0x4c   : > { %p9131_p10 = pnand %p9129_p9, %p9405_p7  ;;  %p9138_p0 = por %p9137_p13, %p9136_p12 }
  0x4d   : > { %8313 = dma.hbm_to_vmem [thread:$0]  (!%p9395_p6), %s14258_s11, 4096, %s458_s17, [#allocation9], %s9255_s23, %s9255_s23, %s9256_s5  }
  0x4e   : > { %p9132_p11 = pneg %p9131_p10 }
  0x50   : > { %p9139_p2 = pnand %p9138_p0, %p9132_p11 }
  0x52   : > { %9142 = shalt.err (!%p9139_p2)
}
  0x53   : > { %s14259_s15 = smov 128   ;;  %s14260_s13 = sld [smem:[#allocation221_spill]] }
  0x54   : > { %s7357_s28 = sadd.s32 4294967294, %s9247_s21   ;;  %s9468_s16 = sadd.s32 1, %s9247_s21  }
  0x55   : > { %14261 = sst [smem:[#allocation20_spill]] %s9468_s16  ;;  %s41_s22 = sadd.s32 1, %s9243_s20 }
  0x56   : > { %s38_s17 = ssub.s32 %s9247_s21, %s9468_s16  ;;  %p48_p7 = scmp.ne.s32.totalorder %s9243_s20, %s9239_s19 }
  0x57   : > { %p39_p5 = scmp.eq.s32.totalorder %s38_s17, 0  ;;  %p49_p8 = scmp.eq.s32.totalorder %s9247_s21, 0 }
  0x58   : > { %p54_p9 = scmp.ne.s32.totalorder %s9239_s19, %s9235_s18  ;;  %p372_p10 = scmp.eq.s32.totalorder %s9381_s24, 1 }
  0x59   : > { %8316 = dma.hbm_to_vmem [thread:$0]  (!%p9395_p6), %s14260_s13, 4096, %s474_s27, [#allocation12], %s14259_s15, %s14259_s15, %s14023_s26  }
  0x5a   : > { %s9480_s23 = scalar_select %p39_p5, %s9243_s20, %s41_s22  }
  0x5b   : > { %p50_p11 = por %p49_p8, %p48_p7  ;;  %p9484_p12 = por %p14024_p1, %p54_p9 }
  0x5c   : > { %14262 = sst [smem:[#allocation21_spill]] %s9480_s23  ;;  %p9488_p6 = por %p372_p10, %p48_p7 }
  0x5d   : > { %s14263_s30 = scalar_select %p9484_p12, 1, 0 }
  0x5e   : > { %s14264_s29 = scalar_select %p9488_p6, 1, 0 }
  0x5f   : > { %p378_p13 = scmp.eq.s32.totalorder %s7357_s28, 1  ;;  %p8330_p0 = scmp.lt.s32.totalorder %s9247_s21, 2 }
  0x60   : > { %s490_s27 = sand.u32 1, %s9243_s20   ;;  %s7515_s22 = sshll.u32 %s9247_s21, 11 }
  0x61   : > { %p9494_p2 = por %p378_p13, %p54_p9  ;;  %s7365_s5 = sshll.u32 %s490_s27, 7 }
  0x62   : > { %s9502_s6 = scalar_lea.hbm %s14004_s0, %s7515_s22  ;;  %s494_s7 = scalar_lea.vmem [#allocation2], %s7365_s5 }
  0x63   : > { %s14265_s14 = scalar_select %p9494_p2, 1, 0 }
  0x64   : > { %s501_s11 = sshll.u32 %s494_s7, 4  ;;  %p9504_p7 = pnand %p8330_p0, %p50_p11  ;;  %s9508_s11 = int_to_ptr.vmem [resolvable:$true] %s501_s11 }
  0x65   : > { %s9510_s13 = scalar_lea.sflag [#allocation3], %s490_s27  ;;  %s9143_s23 = scalar_lea.hbm %s9502_s6, 2048 }
  0x66   : > { %p9144_p5 = scmp.ne.s32.totalorder %s9502_s6, %s9143_s23  ;;  %p9145_p8 = pneg %p9504_p7 }
  0x67   : > { %s9148_s5 = scalar_lea.hbm %s14004_s0, 4096  ;;  %p9149_p11 = scmp.lt.s32.totalorder %s9502_s6, %s14004_s0 }
  0x68   : > { %p9146_p9 = pnand %p9145_p8, %p9144_p5  ;;  %p9150_p13 = scmp.lt.s32.totalorder %s9148_s5, %s9143_s23 }
  0x6a   : > { %p9147_p10 = pneg %p9146_p9  ;;  %p9151_p0 = por %p9150_p13, %p9149_p11 }
  0x6c   : > { %p9152_p4 = pnand %p9151_p0, %p9147_p10 }
  0x6e   : > { %9155 = shalt.err (!%p9152_p4)
}
  0x6f   : > { %s9156_s27 = scalar_lea.vmem %s9508_s11, 2048  ;;  %s9258_s20 = smov [#allocation2]  }
  0x70   : > { %p9157_p1 = scmp.ne.s32.totalorder %s9508_s11, %s9156_s27  ;;  %s9161_s16 = sshll.u32 %s9258_s20, 4  ;;  %s9162_s16 = int_to_ptr.vmem [resolvable:$false] %s9161_s16 }
  0x71   : > { %s9163_s26 = scalar_lea.vmem %s9162_s16, 4096  ;;  %p9164_p9 = scmp.lt.s32.totalorder %s9508_s11, %s9162_s16 }
  0x72   : > { %p9159_p2 = pnand %p9157_p1, %p9145_p8  ;;  %p9165_p6 = scmp.lt.s32.totalorder %s9163_s26, %s9156_s27 }
  0x74   : > { %p9160_p5 = pneg %p9159_p2  ;;  %p9166_p12 = por %p9165_p6, %p9164_p9 }
  0x76   : > { %p9167_p3 = pnand %p9166_p12, %p9160_p5 }
  0x78   : > { %9170 = shalt.err (!%p9167_p3)
}
  0x79   : > { %s14267_s23 = smov 8   ;;  %p14268_p1 = scmp.ne.s32.totalorder %s14252_s25, 0 }
  0x7a   : > { %8320 = dma.hbm_to_vmem [thread:$0]  (!%p9504_p7), %s9502_s6, 2048, %s9508_s11, %s9510_s13, %s14259_s15, %s14259_s15, %s14267_s23  }
  0x7b   : > { %513 = sbr.rel (%p14268_p1) target bundleno = 5857 (0x16e1), region = 80 }
  0x80   : > { %s9537_s20 = sand.u32 1, %s9239_s19   ;;  %p14269_p3 = scmp.ne.s32.totalorder %s14263_s30, 0 }
  0x81   : > { %s14031_s16 = sshll.u32 %s9537_s20, 7  ;;  %s516_s22 = scalar_lea.sflag [#allocation3], %s9537_s20 }
  0x82   : > { %s9543_s28 = scalar_lea.vmem [#allocation2], %s14031_s16 }
  0x83   : > { %9214 = dma.done.wait (%p14269_p3), %s516_s22, 2048  }
  0x84   : > { %9216 = vsyncadd (%p14269_p3), %s516_s22, 4294965248  ;;  %p14270_p4 = scmp.eq.s32.totalorder %s9381_s24, 0 }
  0x86   : > { %9218 = dma.done.wait (%p14270_p4), [#allocation6], 4096   ;;  %p14271_p12 = pmov %p14270_p4 }
  0x87   : > { %p14272_p6 = pmov %p14270_p4 }
  0x88   : > { %9220 = vsyncadd (%p14271_p12), [#allocation6], 4294963200 }
  0x89   : > { %9222 = dma.done.wait (%p14272_p6), [#allocation9], 6144   ;;  %p14273_p2 = pmov %p14270_p4 }
  0x8b   : > { %9224 = vsyncadd (%p14273_p2), [#allocation9], 4294961152  ;;  %p14274_p7 = pmov %p14273_p2 }
  0x8c   : > { %p14275_p8 = pmov %p14273_p2 }
  0x8d   : > { %9226 = dma.done.wait (%p14274_p7), [#allocation12], 4096  }
  0x8e   : > { %9228 = vsyncadd (%p14275_p8), [#allocation12], 4294963200  ;;  %v9259_v0 = vmov 0   ;;  %v601_v1 = vld [vmem:[%s9543_s28 + $0x78] sm:$0xff]  ;;  %v599_v2 = vld [vmem:[%s9543_s28 + $0x68] sm:$0xff]  ;;  %vm1738_vm0 = vcmask 130048  }
  0x8f   : > { %8399 = vset.pattern.permute.xlu1 %v9259_v0  ;;  %8398 = vset.pattern.permute.xlu0 %v9259_v0  ;;  %v600_v3 = vld [vmem:[%s9543_s28 + $0x70] sm:$0xff]  ;;  %v598_v4 = vld [vmem:[%s9543_s28 + $0x60] sm:$0xff]  ;;  %v9566_v5 = vld [vmem:[%s9543_s28 + $0x58] sm:$0xff]  ;;  %s14038_s6 = smov 257   ;;  %s14040_s11 = smov 265  }
  0x90   : > { %634 = vadd.xlane.f32.xlu0 %v601_v1  ;;  %630 = vadd.xlane.f32.xlu1 %v599_v2  ;;  %v9569_v6 = vld [vmem:[%s9543_s28 + $0x50] sm:$0xff]  ;;  %v9574_v7 = vld [vmem:[%s9543_s28 + $0x48] sm:$0xff]  ;;  %v9577_v8 = vld [vmem:[%s9543_s28 + $0x40] sm:$0xff]  ;;  %s9263_s13 = smov 273   ;;  %s14110_s25 = smov 281  }
  0x91   : > { %v9582_v9 = vld [vmem:[%s9543_s28 + $0x38] sm:$0xff]  ;;  %v9585_v10 = vld [vmem:[%s9543_s28 + $0x30] sm:$0xff]  ;;  %v9590_v11 = vld [vmem:[%s9543_s28 + $0x28] sm:$0xff]  ;;  %s14048_s15 = smov 289   ;;  %s14096_s30 = smov 297  }
  0x92   : > { %v9593_v12 = vld [vmem:[%s9543_s28 + $0x20] sm:$0xff]  ;;  %v9598_v13 = vld [vmem:[%s9543_s28 + $0x18] sm:$0xff]  ;;  %v9601_v14 = vld [vmem:[%s9543_s28 + $0x10] sm:$0xff]  ;;  %s14098_s5 = smov 305   ;;  %s14036_s7 = smov 313  }
  0x93   : > { %v9606_v15 = vld [vmem:[%s9543_s28 + $0x8] sm:$0xff]  ;;  %v9609_v16 = vld [vmem:[%s9543_s28] sm:$0xff]  ;;  %v892_v21 = vld [vmem:[%s14008_s4 + $0x98] sm:$0xff]  ;;  %s14032_s17 = smov 321   ;;  %s14080_s27 = smov 329  }
  0x94   : > { %632 = vadd.xlane.f32.xlu0 %v600_v3  ;;  %628 = vadd.xlane.f32.xlu1 %v598_v4  ;;  %v874_v17 = vld [vmem:[%s14008_s4 + $0x8] sm:$0xff]  ;;  %v873_v19 = vld [vmem:[%s14008_s4] sm:$0xff]  ;;  %v875_v22 = vld [vmem:[%s14008_s4 + $0x10] sm:$0xff]  ;;  %s14112_s26 = smov 337   ;;  %s9272_s23 = smov 345  }
  0x95   : > { %v890_v18 = vld [vmem:[%s14008_s4 + $0x88] sm:$0xff]  ;;  %v889_v20 = vld [vmem:[%s14008_s4 + $0x80] sm:$0xff]  ;;  %v891_v23 = vld [vmem:[%s14008_s4 + $0x90] sm:$0xff]  ;;  %s9273_s22 = smov 353   ;;  %s9274_s16 = smov 361  }
  0x96   : > { %v876_v24 = vld [vmem:[%s14008_s4 + $0x18] sm:$0xff]  ;;  %v877_v25 = vld [vmem:[%s14008_s4 + $0x20] sm:$0xff]  ;;  %v878_v26 = vld [vmem:[%s14008_s4 + $0x28] sm:$0xff]  ;;  %p15178_p11 = scmp.ne.s32.totalorder %s14264_s29, 0 }
  0x98   : > { %626 = vadd.xlane.f32.xlu0 %v9566_v5  ;;  %624 = vadd.xlane.f32.xlu1 %v9569_v6 }
  0x9c   : > { %622 = vadd.xlane.f32.xlu0 %v9574_v7  ;;  %620 = vadd.xlane.f32.xlu1 %v9577_v8 }
  0xa0   : > { %618 = vadd.xlane.f32.xlu0 %v9582_v9  ;;  %616 = vadd.xlane.f32.xlu1 %v9585_v10 }
  0xa4   : > { %614 = vadd.xlane.f32.xlu0 %v9590_v11  ;;  %612 = vadd.xlane.f32.xlu1 %v9593_v12 }
  0xa8   : > { %610 = vadd.xlane.f32.xlu0 %v9598_v13  ;;  %608 = vadd.xlane.f32.xlu1 %v9601_v14 }
  0xac   : > { %606 = vadd.xlane.f32.xlu0 %v9606_v15  ;;  %604 = vadd.xlane.f32.xlu1 %v9609_v16 }
  0xbd   : > { %928 = vperm.xlu1 %8399, %v874_v17  }
  0xc1   : > { %1008 = vperm.xlu1 %8399, %v890_v18  }
  0xc2   : > { %923 = vperm.xlu0 %8398, %v873_v19  }
  0xc5   : > { %1003 = vperm.xlu1 %8399, %v889_v20  }
  0xc6   : > { %1018 = vperm.xlu0 %8398, %v892_v21  }
  0xc9   : > { %933 = vperm.xlu1 %8399, %v875_v22  }
  0xca   : > { %1013 = vperm.xlu0 %8398, %v891_v23  }
  0xcd   : > { %938 = vperm.xlu1 %8399, %v876_v24  }
  0xce   : > { %943 = vperm.xlu0 %8398, %v877_v25  }
  0xd2   : > { %948 = vperm.xlu0 %8398, %v878_v26  }
 0x119   : > { %v635_v27 = vpop.xlane.xlu0 %634  ;;  %v631_v28 = vpop.xlane.xlu1 %630 }
 0x11a   : > { %v652_v29 = vmul.f32 0.0078125, %v635_v27  ;;  %v650_v30 = vmul.f32 0.0078125, %v631_v28 }
 0x11c   : > { %v9643_v31 = vsub.f32 %v601_v1, %v652_v29  ;;  %v9645_v32 = vsub.f32 %v599_v2, %v650_v30  ;;  %v894_v29 = vld [vmem:[%s14008_s4 + $0xa8] sm:$0xff]  ;;  %v883_v30 = vld [vmem:[%s14008_s4 + $0x50] sm:$0xff] }
 0x11d   : > { %v633_v33 = vpop.xlane.xlu0 %632  ;;  %v629_v34 = vpop.xlane.xlu1 %628 }
 0x11e   : > { %v651_v35 = vmul.f32 0.0078125, %v633_v33  ;;  %v684_v36 = vmul.f32 %v9643_v31, %v9643_v31  ;;  %v649_v37 = vmul.f32 0.0078125, %v629_v34  ;;  %v682_v40 = vmul.f32 %v9645_v32, %v9645_v32  ;;  %v893_v33 = vld [vmem:[%s14008_s4 + $0xa0] sm:$0xff]  ;;  %v884_v34 = vld [vmem:[%s14008_s4 + $0x58] sm:$0xff] }
 0x120   : > { %v9649_v38 = vsub.f32 %v600_v3, %v651_v35  ;;  %715 = vadd.xlane.f32.xlu0 %v684_v36  ;;  %v9651_v39 = vsub.f32 %v598_v4, %v649_v37  ;;  %v896_v35 = vld [vmem:[%s14008_s4 + $0xb8] sm:$0xff]  ;;  %v898_v36 = vld [vmem:[%s14008_s4 + $0xc8] sm:$0xff]  ;;  %v895_v37 = vld [vmem:[%s14008_s4 + $0xb0] sm:$0xff] }
 0x121   : > { %v627_v41 = vpop.xlane.xlu0 %626  ;;  %v625_v42 = vpop.xlane.xlu1 %624 }
 0x122   : > { %v648_v43 = vmul.f32 0.0078125, %v627_v41  ;;  %v683_v44 = vmul.f32 %v9649_v38, %v9649_v38  ;;  %v647_v45 = vmul.f32 0.0078125, %v625_v42  ;;  %v681_v48 = vmul.f32 %v9651_v39, %v9651_v39  ;;  %v881_v41 = vld [vmem:[%s14008_s4 + $0x40] sm:$0xff]  ;;  %v887_v42 = vld [vmem:[%s14008_s4 + $0x70] sm:$0xff] }
 0x124   : > { %v9658_v46 = vsub.f32 %v9566_v5, %v648_v43  ;;  %711 = vadd.xlane.f32.xlu0 %v682_v40  ;;  %713 = vadd.xlane.f32.xlu1 %v683_v44  ;;  %v9661_v47 = vsub.f32 %v9569_v6, %v647_v45  ;;  %v886_v40 = vld [vmem:[%s14008_s4 + $0x68] sm:$0xff]  ;;  %v888_v44 = vld [vmem:[%s14008_s4 + $0x78] sm:$0xff]  ;;  %v897_v45 = vld [vmem:[%s14008_s4 + $0xc0] sm:$0xff] }
 0x125   : > { %v623_v49 = vpop.xlane.xlu0 %622  ;;  %v621_v50 = vpop.xlane.xlu1 %620  ;;  %v882_v43 = vld [vmem:[%s14008_s4 + $0x48] sm:$0xff] }
 0x126   : > { %v646_v51 = vmul.f32 0.0078125, %v623_v49  ;;  %v680_v52 = vmul.f32 %v9658_v46, %v9658_v46  ;;  %v645_v53 = vmul.f32 0.0078125, %v621_v50  ;;  %v679_v56 = vmul.f32 %v9661_v47, %v9661_v47  ;;  %v899_v49 = vld [vmem:[%s14008_s4 + $0xd0] sm:$0xff]  ;;  %v885_v50 = vld [vmem:[%s14008_s4 + $0x60] sm:$0xff] }
 0x128   : > { %v9668_v54 = vsub.f32 %v9574_v7, %v646_v51  ;;  %707 = vadd.xlane.f32.xlu0 %v680_v52  ;;  %709 = vadd.xlane.f32.xlu1 %v681_v48  ;;  %v9671_v55 = vsub.f32 %v9577_v8, %v645_v53  ;;  %v900_v48 = vld [vmem:[%s14008_s4 + $0xd8] sm:$0xff]  ;;  %v825_v51 = vld [vmem:[%s14007_s3] sm:$0xff] }
 0x129   : > { %v619_v57 = vpop.xlane.xlu0 %618  ;;  %v617_v58 = vpop.xlane.xlu1 %616  ;;  %7869 = vmatprep.mubr.f32.mxu0 %v825_v51 }
 0x12a   : > { %v644_v59 = vmul.f32 0.0078125, %v619_v57  ;;  %v678_v60 = vmul.f32 %v9668_v54, %v9668_v54  ;;  %v643_v61 = vmul.f32 0.0078125, %v617_v58  ;;  %v677_v0 = vmul.f32 %v9671_v55, %v9671_v55 }
 0x12c   : > { %v9678_v62 = vsub.f32 %v9582_v9, %v644_v59  ;;  %703 = vadd.xlane.f32.xlu0 %v678_v60  ;;  %705 = vadd.xlane.f32.xlu1 %v679_v56  ;;  %v9681_v63 = vsub.f32 %v9585_v10, %v643_v61 }
 0x12d   : > { %v615_v1 = vpop.xlane.xlu0 %614  ;;  %v613_v2 = vpop.xlane.xlu1 %612 }
 0x12e   : > { %v642_v3 = vmul.f32 0.0078125, %v615_v1  ;;  %v676_v4 = vmul.f32 %v9678_v62, %v9678_v62  ;;  %v641_v5 = vmul.f32 0.0078125, %v613_v2  ;;  %v675_v8 = vmul.f32 %v9681_v63, %v9681_v63 }
 0x130   : > { %v9688_v6 = vsub.f32 %v9590_v11, %v642_v3  ;;  %699 = vadd.xlane.f32.xlu0 %v676_v4  ;;  %701 = vadd.xlane.f32.xlu1 %v677_v0  ;;  %v9691_v7 = vsub.f32 %v9593_v12, %v641_v5 }
 0x131   : > { %v611_v9 = vpop.xlane.xlu0 %610  ;;  %v609_v10 = vpop.xlane.xlu1 %608 }
 0x132   : > { %v640_v17 = vmul.f32 0.0078125, %v611_v9  ;;  %v674_v18 = vmul.f32 %v9688_v6, %v9688_v6  ;;  %v639_v19 = vmul.f32 0.0078125, %v609_v10  ;;  %v673_v12 = vmul.f32 %v9691_v7, %v9691_v7 }
 0x134   : > { %v9698_v20 = vsub.f32 %v9598_v13, %v640_v17  ;;  %695 = vadd.xlane.f32.xlu0 %v674_v18  ;;  %697 = vadd.xlane.f32.xlu1 %v675_v8  ;;  %v9701_v11 = vsub.f32 %v9601_v14, %v639_v19 }
 0x135   : > { %v607_v21 = vpop.xlane.xlu0 %606  ;;  %v605_v22 = vpop.xlane.xlu1 %604 }
 0x136   : > { %v638_v23 = vmul.f32 0.0078125, %v607_v21  ;;  %v672_v24 = vmul.f32 %v9698_v20, %v9698_v20  ;;  %v637_v25 = vmul.f32 0.0078125, %v605_v22  ;;  %v671_v14 = vmul.f32 %v9701_v11, %v9701_v11 }
 0x138   : > { %v9708_v26 = vsub.f32 %v9606_v15, %v638_v23  ;;  %691 = vadd.xlane.f32.xlu0 %v672_v24  ;;  %693 = vadd.xlane.f32.xlu1 %v673_v12  ;;  %v9711_v13 = vsub.f32 %v9609_v16, %v637_v25  ;;  %v879_v15 = vld [vmem:[%s14008_s4 + $0x30] sm:$0xff]  ;;  %v880_v16 = vld [vmem:[%s14008_s4 + $0x38] sm:$0xff] }
 0x139   : > { %v9778_v53 = vpop.permute.xlu1 %928 }
 0x13a   : > { %v670_v27 = vmul.f32 %v9708_v26, %v9708_v26  ;;  %v669_v28 = vmul.f32 %v9711_v13, %v9711_v13 }
 0x13c   : > { %687 = vadd.xlane.f32.xlu0 %v670_v27  ;;  %689 = vadd.xlane.f32.xlu1 %v671_v14 }
 0x13d   : > { %v9776_v52 = vpop.permute.xlu0 %923  ;;  %v9782_v57 = vpop.permute.xlu1 %1008 }
 0x140   : > { %685 = vadd.xlane.f32.xlu1 %v669_v28 }
 0x141   : > { %v9780_v56 = vpop.permute.xlu0 %1018  ;;  %v9786_v59 = vpop.permute.xlu1 %1003 }
 0x145   : > { %v9784_v58 = vpop.permute.xlu0 %1013  ;;  %v9790_v61 = vpop.permute.xlu1 %933 }
 0x149   : > { %v9788_v60 = vpop.permute.xlu0 %943  ;;  %v9794_v1 = vpop.permute.xlu1 %938 }
 0x14d   : > { %v9792_v0 = vpop.permute.xlu0 %948 }
 0x151   : > { %953 = vperm.xlu1 %8399, %v879_v15  }
 0x152   : > { %958 = vperm.xlu0 %8398, %v880_v16  }
 0x155   : > { %1028 = vperm.xlu1 %8399, %v894_v29  }
 0x156   : > { %973 = vperm.xlu0 %8398, %v883_v30  }
 0x159   : > { %1023 = vperm.xlu1 %8399, %v893_v33  }
 0x15a   : > { %978 = vperm.xlu0 %8398, %v884_v34  }
 0x15d   : > { %1038 = vperm.xlu1 %8399, %v896_v35   ;;  %v9799_v35 = vld [vmem:[%s14005_s1] ss:$0 sm:$0xff] }
 0x15e   : > { %1048 = vperm.xlu0 %8398, %v898_v36  }
 0x161   : > { %1033 = vperm.xlu1 %8399, %v895_v37   ;;  %v9805_v37 = vld [vmem:[%s14006_s2] ss:$0 sm:$0xff] }
 0x162   : > { %988 = vperm.xlu0 %8398, %v886_v40  }
 0x165   : > { %963 = vperm.xlu1 %8399, %v881_v41  }
 0x166   : > { %993 = vperm.xlu0 %8398, %v887_v42  }
 0x169   : > { %968 = vperm.xlu1 %8399, %v882_v43  }
 0x16a   : > { %998 = vperm.xlu0 %8398, %v888_v44  }
 0x16d   : > { %1043 = vperm.xlu1 %8399, %v897_v45  }
 0x171   : > { %1058 = vperm.xlu1 %8399, %v900_v48  }
 0x175   : > { %1053 = vperm.xlu1 %8399, %v899_v49  }
 0x179   : > { %983 = vperm.xlu1 %8399, %v885_v50  }
 0x1a9   : > { %v716_v2 = vpop.xlane.xlu0 %715 }
 0x1aa   : > { %v732_v3 = vmul.f32 0.0078125, %v716_v2 }
 0x1ac   : > { %v748_v4 = vadd.f32 1e-06, %v732_v3 }
 0x1ad   : > { %v712_v5 = vpop.xlane.xlu0 %711  ;;  %v714_v8 = vpop.xlane.xlu1 %713 }
 0x1ae   : > { %8400 = vrsqrt.f32 %v748_v4  ;;  %v730_v9 = vmul.f32 0.0078125, %v712_v5  ;;  %v731_v10 = vmul.f32 0.0078125, %v714_v8 }
 0x1b0   : > { %v746_v17 = vadd.f32 1e-06, %v730_v9  ;;  %v747_v18 = vadd.f32 1e-06, %v731_v10 }
 0x1b1   : > { %v708_v19 = vpop.xlane.xlu0 %707  ;;  %v710_v12 = vpop.xlane.xlu1 %709 }
 0x1b2   : > { %8402 = vrsqrt.f32 %v746_v17  ;;  %v728_v21 = vmul.f32 0.0078125, %v708_v19  ;;  %v729_v22 = vmul.f32 0.0078125, %v710_v12 }
 0x1b3   : > { %8404 = vrsqrt.f32 %v747_v18 }
 0x1b4   : > { %v744_v23 = vadd.f32 1e-06, %v728_v21  ;;  %v745_v24 = vadd.f32 1e-06, %v729_v22 }
 0x1b5   : > { %v704_v25 = vpop.xlane.xlu0 %703  ;;  %v706_v14 = vpop.xlane.xlu1 %705 }
 0x1b6   : > { %8406 = vrsqrt.f32 %v744_v23  ;;  %v727_v27 = vmul.f32 0.0078125, %v706_v14  ;;  %v726_v28 = vmul.f32 0.0078125, %v704_v25 }
 0x1b7   : > { %8408 = vrsqrt.f32 %v745_v24 }
 0x1b8   : > { %v743_v15 = vadd.f32 1e-06, %v727_v27  ;;  %v742_v30 = vadd.f32 1e-06, %v726_v28 }
 0x1b9   : > { %v702_v16 = vpop.xlane.xlu1 %701  ;;  %v700_v33 = vpop.xlane.xlu0 %699 }
 0x1ba   : > { %8410 = vrsqrt.f32 %v743_v15  ;;  %v725_v34 = vmul.f32 0.0078125, %v702_v16  ;;  %v724_v40 = vmul.f32 0.0078125, %v700_v33 }
 0x1bb   : > { %v8401_v29 = vpop.eup %8400  ;;  %8412 = vrsqrt.f32 %v742_v30 }
 0x1bc   : > { %v780_v36 = vmul.f32 %v8401_v29, %v9643_v31  ;;  %v741_v43 = vadd.f32 1e-06, %v725_v34  ;;  %v740_v31 = vadd.f32 1e-06, %v724_v40 }
 0x1bd   : > { %v698_v45 = vpop.xlane.xlu1 %697  ;;  %v696_v2 = vpop.xlane.xlu0 %695 }
 0x1be   : > { %v802_v41 = vmul.f32 %v9799_v35, %v780_v36  ;;  %8414 = vrsqrt.f32 %v741_v43  ;;  %v723_v3 = vmul.f32 0.0078125, %v698_v45 }
 0x1bf   : > { %v8403_v42 = vpop.eup %8402  ;;  %8416 = vrsqrt.f32 %v740_v31 }
 0x1c0   : > { %v8405_v44 = vpop.eup %8404  ;;  %v824_v48 = vadd.f32 %v9805_v37, %v802_v41  ;;  %v778_v49 = vmul.f32 %v8403_v42, %v9645_v32  ;;  %v722_v32 = vmul.f32 0.0078125, %v696_v2  ;;  %v739_v17 = vadd.f32 1e-06, %v723_v3 }
 0x1c1   : > { %v779_v50 = vmul.f32 %v8405_v44, %v9649_v38  ;;  %v694_v38 = vpop.xlane.xlu1 %693  ;;  %v692_v24 = vpop.xlane.xlu0 %691 }
 0x1c2   : > { %7837 = vmatprep.subr.mxu0 %v824_v48  ;;  %v800_v5 = vmul.f32 %v9799_v35, %v778_v49  ;;  %v738_v22 = vadd.f32 1e-06, %v722_v32  ;;  %v721_v23 = vmul.f32 0.0078125, %v694_v38  ;;  %8418 = vrsqrt.f32 %v739_v17 }
 0x1c3   : > { %v8407_v51 = vpop.eup %8406  ;;  %7838 = vmatpush3.xpose.msra.mxu0 %v824_v48  ;;  %v801_v4 = vmul.f32 %v9799_v35, %v779_v50  ;;  %v720_v28 = vmul.f32 0.0078125, %v692_v24 }
 0x1c4   : > { %v8409_v8 = vpop.eup %8408  ;;  %v822_v18 = vadd.f32 %v9805_v37, %v800_v5  ;;  %v776_v12 = vmul.f32 %v8407_v51, %v9658_v46  ;;  %8420 = vrsqrt.f32 %v738_v22  ;;  %v737_v15 = vadd.f32 1e-06, %v721_v23 }
 0x1c5   : > { %v823_v9 = vadd.f32 %v9805_v37, %v801_v4  ;;  %v777_v10 = vmul.f32 %v8409_v8, %v9651_v39  ;;  %v690_v46 = vpop.xlane.xlu1 %689  ;;  %v736_v34 = vadd.f32 1e-06, %v720_v28 }
 0x1c6   : > { %v798_v25 = vmul.f32 %v9799_v35, %v776_v12  ;;  %v719_v36 = vmul.f32 0.0078125, %v690_v46  ;;  %8422 = vrsqrt.f32 %v737_v15 }
 0x1c7   : > { %7839 = vmatprep.subr.mxu0 %v823_v9  ;;  %v799_v19 = vmul.f32 %v9799_v35, %v777_v10  ;;  %v8411_v21 = vpop.eup %8410  ;;  %8424 = vrsqrt.f32 %v736_v34  ;;  %v833_v34 = vld [vmem:[%s14007_s3 + $0x40] sm:$0xff] }
 0x1c8   : > { %7840 = vmatpush3.xpose.msra.mxu0 %v823_v9  ;;  %v775_v14 = vmul.f32 %v8411_v21, %v9661_v47  ;;  %v8413_v27 = vpop.eup %8412  ;;  %v820_v16 = vadd.f32 %v9805_v37, %v798_v25  ;;  %v688_v47 = vpop.xlane.xlu0 %687  ;;  %v735_v45 = vadd.f32 1e-06, %v719_v36  ;;  %v834_v36 = vld [vmem:[%s14007_s3 + $0x48] sm:$0xff] }
 0x1c9   : > { %7841 = vmatprep.subr.mxu0 %v822_v18  ;;  %v821_v39 = vadd.f32 %v9805_v37, %v799_v19  ;;  %v774_v30 = vmul.f32 %v8413_v27, %v9668_v54  ;;  %v718_v44 = vmul.f32 0.0078125, %v688_v47  ;;  %v686_v54 = vpop.xlane.xlu1 %685  ;;  %v836_v47 = vld [vmem:[%s14007_s3 + $0x58] sm:$0xff] }
 0x1ca   : > { %v797_v29 = vmul.f32 %v9799_v35, %v775_v14  ;;  %v717_v2 = vmul.f32 0.0078125, %v686_v54  ;;  %8426 = vrsqrt.f32 %v735_v45  ;;  %v841_v45 = vld [vmem:[%s14007_s3 + $0x80] sm:$0xff]  ;;  %v842_v54 = vld [vmem:[%s14007_s3 + $0x88] sm:$0xff] }
 0x1cb   : > { %v8415_v33 = vpop.eup %8414  ;;  %v796_v42 = vmul.f32 %v9799_v35, %v774_v30  ;;  %v734_v51 = vadd.f32 1e-06, %v718_v44  ;;  %v831_v30 = vld [vmem:[%s14007_s3 + $0x30] sm:$0xff]  ;;  %v840_v44 = vld [vmem:[%s14007_s3 + $0x78] sm:$0xff] }
 0x1cc   : > { %7842 = vmatpush3.xpose.msra.mxu0 %v822_v18  ;;  %v8417_v40 = vpop.eup %8416  ;;  %v819_v41 = vadd.f32 %v9805_v37, %v797_v29  ;;  %v773_v43 = vmul.f32 %v8415_v33, %v9671_v55  ;;  %v733_v8 = vadd.f32 1e-06, %v717_v2  ;;  %v830_v29 = vld [vmem:[%s14007_s3 + $0x28] sm:$0xff]  ;;  %v832_v33 = vld [vmem:[%s14007_s3 + $0x38] sm:$0xff] }
 0x1cd   : > { %7843 = vmatprep.subr.mxu0 %v821_v39  ;;  %v818_v48 = vadd.f32 %v9805_v37, %v796_v42  ;;  %v772_v50 = vmul.f32 %v8417_v40, %v9678_v62  ;;  %8428 = vrsqrt.f32 %v734_v51  ;;  %v835_v40 = vld [vmem:[%s14007_s3 + $0x50] sm:$0xff]  ;;  %v838_v42 = vld [vmem:[%s14007_s3 + $0x68] sm:$0xff]  ;;  %v848_v2 = vld [vmem:[%s14007_s3 + $0xb8] sm:$0xff] }
 0x1ce   : > { %v795_v49 = vmul.f32 %v9799_v35, %v773_v43  ;;  %8430 = vrsqrt.f32 %v733_v8  ;;  %v839_v43 = vld [vmem:[%s14007_s3 + $0x70] sm:$0xff]  ;;  %v1723_v8 = vld [vmem:[#allocation5 + $0x8] sm:$0xff] }
 0x1cf   : > { %v8419_v31 = vpop.eup %8418  ;;  %v794_v4 = vmul.f32 %v9799_v35, %v772_v50  ;;  %v845_v50 = vld [vmem:[%s14007_s3 + $0xa0] sm:$0xff]  ;;  %v847_v51 = vld [vmem:[%s14007_s3 + $0xb0] sm:$0xff]  ;;  %1815 = vmatprep.subr.mxu1 %v1723_v8 }
 0x1d0   : > { %7844 = vmatpush3.xpose.msra.mxu0 %v821_v39  ;;  %v817_v55 = vadd.f32 %v9805_v37, %v795_v49  ;;  %v771_v5 = vmul.f32 %v8419_v31, %v9681_v63  ;;  %v844_v49 = vld [vmem:[%s14007_s3 + $0x98] sm:$0xff]  ;;  %v846_v31 = vld [vmem:[%s14007_s3 + $0xa8] sm:$0xff]  ;;  %v863_v8 = vld [vmem:[%s14007_s3 + $0x130] sm:$0xff] }
 0x1d1   : > { %7845 = vmatprep.subr.mxu0 %v820_v16  ;;  %v8421_v3 = vpop.eup %8420  ;;  %v816_v9 = vadd.f32 %v9805_v37, %v794_v4  ;;  %v851_v4 = vld [vmem:[%s14007_s3 + $0xd0] sm:$0xff] }
 0x1d2   : > { %v793_v62 = vmul.f32 %v9799_v35, %v771_v5  ;;  %v770_v10 = vmul.f32 %v8421_v3, %v9688_v6  ;;  %v849_v3 = vld [vmem:[%s14007_s3 + $0xc0] sm:$0xff]  ;;  %v852_v5 = vld [vmem:[%s14007_s3 + $0xd8] sm:$0xff] }
 0x1d3   : > { %v8423_v32 = vpop.eup %8422 }
 0x1d4   : > { %7846 = vmatpush3.xpose.msra.mxu0 %v820_v16  ;;  %v8425_v17 = vpop.eup %8424  ;;  %v815_v38 = vadd.f32 %v9805_v37, %v793_v62  ;;  %v792_v18 = vmul.f32 %v9799_v35, %v770_v10  ;;  %v769_v63 = vmul.f32 %v8423_v32, %v9691_v7  ;;  %v9935_v62 = vpop.permute.xlu0 %958 }
 0x1d5   : > { %7847 = vmatprep.subr.mxu0 %v819_v41  ;;  %v768_v21 = vmul.f32 %v8425_v17, %v9698_v20  ;;  %v14034_v17 = vmov 0.0  }
 0x1d6   : > { %v814_v19 = vadd.f32 %v9805_v37, %v792_v18  ;;  %v791_v12 = vmul.f32 %v9799_v35, %v769_v63  ;;  %1851 = vmatprep.mubr.f32.mxu1 %v14034_v17 }
 0x1d7   : > { %v8427_v6 = vpop.eup %8426  ;;  %v790_v24 = vmul.f32 %v9799_v35, %v768_v21 }
 0x1d8   : > { %7848 = vmatpush3.xpose.msra.mxu0 %v819_v41  ;;  %v813_v23 = vadd.f32 %v9805_v37, %v791_v12  ;;  %v767_v39 = vmul.f32 %v8427_v6, %v9701_v11  ;;  %v837_v41 = vld [vmem:[%s14007_s3 + $0x60] sm:$0xff]  ;;  %v9937_v10 = vpop.permute.xlu0 %973 }
 0x1d9   : > { %7849 = vmatprep.subr.mxu0 %v818_v48  ;;  %v812_v7 = vadd.f32 %v9805_v37, %v790_v24 }
 0x1da   : > { %v8429_v22 = vpop.eup %8428  ;;  %v789_v25 = vmul.f32 %v9799_v35, %v767_v39 }
 0x1db   : > { %v766_v14 = vmul.f32 %v8429_v22, %v9708_v26  ;;  %v8431_v27 = vpop.eup %8430  ;;  %v826_v26 = vld [vmem:[%s14007_s3 + $0x8] sm:$0xff] }
 0x1dc   : > { %7850 = vmatpush3.xpose.msra.mxu0 %v818_v48  ;;  %v811_v20 = vadd.f32 %v9805_v37, %v789_v25  ;;  %v765_v15 = vmul.f32 %v8431_v27, %v9711_v13  ;;  %v827_v13 = vld [vmem:[%s14007_s3 + $0x10] sm:$0xff]  ;;  %v9941_v63 = vpop.permute.xlu0 %978  ;;  %v9964_v27 = vpop.permute.xlu1 %953 }
 0x1dd   : > { %7851 = vmatprep.subr.mxu0 %v817_v55  ;;  %v788_v28 = vmul.f32 %v9799_v35, %v766_v14  ;;  %v843_v48 = vld [vmem:[%s14007_s3 + $0x90] sm:$0xff] }
 0x1de   : > { %v787_v46 = vmul.f32 %v9799_v35, %v765_v15  ;;  %v828_v35 = vld [vmem:[%s14007_s3 + $0x18] sm:$0xff] }
 0x1df   : > { %v810_v11 = vadd.f32 %v9805_v37, %v788_v28 }
 0x1e0   : > { %7852 = vmatpush3.xpose.msra.mxu0 %v817_v55  ;;  %v809_v16 = vadd.f32 %v9805_v37, %v787_v46  ;;  %v829_v37 = vld [vmem:[%s14007_s3 + $0x20] sm:$0xff]  ;;  %v850_v55 = vld [vmem:[%s14007_s3 + $0xc8] sm:$0xff]  ;;  %v9977_v46 = vpop.permute.xlu1 %1028 }
 0x1e1   : > { %7853 = vmatprep.subr.mxu0 %v816_v9 }
 0x1e4   : > { %7854 = vmatpush3.xpose.msra.mxu0 %v816_v9  ;;  %v1729_v9 = vld [vmem:[#allocation5 + $0x38] sm:$0xff] }
 0x1e5   : > { %7855 = vmatprep.subr.mxu0 %v815_v38 }
 0x1e8   : > { %7856 = vmatpush3.xpose.msra.mxu0 %v815_v38 }
 0x1e9   : > { %7857 = vmatprep.subr.mxu0 %v814_v19 }
 0x1ec   : > { %7858 = vmatpush3.xpose.msra.mxu0 %v814_v19 }
 0x1ed   : > { %7859 = vmatprep.subr.mxu0 %v813_v23 }
 0x1f0   : > { %7860 = vmatpush3.xpose.msra.mxu0 %v813_v23  ;;  %v9947_v23 = vpop.permute.xlu0 %1048 }
 0x1f1   : > { %7861 = vmatprep.subr.mxu0 %v812_v7 }
 0x1f4   : > { %7862 = vmatpush3.xpose.msra.mxu0 %v812_v7  ;;  %v9956_v25 = vpop.permute.xlu0 %988 }
 0x1f5   : > { %7863 = vmatprep.subr.mxu0 %v811_v20 }
 0x1f8   : > { %7864 = vmatpush3.xpose.msra.mxu0 %v811_v20  ;;  %v9966_v20 = vpop.permute.xlu0 %993 }
 0x1f9   : > { %7865 = vmatprep.subr.mxu0 %v810_v11 }
 0x1fc   : > { %7866 = vmatpush3.xpose.msra.mxu0 %v810_v11  ;;  %v853_v11 = vld [vmem:[%s14007_s3 + $0xe0] sm:$0xff] }
 0x1fd   : > { %7867 = vmatprep.subr.mxu0 %v809_v16 }
 0x200   : > { %7868 = vmatpush3.xpose.msra.mxu0 %v809_v16  ;;  %v999_v16 = vpop.permute.xlu0 %998 }
 0x201   : > { %2442 = vmatprep.subr.mxu0 %v1729_v9 }
 0x203   : > { %7870 = vmatmul.mubr.f32.vlgmr.msra.gmra.mxu0 %v826_v26 }
 0x204   : > { %7872 = vmatprep.mubr.f32.mxu0 %v827_v13 }
 0x207   : > { %7873 = vmatmul.mubr.f32.gmra.mxu0 %v828_v35  ;;  %v854_v35 = vld [vmem:[%s14007_s3 + $0xe8] sm:$0xff] }
 0x208   : > { %7875 = vmatprep.mubr.f32.mxu0 %v829_v37 }
 0x20b   : > { %7876 = vmatmul.mubr.f32.gmra.mxu0 %v830_v29  ;;  %v855_v29 = vld [vmem:[%s14007_s3 + $0xf0] sm:$0xff] }
 0x20c   : > { %7878 = vmatprep.mubr.f32.mxu0 %v831_v30 }
 0x20f   : > { %7879 = vmatmul.mubr.f32.gmra.mxu0 %v832_v33 }
 0x210   : > { %7881 = vmatprep.mubr.f32.mxu0 %v833_v34  ;;  %v1722_v34 = vld [vmem:[#allocation5] sm:$0xff] }
 0x213   : > { %7882 = vmatmul.mubr.f32.gmra.mxu0 %v834_v36  ;;  %v856_v36 = vld [vmem:[%s14007_s3 + $0xf8] sm:$0xff] }
 0x214   : > { %7884 = vmatprep.mubr.f32.mxu0 %v835_v40  ;;  %v9993_v40 = vpop.permute.xlu1 %1023 }
 0x217   : > { %7885 = vmatmul.mubr.f32.gmra.mxu0 %v836_v47 }
 0x218   : > { %7887 = vmatprep.mubr.f32.mxu0 %v837_v41  ;;  %v857_v41 = vld [vmem:[%s14007_s3 + $0x100] sm:$0xff] }
 0x21b   : > { %7888 = vmatmul.mubr.f32.gmra.mxu0 %v838_v42 }
 0x21c   : > { %7890 = vmatprep.mubr.f32.mxu0 %v839_v43  ;;  %v1725_v43 = vld [vmem:[#allocation5 + $0x18] sm:$0xff] }
 0x21f   : > { %7891 = vmatmul.mubr.f32.gmra.mxu0 %v840_v44 }
 0x220   : > { %7893 = vmatprep.mubr.f32.mxu0 %v841_v45 }
 0x223   : > { %7894 = vmatmul.mubr.f32.gmra.mxu0 %v842_v54  ;;  %v859_v54 = vld [vmem:[%s14007_s3 + $0x110] sm:$0xff] }
 0x224   : > { %7896 = vmatprep.mubr.f32.mxu0 %v843_v48 }
 0x227   : > { %7897 = vmatmul.mubr.f32.gmra.mxu0 %v844_v49  ;;  %v860_v49 = vld [vmem:[%s14007_s3 + $0x118] sm:$0xff] }
 0x228   : > { %7899 = vmatprep.mubr.f32.mxu0 %v845_v50 }
 0x22b   : > { %7900 = vmatmul.mubr.f32.gmra.mxu0 %v846_v31  ;;  %v861_v31 = vld [vmem:[%s14007_s3 + $0x120] sm:$0xff] }
 0x22c   : > { %7902 = vmatprep.mubr.f32.mxu0 %v847_v51 }
 0x22f   : > { %7903 = vmatmul.mubr.f32.gmra.mxu0 %v848_v2 }
 0x230   : > { %7905 = vmatprep.mubr.f32.mxu0 %v849_v3  ;;  %v1728_v3 = vld [vmem:[#allocation5 + $0x30] sm:$0xff] }
 0x233   : > { %7906 = vmatmul.mubr.f32.gmra.mxu0 %v850_v55  ;;  %v862_v55 = vld [vmem:[%s14007_s3 + $0x128] sm:$0xff] }
 0x234   : > { %7908 = vmatprep.mubr.f32.mxu0 %v851_v4 }
 0x237   : > { %7909 = vmatmul.mubr.f32.gmra.mxu0 %v852_v5 }
 0x238   : > { %7911 = vmatprep.mubr.f32.mxu0 %v853_v11  ;;  %v871_v11 = vld [vmem:[%s14007_s3 + $0x170] sm:$0xff] }
 0x23b   : > { %7912 = vmatmul.mubr.f32.gmra.mxu0 %v854_v35 }
 0x23c   : > { %7914 = vmatprep.mubr.f32.mxu0 %v855_v29 }
 0x23f   : > { %7915 = vmatmul.mubr.f32.gmra.mxu0 %v856_v36  ;;  %v1724_v36 = vld [vmem:[#allocation5 + $0x10] sm:$0xff] }
 0x240   : > { %7917 = vmatprep.mubr.f32.mxu0 %v857_v41 }
 0x2c3   : > { %v7871_v32 = vpop.f32.mrf.mxu0 }
 0x2c4   : > { %v1233_v21 = vadd.f32 %v7871_v32, %v9778_v53  ;;  %v864_v32 = vld [vmem:[%s14007_s3 + $0x138] sm:$0xff] }
 0x2c5   : > { %v1227_v38 = vpop.f32.mrf.mxu0 }
 0x2c6   : > { %v1228_v18 = vadd.f32 %v1227_v38, %v9776_v52  ;;  %v865_v38 = vld [vmem:[%s14007_s3 + $0x140] sm:$0xff] }
 0x2c7   : > { %v7874_v19 = vpop.f32.mrf.mxu0 }
 0x2c8   : > { %1466 = vxpose.xlu1.b32.start [1/2] (short) %v1228_v18, 128  ;;  %v1243_v39 = vadd.f32 %v7874_v19, %v9794_v1  ;;  %v866_v18 = vld [vmem:[%s14007_s3 + $0x148] sm:$0xff]  ;;  %v867_v19 = vld [vmem:[%s14007_s3 + $0x150] sm:$0xff] }
 0x2c9   : > { %v1237_v12 = vpop.f32.mrf.mxu0 }
 0x2ca   : > { %v1238_v6 = vadd.f32 %v1237_v12, %v9790_v61  ;;  %v868_v12 = vld [vmem:[%s14007_s3 + $0x158] sm:$0xff] }
 0x2cb   : > { %v9945_v22 = vpop.f32.mrf.mxu0 }
 0x2cc   : > { %1498 = vxpose.xlu0.b32.start [1/2] (short) %v1238_v6, 128  ;;  %1467 = vxpose.xlu1.b32.end [2/2] (short) %v1233_v21, 128  ;;  %v869_v21 = vld [vmem:[%s14007_s3 + $0x160] sm:$0xff]  ;;  %v870_v6 = vld [vmem:[%s14007_s3 + $0x168] sm:$0xff] }
 0x2cd   : > { %v9949_v24 = vpop.f32.mrf.mxu0 }
 0x2cf   : > { %v9952_v52 = vpop.f32.mrf.mxu0 }
 0x2d0   : > { %1499 = vxpose.xlu0.b32.end [2/2] (short) %v1243_v39, 128  ;;  %v1248_v39 = vadd.f32 %v9949_v24, %v9788_v60  ;;  %v1733_v60 = vld [vmem:[#allocation5 + $0x58] sm:$0xff]  ;;  %v1263_v24 = vadd.f32 %v9952_v52, %v9935_v62 }
 0x2d1   : > { %v9954_v7 = vpop.f32.mrf.mxu0 }
 0x2d2   : > { %v1258_v35 = vadd.f32 %v9954_v7, %v9964_v27 }
 0x2d3   : > { %v9958_v53 = vpop.f32.mrf.mxu0 }
 0x2d5   : > { %v9960_v61 = vpop.f32.mrf.mxu0 }
 0x2d7   : > { %v9962_v14 = vpop.f32.mrf.mxu0 }
 0x2d9   : > { %v9968_v28 = vpop.f32.mrf.mxu0 }
 0x2da   : > { %v1278_v27 = vadd.f32 %v9968_v28, %v9937_v10  ;;  %v1283_v10 = vadd.f32 %v9962_v14, %v9941_v63 }
 0x2db   : > { %v9970_v1 = vpop.f32.mrf.mxu0 }
 0x2dd   : > { %v9972_v15 = vpop.f32.mrf.mxu0 }
 0x2df   : > { %v7892_v26 = vpop.f32.mrf.mxu0 }
 0x2e0   : > { %v9979_v13 = vadd.f32 %v7892_v26, %v999_v16  ;;  %v872_v16 = vld [vmem:[%s14007_s3 + $0x178] sm:$0xff]  ;;  %v1253_v26 = vadd.f32 %v9945_v22, %v9792_v0 }
 0x2e1   : > { %v9984_v37 = vpop.f32.mrf.mxu0 }
 0x2e3   : > { %v7895_v30 = vpop.f32.mrf.mxu0 }
 0x2e4   : > { %v1313_v33 = vadd.f32 %v7895_v30, %v9782_v57  ;;  %v858_v57 = vld [vmem:[%s14007_s3 + $0x108] sm:$0xff] }
 0x2e5   : > { %v1307_v47 = vpop.f32.mrf.mxu0  ;;  %7918 = vmatmul.mubr.f32.gmra.mxu0 %v858_v57 }
 0x2e6   : > { %v1308_v42 = vadd.f32 %v1307_v47, %v9786_v59  ;;  %1816 = vmatpush1.msra.mxu1 %v1313_v33  ;;  %7920 = vmatprep.mubr.f32.mxu0 %v859_v54  ;;  %v1039_v59 = vpop.permute.xlu1 %1038 }
 0x2e7   : > { %v9999_v44 = vpop.f32.mrf.mxu0  ;;  %1817 = vmatprep.subr.mxu1 %v1722_v34 }
 0x2e8   : > { %1818 = vmatpush1.msra.mxu1 %v1308_v42  ;;  %v1323_v62 = vadd.f32 %v9999_v44, %v9780_v56 }
 0x2e9   : > { %v10004_v45 = vpop.f32.mrf.mxu0  ;;  %2024 = vmatprep.subr.mxu1 %v1725_v43  ;;  %7921 = vmatmul.mubr.f32.gmra.mxu0 %v860_v49 }
 0x2ea   : > { %7923 = vmatprep.mubr.f32.mxu0 %v861_v31  ;;  %v1034_v4 = vpop.permute.xlu1 %1033  ;;  %v1318_v41 = vadd.f32 %v10004_v45, %v9784_v58 }
 0x2eb   : > { %v10009_v48 = vpop.f32.mrf.mxu0 }
 0x2ed   : > { %v10014_v50 = vpop.f32.mrf.mxu0  ;;  %7924 = vmatmul.mubr.f32.gmra.mxu0 %v862_v55 }
 0x2ee   : > { %7926 = vmatprep.mubr.f32.mxu0 %v863_v8  ;;  %v964_v29 = vpop.permute.xlu1 %963 }
 0x2ef   : > { %v7904_v51 = vpop.f32.mrf.mxu0  ;;  %v1268_v7 = vadd.f32 %v9960_v61, %v964_v29  ;;  %v1727_v61 = vld [vmem:[#allocation5 + $0x28] sm:$0xff]  ;;  %v1726_v29 = vld [vmem:[#allocation5 + $0x20] sm:$0xff] }
 0x2f0   : > { %v1343_v2 = vadd.f32 %v7904_v51, %v1039_v59 }
 0x2f1   : > { %v1337_v5 = vpop.f32.mrf.mxu0  ;;  %7927 = vmatmul.mubr.f32.gmra.mxu0 %v864_v32 }
 0x2f2   : > { %v1338_v9 = vadd.f32 %v1337_v5, %v1034_v4  ;;  %2443 = vmatpush1.msra.mxu0 %v1343_v2  ;;  %7929 = vmatprep.mubr.f32.mxu0 %v865_v38  ;;  %v969_v30 = vpop.permute.xlu1 %968 }
 0x2f3   : > { %2444 = vmatprep.subr.mxu0 %v1728_v3  ;;  %v1273_v47 = vadd.f32 %v9958_v53, %v969_v30 }
 0x2f4   : > { %2445 = vmatpush1.msra.mxu0 %v1338_v9 }
 0x2f5   : > { %7930 = vmatmul.mubr.f32.gmra.mxu0 %v866_v18  ;;  %2860 = vmatprep.subr.mxu0 %v1733_v60 }
 0x2f6   : > { %7932 = vmatprep.mubr.f32.mxu0 %v867_v19  ;;  %v10061_v33 = vpop.permute.xlu1 %1043  ;;  %v10133_v19 = vpop.f32.mrf.mxu0 }
 0x2f9   : > { %7933 = vmatmul.mubr.f32.gmra.mxu0 %v868_v12 }
 0x2fa   : > { %7935 = vmatprep.mubr.f32.mxu0 %v869_v21  ;;  %v10063_v34 = vpop.permute.xlu1 %1058 }
 0x2fd   : > { %7936 = vmatmul.mubr.f32.gmra.mxu0 %v870_v6 }
 0x2fe   : > { %7938 = vmatprep.mubr.f32.mxu0 %v871_v11  ;;  %v10065_v0 = vpop.permute.xlu1 %1053 }
 0x301   : > { %7939 = vmatmul.mubr.f32.gmra.mxu0 %v872_v16 }
 0x302   : > { %2478 = vmatprep.mubr.f32.mxu0 %v14034_v17  ;;  %v10067_v22 = vpop.permute.xlu1 %983 }
 0x303   : > { %v1288_v6 = vadd.f32 %v9972_v15, %v10067_v22  ;;  %v1333_v15 = vadd.f32 %v10009_v48, %v9977_v46  ;;  %v1731_v48 = vld [vmem:[#allocation5 + $0x48] sm:$0xff] }
 0x305   : > { %1530 = vxpose.xlu1.b32.start [1/2] (short) %v1248_v39, 128  ;;  %v10141_v39 = vpop.f32.mrf.mxu0 }
 0x307   : > { %v7910_v60 = vpop.f32.mrf.mxu0 }
 0x309   : > { %1531 = vxpose.xlu1.b32.end [2/2] (short) %v1253_v26, 128  ;;  %1562 = vxpose.xlu0.b32.start [1/2] (short) %v1258_v35, 128  ;;  %v1298_v26 = vadd.f32 %v9984_v37, %v9966_v20  ;;  %v1293_v35 = vadd.f32 %v9970_v1, %v9956_v25  ;;  %v1328_v20 = vadd.f32 %v10014_v50, %v9993_v40  ;;  %v1357_v25 = vpop.f32.mrf.mxu0  ;;  %v1732_v37 = vld [vmem:[#allocation5 + $0x50] sm:$0xff] }
 0x30a   : > { %v1363_v1 = vadd.f32 %v7910_v60, %v10063_v34  ;;  %v1358_v40 = vadd.f32 %v1357_v25, %v10065_v0 }
 0x30d   : > { %1563 = vxpose.xlu0.b32.end [2/2] (short) %v1263_v24, 128 }
 0x342   : > { %1594 = vxpose.xlu1.b32.start [1/2] (short) %v1268_v7, 128 }
 0x344   : > { %v1482_v52 = vpop.trf.xlu1 }
 0x345   : > { %7378 = vmatmul.mubr.msk.f32.vlgmr.msra.gmra.mxu1 %vm1738_vm0, %v1482_v52 }
 0x346   : > { %2025 = vmatpush1.msra.mxu1 %v1323_v62  ;;  %1626 = vxpose.xlu0.b32.start [1/2] (short) %v1278_v27, 128 }
 0x347   : > { %1595 = vxpose.xlu1.b32.end [2/2] (short) %v1273_v47, 128  ;;  %2026 = vmatprep.subr.mxu1 %v1724_v36 }
 0x348   : > { %2027 = vmatpush1.msra.mxu1 %v1318_v41  ;;  %v10080_v28 = vpop.trf.xlu0  ;;  %1857 = vmatprep.mubr.f32.mxu1 %v14034_v17  ;;  %v1483_v56 = vpop.trf.xlu1 }
 0x349   : > { %7379 = vmatmul.mubr.msk.f32.gmra.mxu1 %vm1738_vm0, %v1483_v56  ;;  %2233 = vmatprep.subr.mxu1 %v1727_v61 }
 0x34a   : > { %1627 = vxpose.xlu0.b32.end [2/2] (short) %v1283_v10, 128  ;;  %1863 = vmatprep.mubr.f32.mxu1 %v14034_v17 }
 0x34c   : > { %v10085_v58 = vpop.trf.xlu0  ;;  %v1484_v53 = vpop.trf.xlu1 }
 0x34d   : > { %7380 = vmatmul.mubr.msk.f32.gmra.mxu1 %vm1738_vm0, %v1484_v53 }
 0x34e   : > { %1869 = vmatprep.mubr.f32.mxu1 %v14034_v17 }
 0x350   : > { %v10089_v63 = vpop.trf.xlu0  ;;  %v1485_v14 = vpop.trf.xlu1 }
 0x351   : > { %7381 = vmatmul.mubr.msk.f32.gmra.mxu1 %vm1738_vm0, %v1485_v14 }
 0x352   : > { %1875 = vmatprep.mubr.f32.mxu1 %v14034_v17 }
 0x354   : > { %v10093_v42 = vpop.trf.xlu0  ;;  %v1486_v43 = vpop.trf.xlu1 }
 0x355   : > { %7382 = vmatmul.mubr.msk.f32.gmra.mxu1 %vm1738_vm0, %v1486_v43 }
 0x356   : > { %1881 = vmatprep.mubr.f32.mxu1 %v14034_v17 }
 0x358   : > { %v10097_v44 = vpop.trf.xlu0  ;;  %v1487_v57 = vpop.trf.xlu1 }
 0x359   : > { %7383 = vmatmul.mubr.msk.f32.gmra.mxu1 %vm1738_vm0, %v1487_v57  ;;  %v1353_v57 = vadd.f32 %v10133_v19, %v9947_v23 }
 0x35a   : > { %1887 = vmatprep.mubr.f32.mxu1 %v14034_v17 }
 0x35c   : > { %v10101_v45 = vpop.trf.xlu0  ;;  %v1488_v54 = vpop.trf.xlu1 }
 0x35d   : > { %7384 = vmatmul.mubr.msk.f32.gmra.mxu1 %vm1738_vm0, %v1488_v54 }
 0x35e   : > { %1893 = vmatprep.mubr.f32.mxu1 %v14034_v17 }
 0x360   : > { %v10105_v59 = vpop.trf.xlu0  ;;  %v1489_v49 = vpop.trf.xlu1 }
 0x361   : > { %7385 = vmatmul.mubr.msk.f32.gmra.mxu1 %vm1738_vm0, %v1489_v49  ;;  %v1348_v49 = vadd.f32 %v10141_v39, %v10061_v33 }
 0x362   : > { %1899 = vmatprep.mubr.f32.mxu1 %v14034_v17 }
 0x364   : > { %v10109_v31 = vpop.trf.xlu0  ;;  %v1490_v51 = vpop.trf.xlu1 }
 0x365   : > { %7386 = vmatmul.mubr.msk.f32.gmra.mxu1 %vm1738_vm0, %v1490_v51 }
 0x366   : > { %1905 = vmatprep.mubr.f32.mxu1 %v14034_v17 }
 0x368   : > { %v10113_v2 = vpop.trf.xlu0  ;;  %v1491_v3 = vpop.trf.xlu1 }
 0x369   : > { %7387 = vmatmul.mubr.msk.f32.gmra.mxu1 %vm1738_vm0, %v1491_v3 }
 0x36a   : > { %1911 = vmatprep.mubr.f32.mxu1 %v14034_v17 }
 0x36c   : > { %v10117_v55 = vpop.trf.xlu0  ;;  %v1492_v4 = vpop.trf.xlu1 }
 0x36d   : > { %7388 = vmatmul.mubr.msk.f32.gmra.mxu1 %vm1738_vm0, %v1492_v4 }
 0x36e   : > { %1917 = vmatprep.mubr.f32.mxu1 %v14034_v17 }
 0x370   : > { %v10121_v5 = vpop.trf.xlu0  ;;  %v1493_v8 = vpop.trf.xlu1 }
 0x371   : > { %7389 = vmatmul.mubr.msk.f32.gmra.mxu1 %vm1738_vm0, %v1493_v8 }
 0x372   : > { %1923 = vmatprep.mubr.f32.mxu1 %v14034_v17 }
 0x374   : > { %v10125_v9 = vpop.trf.xlu0  ;;  %v1494_v32 = vpop.trf.xlu1 }
 0x375   : > { %7390 = vmatmul.mubr.msk.f32.gmra.mxu1 %vm1738_vm0, %v1494_v32 }
 0x376   : > { %1929 = vmatprep.mubr.f32.mxu1 %v14034_v17 }
 0x378   : > { %v10129_v38 = vpop.trf.xlu0  ;;  %v1495_v18 = vpop.trf.xlu1 }
 0x379   : > { %7391 = vmatmul.mubr.msk.f32.gmra.mxu1 %vm1738_vm0, %v1495_v18 }
 0x37a   : > { %1935 = vmatprep.mubr.f32.mxu1 %v14034_v17 }
 0x37c   : > { %v10135_v12 = vpop.trf.xlu0  ;;  %v1496_v21 = vpop.trf.xlu1 }
 0x37d   : > { %7392 = vmatmul.mubr.msk.f32.gmra.mxu1 %vm1738_vm0, %v1496_v21 }
 0x37e   : > { %1941 = vmatprep.mubr.f32.mxu1 %v14034_v17 }
 0x380   : > { %1658 = vxpose.xlu1.b32.start [1/2] (short) %v1288_v6, 128  ;;  %v10143_v11 = vpop.trf.xlu0  ;;  %v1497_v16 = vpop.trf.xlu1 }
 0x381   : > { %7393 = vmatmul.mubr.msk.f32.gmra.mxu1 %vm1738_vm0, %v1497_v16 }
 0x382   : > { %2060 = vmatprep.mubr.f32.mxu1 %v14034_v17 }
 0x383   : > { %1690 = vxpose.xlu0.b32.start [1/2] (short) %v1298_v26, 128 }
 0x384   : > { %1659 = vxpose.xlu1.b32.end [2/2] (short) %v1293_v35, 128  ;;  %v10153_v24 = vpop.trf.xlu0  ;;  %v10168_v50 = vpop.trf.xlu1 }
 0x385   : > { %7394 = vmatmul.mubr.msk.f32.vlgmr.msra.gmra.mxu1 %vm1738_vm0, %v10080_v28  ;;  %v10327_v35 = vpop.f32.mrf.mxu0 }
 0x386   : > { %2234 = vmatpush1.msra.mxu1 %v1333_v15  ;;  %2066 = vmatprep.mubr.f32.mxu1 %v14034_v17  ;;  %14276 = vst [vmem:[#allocation22_spill] sm:$0xff] %v10327_v35 }
 0x387   : > { %2235 = vmatprep.subr.mxu1 %v1726_v29  ;;  %1691 = vxpose.xlu0.b32.end [2/2] (short) %v9979_v13, 128  ;;  %v10333_v15 = vpop.f32.mrf.mxu0 }
 0x388   : > { %2236 = vmatpush1.msra.mxu1 %v1328_v20  ;;  %v1578_v46 = vpop.trf.xlu0  ;;  %v10175_v34 = vpop.trf.xlu1  ;;  %14277 = vst [vmem:[#allocation23_spill] sm:$0xff] %v10333_v15 }
 0x389   : > { %7395 = vmatmul.mubr.msk.f32.gmra.mxu1 %vm1738_vm0, %v10085_v58  ;;  %7426 = vmatmul.mubr.msk.f32.vlgmr.msra.gmra.mxu0 %vm1738_vm0, %v1578_v46  ;;  %v10339_v20 = vpop.f32.mrf.mxu0 }
 0x38a   : > { %2861 = vmatpush1.msra.mxu0 %v1363_v1  ;;  %2072 = vmatprep.mubr.f32.mxu1 %v14034_v17  ;;  %14278 = vst [vmem:[#allocation24_spill] sm:$0xff] %v10339_v20 }
 0x38b   : > { %2862 = vmatprep.subr.mxu0 %v1732_v37  ;;  %2484 = vmatprep.mubr.f32.mxu0 %v14034_v17  ;;  %v10347_v37 = vpop.f32.mrf.mxu0 }
 0x38c   : > { %2863 = vmatpush1.msra.mxu0 %v1358_v40  ;;  %v1579_v13 = vpop.trf.xlu0  ;;  %2651 = vmatprep.subr.mxu1 %v1731_v48  ;;  %v10187_v22 = vpop.trf.xlu1  ;;  %14280 = vst [vmem:[#allocation26_spill] sm:$0xff] %v10347_v37 }
 0x38d   : > { %7396 = vmatmul.mubr.msk.f32.gmra.mxu1 %vm1738_vm0, %v10089_v63  ;;  %7427 = vmatmul.mubr.msk.f32.gmra.mxu0 %vm1738_vm0, %v1579_v13 }
 0x38e   : > { %2078 = vmatprep.mubr.f32.mxu1 %v14034_v17  ;;  %2490 = vmatprep.mubr.f32.mxu0 %v14034_v17 }
 0x390   : > { %v1580_v30 = vpop.trf.xlu0  ;;  %v10194_v62 = vpop.trf.xlu1 }
 0x391   : > { %7397 = vmatmul.mubr.msk.f32.gmra.mxu1 %vm1738_vm0, %v10093_v42  ;;  %7428 = vmatmul.mubr.msk.f32.gmra.mxu0 %vm1738_vm0, %v1580_v30 }
 0x392   : > { %2084 = vmatprep.mubr.f32.mxu1 %v14034_v17  ;;  %2496 = vmatprep.mubr.f32.mxu0 %v14034_v17 }
 0x394   : > { %v1581_v0 = vpop.trf.xlu0  ;;  %v10206_v36 = vpop.trf.xlu1 }
 0x395   : > { %7398 = vmatmul.mubr.msk.f32.gmra.mxu1 %vm1738_vm0, %v10097_v44  ;;  %7429 = vmatmul.mubr.msk.f32.gmra.mxu0 %vm1738_vm0, %v1581_v0 }
 0x396   : > { %2090 = vmatprep.mubr.f32.mxu1 %v14034_v17  ;;  %2502 = vmatprep.mubr.f32.mxu0 %v14034_v17 }
 0x398   : > { %v1582_v7 = vpop.trf.xlu0  ;;  %v10213_v61 = vpop.trf.xlu1 }
 0x399   : > { %7399 = vmatmul.mubr.msk.f32.gmra.mxu1 %vm1738_vm0, %v10101_v45  ;;  %7430 = vmatmul.mubr.msk.f32.gmra.mxu0 %vm1738_vm0, %v1582_v7  ;;  %v1730_v45 = vld [vmem:[#allocation5 + $0x40] sm:$0xff] }
 0x39a   : > { %2096 = vmatprep.mubr.f32.mxu1 %v14034_v17  ;;  %2508 = vmatprep.mubr.f32.mxu0 %v14034_v17 }
 0x39c   : > { %v1583_v27 = vpop.trf.xlu0  ;;  %v10225_v28 = vpop.trf.xlu1 }
 0x39d   : > { %7400 = vmatmul.mubr.msk.f32.gmra.mxu1 %vm1738_vm0, %v10105_v59  ;;  %7431 = vmatmul.mubr.msk.f32.gmra.mxu0 %vm1738_vm0, %v1583_v27 }
 0x39e   : > { %2102 = vmatprep.mubr.f32.mxu1 %v14034_v17  ;;  %2514 = vmatprep.mubr.f32.mxu0 %v14034_v17 }
 0x3a0   : > { %v1584_v52 = vpop.trf.xlu0  ;;  %v10232_v53 = vpop.trf.xlu1 }
 0x3a1   : > { %7401 = vmatmul.mubr.msk.f32.gmra.mxu1 %vm1738_vm0, %v10109_v31  ;;  %7432 = vmatmul.mubr.msk.f32.gmra.mxu0 %vm1738_vm0, %v1584_v52 }
 0x3a2   : > { %2108 = vmatprep.mubr.f32.mxu1 %v14034_v17  ;;  %2520 = vmatprep.mubr.f32.mxu0 %v14034_v17 }
 0x3a4   : > { %v1585_v47 = vpop.trf.xlu0  ;;  %v10244_v14 = vpop.trf.xlu1 }
 0x3a5   : > { %7402 = vmatmul.mubr.msk.f32.gmra.mxu1 %vm1738_vm0, %v10113_v2  ;;  %7433 = vmatmul.mubr.msk.f32.gmra.mxu0 %vm1738_vm0, %v1585_v47  ;;  %v10356_v13 = vpop.f32.mrf.mxu0 }
 0x3a6   : > { %2114 = vmatprep.mubr.f32.mxu1 %v14034_v17  ;;  %2526 = vmatprep.mubr.f32.mxu0 %v14034_v17  ;;  %14282 = vst [vmem:[#allocation28_spill] sm:$0xff] %v10356_v13 }
 0x3a7   : > { %v10363_v0 = vpop.f32.mrf.mxu0 }
 0x3a8   : > { %v1586_v41 = vpop.trf.xlu0  ;;  %v10251_v43 = vpop.trf.xlu1  ;;  %14284 = vst [vmem:[#allocation30_spill] sm:$0xff] %v10363_v0 }
 0x3a9   : > { %7403 = vmatmul.mubr.msk.f32.gmra.mxu1 %vm1738_vm0, %v10117_v55  ;;  %7434 = vmatmul.mubr.msk.f32.gmra.mxu0 %vm1738_vm0, %v1586_v41 }
 0x3aa   : > { %2120 = vmatprep.mubr.f32.mxu1 %v14034_v17  ;;  %2532 = vmatprep.mubr.f32.mxu0 %v14034_v17 }
 0x3ac   : > { %v1587_v10 = vpop.trf.xlu0  ;;  %v10260_v59 = vpop.trf.xlu1 }
 0x3ad   : > { %7404 = vmatmul.mubr.msk.f32.gmra.mxu1 %vm1738_vm0, %v10121_v5  ;;  %7435 = vmatmul.mubr.msk.f32.gmra.mxu0 %vm1738_vm0, %v1587_v10 }
 0x3ae   : > { %2126 = vmatprep.mubr.f32.mxu1 %v14034_v17  ;;  %2538 = vmatprep.mubr.f32.mxu0 %v14034_v17 }
 0x3b0   : > { %v1588_v56 = vpop.trf.xlu0  ;;  %v1557_v31 = vpop.trf.xlu1 }
 0x3b1   : > { %7405 = vmatmul.mubr.msk.f32.gmra.mxu1 %vm1738_vm0, %v10125_v9  ;;  %7436 = vmatmul.mubr.msk.f32.gmra.mxu0 %vm1738_vm0, %v1588_v56 }
 0x3b2   : > { %2132 = vmatprep.mubr.f32.mxu1 %v14034_v17  ;;  %2544 = vmatprep.mubr.f32.mxu0 %v14034_v17 }
 0x3b4   : > { %v1589_v58 = vpop.trf.xlu0  ;;  %v1558_v2 = vpop.trf.xlu1 }
 0x3b5   : > { %7406 = vmatmul.mubr.msk.f32.gmra.mxu1 %vm1738_vm0, %v10129_v38  ;;  %7437 = vmatmul.mubr.msk.f32.gmra.mxu0 %vm1738_vm0, %v1589_v58 }
 0x3b6   : > { %2138 = vmatprep.mubr.f32.mxu1 %v14034_v17  ;;  %2550 = vmatprep.mubr.f32.mxu0 %v14034_v17 }
 0x3b8   : > { %v1590_v63 = vpop.trf.xlu0  ;;  %v1559_v55 = vpop.trf.xlu1 }
 0x3b9   : > { %7407 = vmatmul.mubr.msk.f32.gmra.mxu1 %vm1738_vm0, %v10135_v12  ;;  %7438 = vmatmul.mubr.msk.f32.gmra.mxu0 %vm1738_vm0, %v1590_v63 }
 0x3ba   : > { %2144 = vmatprep.mubr.f32.mxu1 %v14034_v17  ;;  %2556 = vmatprep.mubr.f32.mxu0 %v14034_v17 }
 0x3bc   : > { %v1591_v42 = vpop.trf.xlu0  ;;  %v1560_v8 = vpop.trf.xlu1 }
 0x3bd   : > { %7408 = vmatmul.mubr.msk.f32.gmra.mxu1 %vm1738_vm0, %v10143_v11  ;;  %7439 = vmatmul.mubr.msk.f32.gmra.mxu0 %vm1738_vm0, %v1591_v42 }
 0x3be   : > { %2150 = vmatprep.mubr.f32.mxu1 %v14034_v17  ;;  %2562 = vmatprep.mubr.f32.mxu0 %v14034_v17 }
 0x3c0   : > { %v1592_v44 = vpop.trf.xlu0  ;;  %v1561_v32 = vpop.trf.xlu1 }
 0x3c1   : > { %7409 = vmatmul.mubr.msk.f32.gmra.mxu1 %vm1738_vm0, %v10153_v24  ;;  %7440 = vmatmul.mubr.msk.f32.gmra.mxu0 %vm1738_vm0, %v1592_v44 }
 0x3c2   : > { %2269 = vmatprep.mubr.f32.mxu1 %v14034_v17  ;;  %2568 = vmatprep.mubr.f32.mxu0 %v14034_v17 }
 0x3c4   : > { %v1593_v54 = vpop.trf.xlu0  ;;  %v1610_v18 = vpop.trf.xlu1 }
 0x3c5   : > { %7410 = vmatmul.mubr.msk.f32.vlgmr.msra.gmra.mxu1 %vm1738_vm0, %v10168_v50  ;;  %7441 = vmatmul.mubr.msk.f32.gmra.mxu0 %vm1738_vm0, %v1593_v54 }
 0x3c6   : > { %2652 = vmatpush1.msra.mxu1 %v1353_v57  ;;  %2275 = vmatprep.mubr.f32.mxu1 %v14034_v17 }
 0x3c7   : > { %2653 = vmatprep.subr.mxu1 %v1730_v45  ;;  %2896 = vmatprep.mubr.f32.mxu0 %v14034_v17 }
 0x3c8   : > { %2654 = vmatpush1.msra.mxu1 %v1348_v49  ;;  %v1642_v23 = vpop.trf.xlu0  ;;  %v1611_v21 = vpop.trf.xlu1 }
 0x3c9   : > { %7411 = vmatmul.mubr.msk.f32.gmra.mxu1 %vm1738_vm0, %v10175_v34  ;;  %7458 = vmatmul.mubr.msk.f32.vlgmr.msra.gmra.mxu0 %vm1738_vm0, %v1642_v23 }
 0x3ca   : > { %2281 = vmatprep.mubr.f32.mxu1 %v14034_v17  ;;  %2902 = vmatprep.mubr.f32.mxu0 %v14034_v17 }
 0x3cc   : > { %v1643_v51 = vpop.trf.xlu0  ;;  %v1612_v39 = vpop.trf.xlu1 }
 0x3cd   : > { %7412 = vmatmul.mubr.msk.f32.gmra.mxu1 %vm1738_vm0, %v10187_v22  ;;  %7459 = vmatmul.mubr.msk.f32.gmra.mxu0 %vm1738_vm0, %v1643_v51 }
 0x3ce   : > { %2287 = vmatprep.mubr.f32.mxu1 %v14034_v17  ;;  %2908 = vmatprep.mubr.f32.mxu0 %v14034_v17 }
 0x3d0   : > { %v1644_v33 = vpop.trf.xlu0  ;;  %v1613_v26 = vpop.trf.xlu1 }
 0x3d1   : > { %7413 = vmatmul.mubr.msk.f32.gmra.mxu1 %vm1738_vm0, %v10194_v62  ;;  %7460 = vmatmul.mubr.msk.f32.gmra.mxu0 %vm1738_vm0, %v1644_v33  ;;  %v10370_v62 = vpop.f32.mrf.mxu0 }
 0x3d2   : > { %2293 = vmatprep.mubr.f32.mxu1 %v14034_v17  ;;  %2914 = vmatprep.mubr.f32.mxu0 %v14034_v17  ;;  %14285 = vst [vmem:[#allocation31_spill] sm:$0xff] %v10370_v62 }
 0x3d3   : > { %v10377_v47 = vpop.f32.mrf.mxu0 }
 0x3d4   : > { %v1645_v3 = vpop.trf.xlu0  ;;  %v1614_v24 = vpop.trf.xlu1  ;;  %14286 = vst [vmem:[#allocation32_spill] sm:$0xff] %v10377_v47 }
 0x3d5   : > { %7414 = vmatmul.mubr.msk.f32.gmra.mxu1 %vm1738_vm0, %v10206_v36  ;;  %7461 = vmatmul.mubr.msk.f32.gmra.mxu0 %vm1738_vm0, %v1645_v3 }
 0x3d6   : > { %2299 = vmatprep.mubr.f32.mxu1 %v14034_v17  ;;  %2920 = vmatprep.mubr.f32.mxu0 %v14034_v17 }
 0x3d8   : > { %v1646_v4 = vpop.trf.xlu0  ;;  %v1615_v1 = vpop.trf.xlu1 }
 0x3d9   : > { %7415 = vmatmul.mubr.msk.f32.gmra.mxu1 %vm1738_vm0, %v10213_v61  ;;  %7462 = vmatmul.mubr.msk.f32.gmra.mxu0 %vm1738_vm0, %v1646_v4 }
 0x3da   : > { %2305 = vmatprep.mubr.f32.mxu1 %v14034_v17  ;;  %2926 = vmatprep.mubr.f32.mxu0 %v14034_v17 }
 0x3dc   : > { %v1647_v5 = vpop.trf.xlu0  ;;  %v1616_v50 = vpop.trf.xlu1 }
 0x3dd   : > { %7416 = vmatmul.mubr.msk.f32.gmra.mxu1 %vm1738_vm0, %v10225_v28  ;;  %7463 = vmatmul.mubr.msk.f32.gmra.mxu0 %vm1738_vm0, %v1647_v5  ;;  %v10384_v28 = vpop.f32.mrf.mxu0 }
 0x3de   : > { %2311 = vmatprep.mubr.f32.mxu1 %v14034_v17  ;;  %2932 = vmatprep.mubr.f32.mxu0 %v14034_v17  ;;  %14287 = vst [vmem:[#allocation33_spill] sm:$0xff] %v10384_v28 }
 0x3e0   : > { %v1648_v9 = vpop.trf.xlu0  ;;  %v1617_v7 = vpop.trf.xlu1 }
 0x3e1   : > { %7417 = vmatmul.mubr.msk.f32.gmra.mxu1 %vm1738_vm0, %v10232_v53  ;;  %7464 = vmatmul.mubr.msk.f32.gmra.mxu0 %vm1738_vm0, %v1648_v9 }
 0x3e2   : > { %2317 = vmatprep.mubr.f32.mxu1 %v14034_v17  ;;  %2938 = vmatprep.mubr.f32.mxu0 %v14034_v17 }
 0x3e4   : > { %v1649_v38 = vpop.trf.xlu0  ;;  %v1618_v41 = vpop.trf.xlu1 }
 0x3e5   : > { %7418 = vmatmul.mubr.msk.f32.gmra.mxu1 %vm1738_vm0, %v10244_v14  ;;  %7465 = vmatmul.mubr.msk.f32.gmra.mxu0 %vm1738_vm0, %v1649_v38  ;;  %v10393_v14 = vpop.f32.mrf.mxu0 }
 0x3e6   : > { %2944 = vmatprep.mubr.f32.mxu0 %v14034_v17  ;;  %2323 = vmatprep.mubr.f32.mxu1 %v14034_v17  ;;  %14289 = vst [vmem:[#allocation35_spill] sm:$0xff] %v10393_v14 }
 0x3e7   : > { %v10402_v57 = vpop.f32.mrf.mxu0 }
 0x3e8   : > { %v1650_v19 = vpop.trf.xlu0  ;;  %v1619_v53 = vpop.trf.xlu1  ;;  %14291 = vst [vmem:[#allocation37_spill] sm:$0xff] %v10402_v57 }
 0x3e9   : > { %7466 = vmatmul.mubr.msk.f32.gmra.mxu0 %vm1738_vm0, %v1650_v19  ;;  %7419 = vmatmul.mubr.msk.f32.gmra.mxu1 %vm1738_vm0, %v10251_v43  ;;  %v10409_v49 = vpop.f32.mrf.mxu0 }
 0x3ea   : > { %2950 = vmatprep.mubr.f32.mxu0 %v14034_v17  ;;  %2329 = vmatprep.mubr.f32.mxu1 %v14034_v17  ;;  %14292 = vst [vmem:[#allocation38_spill] sm:$0xff] %v10409_v49 }
 0x3ec   : > { %v1651_v12 = vpop.trf.xlu0  ;;  %v1620_v45 = vpop.trf.xlu1 }
 0x3ed   : > { %7467 = vmatmul.mubr.msk.f32.gmra.mxu0 %vm1738_vm0, %v1651_v12  ;;  %7420 = vmatmul.mubr.msk.f32.gmra.mxu1 %vm1738_vm0, %v10260_v59 }
 0x3ee   : > { %2956 = vmatprep.mubr.f32.mxu0 %v14034_v17  ;;  %2335 = vmatprep.mubr.f32.mxu1 %v14034_v17 }
 0x3f0   : > { %v1652_v6 = vpop.trf.xlu0  ;;  %v1621_v51 = vpop.trf.xlu1 }
 0x3f1   : > { %7468 = vmatmul.mubr.msk.f32.gmra.mxu0 %vm1738_vm0, %v1652_v6  ;;  %7421 = vmatmul.mubr.msk.f32.gmra.mxu1 %vm1738_vm0, %v1557_v31 }
 0x3f2   : > { %2962 = vmatprep.mubr.f32.mxu0 %v14034_v17  ;;  %2341 = vmatprep.mubr.f32.mxu1 %v14034_v17 }
 0x3f4   : > { %v1653_v11 = vpop.trf.xlu0 }
 0x3f5   : > { %7469 = vmatmul.mubr.msk.f32.gmra.mxu0 %vm1738_vm0, %v1653_v11  ;;  %7422 = vmatmul.mubr.msk.f32.gmra.mxu1 %vm1738_vm0, %v1558_v2  ;;  %v10418_v2 = vpop.f32.mrf.mxu0 }
 0x3f6   : > { %2968 = vmatprep.mubr.f32.mxu0 %v14034_v17  ;;  %2347 = vmatprep.mubr.f32.mxu1 %v14034_v17  ;;  %14294 = vst [vmem:[#allocation40_spill] sm:$0xff] %v10418_v2 }
 0x3f7   : > { %v10427_v5 = vpop.f32.mrf.mxu0 }
 0x3f8   : > { %v1654_v16 = vpop.trf.xlu0  ;;  %14296 = vst [vmem:[#allocation42_spill] sm:$0xff] %v10427_v5 }
 0x3f9   : > { %7470 = vmatmul.mubr.msk.f32.gmra.mxu0 %vm1738_vm0, %v1654_v16  ;;  %7423 = vmatmul.mubr.msk.f32.gmra.mxu1 %vm1738_vm0, %v1559_v55  ;;  %v10434_v38 = vpop.f32.mrf.mxu0 }
 0x3fa   : > { %2974 = vmatprep.mubr.f32.mxu0 %v14034_v17  ;;  %2353 = vmatprep.mubr.f32.mxu1 %v14034_v17  ;;  %14297 = vst [vmem:[#allocation43_spill] sm:$0xff] %v10434_v38 }
 0x3fb   : > { %v10443_v6 = vpop.f32.mrf.mxu0 }
 0x3fc   : > { %v1655_v60 = vpop.trf.xlu0  ;;  %14299 = vst [vmem:[#allocation45_spill] sm:$0xff] %v10443_v6 }
 0x3fd   : > { %7471 = vmatmul.mubr.msk.f32.gmra.mxu0 %vm1738_vm0, %v1655_v60  ;;  %7424 = vmatmul.mubr.msk.f32.gmra.mxu1 %vm1738_vm0, %v1560_v8  ;;  %v1622_v8 = vpop.trf.xlu1 }
 0x3fe   : > { %2980 = vmatprep.mubr.f32.mxu0 %v14034_v17  ;;  %2359 = vmatprep.mubr.f32.mxu1 %v14034_v17 }
 0x400   : > { %v1656_v29 = vpop.trf.xlu0 }
 0x401   : > { %7472 = vmatmul.mubr.msk.f32.gmra.mxu0 %vm1738_vm0, %v1656_v29  ;;  %7425 = vmatmul.mubr.msk.f32.gmra.mxu1 %vm1738_vm0, %v1561_v32  ;;  %v1623_v12 = vpop.trf.xlu1 }
 0x402   : > { %2986 = vmatprep.mubr.f32.mxu0 %v14034_v17  ;;  %2687 = vmatprep.mubr.f32.mxu1 %v14034_v17 }
 0x404   : > { %v1657_v25 = vpop.trf.xlu0 }
 0x405   : > { %v10345_v46 = vpop.f32.mrf.mxu1  ;;  %7473 = vmatmul.mubr.msk.f32.gmra.mxu0 %vm1738_vm0, %v1657_v25  ;;  %7442 = vmatmul.mubr.msk.f32.vlgmr.msra.gmra.mxu1 %vm1738_vm0, %v1610_v18  ;;  %v1624_v60 = vpop.trf.xlu1 }
 0x406   : > { %14279 = vst [vmem:[#allocation25_spill] sm:$0xff] %v10345_v46  ;;  %2693 = vmatprep.mubr.f32.mxu1 %v14034_v17  ;;  %3314 = vmatprep.mubr.f32.mxu0 %v14034_v17 }
 0x407   : > { %v1855_v48 = vpop.f32.mrf.mxu1 }
 0x408   : > { %3413 = vrot.lane.b32.xlu0 %v1855_v48, %s14038_s6  ;;  %v10387_v56 = vpop.trf.xlu0 }
 0x409   : > { %v10354_v40 = vpop.f32.mrf.mxu1  ;;  %7443 = vmatmul.mubr.msk.f32.gmra.mxu1 %vm1738_vm0, %v1611_v21  ;;  %14288 = vst [vmem:[#allocation34_spill] sm:$0xff] %v10387_v56 }
 0x40a   : > { %14281 = vst [vmem:[#allocation27_spill] sm:$0xff] %v10354_v40  ;;  %2699 = vmatprep.mubr.f32.mxu1 %v14034_v17 }
 0x40b   : > { %v1861_v30 = vpop.f32.mrf.mxu1 }
 0x40c   : > { %3417 = vrot.lane.b32.xlu0 %v1861_v30, %s14040_s11  ;;  %v10398_v43 = vpop.trf.xlu0 }
 0x40d   : > { %v10361_v34 = vpop.f32.mrf.mxu1  ;;  %7444 = vmatmul.mubr.msk.f32.gmra.mxu1 %vm1738_vm0, %v1612_v39  ;;  %14290 = vst [vmem:[#allocation36_spill] sm:$0xff] %v10398_v43 }
 0x40e   : > { %14283 = vst [vmem:[#allocation29_spill] sm:$0xff] %v10361_v34  ;;  %2705 = vmatprep.mubr.f32.mxu1 %v14034_v17  ;;  %v10677_v34 = vld [vmem:[#allocation7 + $0x48] sm:$0xff] }
 0x40f   : > { %v1867_v22 = vpop.f32.mrf.mxu1 }
 0x410   : > { %3421 = vrot.lane.b32.xlu0 %v1867_v22, %s9263_s13  ;;  %v10412_v23 = vpop.trf.xlu0 }
 0x411   : > { %v10368_v27 = vpop.f32.mrf.mxu1  ;;  %7445 = vmatmul.mubr.msk.f32.gmra.mxu1 %vm1738_vm0, %v1613_v26  ;;  %14293 = vst [vmem:[#allocation39_spill] sm:$0xff] %v10412_v23  ;;  %v10452_v26 = vpop.f32.mrf.mxu0 }
 0x412   : > { %2711 = vmatprep.mubr.f32.mxu1 %v14034_v17  ;;  %14301 = vst [vmem:[#allocation47_spill] sm:$0xff] %v10452_v26 }
 0x413   : > { %v1873_v52 = vpop.f32.mrf.mxu1  ;;  %v10459_v25 = vpop.f32.mrf.mxu0 }
 0x414   : > { %3425 = vrot.lane.b32.xlu0 %v1873_v52, %s14110_s25  ;;  %v10423_v55 = vpop.trf.xlu0  ;;  %14302 = vst [vmem:[#allocation48_spill] sm:$0xff] %v10459_v25 }
 0x415   : > { %v10375_v36 = vpop.f32.mrf.mxu1  ;;  %7446 = vmatmul.mubr.msk.f32.gmra.mxu1 %vm1738_vm0, %v1614_v24  ;;  %14295 = vst [vmem:[#allocation41_spill] sm:$0xff] %v10423_v55  ;;  %v10469_v22 = vpop.f32.mrf.mxu0 }
 0x416   : > { %2717 = vmatprep.mubr.f32.mxu1 %v14034_v17  ;;  %14304 = vst [vmem:[#allocation50_spill] sm:$0xff] %v10469_v22 }
 0x417   : > { %v1879_v61 = vpop.f32.mrf.mxu1 }
 0x418   : > { %3429 = vrot.lane.b32.xlu0 %v1879_v61, %s14048_s15  ;;  %v10437_v18 = vpop.trf.xlu0  ;;  %v10478_v61 = vpop.f32.mrf.mxu0 }
 0x419   : > { %v10382_v10 = vpop.f32.mrf.mxu1  ;;  %7447 = vmatmul.mubr.msk.f32.gmra.mxu1 %vm1738_vm0, %v1615_v1  ;;  %14298 = vst [vmem:[#allocation44_spill] sm:$0xff] %v10437_v18  ;;  %14307 = vst [vmem:[#allocation53_spill] sm:$0xff] %v10478_v61 }
 0x41a   : > { %2723 = vmatprep.mubr.f32.mxu1 %v14034_v17 }
 0x41b   : > { %v1885_v58 = vpop.f32.mrf.mxu1 }
 0x41c   : > { %3433 = vrot.lane.b32.xlu0 %v1885_v58, %s14096_s30  ;;  %v10448_v11 = vpop.trf.xlu0 }
 0x41d   : > { %v10391_v63 = vpop.f32.mrf.mxu1  ;;  %7448 = vmatmul.mubr.msk.f32.gmra.mxu1 %vm1738_vm0, %v1616_v50  ;;  %14300 = vst [vmem:[#allocation46_spill] sm:$0xff] %v10448_v11  ;;  %v1625_v50 = vpop.trf.xlu1 }
 0x41e   : > { %2729 = vmatprep.mubr.f32.mxu1 %v14034_v17 }
 0x41f   : > { %v1891_v42 = vpop.f32.mrf.mxu1 }
 0x420   : > { %3437 = vrot.lane.b32.xlu0 %v1891_v42, %s14098_s5  ;;  %v10462_v1 = vpop.trf.xlu0 }
 0x421   : > { %v10400_v44 = vpop.f32.mrf.mxu1  ;;  %7449 = vmatmul.mubr.msk.f32.gmra.mxu1 %vm1738_vm0, %v1617_v7  ;;  %14303 = vst [vmem:[#allocation49_spill] sm:$0xff] %v10462_v1 }
 0x422   : > { %2735 = vmatprep.mubr.f32.mxu1 %v14034_v17 }
 0x423   : > { %v1897_v54 = vpop.f32.mrf.mxu1 }
 0x424   : > { %3441 = vrot.lane.b32.xlu0 %v1897_v54, %s14036_s7  ;;  %v10474_v52 = vpop.trf.xlu0  ;;  %s9276_s7 = smov 369  }
 0x425   : > { %v10407_v59 = vpop.f32.mrf.mxu1  ;;  %7450 = vmatmul.mubr.msk.f32.gmra.mxu1 %vm1738_vm0, %v1618_v41  ;;  %14305 = vst [vmem:[#allocation51_spill] sm:$0xff] %v10474_v52 }
 0x426   : > { %2741 = vmatprep.mubr.f32.mxu1 %v14034_v17 }
 0x427   : > { %v1903_v31 = vpop.f32.mrf.mxu1 }
 0x428   : > { %3445 = vrot.lane.b32.xlu0 %v1903_v31, %s14032_s17  ;;  %s14065_s17 = smov 377  }
 0x429   : > { %v10416_v33 = vpop.f32.mrf.mxu1  ;;  %7451 = vmatmul.mubr.msk.f32.gmra.mxu1 %vm1738_vm0, %v1619_v53 }
 0x42a   : > { %2747 = vmatprep.mubr.f32.mxu1 %v14034_v17 }
 0x42b   : > { %v1909_v3 = vpop.f32.mrf.mxu1 }
 0x42c   : > { %3449 = vrot.lane.b32.xlu0 %v1909_v3, %s14080_s27 }
 0x42d   : > { %v10425_v4 = vpop.f32.mrf.mxu1  ;;  %7452 = vmatmul.mubr.msk.f32.gmra.mxu1 %vm1738_vm0, %v1620_v45  ;;  %v10486_v45 = vpop.trf.xlu0 }
 0x42e   : > { %2753 = vmatprep.mubr.f32.mxu1 %v14034_v17  ;;  %14309 = vst [vmem:[#allocation55_spill] sm:$0xff] %v10486_v45 }
 0x42f   : > { %v1915_v9 = vpop.f32.mrf.mxu1 }
 0x430   : > { %3453 = vrot.lane.b32.xlu0 %v1915_v9, %s14112_s26 }
 0x431   : > { %v10432_v32 = vpop.f32.mrf.mxu1  ;;  %7453 = vmatmul.mubr.msk.f32.gmra.mxu1 %vm1738_vm0, %v1621_v51 }
 0x432   : > { %2759 = vmatprep.mubr.f32.mxu1 %v14034_v17 }
 0x433   : > { %v1921_v19 = vpop.f32.mrf.mxu1 }
 0x434   : > { %3457 = vrot.lane.b32.xlu0 %v1921_v19, %s9272_s23  ;;  %v10500_v19 = vpop.trf.xlu0 }
 0x435   : > { %v10441_v21 = vpop.f32.mrf.mxu1  ;;  %7454 = vmatmul.mubr.msk.f32.gmra.mxu1 %vm1738_vm0, %v1622_v8  ;;  %14313 = vst [vmem:[#allocation59_spill] sm:$0xff] %v10500_v19 }
 0x436   : > { %2765 = vmatprep.mubr.f32.mxu1 %v14034_v17 }
 0x437   : > { %v1927_v39 = vpop.f32.mrf.mxu1 }
 0x438   : > { %3461 = vrot.lane.b32.xlu0 %v1927_v39, %s9273_s22 }
 0x439   : > { %v10450_v16 = vpop.f32.mrf.mxu1  ;;  %7455 = vmatmul.mubr.msk.f32.gmra.mxu1 %vm1738_vm0, %v1623_v12 }
 0x43a   : > { %2771 = vmatprep.mubr.f32.mxu1 %v14034_v17 }
 0x43b   : > { %v1933_v24 = vpop.f32.mrf.mxu1 }
 0x43c   : > { %3465 = vrot.lane.b32.xlu0 %v1933_v24, %s9274_s16 }
 0x43d   : > { %v10457_v29 = vpop.f32.mrf.mxu1  ;;  %7456 = vmatmul.mubr.msk.f32.gmra.mxu1 %vm1738_vm0, %v1624_v60 }
 0x43e   : > { %2777 = vmatprep.mubr.f32.mxu1 %v14034_v17 }
 0x43f   : > { %v10465_v48 = vpop.f32.mrf.mxu1 }
 0x441   : > { %v10467_v30 = vpop.f32.mrf.mxu1  ;;  %7457 = vmatmul.mubr.msk.f32.gmra.mxu1 %vm1738_vm0, %v1625_v50 }
 0x442   : > { %3105 = vmatprep.mubr.f32.mxu1 %v14034_v17  ;;  %v10514_v17 = vpop.trf.xlu0 }
 0x443   : > { %v1945_v7 = vpop.f32.mrf.mxu1  ;;  %14316 = vst [vmem:[#allocation62_spill] sm:$0xff] %v10514_v17 }
 0x444   : > { %3473 = vrot.lane.b32.xlu0 %v1945_v7, %s14065_s17 }
 0x445   : > { %v10476_v41 = vpop.f32.mrf.mxu1 }
 0x446   : > { %14306 = vst [vmem:[#allocation52_spill] sm:$0xff] %v10476_v41  ;;  %v10528_v2 = vpop.trf.xlu0 }
 0x447   : > { %v10480_v58 = vpop.f32.mrf.mxu1  ;;  %14318 = vst [vmem:[#allocation64_spill] sm:$0xff] %v10528_v2 }
 0x449   : > { %v10482_v53 = vpop.f32.mrf.mxu1  ;;  %v10484_v42 = vpop.f32.mrf.mxu0 }
 0x44a   : > { %14308 = vst [vmem:[#allocation54_spill] sm:$0xff] %v10484_v42  ;;  %v10542_v47 = vpop.trf.xlu0 }
 0x44b   : > { %v10488_v54 = vpop.f32.mrf.mxu1  ;;  %v10490_v31 = vpop.f32.mrf.mxu0  ;;  %14321 = vst [vmem:[#allocation67_spill] sm:$0xff] %v10542_v47 }
 0x44c   : > { %14310 = vst [vmem:[#allocation56_spill] sm:$0xff] %v10490_v31 }
 0x44d   : > { %v10492_v51 = vpop.f32.mrf.mxu1  ;;  %v10494_v3 = vpop.f32.mrf.mxu0 }
 0x44e   : > { %14311 = vst [vmem:[#allocation57_spill] sm:$0xff] %v10494_v3  ;;  %v10556_v19 = vpop.trf.xlu0 }
 0x44f   : > { %v10496_v8 = vpop.f32.mrf.mxu1  ;;  %v10498_v9 = vpop.f32.mrf.mxu0  ;;  %14323 = vst [vmem:[#allocation69_spill] sm:$0xff] %v10556_v19 }
 0x450   : > { %14312 = vst [vmem:[#allocation58_spill] sm:$0xff] %v10498_v9 }
 0x451   : > { %v10502_v12 = vpop.f32.mrf.mxu1  ;;  %v10504_v39 = vpop.f32.mrf.mxu0 }
 0x452   : > { %14314 = vst [vmem:[#allocation60_spill] sm:$0xff] %v10504_v39  ;;  %v10570_v55 = vpop.trf.xlu0 }
 0x453   : > { %v10506_v60 = vpop.f32.mrf.mxu1  ;;  %v10508_v24 = vpop.f32.mrf.mxu0  ;;  %14326 = vst [vmem:[#allocation72_spill] sm:$0xff] %v10570_v55 }
 0x455   : > { %v10510_v50 = vpop.f32.mrf.mxu1  ;;  %v10512_v7 = vpop.f32.mrf.mxu0 }
 0x456   : > { %14315 = vst [vmem:[#allocation61_spill] sm:$0xff] %v10512_v7  ;;  %v10582_v3 = vpop.trf.xlu0 }
 0x457   : > { %v10516_v22 = vpop.f32.mrf.mxu1  ;;  %v10518_v26 = vpop.f32.mrf.mxu0  ;;  %14328 = vst [vmem:[#allocation74_spill] sm:$0xff] %v10582_v3 }
 0x459   : > { %v10520_v61 = vpop.f32.mrf.mxu1  ;;  %v10522_v25 = vpop.f32.mrf.mxu0 }
 0x45a   : > { %14317 = vst [vmem:[#allocation63_spill] sm:$0xff] %v10522_v25 }
 0x45b   : > { %v10524_v38 = vpop.f32.mrf.mxu1  ;;  %v10526_v6 = vpop.f32.mrf.mxu0 }
 0x45d   : > { %v10530_v5 = vpop.f32.mrf.mxu1  ;;  %v10532_v57 = vpop.f32.mrf.mxu0 }
 0x45e   : > { %14319 = vst [vmem:[#allocation65_spill] sm:$0xff] %v10532_v57 }
 0x45f   : > { %v10534_v28 = vpop.f32.mrf.mxu1  ;;  %v10536_v49 = vpop.f32.mrf.mxu0 }
 0x461   : > { %v10538_v14 = vpop.f32.mrf.mxu1  ;;  %v10540_v62 = vpop.f32.mrf.mxu0 }
 0x462   : > { %14320 = vst [vmem:[#allocation66_spill] sm:$0xff] %v10540_v62 }
 0x463   : > { %v10544_v13 = vpop.f32.mrf.mxu1  ;;  %v10546_v0 = vpop.f32.mrf.mxu0 }
 0x465   : > { %v10548_v15 = vpop.f32.mrf.mxu1  ;;  %v10550_v35 = vpop.f32.mrf.mxu0 }
 0x466   : > { %14322 = vst [vmem:[#allocation68_spill] sm:$0xff] %v10550_v35 }
 0x467   : > { %v10552_v2 = vpop.f32.mrf.mxu1  ;;  %v10554_v17 = vpop.f32.mrf.mxu0 }
 0x469   : > { %v10558_v45 = vpop.f32.mrf.mxu1  ;;  %v10560_v52 = vpop.f32.mrf.mxu0 }
 0x46a   : > { %14324 = vst [vmem:[#allocation70_spill] sm:$0xff] %v10560_v52 }
 0x46b   : > { %v10562_v1 = vpop.f32.mrf.mxu1  ;;  %v10564_v47 = vpop.f32.mrf.mxu0 }
 0x46d   : > { %v10566_v11 = vpop.f32.mrf.mxu1  ;;  %v10568_v18 = vpop.f32.mrf.mxu0 }
 0x46e   : > { %14325 = vst [vmem:[#allocation71_spill] sm:$0xff] %v10568_v18 }
 0x46f   : > { %v10572_v23 = vpop.f32.mrf.mxu1  ;;  %v2536_v43 = vpop.f32.mrf.mxu0 }
 0x470   : > { %3641 = vrot.lane.b32.xlu1 %v2536_v43, %s14080_s27 }
 0x471   : > { %v10575_v19 = vpop.f32.mrf.mxu1  ;;  %v10577_v56 = vpop.f32.mrf.mxu0 }
 0x472   : > { %14327 = vst [vmem:[#allocation73_spill] sm:$0xff] %v10577_v56 }
 0x473   : > { %v10579_v37 = vpop.f32.mrf.mxu1  ;;  %v2542_v20 = vpop.f32.mrf.mxu0 }
 0x474   : > { %3645 = vrot.lane.b32.xlu1 %v2542_v20, %s14112_s26 }
 0x475   : > { %v10584_v39 = vpop.f32.mrf.mxu1  ;;  %v10586_v7 = vpop.f32.mrf.mxu0 }
 0x476   : > { %14329 = vst [vmem:[#allocation75_spill] sm:$0xff] %v10586_v7  ;;  %v10614_v7 = vpop.trf.xlu1 }
 0x477   : > { %v10588_v55 = vpop.f32.mrf.mxu1  ;;  %v2548_v42 = vpop.f32.mrf.mxu0  ;;  %14335 = vst [vmem:[#allocation81_spill] sm:$0xff] %v10614_v7 }
 0x478   : > { %3469 = vrot.lane.b32.xlu1 %v10465_v48, %s9276_s7 }
 0x479   : > { %v10592_v43 = vpop.f32.mrf.mxu1  ;;  %v10594_v25 = vpop.f32.mrf.mxu0 }
 0x47a   : > { %14330 = vst [vmem:[#allocation76_spill] sm:$0xff] %v10594_v25  ;;  %v10596_v57 = vpop.permute.xlu0 %3413 }
 0x47b   : > { %14331 = vst [vmem:[#allocation77_spill] sm:$0xff] %v10596_v57  ;;  %v10598_v20 = vpop.f32.mrf.mxu1  ;;  %v2554_v62 = vpop.f32.mrf.mxu0 }
 0x47c   : > { %3649 = vrot.lane.b32.xlu1 %v2548_v42, %s9272_s23 }
 0x47d   : > { %v10601_v3 = vpop.f32.mrf.mxu1  ;;  %v10610_v18 = vpop.f32.mrf.mxu0 }
 0x47e   : > { %v10603_v35 = vpop.permute.xlu0 %3417  ;;  %14333 = vst [vmem:[#allocation79_spill] sm:$0xff] %v10610_v18 }
 0x47f   : > { %14332 = vst [vmem:[#allocation78_spill] sm:$0xff] %v10603_v35  ;;  %v10605_v52 = vpop.f32.mrf.mxu1  ;;  %v2560_v42 = vpop.f32.mrf.mxu0 }
 0x480   : > { %3653 = vrot.lane.b32.xlu1 %v2554_v62, %s9273_s22  ;;  %v10627_v62 = vpop.trf.xlu1 }
 0x481   : > { %v10608_v48 = vpop.f32.mrf.mxu1  ;;  %14338 = vst [vmem:[#allocation84_spill] sm:$0xff] %v10627_v62  ;;  %v10629_v18 = vpop.f32.mrf.mxu0 }
 0x482   : > { %v10612_v56 = vpop.permute.xlu0 %3421  ;;  %14339 = vst [vmem:[#allocation85_spill] sm:$0xff] %v10629_v18 }
 0x483   : > { %14334 = vst [vmem:[#allocation80_spill] sm:$0xff] %v10612_v56  ;;  %v10616_v25 = vpop.f32.mrf.mxu1 }
 0x484   : > { %3477 = vrot.lane.b32.xlu1 %v10480_v58, %s14038_s6  ;;  %v2566_v58 = vpop.f32.mrf.mxu0  ;;  %s14358_s6 = smov 313  }
 0x485   : > { %v10620_v31 = vpop.f32.mrf.mxu1 }
 0x486   : > { %14336 = vst [vmem:[#allocation82_spill] sm:$0xff] %v10620_v31  ;;  %v10622_v41 = vpop.permute.xlu0 %3425  ;;  %v10648_v62 = vpop.f32.mrf.mxu0 }
 0x487   : > { %v10624_v57 = vpop.f32.mrf.mxu1  ;;  %14345 = vst [vmem:[#allocation91_spill] sm:$0xff] %v10648_v62 }
 0x488   : > { %14337 = vst [vmem:[#allocation83_spill] sm:$0xff] %v10624_v57  ;;  %3657 = vrot.lane.b32.xlu1 %v2560_v42, %s9274_s16  ;;  %v10643_v57 = vpop.trf.xlu1 }
 0x489   : > { %v10631_v46 = vpop.f32.mrf.mxu1  ;;  %14343 = vst [vmem:[#allocation89_spill] sm:$0xff] %v10643_v57 }
 0x48a   : > { %14340 = vst [vmem:[#allocation86_spill] sm:$0xff] %v10631_v46  ;;  %v10633_v7 = vpop.permute.xlu0 %3429 }
 0x48b   : > { %v10635_v35 = vpop.f32.mrf.mxu1 }
 0x48c   : > { %14341 = vst [vmem:[#allocation87_spill] sm:$0xff] %v10635_v35  ;;  %3481 = vrot.lane.b32.xlu1 %v10488_v54, %s14040_s11  ;;  %v2572_v35 = vpop.f32.mrf.mxu0  ;;  %s14360_s11 = smov 321  }
 0x48d   : > { %v10639_v31 = vpop.f32.mrf.mxu1 }
 0x48e   : > { %14342 = vst [vmem:[#allocation88_spill] sm:$0xff] %v10639_v31  ;;  %v10641_v40 = vpop.permute.xlu0 %3433  ;;  %v10658_v31 = vpop.trf.xlu1 }
 0x48f   : > { %v10645_v42 = vpop.f32.mrf.mxu1  ;;  %14348 = vst [vmem:[#allocation94_spill] sm:$0xff] %v10658_v31 }
 0x490   : > { %14344 = vst [vmem:[#allocation90_spill] sm:$0xff] %v10645_v42  ;;  %3661 = vrot.lane.b32.xlu1 %v2566_v58, %s9276_s7  ;;  %v10665_v58 = vld [vmem:[#allocation7 + $0x40] sm:$0xff] }
 0x491   : > { %v10650_v46 = vpop.f32.mrf.mxu1 }
 0x492   : > { %14346 = vst [vmem:[#allocation92_spill] sm:$0xff] %v10650_v46  ;;  %v10652_v18 = vpop.permute.xlu0 %3437  ;;  %v10667_v46 = vpop.trf.xlu1 }
 0x493   : > { %v10656_v54 = vpop.f32.mrf.mxu1  ;;  %14350 = vst [vmem:[#allocation96_spill] sm:$0xff] %v10667_v46 }
 0x494   : > { %3485 = vrot.lane.b32.xlu1 %v10496_v8, %s9263_s13  ;;  %14347 = vst [vmem:[#allocation93_spill] sm:$0xff] %v10656_v54 }
 0x495   : > { %v10663_v57 = vpop.f32.mrf.mxu1 }
 0x496   : > { %v10660_v56 = vpop.permute.xlu0 %3441  ;;  %14349 = vst [vmem:[#allocation95_spill] sm:$0xff] %v10663_v57 }
 0x497   : > { %v10672_v8 = vpop.f32.mrf.mxu1 }
 0x498   : > { %3665 = vrot.lane.b32.xlu1 %v2572_v35, %s14065_s17 }
 0x499   : > { %v10683_v46 = vpop.f32.mrf.mxu1 }
 0x49a   : > { %v3446_v62 = vpop.permute.xlu0 %3445  ;;  %14352 = vst [vmem:[#allocation98_spill] sm:$0xff] %v10683_v46 }
 0x49b   : > { %v3931_v42 = vadd.f32 %v3446_v62, %v10407_v59  ;;  %v10685_v59 = vpop.trf.xlu1  ;;  %v10690_v62 = vld [vmem:[#allocation7 + $0x50] sm:$0xff] }
 0x49c   : > { %3489 = vrot.lane.b32.xlu1 %v10506_v60, %s14110_s25  ;;  %14353 = vst [vmem:[#allocation99_spill] sm:$0xff] %v10685_v59 }
 0x49d   : > { %v10675_v31 = vadd.f32 %v10665_v58, %v3931_v42 }
 0x49e   : > { %v3450_v35 = vpop.permute.xlu0 %3449 }
 0x49f   : > { %14351 = vst [vmem:[#allocation97_spill] sm:$0xff] %v10675_v31  ;;  %v3932_v57 = vadd.f32 %v3450_v35, %v10416_v33  ;;  %4211 = vmax.xlane.f32.xlu0 %v10675_v31  ;;  %v10696_v33 = vpop.f32.mrf.mxu1  ;;  %v10701_v35 = vpop.trf.xlu1 }
 0x4a0   : > { %3493 = vrot.lane.b32.xlu1 %v10516_v22, %s14048_s15  ;;  %14356 = vst [vmem:[#allocation102_spill] sm:$0xff] %v10701_v35 }
 0x4a1   : > { %v10688_v60 = vadd.f32 %v10677_v34, %v3932_v57  ;;  %v10706_v57 = vpop.f32.mrf.mxu1 }
 0x4a2   : > { %v3454_v42 = vpop.permute.xlu0 %3453  ;;  %14357 = vst [vmem:[#allocation103_spill] sm:$0xff] %v10706_v57 }
 0x4a3   : > { %14354 = vst [vmem:[#allocation100_spill] sm:$0xff] %v10688_v60  ;;  %v3933_v54 = vadd.f32 %v3454_v42, %v10425_v4  ;;  %4213 = vmax.xlane.f32.xlu0 %v10688_v60  ;;  %v10710_v4 = vpop.f32.mrf.mxu1 }
 0x4a4   : > { %3497 = vrot.lane.b32.xlu1 %v10524_v38, %s14096_s30  ;;  %v10712_v38 = vpop.trf.xlu1 }
 0x4a5   : > { %v10699_v22 = vadd.f32 %v10690_v62, %v3933_v54  ;;  %14359 = vst [vmem:[#allocation104_spill] sm:$0xff] %v10712_v38  ;;  %v10716_v54 = vpop.f32.mrf.mxu1 }
 0x4a6   : > { %14361 = vst [vmem:[#allocation105_spill] sm:$0xff] %v10716_v54 }
 0x4a7   : > { %14355 = vst [vmem:[#allocation101_spill] sm:$0xff] %v10699_v22  ;;  %4215 = vmax.xlane.f32.xlu0 %v10699_v22 }
 0x4a8   : > { %3501 = vrot.lane.b32.xlu1 %v10534_v28, %s14098_s5  ;;  %v10718_v42 = vpop.trf.xlu1  ;;  %v10722_v28 = vpop.f32.mrf.mxu1 }
 0x4a9   : > { %14362 = vst [vmem:[#allocation106_spill] sm:$0xff] %v10718_v42 }
 0x4aa   : > { %v10724_v35 = vpop.f32.mrf.mxu1 }
 0x4ab   : > { %14363 = vst [vmem:[#allocation107_spill] sm:$0xff] %v10724_v35 }
 0x4ac   : > { %3505 = vrot.lane.b32.xlu1 %v10544_v13, %s14358_s6  ;;  %v10728_v13 = vpop.trf.xlu1  ;;  %v2321_v38 = vpop.f32.mrf.mxu1 }
 0x4ad   : > { %14364 = vst [vmem:[#allocation108_spill] sm:$0xff] %v10728_v13  ;;  %v3458_v13 = vpop.permute.xlu0 %3457 }
 0x4b0   : > { %3509 = vrot.lane.b32.xlu1 %v10552_v2, %s14360_s11  ;;  %v10733_v2 = vpop.trf.xlu1 }
 0x4b1   : > { %14365 = vst [vmem:[#allocation109_spill] sm:$0xff] %v10733_v2 }
 0x4b4   : > { %3513 = vrot.lane.b32.xlu1 %v10562_v1, %s14080_s27  ;;  %v10739_v1 = vpop.trf.xlu1 }
 0x4b5   : > { %14366 = vst [vmem:[#allocation110_spill] sm:$0xff] %v10739_v1  ;;  %v10756_v1 = vld [vmem:[#allocation7 + $0x58] sm:$0xff] }
 0x4b8   : > { %3517 = vrot.lane.b32.xlu1 %v10572_v23, %s14112_s26  ;;  %v10743_v23 = vpop.trf.xlu1 }
 0x4b9   : > { %14367 = vst [vmem:[#allocation111_spill] sm:$0xff] %v10743_v23 }
 0x4bc   : > { %3521 = vrot.lane.b32.xlu1 %v10579_v37, %s9272_s23  ;;  %v10747_v37 = vpop.f32.mrf.mxu1 }
 0x4bd   : > { %3573 = vrot.lane.b32.xlu0 %v2321_v38, %s14360_s11  ;;  %14368 = vst [vmem:[#allocation112_spill] sm:$0xff] %v10747_v37  ;;  %v10749_v38 = vpop.trf.xlu1 }
 0x4be   : > { %14369 = vst [vmem:[#allocation113_spill] sm:$0xff] %v10749_v38  ;;  %v2327_v2 = vpop.f32.mrf.mxu1 }
 0x4c0   : > { %3525 = vrot.lane.b32.xlu1 %v10588_v55, %s9273_s22  ;;  %v3934_v55 = vadd.f32 %v3458_v13, %v10432_v32 }
 0x4c1   : > { %v10752_v42 = vpop.trf.xlu1 }
 0x4c2   : > { %14370 = vst [vmem:[#allocation114_spill] sm:$0xff] %v10752_v42  ;;  %v10774_v42 = vld [vmem:[#allocation7 + $0x70] sm:$0xff] }
 0x4c4   : > { %3529 = vrot.lane.b32.xlu1 %v10598_v20, %s9274_s16  ;;  %v10754_v20 = vpop.f32.mrf.mxu1 }
 0x4c5   : > { %14371 = vst [vmem:[#allocation115_spill] sm:$0xff] %v10754_v20 }
 0x4c6   : > { %v2333_v23 = vpop.f32.mrf.mxu1 }
 0x4c8   : > { %3533 = vrot.lane.b32.xlu1 %v10605_v52, %s9276_s7  ;;  %v10759_v52 = vadd.f32 %v10756_v1, %v3934_v55  ;;  %v10764_v59 = vpop.f32.mrf.mxu1 }
 0x4c9   : > { %14374 = vst [vmem:[#allocation118_spill] sm:$0xff] %v10764_v59 }
 0x4ca   : > { %14372 = vst [vmem:[#allocation116_spill] sm:$0xff] %v10759_v52  ;;  %v10768_v31 = vpop.f32.mrf.mxu1 }
 0x4cc   : > { %3537 = vrot.lane.b32.xlu1 %v10616_v25, %s14065_s17  ;;  %v10762_v25 = vpop.trf.xlu1  ;;  %v10772_v13 = vpop.f32.mrf.mxu1 }
 0x4cd   : > { %14373 = vst [vmem:[#allocation117_spill] sm:$0xff] %v10762_v25  ;;  %14377 = vst [vmem:[#allocation121_spill] sm:$0xff] %v10772_v13 }
 0x4ce   : > { %v10776_v55 = vpop.f32.mrf.mxu1 }
 0x4d0   : > { %v10784_v46 = vpop.f32.mrf.mxu1 }
 0x4d1   : > { %14380 = vst [vmem:[#allocation124_spill] sm:$0xff] %v10784_v46  ;;  %v10814_v46 = vld [vmem:[#allocation7 + $0x60] sm:$0xff] }
 0x4d2   : > { %v10790_v37 = vpop.f32.mrf.mxu1 }
 0x4d4   : > { %v10794_v20 = vpop.f32.mrf.mxu1 }
 0x4d5   : > { %14383 = vst [vmem:[#allocation127_spill] sm:$0xff] %v10794_v20 }
 0x4dc   : > { %4217 = vmax.xlane.f32.xlu0 %v10759_v52 }
 0x4e2   : > { %v10766_v38 = vpop.permute.xlu1 %3641 }
 0x4e3   : > { %14375 = vst [vmem:[#allocation119_spill] sm:$0xff] %v10766_v38  ;;  %v3462_v38 = vpop.permute.xlu0 %3461 }
 0x4e6   : > { %v10770_v32 = vpop.permute.xlu1 %3645 }
 0x4e7   : > { %14376 = vst [vmem:[#allocation120_spill] sm:$0xff] %v10770_v32  ;;  %v3935_v32 = vadd.f32 %v3462_v38, %v10441_v21 }
 0x4e9   : > { %v10819_v20 = vadd.f32 %v10814_v46, %v3935_v32 }
 0x4ea   : > { %v3470_v60 = vpop.permute.xlu1 %3469 }
 0x4eb   : > { %v3937_v22 = vadd.f32 %v3470_v60, %v10457_v29  ;;  %v10798_v60 = vpop.f32.mrf.mxu1  ;;  %14388 = vst [vmem:[#allocation132_spill] sm:$0xff] %v10819_v20 }
 0x4ed   : > { %v10780_v35 = vadd.f32 %v10774_v42, %v3937_v22  ;;  %v10802_v54 = vpop.f32.mrf.mxu1 }
 0x4ee   : > { %v10782_v25 = vpop.permute.xlu1 %3649  ;;  %14385 = vst [vmem:[#allocation129_spill] sm:$0xff] %v10802_v54 }
 0x4ef   : > { %14378 = vst [vmem:[#allocation122_spill] sm:$0xff] %v10780_v35  ;;  %14379 = vst [vmem:[#allocation123_spill] sm:$0xff] %v10782_v25 }
 0x4f0   : > { %4223 = vmax.xlane.f32.xlu1 %v10780_v35  ;;  %v2363_v35 = vpop.f32.mrf.mxu1 }
 0x4f2   : > { %3577 = vrot.lane.b32.xlu0 %v2327_v2, %s14080_s27  ;;  %v10788_v52 = vpop.permute.xlu1 %3653 }
 0x4f3   : > { %14381 = vst [vmem:[#allocation125_spill] sm:$0xff] %v10788_v52 }
 0x4f6   : > { %v10792_v57 = vpop.permute.xlu1 %3477 }
 0x4f7   : > { %14382 = vst [vmem:[#allocation126_spill] sm:$0xff] %v10792_v57 }
 0x4fa   : > { %v10796_v29 = vpop.permute.xlu1 %3657 }
 0x4fb   : > { %14384 = vst [vmem:[#allocation128_spill] sm:$0xff] %v10796_v29 }
 0x4fe   : > { %v10800_v22 = vpop.permute.xlu1 %3481 }
 0x501   : > { %3637 = vrot.lane.b32.xlu1 %v10564_v47, %s14360_s11 }
 0x502   : > { %v10806_v2 = vpop.permute.xlu1 %3661 }
 0x503   : > { %14386 = vst [vmem:[#allocation130_spill] sm:$0xff] %v10806_v2 }
 0x505   : > { %3601 = vrot.lane.b32.xlu1 %v2363_v35, %s14065_s17 }
 0x506   : > { %v10809_v59 = vpop.permute.xlu1 %3485 }
 0x50a   : > { %v10811_v13 = vpop.permute.xlu1 %3665 }
 0x50b   : > { %14387 = vst [vmem:[#allocation131_spill] sm:$0xff] %v10811_v13 }
 0x50e   : > { %v10816_v25 = vpop.permute.xlu1 %3489 }
 0x511   : > { %4219 = vmax.xlane.f32.xlu0 %v10819_v20 }
 0x512   : > { %v10822_v47 = vpop.permute.xlu1 %3493 }
 0x516   : > { %v3498_v52 = vpop.permute.xlu1 %3497 }
 0x51a   : > { %v3502_v35 = vpop.permute.xlu1 %3501 }
 0x51e   : > { %v3506_v57 = vpop.permute.xlu1 %3505 }
 0x522   : > { %v3510_v29 = vpop.permute.xlu1 %3509 }
 0x523   : > { %v3947_v2 = vadd.f32 %v3510_v29, %v10548_v15 }
 0x525   : > { %v10826_v21 = vadd.f32 %v10665_v58, %v3947_v2 }
 0x526   : > { %v3514_v13 = vpop.permute.xlu1 %3513 }
 0x527   : > { %14389 = vst [vmem:[#allocation133_spill] sm:$0xff] %v10826_v21  ;;  %v3948_v38 = vadd.f32 %v3514_v13, %v10558_v45  ;;  %3581 = vrot.lane.b32.xlu0 %v2333_v23, %s14112_s26 }
 0x529   : > { %4243 = vmax.xlane.f32.xlu1 %v10826_v21  ;;  %v10832_v20 = vadd.f32 %v10677_v34, %v3948_v38  ;;  %v14452_v21 = vld [vmem:[#allocation131_spill] sm:$0xff] }
 0x52a   : > { %v3518_v32 = vpop.permute.xlu1 %3517 }
 0x52b   : > { %14390 = vst [vmem:[#allocation134_spill] sm:$0xff] %v10832_v20  ;;  %v3949_v54 = vadd.f32 %v3518_v32, %v10566_v11 }
 0x52d   : > { %4245 = vmax.xlane.f32.xlu1 %v10832_v20  ;;  %v10837_v15 = vadd.f32 %v10690_v62, %v3949_v54  ;;  %v10851_v54 = vld [vmem:[#allocation7 + $0x68] sm:$0xff] }
 0x52e   : > { %v3522_v9 = vpop.permute.xlu1 %3521 }
 0x52f   : > { %14391 = vst [vmem:[#allocation135_spill] sm:$0xff] %v10837_v15  ;;  %v3950_v29 = vadd.f32 %v3522_v9, %v10575_v19 }
 0x531   : > { %4247 = vmax.xlane.f32.xlu1 %v10837_v15  ;;  %v10842_v23 = vadd.f32 %v10756_v1, %v3950_v29  ;;  %v3466_v29 = vpop.permute.xlu0 %3465  ;;  %v14476_v15 = vld [vmem:[#allocation56_spill] sm:$0xff] }
 0x532   : > { %v3526_v45 = vpop.permute.xlu1 %3525 }
 0x533   : > { %14392 = vst [vmem:[#allocation136_spill] sm:$0xff] %v10842_v23  ;;  %v3951_v13 = vadd.f32 %v3526_v45, %v10584_v39  ;;  %v3946_v39 = vadd.f32 %v3506_v57, %v10538_v14  ;;  %v3945_v14 = vadd.f32 %v3502_v35, %v10530_v5  ;;  %v3944_v5 = vadd.f32 %v3498_v52, %v10520_v61 }
 0x534   : > { %v3943_v61 = vadd.f32 %v10822_v47, %v10510_v50 }
 0x535   : > { %4249 = vmax.xlane.f32.xlu1 %v10842_v23  ;;  %v10847_v11 = vadd.f32 %v10814_v46, %v3951_v13  ;;  %v10864_v13 = vld [vmem:[#allocation7 + $0x38] sm:$0xff] }
 0x536   : > { %v3530_v2 = vpop.permute.xlu1 %3529 }
 0x537   : > { %v3952_v38 = vadd.f32 %v3530_v2, %v10592_v43  ;;  %v3936_v43 = vadd.f32 %v3466_v29, %v10450_v16  ;;  %v10867_v2 = vadd.f32 %v10864_v13, %v3946_v39  ;;  %v3474_v16 = vpop.permute.xlu0 %3473 }
 0x539   : > { %4251 = vmax.xlane.f32.xlu1 %v10847_v11  ;;  %v10854_v19 = vadd.f32 %v10851_v54, %v3952_v38  ;;  %14393 = vst [vmem:[#allocation137_spill] sm:$0xff] %v10867_v2  ;;  %v10870_v38 = vadd.f32 %v10851_v54, %v3936_v43 }
 0x53a   : > { %v3534_v9 = vpop.permute.xlu1 %3533 }
 0x53b   : > { %v3953_v32 = vadd.f32 %v3534_v9, %v10601_v3  ;;  %v10881_v3 = vld [vmem:[#allocation7 + $0x30] sm:$0xff]  ;;  %v3938_v9 = vadd.f32 %v3474_v16, %v10467_v30  ;;  %v10901_v30 = vld [vmem:[#allocation7 + $0x28] sm:$0xff] }
 0x53c   : > { %v10884_v57 = vadd.f32 %v10881_v3, %v3945_v14 }
 0x53d   : > { %4253 = vmax.xlane.f32.xlu1 %v10854_v19  ;;  %v10860_v45 = vadd.f32 %v10774_v42, %v3953_v32  ;;  %v10887_v32 = vld [vmem:[#allocation7 + $0x78] sm:$0xff] }
 0x53e   : > { %14394 = vst [vmem:[#allocation138_spill] sm:$0xff] %v10884_v57 }
 0x541   : > { %4255 = vmax.xlane.f32.xlu1 %v10860_v45 }
 0x545   : > { %4241 = vmax.xlane.f32.xlu1 %v10867_v2 }
 0x546   : > { %4221 = vmax.xlane.f32.xlu0 %v10870_v38 }
 0x556   : > { %3633 = vrot.lane.b32.xlu1 %v10554_v17, %s14358_s6  ;;  %v10891_v17 = vadd.f32 %v10887_v32, %v3938_v9  ;;  %v11004_v9 = vld [vmem:[#allocation7 + $0x8] sm:$0xff] }
 0x557   : > { %14411 = vst [vmem:[#allocation155_spill] sm:$0xff] %v11004_v9 }
 0x55c   : > { %3585 = vrot.lane.b32.xlu0 %v10768_v31, %s9272_s23  ;;  %v10904_v31 = vadd.f32 %v10901_v30, %v3944_v5 }
 0x55e   : > { %14395 = vst [vmem:[#allocation139_spill] sm:$0xff] %v10904_v31 }
 0x560   : > { %3589 = vrot.lane.b32.xlu0 %v10776_v55, %s9273_s22  ;;  %v3930_v55 = vadd.f32 %v10660_v56, %v10400_v44  ;;  %v3929_v56 = vadd.f32 %v10652_v18, %v10391_v63  ;;  %v3538_v44 = vpop.permute.xlu1 %3537  ;;  %v3942_v63 = vadd.f32 %v10816_v25, %v10502_v12  ;;  %v10942_v18 = vld [vmem:[#allocation7 + $0x18] sm:$0xff]  ;;  %v10960_v12 = vld [vmem:[#allocation7 + $0x10] sm:$0xff] }
 0x57a   : > { %4239 = vmax.xlane.f32.xlu1 %v10884_v57 }
 0x57f   : > { %4225 = vmax.xlane.f32.xlu0 %v10891_v17 }
 0x58b   : > { %3629 = vrot.lane.b32.xlu1 %v10546_v0, %s14098_s5  ;;  %v10910_v0 = vadd.f32 %v10864_v13, %v3930_v55  ;;  %v11008_v55 = vpop.f32.mrf.mxu0 }
 0x58c   : > { %14412 = vst [vmem:[#allocation156_spill] sm:$0xff] %v11008_v55 }
 0x595   : > { %3593 = vrot.lane.b32.xlu0 %v10790_v37, %s9274_s16  ;;  %v10919_v37 = vld [vmem:[#allocation7 + $0x20] sm:$0xff] }
 0x596   : > { %v10922_v52 = vadd.f32 %v10919_v37, %v3943_v61 }
 0x598   : > { %14396 = vst [vmem:[#allocation140_spill] sm:$0xff] %v10922_v52 }
 0x599   : > { %3597 = vrot.lane.b32.xlu0 %v10798_v60, %s9276_s7  ;;  %v10928_v60 = vadd.f32 %v10881_v3, %v3929_v56  ;;  %v11016_v56 = vpop.f32.mrf.mxu0 }
 0x59a   : > { %14415 = vst [vmem:[#allocation159_spill] sm:$0xff] %v11016_v56  ;;  %v14457_v56 = vld [vmem:[#allocation78_spill] sm:$0xff] }
 0x59b   : > { %14397 = vst [vmem:[#allocation141_spill] sm:$0xff] %v10928_v60 }
 0x5af   : > { %4237 = vmax.xlane.f32.xlu1 %v10904_v31  ;;  %v14442_v31 = vld [vmem:[#allocation80_spill] sm:$0xff] }
 0x5b8   : > { %4209 = vmax.xlane.f32.xlu0 %v10910_v0 }
 0x5c0   : > { %3625 = vrot.lane.b32.xlu1 %v10536_v49, %s14096_s30  ;;  %v3954_v49 = vadd.f32 %v3538_v44, %v10608_v48  ;;  %v10945_v48 = vadd.f32 %v10942_v18, %v3942_v63 }
 0x5c2   : > { %v10933_v50 = vadd.f32 %v10887_v32, %v3954_v49  ;;  %14398 = vst [vmem:[#allocation142_spill] sm:$0xff] %v10945_v48  ;;  %v11020_v49 = vpop.f32.mrf.mxu0 }
 0x5c3   : > { %14416 = vst [vmem:[#allocation160_spill] sm:$0xff] %v11020_v49  ;;  %v14423_v49 = vld [vmem:[#allocation58_spill] sm:$0xff] }
 0x5c4   : > { %v11026_v63 = vpop.f32.mrf.mxu0 }
 0x5c5   : > { %14418 = vst [vmem:[#allocation162_spill] sm:$0xff] %v11026_v63 }
 0x5ce   : > { %3569 = vrot.lane.b32.xlu0 %v10722_v28, %s14358_s6  ;;  %v3928_v28 = vadd.f32 %v10641_v40, %v10382_v10  ;;  %v10965_v40 = vpop.f32.mrf.mxu1 }
 0x5cf   : > { %14401 = vst [vmem:[#allocation145_spill] sm:$0xff] %v10965_v40 }
 0x5d0   : > { %v10951_v47 = vadd.f32 %v10901_v30, %v3928_v28  ;;  %v10968_v10 = vpop.f32.mrf.mxu1 }
 0x5d1   : > { %14402 = vst [vmem:[#allocation146_spill] sm:$0xff] %v10968_v10 }
 0x5d2   : > { %14399 = vst [vmem:[#allocation143_spill] sm:$0xff] %v10951_v47  ;;  %v10970_v25 = vpop.f32.mrf.mxu1 }
 0x5d3   : > { %14403 = vst [vmem:[#allocation147_spill] sm:$0xff] %v10970_v25 }
 0x5e4   : > { %4235 = vmax.xlane.f32.xlu1 %v10922_v52 }
 0x5ed   : > { %4207 = vmax.xlane.f32.xlu0 %v10928_v60  ;;  %v14478_v60 = vld [vmem:[#allocation125_spill] sm:$0xff] }
 0x5f1   : > { %4257 = vmax.xlane.f32.xlu0 %v10933_v50 }
 0x5f5   : > { %3621 = vrot.lane.b32.xlu1 %v10526_v6, %s14048_s15  ;;  %v3941_v6 = vadd.f32 %v10809_v59, %v10492_v51 }
 0x607   : > { %3565 = vrot.lane.b32.xlu0 %v10710_v4, %s14098_s5  ;;  %v10963_v4 = vadd.f32 %v10960_v12, %v3941_v6 }
 0x609   : > { %14400 = vst [vmem:[#allocation144_spill] sm:$0xff] %v10963_v4 }
 0x619   : > { %4233 = vmax.xlane.f32.xlu1 %v10945_v48 }
 0x626   : > { %4205 = vmax.xlane.f32.xlu0 %v10951_v47 }
 0x62a   : > { %3617 = vrot.lane.b32.xlu1 %v10518_v26, %s14110_s25  ;;  %v3927_v26 = vadd.f32 %v10633_v7, %v10375_v36 }
 0x62c   : > { %v10977_v51 = vadd.f32 %v10919_v37, %v3927_v26  ;;  %v11034_v26 = vpop.f32.mrf.mxu0 }
 0x62d   : > { %14420 = vst [vmem:[#allocation164_spill] sm:$0xff] %v11034_v26 }
 0x62e   : > { %14405 = vst [vmem:[#allocation149_spill] sm:$0xff] %v10977_v51  ;;  %v11040_v55 = vpop.f32.mrf.mxu0 }
 0x62f   : > { %14424 = vst [vmem:[#allocation58_spill] sm:$0xff] %v11040_v55 }
 0x63c   : > { %3561 = vrot.lane.b32.xlu0 %v10696_v33, %s14096_s30  ;;  %v10974_v33 = vpop.f32.mrf.mxu1 }
 0x63d   : > { %14404 = vst [vmem:[#allocation148_spill] sm:$0xff] %v10974_v33 }
 0x63e   : > { %v10980_v59 = vpop.f32.mrf.mxu1 }
 0x63f   : > { %14406 = vst [vmem:[#allocation150_spill] sm:$0xff] %v10980_v59 }
 0x640   : > { %v10984_v35 = vpop.f32.mrf.mxu1 }
 0x642   : > { %v10986_v29 = vpop.f32.mrf.mxu1 }
 0x643   : > { %14407 = vst [vmem:[#allocation151_spill] sm:$0xff] %v10986_v29 }
 0x644   : > { %v10988_v39 = vpop.f32.mrf.mxu1 }
 0x646   : > { %v10990_v43 = vpop.f32.mrf.mxu1 }
 0x647   : > { %14408 = vst [vmem:[#allocation152_spill] sm:$0xff] %v10990_v43  ;;  %v11060_v43 = vpop.xlane.xlu1 %4223 }
 0x648   : > { %v10992_v36 = vpop.f32.mrf.mxu1 }
 0x64a   : > { %v10996_v7 = vpop.f32.mrf.mxu1 }
 0x64b   : > { %14409 = vst [vmem:[#allocation153_spill] sm:$0xff] %v10996_v7 }
 0x64c   : > { %v10998_v14 = vpop.f32.mrf.mxu1 }
 0x64e   : > { %4231 = vmax.xlane.f32.xlu1 %v10963_v4  ;;  %v11000_v16 = vpop.f32.mrf.mxu1 }
 0x64f   : > { %14410 = vst [vmem:[#allocation154_spill] sm:$0xff] %v11000_v16 }
 0x650   : > { %v11006_v5 = vpop.f32.mrf.mxu1 }
 0x65b   : > { %4203 = vmax.xlane.f32.xlu0 %v10977_v51 }
 0x65f   : > { %3613 = vrot.lane.b32.xlu1 %v10508_v24, %s9263_s13  ;;  %v3940_v24 = vadd.f32 %v10800_v22, %v10482_v53  ;;  %v3926_v53 = vadd.f32 %v10622_v41, %v10368_v27  ;;  %v11044_v41 = vpop.f32.mrf.mxu0 }
 0x660   : > { %14425 = vst [vmem:[#allocation166_spill] sm:$0xff] %v11044_v41 }
 0x661   : > { %v11011_v61 = vadd.f32 %v11004_v9, %v3940_v24  ;;  %v11029_v28 = vadd.f32 %v10942_v18, %v3926_v53  ;;  %v11048_v53 = vpop.f32.mrf.mxu0 }
 0x662   : > { %14427 = vst [vmem:[#allocation168_spill] sm:$0xff] %v11048_v53 }
 0x663   : > { %14413 = vst [vmem:[#allocation157_spill] sm:$0xff] %v11011_v61  ;;  %14419 = vst [vmem:[#allocation163_spill] sm:$0xff] %v11029_v28  ;;  %v11052_v59 = vpop.f32.mrf.mxu0 }
 0x664   : > { %14428 = vst [vmem:[#allocation169_spill] sm:$0xff] %v11052_v59 }
 0x665   : > { %v11056_v29 = vpop.f32.mrf.mxu0 }
 0x666   : > { %14430 = vst [vmem:[#allocation171_spill] sm:$0xff] %v11056_v29 }
 0x667   : > { %v11064_v41 = vpop.f32.mrf.mxu0 }
 0x671   : > { %3557 = vrot.lane.b32.xlu0 %v10672_v8, %s14048_s15  ;;  %v11014_v8 = vpop.f32.mrf.mxu1  ;;  %s14422_s15 = smov 265  }
 0x672   : > { %14414 = vst [vmem:[#allocation158_spill] sm:$0xff] %v11014_v8  ;;  %v11068_v8 = vpop.f32.mrf.mxu0 }
 0x673   : > { %v11018_v44 = vpop.f32.mrf.mxu1  ;;  %14434 = vst [vmem:[#allocation173_spill] sm:$0xff] %v11068_v8 }
 0x675   : > { %v11024_v22 = vpop.f32.mrf.mxu1 }
 0x676   : > { %14417 = vst [vmem:[#allocation161_spill] sm:$0xff] %v11024_v22  ;;  %v11070_v22 = vpop.permute.xlu1 %3637 }
 0x677   : > { %v11031_v6 = vpop.f32.mrf.mxu1 }
 0x679   : > { %v11036_v24 = vpop.f32.mrf.mxu1 }
 0x67a   : > { %14421 = vst [vmem:[#allocation165_spill] sm:$0xff] %v11036_v24  ;;  %v11074_v24 = vpop.f32.mrf.mxu0 }
 0x67b   : > { %v11042_v27 = vpop.f32.mrf.mxu1  ;;  %14435 = vst [vmem:[#allocation174_spill] sm:$0xff] %v11074_v24  ;;  %v14441_v24 = vld [vmem:[#allocation29_spill] sm:$0xff] }
 0x67d   : > { %v11046_v25 = vpop.f32.mrf.mxu1 }
 0x67e   : > { %14426 = vst [vmem:[#allocation167_spill] sm:$0xff] %v11046_v25  ;;  %v14436_v25 = vld [vmem:[#allocation129_spill] sm:$0xff] }
 0x67f   : > { %v11050_v40 = vpop.f32.mrf.mxu1 }
 0x681   : > { %v11054_v26 = vpop.f32.mrf.mxu1 }
 0x682   : > { %14429 = vst [vmem:[#allocation170_spill] sm:$0xff] %v11054_v26  ;;  %v11079_v26 = vpop.f32.mrf.mxu0 }
 0x683   : > { %4229 = vmax.xlane.f32.xlu1 %v11011_v61  ;;  %v11062_v7 = vpop.f32.mrf.mxu1  ;;  %v3602_v61 = vpop.permute.xlu1 %3601 }
 0x684   : > { %v3970_v4 = vadd.f32 %v3602_v61, %v14436_v25  ;;  %v3925_v25 = vadd.f32 %v14442_v31, %v14441_v24 }
 0x685   : > { %v11066_v16 = vpop.f32.mrf.mxu1 }
 0x686   : > { %14433 = vst [vmem:[#allocation172_spill] sm:$0xff] %v11066_v16  ;;  %v11082_v48 = vadd.f32 %v10887_v32, %v3970_v4  ;;  %v11087_v16 = vpop.f32.mrf.mxu0  ;;  %v11100_v4 = vadd.f32 %v10960_v12, %v3925_v25  ;;  %v14449_v25 = vld [vmem:[#allocation90_spill] sm:$0xff] }
 0x687   : > { %v11072_v59 = vpop.f32.mrf.mxu1  ;;  %14439 = vst [vmem:[#allocation176_spill] sm:$0xff] %v11087_v16 }
 0x688   : > { %14438 = vst [vmem:[#allocation175_spill] sm:$0xff] %v11082_v48  ;;  %14444 = vst [vmem:[#allocation80_spill] sm:$0xff] %v11100_v4 }
 0x690   : > { %4201 = vmax.xlane.f32.xlu0 %v11029_v28  ;;  %v11091_v28 = vpop.f32.mrf.mxu0 }
 0x694   : > { %3609 = vrot.lane.b32.xlu1 %v14423_v49, %s14422_s15  ;;  %v14431_v49 = vld [vmem:[#allocation93_spill] sm:$0xff] }
 0x695   : > { %14432 = vst [vmem:[#allocation93_spill] sm:$0xff] %v11064_v41 }
 0x6a6   : > { %3553 = vrot.lane.b32.xlu0 %v14431_v49, %s14110_s25  ;;  %v11077_v49 = vpop.f32.mrf.mxu1 }
 0x6a7   : > { %14437 = vst [vmem:[#allocation129_spill] sm:$0xff] %v11077_v49  ;;  %v11097_v49 = vpop.f32.mrf.mxu0 }
 0x6a8   : > { %v11084_v41 = vpop.f32.mrf.mxu1  ;;  %14443 = vst [vmem:[#allocation29_spill] sm:$0xff] %v11097_v49 }
 0x6a9   : > { %v11104_v63 = vpop.f32.mrf.mxu0 }
 0x6aa   : > { %v11089_v52 = vpop.f32.mrf.mxu1 }
 0x6ab   : > { %14440 = vst [vmem:[#allocation177_spill] sm:$0xff] %v11089_v52  ;;  %v14451_v52 = vld [vmem:[#allocation91_spill] sm:$0xff] }
 0x6ac   : > { %v11095_v61 = vpop.f32.mrf.mxu1 }
 0x6ae   : > { %v11102_v57 = vpop.f32.mrf.mxu1 }
 0x6af   : > { %14445 = vst [vmem:[#allocation178_spill] sm:$0xff] %v11102_v57 }
 0x6b0   : > { %v2781_v16 = vpop.f32.mrf.mxu1 }
 0x6b8   : > { %4289 = vmax.xlane.f32.xlu1 %v11082_v48  ;;  %v11107_v48 = vpop.f32.mrf.mxu0 }
 0x6b9   : > { %14446 = vst [vmem:[#allocation179_spill] sm:$0xff] %v11107_v48  ;;  %v3986_v48 = vadd.f32 %v14452_v21, %v14451_v52  ;;  %v14461_v52 = vld [vmem:[#allocation85_spill] sm:$0xff] }
 0x6ba   : > { %v11110_v2 = vpop.f32.mrf.mxu0 }
 0x6bc   : > { %v11112_v31 = vpop.f32.mrf.mxu0 }
 0x6bd   : > { %14447 = vst [vmem:[#allocation180_spill] sm:$0xff] %v11112_v31 }
 0x6be   : > { %v11114_v24 = vpop.f32.mrf.mxu0 }
 0x6c0   : > { %v11116_v49 = vpop.f32.mrf.mxu0 }
 0x6c1   : > { %14448 = vst [vmem:[#allocation181_spill] sm:$0xff] %v11116_v49  ;;  %v14456_v49 = vld [vmem:[#allocation27_spill] sm:$0xff] }
 0x6c2   : > { %v2966_v57 = vpop.f32.mrf.mxu0 }
 0x6c4   : > { %v11120_v55 = vpop.f32.mrf.mxu0 }
 0x6c5   : > { %4199 = vmax.xlane.f32.xlu0 %v11100_v4  ;;  %14450 = vst [vmem:[#allocation90_spill] sm:$0xff] %v11120_v55 }
 0x6c6   : > { %v2972_v4 = vpop.f32.mrf.mxu0 }
 0x6c8   : > { %v11124_v51 = vpop.f32.mrf.mxu0 }
 0x6c9   : > { %3729 = vrot.lane.b32.xlu1 %v2781_v16, %s14065_s17  ;;  %14453 = vst [vmem:[#allocation91_spill] sm:$0xff] %v11124_v51  ;;  %v11127_v16 = vadd.f32 %v10887_v32, %v3986_v48  ;;  %v14460_v32 = vld [vmem:[#allocation87_spill] sm:$0xff]  ;;  %v14462_v48 = vld [vmem:[#allocation130_spill] sm:$0xff] }
 0x6ca   : > { %v2978_v31 = vpop.f32.mrf.mxu0 }
 0x6cb   : > { %14454 = vst [vmem:[#allocation131_spill] sm:$0xff] %v11127_v16 }
 0x6cc   : > { %v11130_v53 = vpop.f32.mrf.mxu0 }
 0x6cd   : > { %14455 = vst [vmem:[#allocation182_spill] sm:$0xff] %v11130_v53  ;;  %v11151_v53 = vld [vmem:[#allocation7] sm:$0xff] }
 0x6ce   : > { %v2984_v20 = vpop.f32.mrf.mxu0  ;;  %14466 = vst [vmem:[#allocation85_spill] sm:$0xff] %v11151_v53 }
 0x6d0   : > { %v11137_v29 = vpop.f32.mrf.mxu0 }
 0x6d1   : > { %14459 = vst [vmem:[#allocation78_spill] sm:$0xff] %v11137_v29 }
 0x6d2   : > { %v2990_v21 = vpop.f32.mrf.mxu0 }
 0x6db   : > { %3549 = vrot.lane.b32.xlu0 %v14449_v25, %s9263_s13  ;;  %v3924_v25 = vadd.f32 %v14457_v56, %v14456_v49  ;;  %v14464_v56 = vld [vmem:[#allocation25_spill] sm:$0xff] }
 0x6dc   : > { %v14465_v49 = vld [vmem:[#allocation77_spill] sm:$0xff] }
 0x6dd   : > { %v11135_v55 = vadd.f32 %v11004_v9, %v3924_v25  ;;  %v3923_v25 = vadd.f32 %v14465_v49, %v14464_v56 }
 0x6df   : > { %14458 = vst [vmem:[#allocation27_spill] sm:$0xff] %v11135_v55 }
 0x6ed   : > { %4321 = vmax.xlane.f32.xlu1 %v11127_v16  ;;  %v3985_v16 = vadd.f32 %v14462_v48, %v14461_v52  ;;  %v14470_v52 = vld [vmem:[#allocation79_spill] sm:$0xff]  ;;  %v14471_v48 = vld [vmem:[#allocation128_spill] sm:$0xff] }
 0x6ef   : > { %v11146_v51 = vadd.f32 %v10774_v42, %v3985_v16 }
 0x6f1   : > { %14463 = vst [vmem:[#allocation87_spill] sm:$0xff] %v11146_v51 }
 0x6fa   : > { %4197 = vmax.xlane.f32.xlu0 %v11135_v55  ;;  %v11154_v55 = vadd.f32 %v11151_v53, %v3923_v25 }
 0x6fc   : > { %14467 = vst [vmem:[#allocation130_spill] sm:$0xff] %v11154_v55 }
 0x6fe   : > { %3793 = vrot.lane.b32.xlu1 %v2990_v21, %s14065_s17  ;;  %s14468_s17 = smov 257   ;;  %v14469_v21 = vld [vmem:[#allocation83_spill] sm:$0xff] }
 0x710   : > { %3545 = vrot.lane.b32.xlu0 %v14460_v32, %s14422_s15  ;;  %v11160_v32 = vpop.xlane.xlu0 %4211 }
 0x714   : > { %v11162_v16 = vpop.xlane.xlu0 %4213 }
 0x718   : > { %v11169_v49 = vpop.xlane.xlu0 %4215 }
 0x71c   : > { %v11172_v25 = vpop.permute.xlu0 %3573 }
 0x722   : > { %4319 = vmax.xlane.f32.xlu1 %v11146_v51  ;;  %v3984_v51 = vadd.f32 %v14471_v48, %v14470_v52 }
 0x724   : > { %v11167_v56 = vadd.f32 %v10851_v54, %v3984_v51 }
 0x726   : > { %14472 = vst [vmem:[#allocation25_spill] sm:$0xff] %v11167_v56 }
 0x72f   : > { %4195 = vmax.xlane.f32.xlu0 %v11154_v55  ;;  %v14474_v55 = vld [vmem:[#allocation126_spill] sm:$0xff] }
 0x733   : > { %3789 = vrot.lane.b32.xlu1 %v2984_v20, %s9276_s7  ;;  %v14473_v20 = vld [vmem:[#allocation52_spill] sm:$0xff] }
 0x734   : > { %v3939_v29 = vadd.f32 %v14474_v55, %v14473_v20  ;;  %v14477_v20 = vld [vmem:[#allocation76_spill] sm:$0xff] }
 0x735   : > { %v3983_v33 = vadd.f32 %v14478_v60, %v14477_v20  ;;  %v14483_v60 = vld [vmem:[#allocation123_spill] sm:$0xff] }
 0x736   : > { %v11179_v47 = vadd.f32 %v11151_v53, %v3939_v29 }
 0x737   : > { %v11190_v29 = vadd.f32 %v10814_v46, %v3983_v33 }
 0x738   : > { %14475 = vst [vmem:[#allocation77_spill] sm:$0xff] %v11179_v47 }
 0x739   : > { %14479 = vst [vmem:[#allocation83_spill] sm:$0xff] %v11190_v29 }
 0x745   : > { %3541 = vrot.lane.b32.xlu0 %v14469_v21, %s14468_s17  ;;  %v11176_v21 = vpop.xlane.xlu0 %4217 }
 0x749   : > { %v11182_v52 = vpop.permute.xlu0 %3577 }
 0x74d   : > { %v4220_v51 = vpop.xlane.xlu0 %4219 }
 0x751   : > { %v3582_v48 = vpop.permute.xlu0 %3581 }
 0x755   : > { %v4222_v10 = vpop.xlane.xlu0 %4221 }
 0x757   : > { %4317 = vmax.xlane.f32.xlu1 %v11167_v56 }
 0x759   : > { %v3586_v56 = vpop.permute.xlu0 %3585 }
 0x75d   : > { %v3590_v8 = vpop.permute.xlu0 %3589 }
 0x761   : > { %v4226_v55 = vpop.xlane.xlu0 %4225 }
 0x764   : > { %4227 = vmax.xlane.f32.xlu0 %v11179_v47 }
 0x765   : > { %v3594_v47 = vpop.permute.xlu0 %3593 }
 0x768   : > { %3785 = vrot.lane.b32.xlu1 %v2978_v31, %s9274_s16  ;;  %v14480_v31 = vld [vmem:[#allocation127_spill] sm:$0xff] }
 0x769   : > { %v3598_v53 = vpop.permute.xlu0 %3597 }
 0x76a   : > { %v3969_v9 = vadd.f32 %v3598_v53, %v14480_v31 }
 0x76c   : > { %v11195_v23 = vadd.f32 %v10774_v42, %v3969_v9  ;;  %v14487_v9 = vld [vmem:[#allocation73_spill] sm:$0xff] }
 0x76e   : > { %14481 = vst [vmem:[#allocation79_spill] sm:$0xff] %v11195_v23 }
 0x77a   : > { %3605 = vrot.lane.b32.xlu0 %v14476_v15, %s14468_s17  ;;  %v14482_v15 = vld [vmem:[#allocation75_spill] sm:$0xff] }
 0x77b   : > { %v3982_v33 = vadd.f32 %v14483_v60, %v14482_v15  ;;  %v14490_v15 = vld [vmem:[#allocation121_spill] sm:$0xff] }
 0x77d   : > { %v11204_v20 = vadd.f32 %v10756_v1, %v3982_v33 }
 0x77f   : > { %14484 = vst [vmem:[#allocation128_spill] sm:$0xff] %v11204_v20 }
 0x78c   : > { %4315 = vmax.xlane.f32.xlu1 %v11190_v29  ;;  %v14485_v29 = vld [vmem:[#allocation124_spill] sm:$0xff] }
 0x78d   : > { %v3968_v53 = vadd.f32 %v3594_v47, %v14485_v29  ;;  %v3967_v47 = vadd.f32 %v3590_v8, %v14490_v15  ;;  %v14495_v8 = vld [vmem:[#allocation118_spill] sm:$0xff]  ;;  %v14501_v15 = vld [vmem:[#allocation132_spill] sm:$0xff] }
 0x78e   : > { %v3966_v33 = vadd.f32 %v3586_v56, %v14495_v8 }
 0x78f   : > { %v11209_v42 = vadd.f32 %v10851_v54, %v3968_v53  ;;  %v11223_v54 = vadd.f32 %v10814_v46, %v3967_v47  ;;  %v4463_v47 = vsub.f32 %v14501_v15, %v4220_v51 }
 0x790   : > { %v11238_v46 = vadd.f32 %v10756_v1, %v3966_v33 }
 0x791   : > { %14486 = vst [vmem:[#allocation52_spill] sm:$0xff] %v11209_v42  ;;  %14491 = vst [vmem:[#allocation56_spill] sm:$0xff] %v11223_v54 }
 0x792   : > { %14496 = vst [vmem:[#allocation125_spill] sm:$0xff] %v11238_v46 }
 0x799   : > { %4287 = vmax.xlane.f32.xlu0 %v11195_v23 }
 0x79d   : > { %3781 = vrot.lane.b32.xlu1 %v2972_v4, %s9273_s22 }
 0x7af   : > { %3725 = vrot.lane.b32.xlu0 %v11095_v61, %s9276_s7  ;;  %v14488_v61 = vld [vmem:[#allocation120_spill] sm:$0xff] }
 0x7b0   : > { %v3981_v4 = vadd.f32 %v14488_v61, %v14487_v9  ;;  %v14497_v61 = vld [vmem:[#allocation105_spill] sm:$0xff] }
 0x7b2   : > { %v11218_v31 = vadd.f32 %v10690_v62, %v3981_v4 }
 0x7b4   : > { %14489 = vst [vmem:[#allocation126_spill] sm:$0xff] %v11218_v31 }
 0x7c1   : > { %4313 = vmax.xlane.f32.xlu1 %v11204_v20 }
 0x7ce   : > { %4285 = vmax.xlane.f32.xlu0 %v11209_v42 }
 0x7d2   : > { %3777 = vrot.lane.b32.xlu1 %v2966_v57, %s9272_s23  ;;  %v14492_v57 = vld [vmem:[#allocation71_spill] sm:$0xff] }
 0x7e4   : > { %3721 = vrot.lane.b32.xlu0 %v11084_v41, %s9274_s16  ;;  %v14493_v41 = vld [vmem:[#allocation119_spill] sm:$0xff] }
 0x7e5   : > { %v3980_v29 = vadd.f32 %v14493_v41, %v14492_v57  ;;  %v4603_v41 = vmul.f32 1.442695, %v4463_v47 }
 0x7e7   : > { %v11233_v60 = vadd.f32 %v10677_v34, %v3980_v29 }
 0x7e9   : > { %14494 = vst [vmem:[#allocation76_spill] sm:$0xff] %v11233_v60 }
 0x7f6   : > { %4311 = vmax.xlane.f32.xlu1 %v11218_v31 }
 0x803   : > { %4283 = vmax.xlane.f32.xlu0 %v11223_v54 }
 0x807   : > { %3773 = vrot.lane.b32.xlu1 %v11114_v24, %s14112_s26  ;;  %v11246_v24 = vpop.xlane.xlu0 %4209 }
 0x80b   : > { %v3570_v9 = vpop.permute.xlu0 %3569 }
 0x80c   : > { %v3962_v56 = vadd.f32 %v3570_v9, %v14497_v61 }
 0x80e   : > { %v11250_v1 = vadd.f32 %v10864_v13, %v3962_v56 }
 0x810   : > { %14498 = vst [vmem:[#allocation127_spill] sm:$0xff] %v11250_v1 }
 0x819   : > { %3717 = vrot.lane.b32.xlu0 %v11072_v59, %s9273_s22  ;;  %v4464_v59 = vsub.f32 %v10870_v38, %v4222_v10  ;;  %v14499_v38 = vld [vmem:[#allocation115_spill] sm:$0xff] }
 0x81a   : > { %v3965_v10 = vadd.f32 %v3582_v48, %v14499_v38  ;;  %v4466_v48 = vsub.f32 %v10891_v17, %v4226_v55  ;;  %v14506_v55 = vld [vmem:[#allocation116_spill] sm:$0xff] }
 0x81b   : > { %v4605_v53 = vmul.f32 1.442695, %v4464_v59 }
 0x81c   : > { %v4609_v33 = vmul.f32 1.442695, %v4466_v48  ;;  %v14510_v48 = vld [vmem:[#allocation107_spill] sm:$0xff] }
 0x81d   : > { %8432 = vpow2.f32 %v4605_v53 }
 0x81e   : > { %8434 = vpow2.f32 %v4603_v41 }
 0x81f   : > { %8436 = vpow2.f32 %v4609_v33 }
 0x82a   : > { %v11253_v4 = vpop.eup %8432 }
 0x82b   : > { %4309 = vmax.xlane.f32.xlu1 %v11233_v60  ;;  %v14564_v60 = vld [vmem:[#allocation61_spill] sm:$0xff] }
 0x838   : > { %4281 = vmax.xlane.f32.xlu0 %v11238_v46 }
 0x83c   : > { %3701 = vrot.lane.b32.xlu1 %v11031_v6, %s14360_s11  ;;  %v11265_v6 = vpop.xlane.xlu0 %4207 }
 0x840   : > { %v4258_v57 = vpop.xlane.xlu0 %4257 }
 0x841   : > { %v4482_v41 = vsub.f32 %v10933_v50, %v4258_v57  ;;  %v11313_v57 = vpop.xlane.xlu1 %4243 }
 0x844   : > { %v3566_v29 = vpop.permute.xlu0 %3565 }
 0x848   : > { %v11292_v9 = vpop.xlane.xlu0 %4205 }
 0x84c   : > { %v3562_v38 = vpop.permute.xlu0 %3561 }
 0x84e   : > { %3713 = vrot.lane.b32.xlu0 %v11062_v7, %s9272_s23  ;;  %v11258_v7 = vadd.f32 %v10690_v62, %v3965_v10  ;;  %v14502_v62 = vld [vmem:[#allocation103_spill] sm:$0xff]  ;;  %v14508_v10 = vld [vmem:[#allocation98_spill] sm:$0xff] }
 0x84f   : > { %v3961_v8 = vadd.f32 %v3566_v29, %v14502_v62  ;;  %v3960_v15 = vadd.f32 %v3562_v38, %v14508_v10  ;;  %v3963_v29 = vadd.f32 %v11172_v25, %v14510_v48  ;;  %v14513_v10 = vld [vmem:[#allocation95_spill] sm:$0xff] }
 0x850   : > { %14500 = vst [vmem:[#allocation75_spill] sm:$0xff] %v11258_v7 }
 0x851   : > { %v11271_v59 = vadd.f32 %v10881_v3, %v3961_v8  ;;  %v11319_v8 = vpop.xlane.xlu1 %4245 }
 0x853   : > { %14503 = vst [vmem:[#allocation123_spill] sm:$0xff] %v11271_v59 }
 0x855   : > { %v11323_v25 = vpop.xlane.xlu1 %4247 }
 0x859   : > { %v11325_v33 = vpop.xlane.xlu1 %4249 }
 0x860   : > { %4273 = vmax.xlane.f32.xlu1 %v11250_v1  ;;  %v14560_v1 = vld [vmem:[#allocation134_spill] sm:$0xff] }
 0x864   : > { %4861 = vadd.xlane.f32.xlu1 %v11253_v4 }
 0x86d   : > { %4279 = vmax.xlane.f32.xlu0 %v11258_v7 }
 0x875   : > { %3697 = vrot.lane.b32.xlu1 %v11018_v44, %s14358_s6  ;;  %v14504_v44 = vld [vmem:[#allocation112_spill] sm:$0xff] }
 0x876   : > { %v3964_v51 = vadd.f32 %v11182_v52, %v14504_v44  ;;  %v4462_v52 = vsub.f32 %v14506_v55, %v11176_v21  ;;  %v4252_v44 = vpop.xlane.xlu1 %4251 }
 0x878   : > { %v11280_v53 = vadd.f32 %v10677_v34, %v3964_v51  ;;  %v4601_v61 = vmul.f32 1.442695, %v4462_v52  ;;  %v14507_v34 = vld [vmem:[#allocation122_spill] sm:$0xff]  ;;  %v14512_v51 = vld [vmem:[#allocation101_spill] sm:$0xff]  ;;  %v11331_v52 = vpop.xlane.xlu0 %4203 }
 0x879   : > { %v4465_v56 = vsub.f32 %v14507_v34, %v11060_v43  ;;  %v11308_v43 = vadd.f32 %v10665_v58, %v3963_v29  ;;  %v4461_v55 = vsub.f32 %v14512_v51, %v11169_v49  ;;  %v14518_v29 = vld [vmem:[#allocation100_spill] sm:$0xff] }
 0x87a   : > { %14505 = vst [vmem:[#allocation124_spill] sm:$0xff] %v11280_v53  ;;  %8438 = vpow2.f32 %v4601_v61  ;;  %v4254_v34 = vpop.xlane.xlu1 %4253  ;;  %v4460_v51 = vsub.f32 %v14518_v29, %v11162_v16 }
 0x87b   : > { %v4607_v47 = vmul.f32 1.442695, %v4465_v56  ;;  %14511 = vst [vmem:[#allocation120_spill] sm:$0xff] %v11308_v43  ;;  %v4599_v61 = vmul.f32 1.442695, %v4461_v55 }
 0x87c   : > { %v3558_v56 = vpop.permute.xlu0 %3557 }
 0x87d   : > { %8440 = vpow2.f32 %v4607_v47 }
 0x87e   : > { %v4256_v38 = vpop.xlane.xlu1 %4255 }
 0x880   : > { %v11357_v55 = vpop.xlane.xlu0 %4201 }
 0x883   : > { %3709 = vrot.lane.b32.xlu0 %v11050_v40, %s14112_s26  ;;  %v11274_v40 = vpop.eup %8434  ;;  %s7223_s26 = scalar_lea.sflag [#allocation4], %s9537_s20 }
 0x884   : > { %v11283_v17 = vpop.eup %8436 }
 0x887   : > { %v11302_v21 = vpop.eup %8438 }
 0x88a   : > { %v11311_v50 = vpop.eup %8440 }
 0x899   : > { %4271 = vmax.xlane.f32.xlu1 %v11271_v59  ;;  %v4476_v59 = vsub.f32 %v14560_v1, %v11319_v8 }
 0x89d   : > { %4859 = vadd.xlane.f32.xlu1 %v11274_v40 }
 0x8a2   : > { %4277 = vmax.xlane.f32.xlu0 %v11280_v53  ;;  %v14578_v53 = vld [vmem:[#allocation149_spill] sm:$0xff] }
 0x8a3   : > { %v4455_v20 = vsub.f32 %v14578_v53, %v11331_v52  ;;  %v11557_v52 = vld [vmem:[#allocation7 + $0x70] sm:$0xff] }
 0x8a6   : > { %4865 = vadd.xlane.f32.xlu0 %v11283_v17 }
 0x8ae   : > { %3693 = vrot.lane.b32.xlu1 %v11006_v5, %s14098_s5  ;;  %v11299_v5 = vadd.f32 %v10901_v30, %v3960_v15  ;;  %v4481_v15 = vsub.f32 %v10860_v45, %v4256_v38  ;;  %v4480_v38 = vsub.f32 %v10854_v19, %v4254_v34  ;;  %v14523_v34 = vld [vmem:[#allocation97_spill] sm:$0xff] }
 0x8b0   : > { %14509 = vst [vmem:[#allocation73_spill] sm:$0xff] %v11299_v5 }
 0x8bc   : > { %3705 = vrot.lane.b32.xlu0 %v11042_v27, %s14080_s27  ;;  %v4641_v27 = vmul.f32 1.442695, %v4482_v41  ;;  %v4639_v41 = vmul.f32 1.442695, %v4481_v15  ;;  %v14521_v15 = vld [vmem:[#allocation68_spill] sm:$0xff] }
 0x8be   : > { %8442 = vpow2.f32 %v4641_v27 }
 0x8bf   : > { %8444 = vpow2.f32 %v4599_v61  ;;  %v14519_v61 = vld [vmem:[#allocation92_spill] sm:$0xff] }
 0x8c0   : > { %8446 = vpow2.f32 %v4639_v41 }
 0x8cb   : > { %v11316_v62 = vpop.eup %8442 }
 0x8cc   : > { %v11339_v49 = vpop.eup %8444 }
 0x8cd   : > { %v11348_v45 = vpop.eup %8446 }
 0x8d2   : > { %4269 = vmax.xlane.f32.xlu1 %v11299_v5  ;;  %v14559_v5 = vld [vmem:[#allocation54_spill] sm:$0xff] }
 0x8d6   : > { %4857 = vadd.xlane.f32.xlu1 %v11302_v21 }
 0x8db   : > { %4275 = vmax.xlane.f32.xlu0 %v11308_v43 }
 0x8df   : > { %4863 = vadd.xlane.f32.xlu0 %v11311_v50 }
 0x8e3   : > { %4897 = vadd.xlane.f32.xlu0 %v11316_v62 }
 0x8e7   : > { %3689 = vrot.lane.b32.xlu1 %v10998_v14, %s14096_s30  ;;  %v3959_v14 = vadd.f32 %v3558_v56, %v14513_v10  ;;  %v11361_v10 = vpop.xlane.xlu1 %4241 }
 0x8e9   : > { %v11336_v47 = vadd.f32 %v10919_v37, %v3959_v14 }
 0x8eb   : > { %14514 = vst [vmem:[#allocation121_spill] sm:$0xff] %v11336_v47 }
 0x8f9   : > { %3769 = vrot.lane.b32.xlu0 %v11110_v2, %s14080_s27  ;;  %v14515_v2 = vld [vmem:[#allocation70_spill] sm:$0xff]  ;;  %s14517_s27 = smov 289  }
 0x8fa   : > { %v3979_v27 = vadd.f32 %v11070_v22, %v14515_v2  ;;  %v4597_v22 = vmul.f32 1.442695, %v4460_v51 }
 0x8fc   : > { %v11345_v48 = vadd.f32 %v10665_v58, %v3979_v27  ;;  %8448 = vpow2.f32 %v4597_v22  ;;  %v3554_v58 = vpop.permute.xlu0 %3553  ;;  %v4459_v27 = vsub.f32 %v14523_v34, %v11160_v32  ;;  %v14525_v22 = vld [vmem:[#allocation88_spill] sm:$0xff] }
 0x8fd   : > { %v3958_v56 = vadd.f32 %v3554_v58, %v14519_v61  ;;  %v4479_v61 = vsub.f32 %v10847_v11, %v4252_v44  ;;  %v4458_v44 = vsub.f32 %v10910_v0, %v11246_v24  ;;  %v14534_v24 = vld [vmem:[#allocation65_spill] sm:$0xff] }
 0x8fe   : > { %14516 = vst [vmem:[#allocation71_spill] sm:$0xff] %v11345_v48  ;;  %v4595_v51 = vmul.f32 1.442695, %v4459_v27  ;;  %v14530_v27 = vld [vmem:[#allocation86_spill] sm:$0xff] }
 0x8ff   : > { %v11364_v14 = vadd.f32 %v10942_v18, %v3958_v56  ;;  %v4593_v34 = vmul.f32 1.442695, %v4458_v44  ;;  %v14537_v44 = vld [vmem:[#allocation141_spill] sm:$0xff] }
 0x900   : > { %v11384_v29 = vpop.xlane.xlu0 %4199 }
 0x901   : > { %14520 = vst [vmem:[#allocation119_spill] sm:$0xff] %v11364_v14  ;;  %14524 = vst [vmem:[#allocation105_spill] sm:$0xff] %v11384_v29 }
 0x909   : > { %v11367_v16 = vpop.eup %8448 }
 0x90b   : > { %4267 = vmax.xlane.f32.xlu1 %v11336_v47 }
 0x90f   : > { %4855 = vadd.xlane.f32.xlu1 %v11339_v49 }
 0x918   : > { %4307 = vmax.xlane.f32.xlu0 %v11345_v48 }
 0x91c   : > { %4895 = vadd.xlane.f32.xlu0 %v11348_v45 }
 0x920   : > { %3685 = vrot.lane.b32.xlu1 %v10992_v36, %s14517_s27  ;;  %v4637_v36 = vmul.f32 1.442695, %v4480_v38 }
 0x922   : > { %8450 = vpow2.f32 %v4637_v36  ;;  %v14527_v36 = vld [vmem:[#allocation66_spill] sm:$0xff] }
 0x923   : > { %8452 = vpow2.f32 %v4595_v51 }
 0x92f   : > { %v11375_v19 = vpop.eup %8450 }
 0x930   : > { %v11394_v32 = vpop.eup %8452 }
 0x932   : > { %3765 = vrot.lane.b32.xlu0 %v11104_v63, %s14360_s11  ;;  %v3634_v63 = vpop.permute.xlu1 %3633 }
 0x933   : > { %v3978_v41 = vadd.f32 %v3634_v63, %v14521_v15 }
 0x935   : > { %v11372_v2 = vadd.f32 %v10864_v13, %v3978_v41  ;;  %v3550_v13 = vpop.permute.xlu0 %3549 }
 0x936   : > { %v3957_v58 = vadd.f32 %v3550_v13, %v14525_v22  ;;  %v11388_v56 = vpop.xlane.xlu1 %4239  ;;  %v14531_v13 = vld [vmem:[#allocation136_spill] sm:$0xff] }
 0x937   : > { %14522 = vst [vmem:[#allocation118_spill] sm:$0xff] %v11372_v2  ;;  %v4478_v22 = vsub.f32 %v14531_v13, %v11325_v33 }
 0x938   : > { %v11391_v38 = vadd.f32 %v10960_v12, %v3957_v58 }
 0x939   : > { %v11411_v41 = vpop.xlane.xlu0 %4197 }
 0x93a   : > { %14526 = vst [vmem:[#allocation115_spill] sm:$0xff] %v11391_v38  ;;  %14529 = vst [vmem:[#allocation103_spill] sm:$0xff] %v11411_v41 }
 0x944   : > { %4265 = vmax.xlane.f32.xlu1 %v11364_v14 }
 0x948   : > { %4853 = vadd.xlane.f32.xlu1 %v11367_v16 }
 0x951   : > { %4305 = vmax.xlane.f32.xlu0 %v11372_v2 }
 0x955   : > { %4893 = vadd.xlane.f32.xlu0 %v11375_v19 }
 0x959   : > { %3681 = vrot.lane.b32.xlu1 %v10988_v39, %s14110_s25  ;;  %v4635_v39 = vmul.f32 1.442695, %v4479_v61  ;;  %v14532_v61 = vld [vmem:[#allocation155_spill] sm:$0xff] }
 0x95b   : > { %8454 = vpow2.f32 %v4635_v39  ;;  %v4633_v39 = vmul.f32 1.442695, %v4478_v22 }
 0x95c   : > { %8456 = vpow2.f32 %v4593_v34  ;;  %v4457_v34 = vsub.f32 %v14537_v44, %v11265_v6 }
 0x95d   : > { %8458 = vpow2.f32 %v4633_v39  ;;  %v14541_v39 = vld [vmem:[#allocation82_spill] sm:$0xff] }
 0x968   : > { %v11402_v11 = vpop.eup %8454 }
 0x969   : > { %v11422_v0 = vpop.eup %8456 }
 0x96a   : > { %v11430_v33 = vpop.eup %8458 }
 0x96b   : > { %3761 = vrot.lane.b32.xlu0 %v11091_v28, %s14358_s6  ;;  %v3630_v28 = vpop.permute.xlu1 %3629 }
 0x96c   : > { %v3977_v63 = vadd.f32 %v3630_v28, %v14527_v36 }
 0x96e   : > { %v11399_v15 = vadd.f32 %v10881_v3, %v3977_v63  ;;  %v3546_v3 = vpop.permute.xlu0 %3545  ;;  %v14536_v63 = vld [vmem:[#allocation148_spill] sm:$0xff] }
 0x96f   : > { %v3956_v51 = vadd.f32 %v3546_v3, %v14530_v27  ;;  %v11416_v58 = vpop.xlane.xlu1 %4237  ;;  %v14538_v3 = vld [vmem:[#allocation173_spill] sm:$0xff] }
 0x970   : > { %14528 = vst [vmem:[#allocation132_spill] sm:$0xff] %v11399_v15 }
 0x97d   : > { %4263 = vmax.xlane.f32.xlu1 %v11391_v38  ;;  %v14544_v38 = vld [vmem:[#allocation85_spill] sm:$0xff] }
 0x981   : > { %4851 = vadd.xlane.f32.xlu1 %v11394_v32 }
 0x98a   : > { %4303 = vmax.xlane.f32.xlu0 %v11399_v15 }
 0x98e   : > { %4891 = vadd.xlane.f32.xlu0 %v11402_v11 }
 0x992   : > { %3677 = vrot.lane.b32.xlu1 %v10984_v35, %s9263_s13  ;;  %v11419_v35 = vadd.f32 %v14532_v61, %v3956_v51  ;;  %v11441_v51 = vpop.xlane.xlu0 %4195 }
 0x993   : > { %14540 = vst [vmem:[#allocation98_spill] sm:$0xff] %v11441_v51 }
 0x994   : > { %14533 = vst [vmem:[#allocation112_spill] sm:$0xff] %v11419_v35 }
 0x996   : > { %v3542_v22 = vpop.permute.xlu0 %3541 }
 0x99a   : > { %v11485_v15 = vpop.xlane.xlu0 %4227 }
 0x99b   : > { %14556 = vst [vmem:[#allocation88_spill] sm:$0xff] %v11485_v15 }
 0x9a4   : > { %3757 = vrot.lane.b32.xlu0 %v11079_v26, %s14098_s5  ;;  %v3626_v26 = vpop.permute.xlu1 %3625 }
 0x9a5   : > { %v3976_v28 = vadd.f32 %v3626_v26, %v14534_v24  ;;  %v3955_v26 = vadd.f32 %v3542_v22, %v14541_v39  ;;  %v14542_v24 = vld [vmem:[#allocation135_spill] sm:$0xff] }
 0x9a7   : > { %v11427_v36 = vadd.f32 %v10901_v30, %v3976_v28  ;;  %v4591_v30 = vmul.f32 1.442695, %v4457_v34  ;;  %v4477_v28 = vsub.f32 %v14542_v24, %v11323_v25  ;;  %v11449_v6 = vadd.f32 %v14544_v38, %v3955_v26 }
 0x9a8   : > { %v11439_v27 = vpop.xlane.xlu1 %4235 }
 0x9a9   : > { %14535 = vst [vmem:[#allocation116_spill] sm:$0xff] %v11427_v36  ;;  %14539 = vst [vmem:[#allocation122_spill] sm:$0xff] %v11439_v27  ;;  %8460 = vpow2.f32 %v4591_v30  ;;  %v4631_v44 = vmul.f32 1.442695, %v4477_v28  ;;  %v14547_v30 = vld [vmem:[#allocation63_spill] sm:$0xff] }
 0x9aa   : > { %14545 = vst [vmem:[#allocation101_spill] sm:$0xff] %v11449_v6 }
 0x9ab   : > { %8462 = vpow2.f32 %v4631_v44  ;;  %v14550_v44 = vld [vmem:[#allocation146_spill] sm:$0xff] }
 0x9ac   : > { %v3622_v13 = vpop.permute.xlu1 %3621 }
 0x9ad   : > { %v3975_v22 = vadd.f32 %v3622_v13, %v14547_v30  ;;  %v14553_v30 = vld [vmem:[#allocation143_spill] sm:$0xff] }
 0x9af   : > { %v11459_v25 = vadd.f32 %v10919_v37, %v3975_v22  ;;  %v4456_v22 = vsub.f32 %v14553_v30, %v11292_v9  ;;  %v4629_v30 = vmul.f32 1.442695, %v4476_v59 }
 0x9b1   : > { %14548 = vst [vmem:[#allocation70_spill] sm:$0xff] %v11459_v25 }
 0x9b6   : > { %4261 = vmax.xlane.f32.xlu1 %v11419_v35  ;;  %v11452_v14 = vpop.eup %8460 }
 0x9b8   : > { %v11466_v24 = vpop.eup %8462 }
 0x9ba   : > { %4849 = vadd.xlane.f32.xlu1 %v11422_v0 }
 0x9c3   : > { %4301 = vmax.xlane.f32.xlu0 %v11427_v36 }
 0x9c7   : > { %4889 = vadd.xlane.f32.xlu0 %v11430_v33 }
 0x9cb   : > { %3673 = vrot.lane.b32.xlu1 %v14536_v63, %s14422_s15  ;;  %v11446_v63 = vpop.xlane.xlu1 %4233 }
 0x9cc   : > { %14543 = vst [vmem:[#allocation107_spill] sm:$0xff] %v11446_v63 }
 0x9dd   : > { %3753 = vrot.lane.b32.xlu0 %v14538_v3, %s14096_s30  ;;  %v3618_v3 = vpop.permute.xlu1 %3617  ;;  %s14696_s30 = smov 377  }
 0x9e1   : > { %v11455_v34 = vpop.xlane.xlu1 %4231 }
 0x9e2   : > { %14546 = vst [vmem:[#allocation95_spill] sm:$0xff] %v11455_v34 }
 0x9e5   : > { %v11461_v39 = vpop.permute.xlu1 %3613 }
 0x9e9   : > { %v11464_v26 = vpop.xlane.xlu1 %4229 }
 0x9ea   : > { %14549 = vst [vmem:[#allocation100_spill] sm:$0xff] %v11464_v26 }
 0x9ed   : > { %v11469_v28 = vpop.permute.xlu1 %3609 }
 0x9ef   : > { %4259 = vmax.xlane.f32.xlu1 %v11449_v6  ;;  %v4589_v6 = vmul.f32 1.442695, %v4456_v22 }
 0x9f1   : > { %v11473_v36 = vpop.xlane.xlu1 %4289  ;;  %8464 = vpow2.f32 %v4589_v6 }
 0x9f2   : > { %14551 = vst [vmem:[#allocation92_spill] sm:$0xff] %v11473_v36  ;;  %8466 = vpow2.f32 %v4629_v30 }
 0x9f3   : > { %4847 = vadd.xlane.f32.xlu1 %v11452_v14 }
 0x9f5   : > { %v11475_v13 = vpop.permute.xlu1 %3729 }
 0x9f9   : > { %v11477_v37 = vpop.xlane.xlu1 %4321 }
 0x9fa   : > { %14552 = vst [vmem:[#allocation68_spill] sm:$0xff] %v11477_v37 }
 0x9fc   : > { %4299 = vmax.xlane.f32.xlu0 %v11459_v25  ;;  %v14554_v25 = vld [vmem:[#allocation171_spill] sm:$0xff] }
 0x9fd   : > { %v11483_v47 = vpop.permute.xlu1 %3793 }
 0x9fe   : > { %14555 = vst [vmem:[#allocation97_spill] sm:$0xff] %v11483_v47  ;;  %v11500_v22 = vpop.eup %8464 }
 0x9ff   : > { %v11514_v59 = vpop.eup %8466 }
 0xa00   : > { %4887 = vadd.xlane.f32.xlu0 %v11466_v24 }
 0xa01   : > { %v11487_v35 = vpop.xlane.xlu1 %4319 }
 0xa02   : > { %14557 = vst [vmem:[#allocation66_spill] sm:$0xff] %v11487_v35 }
 0xa04   : > { %3669 = vrot.lane.b32.xlu1 %v14550_v44, %s14468_s17  ;;  %v3606_v44 = vpop.permute.xlu0 %3605 }
 0xa05   : > { %v11489_v2 = vpop.permute.xlu1 %3789  ;;  %v3971_v48 = vadd.f32 %v3606_v44, %v14559_v5  ;;  %v3974_v5 = vadd.f32 %v3618_v3, %v14564_v60 }
 0xa06   : > { %14558 = vst [vmem:[#allocation86_spill] sm:$0xff] %v11489_v2  ;;  %v1735_v2 = vld [vmem:[#allocation5 + $0x68] sm:$0xff] }
 0xa07   : > { %v11509_v1 = vadd.f32 %v10942_v18, %v3974_v5  ;;  %v14571_v18 = vld [vmem:[#allocation159_spill] sm:$0xff]  ;;  %3069 = vmatprep.subr.mxu1 %v1735_v2 }
 0xa08   : > { %v11522_v60 = vpop.xlane.xlu0 %4287 }
 0xa09   : > { %v11494_v9 = vpop.xlane.xlu1 %4317  ;;  %14566 = vst [vmem:[#allocation141_spill] sm:$0xff] %v11509_v1  ;;  %14569 = vst [vmem:[#allocation135_spill] sm:$0xff] %v11522_v60 }
 0xa0a   : > { %14561 = vst [vmem:[#allocation136_spill] sm:$0xff] %v11494_v9 }
 0xa0c   : > { %v3726_v5 = vpop.permute.xlu0 %3725 }
 0xa0d   : > { %v11502_v6 = vpop.permute.xlu1 %3785 }
 0xa0e   : > { %14563 = vst [vmem:[#allocation65_spill] sm:$0xff] %v11502_v6 }
 0xa11   : > { %v11506_v44 = vpop.xlane.xlu1 %4315 }
 0xa12   : > { %14565 = vst [vmem:[#allocation148_spill] sm:$0xff] %v11506_v44 }
 0xa15   : > { %v11512_v8 = vpop.permute.xlu1 %3781 }
 0xa16   : > { %3749 = vrot.lane.b32.xlu0 %v14554_v25, %s14517_s27  ;;  %v11497_v25 = vadd.f32 %v14544_v38, %v3971_v48  ;;  %14567 = vst [vmem:[#allocation173_spill] sm:$0xff] %v11512_v8  ;;  %v901_v38 = vld [vmem:[%s14008_s4 + $0xe0] sm:$0xff]  ;;  %v11688_v8 = vld [vmem:[#allocation7 + $0x78] sm:$0xff] }
 0xa18   : > { %14562 = vst [vmem:[#allocation155_spill] sm:$0xff] %v11497_v25 }
 0xa19   : > { %v11517_v48 = vpop.xlane.xlu1 %4313 }
 0xa1a   : > { %14568 = vst [vmem:[#allocation82_spill] sm:$0xff] %v11517_v48 }
 0xa1d   : > { %v11524_v3 = vpop.permute.xlu1 %3777 }
 0xa1e   : > { %14570 = vst [vmem:[#allocation85_spill] sm:$0xff] %v11524_v3 }
 0xa21   : > { %v11528_v30 = vpop.xlane.xlu1 %4311 }
 0xa22   : > { %14572 = vst [vmem:[#allocation63_spill] sm:$0xff] %v11528_v30  ;;  %v4587_v30 = vmul.f32 1.442695, %v4455_v20 }
 0xa24   : > { %8468 = vpow2.f32 %v4587_v30  ;;  %v14591_v30 = vld [vmem:[#allocation60_spill] sm:$0xff] }
 0xa28   : > { %4291 = vmax.xlane.f32.xlu1 %v11497_v25  ;;  %v11532_v25 = vpop.permute.xlu1 %3773 }
 0xa29   : > { %14574 = vst [vmem:[#allocation143_spill] sm:$0xff] %v11532_v25 }
 0xa2c   : > { %4845 = vadd.xlane.f32.xlu1 %v11500_v22  ;;  %v11534_v43 = vpop.xlane.xlu1 %4309 }
 0xa2d   : > { %14575 = vst [vmem:[#allocation171_spill] sm:$0xff] %v11534_v43  ;;  %v14583_v43 = vld [vmem:[#allocation133_spill] sm:$0xff] }
 0xa2e   : > { %v4475_v46 = vsub.f32 %v14583_v43, %v11313_v57  ;;  %14586 = vst [vmem:[#allocation133_spill] sm:$0xff] %v11557_v52 }
 0xa30   : > { %v4627_v53 = vmul.f32 1.442695, %v4475_v46 }
 0xa31   : > { %v11569_v57 = vpop.eup %8468 }
 0xa32   : > { %8470 = vpow2.f32 %v4627_v53 }
 0xa35   : > { %4297 = vmax.xlane.f32.xlu0 %v11509_v1  ;;  %v11530_v1 = vpop.xlane.xlu0 %4285 }
 0xa36   : > { %14573 = vst [vmem:[#allocation146_spill] sm:$0xff] %v11530_v1 }
 0xa39   : > { %4885 = vadd.xlane.f32.xlu0 %v11514_v59  ;;  %v11536_v31 = vpop.permute.xlu0 %3721 }
 0xa3a   : > { %14576 = vst [vmem:[#allocation54_spill] sm:$0xff] %v11536_v31 }
 0xa3d   : > { %1063 = vperm.xlu1 %8399, %v901_v38   ;;  %v14577_v38 = vld [vmem:[#allocation168_spill] sm:$0xff]  ;;  %v11542_v48 = vpop.xlane.xlu0 %4283 }
 0xa3e   : > { %14579 = vst [vmem:[#allocation134_spill] sm:$0xff] %v11542_v48 }
 0xa41   : > { %3733 = vrot.lane.b32.xlu1 %v14571_v18, %s14468_s17  ;;  %v11544_v18 = vpop.permute.xlu1 %3701  ;;  %v11548_v44 = vpop.permute.xlu0 %3717 }
 0xa42   : > { %14580 = vst [vmem:[#allocation61_spill] sm:$0xff] %v11544_v18  ;;  %14582 = vst [vmem:[#allocation168_spill] sm:$0xff] %v11548_v44 }
 0xa45   : > { %v11546_v7 = vpop.xlane.xlu1 %4273  ;;  %v11552_v9 = vpop.xlane.xlu0 %4281 }
 0xa46   : > { %14581 = vst [vmem:[#allocation159_spill] sm:$0xff] %v11546_v7  ;;  %14584 = vst [vmem:[#allocation149_spill] sm:$0xff] %v11552_v9 }
 0xa49   : > { %v11554_v54 = vpop.xlane.xlu1 %4861  ;;  %v11562_v20 = vpop.permute.xlu0 %3713 }
 0xa4a   : > { %14588 = vst [vmem:[#allocation183_spill] sm:$0xff] %v11562_v20 }
 0xa4d   : > { %v11564_v7 = vpop.permute.xlu1 %3697  ;;  %v11567_v43 = vpop.xlane.xlu0 %4279 }
 0xa4e   : > { %14589 = vst [vmem:[#allocation184_spill] sm:$0xff] %v11564_v7  ;;  %14590 = vst [vmem:[#allocation185_spill] sm:$0xff] %v11567_v43 }
 0xa4f   : > { %3745 = vrot.lane.b32.xlu0 %v14577_v38, %s14110_s25  ;;  %v14585_v38 = vld [vmem:[#allocation177_spill] sm:$0xff] }
 0xa50   : > { %v4001_v35 = vadd.f32 %v3726_v5, %v14585_v38  ;;  %v3973_v5 = vadd.f32 %v11461_v39, %v14591_v30 }
 0xa51   : > { %v11573_v46 = vpop.xlane.xlu1 %4271  ;;  %v11579_v38 = vpop.permute.xlu0 %3709 }
 0xa52   : > { %v11560_v48 = vadd.f32 %v11557_v52, %v4001_v35  ;;  %14592 = vst [vmem:[#allocation60_spill] sm:$0xff] %v11573_v46  ;;  %v11577_v35 = vadd.f32 %v10960_v12, %v3973_v5  ;;  %14594 = vst [vmem:[#allocation187_spill] sm:$0xff] %v11579_v38  ;;  %v904_v12 = vld [vmem:[%s14008_s4 + $0xf8] sm:$0xff]  ;;  %v14636_v52 = vld [vmem:[#allocation24_spill] sm:$0xff] }
 0xa53   : > { %v1737_v46 = vld [vmem:[#allocation5 + $0x78] sm:$0xff] }
 0xa54   : > { %14587 = vst [vmem:[#allocation177_spill] sm:$0xff] %v11560_v48  ;;  %14593 = vst [vmem:[#allocation186_spill] sm:$0xff] %v11577_v35  ;;  %3278 = vmatprep.subr.mxu0 %v1737_v46  ;;  %v14602_v46 = vld [vmem:[#allocation58_spill] sm:$0xff] }
 0xa55   : > { %v11581_v53 = vpop.xlane.xlu1 %4859  ;;  %v11586_v43 = vpop.xlane.xlu0 %4277 }
 0xa56   : > { %14595 = vst [vmem:[#allocation188_spill] sm:$0xff] %v11586_v43 }
 0xa59   : > { %v11589_v39 = vpop.permute.xlu1 %3693  ;;  %v11591_v30 = vpop.xlane.xlu0 %4865 }
 0xa5a   : > { %14596 = vst [vmem:[#allocation189_spill] sm:$0xff] %v11589_v39 }
 0xa5d   : > { %v11596_v5 = vpop.xlane.xlu1 %4269  ;;  %v11601_v43 = vpop.permute.xlu0 %3705 }
 0xa5e   : > { %14597 = vst [vmem:[#allocation190_spill] sm:$0xff] %v11596_v5  ;;  %14598 = vst [vmem:[#allocation191_spill] sm:$0xff] %v11601_v43 }
 0xa61   : > { %v11603_v9 = vpop.xlane.xlu1 %4857  ;;  %v11605_v39 = vpop.xlane.xlu0 %4275 }
 0xa62   : > { %14599 = vst [vmem:[#allocation192_spill] sm:$0xff] %v11605_v39 }
 0xa65   : > { %4351 = vmax.xlane.f32.xlu1 %v11560_v48  ;;  %v11584_v48 = vpop.eup %8470  ;;  %v11607_v7 = vpop.permute.xlu1 %3689 }
 0xa66   : > { %14600 = vst [vmem:[#allocation193_spill] sm:$0xff] %v11607_v7  ;;  %v11609_v42 = vpop.xlane.xlu0 %4863 }
 0xa69   : > { %4843 = vadd.xlane.f32.xlu1 %v11569_v57  ;;  %v11611_v1 = vpop.xlane.xlu1 %4267 }
 0xa6a   : > { %14601 = vst [vmem:[#allocation194_spill] sm:$0xff] %v11611_v1 }
 0xa6d   : > { %v11617_v5 = vpop.xlane.xlu1 %4855 }
 0xa6e   : > { %4295 = vmax.xlane.f32.xlu0 %v11577_v35  ;;  %v903_v35 = vld [vmem:[%s14008_s4 + $0xf0] sm:$0xff] }
 0xa71   : > { %v11621_v18 = vpop.permute.xlu1 %3685 }
 0xa72   : > { %4883 = vadd.xlane.f32.xlu0 %v11584_v48  ;;  %14604 = vst [vmem:[#allocation195_spill] sm:$0xff] %v11621_v18 }
 0xa75   : > { %v11627_v7 = vpop.xlane.xlu1 %4265 }
 0xa76   : > { %14607 = vst [vmem:[#allocation196_spill] sm:$0xff] %v11627_v7 }
 0xa79   : > { %v11629_v60 = vpop.xlane.xlu1 %4853 }
 0xa7a   : > { %1078 = vperm.xlu1 %8399, %v904_v12   ;;  %v11615_v12 = vpop.xlane.xlu0 %4897 }
 0xa7e   : > { %1073 = vperm.xlu1 %8399, %v903_v35   ;;  %v11619_v37 = vpop.permute.xlu0 %3769  ;;  %v14605_v35 = vld [vmem:[#allocation137_spill] sm:$0xff] }
 0xa7f   : > { %14603 = vst [vmem:[#allocation58_spill] sm:$0xff] %v11619_v37  ;;  %v4474_v39 = vsub.f32 %v14605_v35, %v11361_v10  ;;  %v11635_v37 = vpop.permute.xlu1 %3681 }
 0xa80   : > { %14610 = vst [vmem:[#allocation197_spill] sm:$0xff] %v11635_v37 }
 0xa81   : > { %v4625_v23 = vmul.f32 1.442695, %v4474_v39 }
 0xa82   : > { %v11625_v25 = vpop.xlane.xlu0 %4307 }
 0xa83   : > { %14606 = vst [vmem:[#allocation137_spill] sm:$0xff] %v11625_v25  ;;  %8472 = vpow2.f32 %v4625_v23  ;;  %v11643_v35 = vpop.xlane.xlu1 %4263 }
 0xa84   : > { %14613 = vst [vmem:[#allocation200_spill] sm:$0xff] %v11643_v35 }
 0xa86   : > { %v4896_v1 = vpop.xlane.xlu0 %4895 }
 0xa87   : > { %v11648_v7 = vpop.xlane.xlu1 %4851 }
 0xa88   : > { %3741 = vrot.lane.b32.xlu0 %v14602_v46, %s9263_s13  ;;  %v14608_v46 = vld [vmem:[#allocation57_spill] sm:$0xff] }
 0xa89   : > { %v3972_v36 = vadd.f32 %v11469_v28, %v14608_v46 }
 0xa8a   : > { %v11633_v43 = vpop.permute.xlu0 %3765 }
 0xa8b   : > { %14609 = vst [vmem:[#allocation57_spill] sm:$0xff] %v11633_v43  ;;  %v11638_v18 = vadd.f32 %v14532_v61, %v3972_v36  ;;  %v11652_v46 = vpop.permute.xlu1 %3677 }
 0xa8c   : > { %14615 = vst [vmem:[#allocation202_spill] sm:$0xff] %v11652_v46 }
 0xa8d   : > { %14611 = vst [vmem:[#allocation198_spill] sm:$0xff] %v11638_v18 }
 0xa8e   : > { %v11640_v10 = vpop.xlane.xlu0 %4305 }
 0xa8f   : > { %14612 = vst [vmem:[#allocation199_spill] sm:$0xff] %v11640_v10  ;;  %v11656_v61 = vpop.xlane.xlu1 %4261 }
 0xa90   : > { %v11645_v23 = vpop.eup %8472  ;;  %14617 = vst [vmem:[#allocation204_spill] sm:$0xff] %v11656_v61 }
 0xa92   : > { %v4894_v39 = vpop.xlane.xlu0 %4893 }
 0xa93   : > { %v11658_v10 = vpop.xlane.xlu1 %4849 }
 0xa96   : > { %v11650_v28 = vpop.permute.xlu0 %3761 }
 0xa97   : > { %14614 = vst [vmem:[#allocation201_spill] sm:$0xff] %v11650_v28  ;;  %v11664_v37 = vpop.permute.xlu1 %3673 }
 0xa98   : > { %14620 = vst [vmem:[#allocation205_spill] sm:$0xff] %v11664_v37 }
 0xa9a   : > { %v11654_v25 = vpop.xlane.xlu0 %4303 }
 0xa9b   : > { %14616 = vst [vmem:[#allocation203_spill] sm:$0xff] %v11654_v25  ;;  %v11668_v3 = vpop.xlane.xlu1 %4259  ;;  %v14623_v25 = vld [vmem:[#allocation138_spill] sm:$0xff] }
 0xa9c   : > { %14622 = vst [vmem:[#allocation207_spill] sm:$0xff] %v11668_v3  ;;  %v4473_v46 = vsub.f32 %v14623_v25, %v11388_v56 }
 0xa9e   : > { %v4892_v36 = vpop.xlane.xlu0 %4891  ;;  %v4623_v15 = vmul.f32 1.442695, %v4473_v46 }
 0xa9f   : > { %v11674_v61 = vpop.xlane.xlu1 %4847 }
 0xaa0   : > { %8474 = vpow2.f32 %v4623_v15 }
 0xaa1   : > { %8476 = vrcp.f32 %v11615_v12 }
 0xaa2   : > { %v11662_v35 = vpop.permute.xlu0 %3757  ;;  %8478 = vrcp.f32 %v4896_v1 }
 0xaa3   : > { %v11678_v38 = vpop.permute.xlu1 %3669  ;;  %8480 = vrcp.f32 %v4894_v39 }
 0xaa4   : > { %14625 = vst [vmem:[#allocation208_spill] sm:$0xff] %v11678_v38  ;;  %8482 = vrcp.f32 %v4892_v36 }
 0xaa6   : > { %v11666_v43 = vpop.xlane.xlu0 %4301 }
 0xaa7   : > { %4293 = vmax.xlane.f32.xlu0 %v11638_v18  ;;  %v14618_v18 = vld [vmem:[#allocation162_spill] sm:$0xff]  ;;  %14621 = vst [vmem:[#allocation206_spill] sm:$0xff] %v11666_v43 }
 0xaa8   : > { %14619 = vst [vmem:[#allocation162_spill] sm:$0xff] %v11662_v35  ;;  %v14628_v43 = vld [vmem:[#allocation178_spill] sm:$0xff] }
 0xaa9   : > { %v4002_v3 = vadd.f32 %v11475_v13, %v14628_v43  ;;  %14629 = vst [vmem:[#allocation178_spill] sm:$0xff] %v11688_v8 }
 0xaaa   : > { %v11670_v28 = vpop.xlane.xlu0 %4889 }
 0xaab   : > { %4881 = vadd.xlane.f32.xlu0 %v11645_v23  ;;  %v11691_v56 = vadd.f32 %v11688_v8, %v4002_v3  ;;  %8484 = vrcp.f32 %v11670_v28  ;;  %v14638_v8 = vld [vmem:[#allocation26_spill] sm:$0xff] }
 0xaad   : > { %14630 = vst [vmem:[#allocation211_spill] sm:$0xff] %v11691_v56  ;;  %v11697_v15 = vpop.eup %8474 }
 0xaae   : > { %v11676_v26 = vpop.permute.xlu0 %3753  ;;  %v8477_v43 = vpop.eup %8476 }
 0xaaf   : > { %14624 = vst [vmem:[#allocation138_spill] sm:$0xff] %v11676_v26  ;;  %v8479_v38 = vpop.eup %8478  ;;  %v5250_v26 = vmul.f32 %v8477_v43, %v11615_v12  ;;  %v1736_v12 = vld [vmem:[#allocation5 + $0x70] sm:$0xff] }
 0xab0   : > { %v8481_v34 = vpop.eup %8480 }
 0xab1   : > { %v11682_v37 = vpop.xlane.xlu1 %4291  ;;  %v8483_v63 = vpop.eup %8482 }
 0xab2   : > { %14627 = vst [vmem:[#allocation210_spill] sm:$0xff] %v11682_v37 }
 0xab5   : > { %v11693_v25 = vpop.xlane.xlu1 %4845 }
 0xab8   : > { %v8485_v27 = vpop.eup %8484 }
 0xab9   : > { %v5246_v47 = vmul.f32 %v8485_v27, %v11670_v28 }
 0xac1   : > { %3737 = vrot.lane.b32.xlu0 %v14618_v18, %s14422_s15  ;;  %v11680_v18 = vpop.xlane.xlu0 %4299 }
 0xac2   : > { %14626 = vst [vmem:[#allocation209_spill] sm:$0xff] %v11680_v18  ;;  %v11701_v18 = vpop.permute.xlu1 %1063 }
 0xac5   : > { %v11686_v35 = vpop.xlane.xlu0 %4887 }
 0xac6   : > { %v11706_v3 = vpop.permute.xlu1 %3733  ;;  %8486 = vrcp.f32 %v11686_v35 }
 0xac7   : > { %14633 = vst [vmem:[#allocation214_spill] sm:$0xff] %v11706_v3  ;;  %v5248_v3 = vmul.f32 %v8481_v34, %v4894_v39 }
 0xac9   : > { %v11699_v46 = vpop.permute.xlu0 %3749 }
 0xaca   : > { %14631 = vst [vmem:[#allocation212_spill] sm:$0xff] %v11699_v46  ;;  %v5249_v46 = vmul.f32 %v8479_v38, %v4896_v1  ;;  %v902_v1 = vld [vmem:[%s14008_s4 + $0xe8] sm:$0xff] }
 0xacc   : > { %v5377_v6 = vsub.f32 2.0, %v5249_v46 }
 0xacd   : > { %v11704_v13 = vpop.xlane.xlu0 %4297 }
 0xace   : > { %14632 = vst [vmem:[#allocation213_spill] sm:$0xff] %v11704_v13  ;;  %v5378_v13 = vsub.f32 2.0, %v5250_v26  ;;  %v5247_v26 = vmul.f32 %v8483_v63, %v4892_v36  ;;  %v5505_v46 = vmul.f32 %v8479_v38, %v5377_v6  ;;  %v14640_v6 = vmov 0.0  }
 0xad0   : > { %v5506_v29 = vmul.f32 %v8477_v43, %v5378_v13  ;;  %v5375_v31 = vsub.f32 2.0, %v5247_v26  ;;  %v14639_v13 = vld [vmem:[#allocation34_spill] sm:$0xff]  ;;  %v5633_v2 = vmul.f32 %v11348_v45, %v5505_v46  ;;  %v14646_v46 = vld [vmem:[#allocation49_spill] sm:$0xff] }
 0xad1   : > { %v4886_v37 = vpop.xlane.xlu0 %4885  ;;  %v14645_v26 = vld [vmem:[#allocation46_spill] sm:$0xff] }
 0xad2   : > { %8488 = vrcp.f32 %v4886_v37  ;;  %v5503_v28 = vmul.f32 %v8483_v63, %v5375_v31  ;;  %v14643_v31 = vld [vmem:[#allocation41_spill] sm:$0xff] }
 0xad3   : > { %v8487_v36 = vpop.eup %8486 }
 0xad5   : > { %v11715_v20 = vpop.permute.xlu0 %3745 }
 0xad6   : > { %14635 = vst [vmem:[#allocation216_spill] sm:$0xff] %v11715_v20  ;;  %v5376_v20 = vsub.f32 2.0, %v5248_v3 }
 0xadf   : > { %v8489_v3 = vpop.eup %8488 }
 0xae0   : > { %4353 = vmax.xlane.f32.xlu0 %v11691_v56 }
 0xae4   : > { %4879 = vadd.xlane.f32.xlu0 %v11697_v15 }
 0xaee   : > { %v11709_v56 = vpop.xlane.xlu1 %4351 }
 0xaef   : > { %14634 = vst [vmem:[#allocation215_spill] sm:$0xff] %v11709_v56 }
 0xaf2   : > { %v11713_v51 = vpop.xlane.xlu1 %4843 }
 0xaf6   : > { %v1079_v41 = vpop.permute.xlu1 %1078 }
 0xaf7   : > { %v1383_v44 = vadd.f32 %v14636_v52, %v1079_v41  ;;  %v11718_v56 = vpop.xlane.xlu0 %4295 }
 0xaf8   : > { %14637 = vst [vmem:[#allocation24_spill] sm:$0xff] %v11718_v56  ;;  %v5634_v56 = vmul.f32 %v11316_v62, %v5506_v29  ;;  %v5245_v62 = vmul.f32 %v8487_v36, %v11686_v35  ;;  %v14641_v29 = vld [vmem:[#allocation36_spill] sm:$0xff] }
 0xaf9   : > { %3279 = vmatpush1.msra.mxu0 %v1383_v44  ;;  %v5504_v44 = vmul.f32 %v8481_v34, %v5376_v20  ;;  %v5244_v34 = vmul.f32 %v8489_v3, %v4886_v37  ;;  %v14642_v20 = vld [vmem:[#allocation39_spill] sm:$0xff] }
 0xafa   : > { %1068 = vperm.xlu0 %8398, %v902_v1   ;;  %v1074_v39 = vpop.permute.xlu1 %1073  ;;  %3280 = vmatprep.subr.mxu0 %v1736_v12  ;;  %v5373_v45 = vsub.f32 2.0, %v5245_v62 }
 0xafb   : > { %v1378_v41 = vadd.f32 %v14638_v8, %v1074_v39  ;;  %v4884_v52 = vpop.xlane.xlu0 %4883  ;;  %v5374_v8 = vsub.f32 2.0, %v5246_v47  ;;  %v5632_v38 = vmul.f32 %v11375_v19, %v5504_v44  ;;  %v5631_v47 = vmul.f32 %v11402_v11, %v5503_v28  ;;  %v14644_v11 = vld [vmem:[#allocation44_spill] sm:$0xff]  ;;  %v14652_v44 = vld [vmem:[#allocation67_spill] sm:$0xff] }
 0xafc   : > { %8490 = vrcp.f32 %v4884_v52  ;;  %v5372_v19 = vsub.f32 2.0, %v5244_v34  ;;  %v5501_v43 = vmul.f32 %v8487_v36, %v5373_v45 }
 0xafd   : > { %3281 = vmatpush1.msra.mxu0 %v1378_v41  ;;  %v14647_v41 = vld [vmem:[#allocation51_spill] sm:$0xff] }
 0xafe   : > { %7490 = vmatmul.mubr.msk.f32.vlgmr.msra.gmra.mxu0 %vm1738_vm0, %v14639_v13  ;;  %7976 = vmatprep.subr.mxu0 %v5634_v56  ;;  %v5500_v12 = vmul.f32 %v8489_v3, %v5372_v19  ;;  %v14651_v13 = vld [vmem:[#allocation64_spill] sm:$0xff] }
 0xaff   : > { %7977 = vmatpush3.xpose.msra.mxu0 %v5634_v56  ;;  %3320 = vmatprep.mubr.f32.mxu0 %v14640_v6  ;;  %v5502_v56 = vmul.f32 %v8485_v27, %v5374_v8  ;;  %v5629_v27 = vmul.f32 %v11466_v24, %v5501_v43  ;;  %v14654_v8 = vld [vmem:[#allocation69_spill] sm:$0xff] }
 0xb00   : > { %7978 = vmatprep.subr.mxu0 %v5633_v2 }
 0xb01   : > { %v5630_v63 = vmul.f32 %v11430_v33, %v5502_v56  ;;  %v5628_v33 = vmul.f32 %v11514_v59, %v5500_v12  ;;  %v14648_v59 = vld [vmem:[#allocation55_spill] sm:$0xff] }
 0xb02   : > { %7491 = vmatmul.mubr.msk.f32.gmra.mxu0 %vm1738_vm0, %v14641_v29  ;;  %v14655_v29 = vld [vmem:[#allocation72_spill] sm:$0xff] }
 0xb03   : > { %7979 = vmatpush3.xpose.msra.mxu0 %v5633_v2  ;;  %3326 = vmatprep.mubr.f32.mxu0 %v14640_v6  ;;  %v11770_v2 = vpop.permute.xlu0 %3741 }
 0xb04   : > { %7980 = vmatprep.subr.mxu0 %v5632_v38 }
 0xb06   : > { %7492 = vmatmul.mubr.msk.f32.gmra.mxu0 %vm1738_vm0, %v14642_v20 }
 0xb07   : > { %7981 = vmatpush3.xpose.msra.mxu0 %v5632_v38  ;;  %3332 = vmatprep.mubr.f32.mxu0 %v14640_v6  ;;  %v14656_v38 = vld [vmem:[#allocation74_spill] sm:$0xff] }
 0xb08   : > { %7982 = vmatprep.subr.mxu0 %v5631_v47 }
 0xb09   : > { %v8491_v35 = vpop.eup %8490 }
 0xb0a   : > { %7493 = vmatmul.mubr.msk.f32.gmra.mxu0 %vm1738_vm0, %v14643_v31  ;;  %v5243_v1 = vmul.f32 %v8491_v35, %v4884_v52  ;;  %v14649_v52 = vld [vmem:[#allocation59_spill] sm:$0xff] }
 0xb0b   : > { %7983 = vmatpush3.xpose.msra.mxu0 %v5631_v47  ;;  %3338 = vmatprep.mubr.f32.mxu0 %v14640_v6 }
 0xb0c   : > { %7984 = vmatprep.subr.mxu0 %v5630_v63  ;;  %v5371_v37 = vsub.f32 2.0, %v5243_v1 }
 0xb0e   : > { %7494 = vmatmul.mubr.msk.f32.gmra.mxu0 %vm1738_vm0, %v14644_v11  ;;  %v5499_v39 = vmul.f32 %v8491_v35, %v5371_v37 }
 0xb0f   : > { %7985 = vmatpush3.xpose.msra.mxu0 %v5630_v63  ;;  %3344 = vmatprep.mubr.f32.mxu0 %v14640_v6 }
 0xb10   : > { %7986 = vmatprep.subr.mxu0 %v5629_v27  ;;  %v5627_v24 = vmul.f32 %v11584_v48, %v5499_v39  ;;  %v14650_v48 = vld [vmem:[#allocation62_spill] sm:$0xff] }
 0xb11   : > { %v14658_v39 = vld [vmem:[#allocation22_spill] sm:$0xff] }
 0xb12   : > { %7495 = vmatmul.mubr.msk.f32.gmra.mxu0 %vm1738_vm0, %v14645_v26 }
 0xb13   : > { %7987 = vmatpush3.xpose.msra.mxu0 %v5629_v27  ;;  %3350 = vmatprep.mubr.f32.mxu0 %v14640_v6 }
 0xb14   : > { %7988 = vmatprep.subr.mxu0 %v5628_v33 }
 0xb16   : > { %7496 = vmatmul.mubr.msk.f32.gmra.mxu0 %vm1738_vm0, %v14646_v46  ;;  %v1734_v46 = vld [vmem:[#allocation5 + $0x60] sm:$0xff] }
 0xb17   : > { %7989 = vmatpush3.xpose.msra.mxu0 %v5628_v33  ;;  %3356 = vmatprep.mubr.f32.mxu0 %v14640_v6 }
 0xb18   : > { %7990 = vmatprep.subr.mxu0 %v5627_v24 }
 0xb1a   : > { %7497 = vmatmul.mubr.msk.f32.gmra.mxu0 %vm1738_vm0, %v14647_v41 }
 0xb1b   : > { %7991 = vmatpush3.xpose.msra.mxu0 %v5627_v24  ;;  %3362 = vmatprep.mubr.f32.mxu0 %v14640_v6 }
 0xb1e   : > { %7498 = vmatmul.mubr.msk.f32.gmra.mxu0 %vm1738_vm0, %v14648_v59  ;;  %v14659_v59 = vld [vmem:[#allocation23_spill] sm:$0xff] }
 0xb1f   : > { %3368 = vmatprep.mubr.f32.mxu0 %v14640_v6 }
 0xb22   : > { %7499 = vmatmul.mubr.msk.f32.gmra.mxu0 %vm1738_vm0, %v14649_v52  ;;  %v1368_v52 = vadd.f32 %v14659_v59, %v11701_v18 }
 0xb23   : > { %3374 = vmatprep.mubr.f32.mxu0 %v14640_v6 }
 0xb26   : > { %7500 = vmatmul.mubr.msk.f32.gmra.mxu0 %vm1738_vm0, %v14650_v48 }
 0xb27   : > { %3380 = vmatprep.mubr.f32.mxu0 %v14640_v6 }
 0xb2a   : > { %7501 = vmatmul.mubr.msk.f32.gmra.mxu0 %vm1738_vm0, %v14651_v13 }
 0xb2b   : > { %3386 = vmatprep.mubr.f32.mxu0 %v14640_v6 }
 0xb2e   : > { %7502 = vmatmul.mubr.msk.f32.gmra.mxu0 %vm1738_vm0, %v14652_v44  ;;  %v14660_v44 = vld [vmem:[#allocation81_spill] sm:$0xff] }
 0xb2f   : > { %3392 = vmatprep.mubr.f32.mxu0 %v14640_v6 }
 0xb30   : > { %v11775_v36 = vpop.xlane.xlu0 %4293 }
 0xb31   : > { %14653 = vst [vmem:[#allocation26_spill] sm:$0xff] %v11775_v36  ;;  %v14719_v36 = vld [vmem:[#allocation168_spill] sm:$0xff] }
 0xb32   : > { %7503 = vmatmul.mubr.msk.f32.gmra.mxu0 %vm1738_vm0, %v14654_v8 }
 0xb33   : > { %3398 = vmatprep.mubr.f32.mxu0 %v14640_v6 }
 0xb34   : > { %v4882_v62 = vpop.xlane.xlu0 %4881 }
 0xb35   : > { %8492 = vrcp.f32 %v4882_v62 }
 0xb36   : > { %7504 = vmatmul.mubr.msk.f32.gmra.mxu0 %vm1738_vm0, %v14655_v29  ;;  %8494 = vrcp.f32 %v11591_v30 }
 0xb37   : > { %3404 = vmatprep.mubr.f32.mxu0 %v14640_v6  ;;  %8496 = vrcp.f32 %v11609_v42 }
 0xb38   : > { %8498 = vrcp.f32 %v11554_v54  ;;  %v11789_v47 = vpop.permute.xlu0 %3737 }
 0xb39   : > { %8500 = vrcp.f32 %v11581_v53 }
 0xb3a   : > { %7505 = vmatmul.mubr.msk.f32.gmra.mxu0 %vm1738_vm0, %v14656_v38  ;;  %8502 = vrcp.f32 %v11603_v9 }
 0xb3b   : > { %8504 = vrcp.f32 %v11617_v5 }
 0xb42   : > { %v8493_v28 = vpop.eup %8492 }
 0xb43   : > { %v5242_v3 = vmul.f32 %v8493_v28, %v4882_v62  ;;  %v8495_v35 = vpop.eup %8494 }
 0xb44   : > { %v8497_v19 = vpop.eup %8496 }
 0xb45   : > { %v5370_v45 = vsub.f32 2.0, %v5242_v3  ;;  %v5233_v63 = vmul.f32 %v8497_v19, %v11609_v42  ;;  %v8499_v43 = vpop.eup %8498  ;;  %v14661_v3 = vld [vmem:[#allocation84_spill] sm:$0xff] }
 0xb46   : > { %v8501_v37 = vpop.eup %8500  ;;  %v5232_v11 = vmul.f32 %v8499_v43, %v11554_v54 }
 0xb47   : > { %v5498_v34 = vmul.f32 %v8493_v28, %v5370_v45  ;;  %v5361_v27 = vsub.f32 2.0, %v5233_v63  ;;  %v5231_v33 = vmul.f32 %v8501_v37, %v11581_v53  ;;  %v8503_v24 = vpop.eup %8502 }
 0xb48   : > { %v5360_v41 = vsub.f32 2.0, %v5232_v11  ;;  %v5230_v13 = vmul.f32 %v8503_v24, %v11603_v9  ;;  %v8505_v53 = vpop.eup %8504 }
 0xb49   : > { %v5626_v20 = vmul.f32 %v11645_v23, %v5498_v34  ;;  %v5234_v23 = vmul.f32 %v8495_v35, %v11591_v30  ;;  %v5489_v42 = vmul.f32 %v8497_v19, %v5361_v27  ;;  %v5359_v48 = vsub.f32 2.0, %v5231_v33  ;;  %v14664_v27 = vld [vmem:[#allocation96_spill] sm:$0xff] }
 0xb4a   : > { %v5488_v62 = vmul.f32 %v8499_v43, %v5360_v41  ;;  %v5229_v9 = vmul.f32 %v8505_v53, %v11617_v5  ;;  %v14666_v41 = vld [vmem:[#allocation102_spill] sm:$0xff] }
 0xb4b   : > { %7992 = vmatprep.subr.mxu0 %v5626_v20  ;;  %v5362_v1 = vsub.f32 2.0, %v5234_v23  ;;  %v5617_v8 = vmul.f32 %v11311_v50, %v5489_v42  ;;  %v5487_v38 = vmul.f32 %v8501_v37, %v5359_v48  ;;  %v14662_v23 = vld [vmem:[#allocation89_spill] sm:$0xff] }
 0xb4c   : > { %7993 = vmatpush3.xpose.msra.mxu0 %v5626_v20  ;;  %v5616_v45 = vmul.f32 %v11253_v4, %v5488_v62  ;;  %v5357_v19 = vsub.f32 2.0, %v5229_v9  ;;  %v14670_v62 = vld [vmem:[#allocation109_spill] sm:$0xff] }
 0xb4d   : > { %v5490_v26 = vmul.f32 %v8495_v35, %v5362_v1  ;;  %v5615_v20 = vmul.f32 %v11274_v40, %v5487_v38 }
 0xb4e   : > { %v5485_v1 = vmul.f32 %v8505_v53, %v5357_v19 }
 0xb4f   : > { %v5618_v54 = vmul.f32 %v11283_v17, %v5490_v26  ;;  %v5358_v17 = vsub.f32 2.0, %v5230_v13  ;;  %v14668_v13 = vld [vmem:[#allocation106_spill] sm:$0xff] }
 0xb51   : > { %v5486_v35 = vmul.f32 %v8503_v24, %v5358_v17  ;;  %v14675_v17 = vld [vmem:[#allocation117_spill] sm:$0xff] }
 0xb53   : > { %v5614_v40 = vmul.f32 %v11302_v21, %v5486_v35  ;;  %v5613_v21 = vmul.f32 %v11339_v49, %v5485_v1 }
 0xb69   : > { %v11792_v56 = vpop.xlane.xlu0 %4353 }
 0xb6a   : > { %14657 = vst [vmem:[#allocation34_spill] sm:$0xff] %v11792_v56  ;;  %v14716_v56 = vld [vmem:[#allocation182_spill] sm:$0xff] }
 0xb6d   : > { %v4880_v31 = vpop.xlane.xlu0 %4879 }
 0xb6e   : > { %8506 = vrcp.f32 %v4880_v31 }
 0xb6f   : > { %8508 = vrcp.f32 %v11629_v60 }
 0xb70   : > { %8510 = vrcp.f32 %v11648_v7 }
 0xb71   : > { %8512 = vrcp.f32 %v11658_v10 }
 0xb72   : > { %8514 = vrcp.f32 %v11674_v61 }
 0xb73   : > { %8516 = vrcp.f32 %v11693_v25 }
 0xb74   : > { %8518 = vrcp.f32 %v11713_v51 }
 0xb75   : > { %v1069_v12 = vpop.permute.xlu0 %1068 }
 0xb76   : > { %v1373_v30 = vadd.f32 %v14658_v39, %v1069_v12  ;;  %v14665_v39 = vld [vmem:[#allocation99_spill] sm:$0xff] }
 0xb78   : > { %3070 = vmatpush1.msra.mxu1 %v1373_v30 }
 0xb79   : > { %3071 = vmatprep.subr.mxu1 %v1734_v46 }
 0xb7a   : > { %3072 = vmatpush1.msra.mxu1 %v1368_v52 }
 0xb7b   : > { %7474 = vmatmul.mubr.msk.f32.vlgmr.msra.gmra.mxu1 %vm1738_vm0, %v14660_v44  ;;  %7941 = vmatprep.subr.mxu1 %v5618_v54  ;;  %v8507_v29 = vpop.eup %8506 }
 0xb7c   : > { %7942 = vmatpush3.xpose.msra.mxu1 %v5618_v54  ;;  %3111 = vmatprep.mubr.f32.mxu1 %v14640_v6  ;;  %v5241_v18 = vmul.f32 %v8507_v29, %v4880_v31  ;;  %v8509_v50 = vpop.eup %8508  ;;  %v14667_v54 = vld [vmem:[#allocation104_spill] sm:$0xff] }
 0xb7d   : > { %7943 = vmatprep.subr.mxu1 %v5617_v8  ;;  %v5228_v5 = vmul.f32 %v8509_v50, %v11629_v60  ;;  %v8511_v4 = vpop.eup %8510  ;;  %v14663_v60 = vld [vmem:[#allocation94_spill] sm:$0xff] }
 0xb7e   : > { %v5369_v28 = vsub.f32 2.0, %v5241_v18  ;;  %v5227_v43 = vmul.f32 %v8511_v4, %v11648_v7  ;;  %v8513_v37 = vpop.eup %8512  ;;  %v14673_v18 = vld [vmem:[#allocation113_spill] sm:$0xff] }
 0xb7f   : > { %7475 = vmatmul.mubr.msk.f32.gmra.mxu1 %vm1738_vm0, %v14661_v3  ;;  %v5356_v63 = vsub.f32 2.0, %v5228_v5  ;;  %v5226_v11 = vmul.f32 %v8513_v37, %v11658_v10  ;;  %v8515_v12 = vpop.eup %8514 }
 0xb80   : > { %7944 = vmatpush3.xpose.msra.mxu1 %v5617_v8  ;;  %3117 = vmatprep.mubr.f32.mxu1 %v14640_v6  ;;  %v5497_v34 = vmul.f32 %v8507_v29, %v5369_v28  ;;  %v5225_v33 = vmul.f32 %v8515_v12, %v11674_v61  ;;  %v8517_v46 = vpop.eup %8516  ;;  %v14671_v29 = vld [vmem:[#allocation110_spill] sm:$0xff] }
 0xb81   : > { %7945 = vmatprep.subr.mxu1 %v5616_v45  ;;  %v5484_v7 = vmul.f32 %v8509_v50, %v5356_v63  ;;  %v5354_v26 = vsub.f32 2.0, %v5226_v11  ;;  %v5224_v24 = vmul.f32 %v8517_v46, %v11693_v25  ;;  %v8519_v59 = vpop.eup %8518 }
 0xb82   : > { %v5625_v31 = vmul.f32 %v11697_v15, %v5497_v34  ;;  %v5355_v15 = vsub.f32 2.0, %v5227_v43  ;;  %v5353_v49 = vsub.f32 2.0, %v5225_v33  ;;  %v5223_v52 = vmul.f32 %v8519_v59, %v11713_v51  ;;  %v14669_v51 = vld [vmem:[#allocation108_spill] sm:$0xff] }
 0xb83   : > { %7476 = vmatmul.mubr.msk.f32.gmra.mxu1 %vm1738_vm0, %v14662_v23  ;;  %v5612_v30 = vmul.f32 %v11367_v16, %v5484_v7  ;;  %v5482_v61 = vmul.f32 %v8513_v37, %v5354_v26  ;;  %v5352_v16 = vsub.f32 2.0, %v5224_v24 }
 0xb84   : > { %7946 = vmatpush3.xpose.msra.mxu1 %v5616_v45  ;;  %3123 = vmatprep.mubr.f32.mxu1 %v14640_v6  ;;  %v5483_v10 = vmul.f32 %v8511_v4, %v5355_v15  ;;  %v5481_v25 = vmul.f32 %v8515_v12, %v5353_v49 }
 0xb85   : > { %7994 = vmatprep.subr.mxu0 %v5625_v31  ;;  %7947 = vmatprep.subr.mxu1 %v5615_v20  ;;  %v5610_v48 = vmul.f32 %v11422_v0, %v5482_v61  ;;  %v5480_v44 = vmul.f32 %v8517_v46, %v5352_v16 }
 0xb86   : > { %7995 = vmatpush3.xpose.msra.mxu0 %v5625_v31  ;;  %v5611_v42 = vmul.f32 %v11394_v32, %v5483_v10  ;;  %v5351_v32 = vsub.f32 2.0, %v5223_v52  ;;  %v5609_v53 = vmul.f32 %v11452_v14, %v5481_v25 }
 0xb87   : > { %7477 = vmatmul.mubr.msk.f32.gmra.mxu1 %vm1738_vm0, %v14663_v60  ;;  %v5608_v0 = vmul.f32 %v11500_v22, %v5480_v44  ;;  %v14672_v22 = vld [vmem:[#allocation111_spill] sm:$0xff] }
 0xb88   : > { %7948 = vmatpush3.xpose.msra.mxu1 %v5615_v20  ;;  %3129 = vmatprep.mubr.f32.mxu1 %v14640_v6  ;;  %v5479_v8 = vmul.f32 %v8519_v59, %v5351_v32 }
 0xb89   : > { %7949 = vmatprep.subr.mxu1 %v5614_v40 }
 0xb8a   : > { %v5607_v14 = vmul.f32 %v11569_v57, %v5479_v8  ;;  %v14674_v57 = vld [vmem:[#allocation114_spill] sm:$0xff] }
 0xb8b   : > { %7478 = vmatmul.mubr.msk.f32.gmra.mxu1 %vm1738_vm0, %v14664_v27 }
 0xb8c   : > { %7950 = vmatpush3.xpose.msra.mxu1 %v5614_v40  ;;  %3135 = vmatprep.mubr.f32.mxu1 %v14640_v6 }
 0xb8d   : > { %7951 = vmatprep.subr.mxu1 %v5613_v21 }
 0xb8f   : > { %7479 = vmatmul.mubr.msk.f32.gmra.mxu1 %vm1738_vm0, %v14665_v39 }
 0xb90   : > { %7952 = vmatpush3.xpose.msra.mxu1 %v5613_v21  ;;  %3141 = vmatprep.mubr.f32.mxu1 %v14640_v6 }
 0xb91   : > { %7953 = vmatprep.subr.mxu1 %v5612_v30 }
 0xb93   : > { %7480 = vmatmul.mubr.msk.f32.gmra.mxu1 %vm1738_vm0, %v14666_v41 }
 0xb94   : > { %7954 = vmatpush3.xpose.msra.mxu1 %v5612_v30  ;;  %3147 = vmatprep.mubr.f32.mxu1 %v14640_v6 }
 0xb95   : > { %7955 = vmatprep.subr.mxu1 %v5611_v42 }
 0xb97   : > { %7481 = vmatmul.mubr.msk.f32.gmra.mxu1 %vm1738_vm0, %v14667_v54 }
 0xb98   : > { %7956 = vmatpush3.xpose.msra.mxu1 %v5611_v42  ;;  %3153 = vmatprep.mubr.f32.mxu1 %v14640_v6 }
 0xb99   : > { %7957 = vmatprep.subr.mxu1 %v5610_v48 }
 0xb9b   : > { %7482 = vmatmul.mubr.msk.f32.gmra.mxu1 %vm1738_vm0, %v14668_v13 }
 0xb9c   : > { %7958 = vmatpush3.xpose.msra.mxu1 %v5610_v48  ;;  %3159 = vmatprep.mubr.f32.mxu1 %v14640_v6 }
 0xb9d   : > { %7959 = vmatprep.subr.mxu1 %v5609_v53 }
 0xb9f   : > { %7483 = vmatmul.mubr.msk.f32.gmra.mxu1 %vm1738_vm0, %v14669_v51 }
 0xba0   : > { %7960 = vmatpush3.xpose.msra.mxu1 %v5609_v53  ;;  %3165 = vmatprep.mubr.f32.mxu1 %v14640_v6 }
 0xba1   : > { %7961 = vmatprep.subr.mxu1 %v5608_v0 }
 0xba3   : > { %7484 = vmatmul.mubr.msk.f32.gmra.mxu1 %vm1738_vm0, %v14670_v62 }
 0xba4   : > { %7962 = vmatpush3.xpose.msra.mxu1 %v5608_v0  ;;  %3171 = vmatprep.mubr.f32.mxu1 %v14640_v6 }
 0xba5   : > { %7963 = vmatprep.subr.mxu1 %v5607_v14 }
 0xba7   : > { %7485 = vmatmul.mubr.msk.f32.gmra.mxu1 %vm1738_vm0, %v14671_v29 }
 0xba8   : > { %7964 = vmatpush3.xpose.msra.mxu1 %v5607_v14  ;;  %3177 = vmatprep.mubr.f32.mxu1 %v14640_v6 }
 0xbab   : > { %7486 = vmatmul.mubr.msk.f32.gmra.mxu1 %vm1738_vm0, %v14672_v22  ;;  %v14699_v22 = vld [vmem:[#allocation139_spill] sm:$0xff] }
 0xbac   : > { %3183 = vmatprep.mubr.f32.mxu1 %v14640_v6 }
 0xbaf   : > { %7487 = vmatmul.mubr.msk.f32.gmra.mxu1 %vm1738_vm0, %v14673_v18  ;;  %v4472_v18 = vsub.f32 %v14699_v22, %v11416_v58  ;;  %v14707_v22 = vld [vmem:[#allocation178_spill] sm:$0xff] }
 0xbb0   : > { %3189 = vmatprep.mubr.f32.mxu1 %v14640_v6 }
 0xbb3   : > { %7488 = vmatmul.mubr.msk.f32.gmra.mxu1 %vm1738_vm0, %v14674_v57  ;;  %v14700_v57 = vld [vmem:[#allocation163_spill] sm:$0xff] }
 0xbb4   : > { %3195 = vmatprep.mubr.f32.mxu1 %v14640_v6  ;;  %v4621_v6 = vmul.f32 1.442695, %v4472_v18 }
 0xbb6   : > { %8520 = vpow2.f32 %v4621_v6 }
 0xbb7   : > { %7489 = vmatmul.mubr.msk.f32.gmra.mxu1 %vm1738_vm0, %v14675_v17  ;;  %v4454_v17 = vsub.f32 %v14700_v57, %v11357_v55  ;;  %v11996_v57 = vld [vmem:[#allocation7 + $0x68] sm:$0xff] }
 0xbbe   : > { %v11877_v38 = vpop.f32.mrf.mxu0 }
 0xbbf   : > { %14676 = vst [vmem:[#allocation36_spill] sm:$0xff] %v11877_v38  ;;  %v14702_v38 = vld [vmem:[#allocation78_spill] sm:$0xff] }
 0xbc0   : > { %v11879_v9 = vpop.f32.mrf.mxu0 }
 0xbc2   : > { %v11885_v45 = vpop.f32.mrf.mxu0 }
 0xbc3   : > { %14678 = vst [vmem:[#allocation41_spill] sm:$0xff] %v11885_v45  ;;  %v4585_v45 = vmul.f32 1.442695, %v4454_v17 }
 0xbc4   : > { %v11891_v20 = vpop.f32.mrf.mxu0 }
 0xbc5   : > { %8522 = vpow2.f32 %v4585_v45 }
 0xbc6   : > { %v11897_v5 = vpop.f32.mrf.mxu0 }
 0xbc7   : > { %14681 = vst [vmem:[#allocation49_spill] sm:$0xff] %v11897_v5 }
 0xbc8   : > { %v11903_v4 = vpop.f32.mrf.mxu0 }
 0xbca   : > { %v11909_v43 = vpop.f32.mrf.mxu0 }
 0xbcb   : > { %14684 = vst [vmem:[#allocation59_spill] sm:$0xff] %v11909_v43  ;;  %v14704_v43 = vld [vmem:[#allocation129_spill] sm:$0xff] }
 0xbcc   : > { %v11915_v37 = vpop.f32.mrf.mxu0 }
 0xbce   : > { %v11921_v27 = vpop.f32.mrf.mxu0 }
 0xbcf   : > { %14687 = vst [vmem:[#allocation67_spill] sm:$0xff] %v11921_v27  ;;  %v14705_v27 = vld [vmem:[#allocation54_spill] sm:$0xff] }
 0xbd0   : > { %v11927_v12 = vpop.f32.mrf.mxu0 }
 0xbd2   : > { %v11933_v39 = vpop.f32.mrf.mxu0 }
 0xbd3   : > { %14690 = vst [vmem:[#allocation74_spill] sm:$0xff] %v11933_v39  ;;  %v4000_v39 = vadd.f32 %v14705_v27, %v14704_v43 }
 0xbd4   : > { %v11939_v46 = vpop.f32.mrf.mxu0 }
 0xbd5   : > { %v11999_v18 = vadd.f32 %v11996_v57, %v4000_v39 }
 0xbd6   : > { %v11945_v41 = vpop.f32.mrf.mxu0 }
 0xbd7   : > { %14691 = vst [vmem:[#allocation22_spill] sm:$0xff] %v11945_v41  ;;  %v14713_v41 = vld [vmem:[#allocation140_spill] sm:$0xff] }
 0xbd8   : > { %v11951_v59 = vpop.f32.mrf.mxu0 }
 0xbda   : > { %v11955_v54 = vpop.f32.mrf.mxu0 }
 0xbdb   : > { %14694 = vst [vmem:[#allocation84_spill] sm:$0xff] %v11955_v54 }
 0xbdc   : > { %v11959_v32 = vpop.f32.mrf.mxu0 }
 0xbde   : > { %v11963_v44 = vpop.f32.mrf.mxu0 }
 0xbdf   : > { %14695 = vst [vmem:[#allocation89_spill] sm:$0xff] %v11963_v44  ;;  %v14714_v44 = vld [vmem:[#allocation105_spill] sm:$0xff] }
 0xbe0   : > { %v11968_v8 = vpop.f32.mrf.mxu0 }
 0xbe2   : > { %v11971_v62 = vpop.f32.mrf.mxu0 }
 0xbe3   : > { %14697 = vst [vmem:[#allocation94_spill] sm:$0xff] %v11971_v62  ;;  %v14715_v62 = vld [vmem:[#allocation80_spill] sm:$0xff] }
 0xbe4   : > { %v11973_v14 = vpop.f32.mrf.mxu0 }
 0xbe6   : > { %v11975_v29 = vpop.f32.mrf.mxu0 }
 0xbe7   : > { %14698 = vst [vmem:[#allocation96_spill] sm:$0xff] %v11975_v29  ;;  %v4453_v29 = vsub.f32 %v14715_v62, %v14714_v44 }
 0xc3b   : > { %v11881_v28 = vpop.f32.mrf.mxu1 }
 0xc3c   : > { %14677 = vst [vmem:[#allocation39_spill] sm:$0xff] %v11881_v28  ;;  %v14703_v28 = vld [vmem:[#allocation97_spill] sm:$0xff] }
 0xc3d   : > { %v11883_v3 = vpop.f32.mrf.mxu1 }
 0xc3f   : > { %v11887_v50 = vpop.f32.mrf.mxu1 }
 0xc40   : > { %14679 = vst [vmem:[#allocation44_spill] sm:$0xff] %v11887_v50  ;;  %v4018_v50 = vadd.f32 %v14703_v28, %v14702_v38  ;;  %v12005_v38 = vpop.eup %8520 }
 0xc41   : > { %v11889_v34 = vpop.f32.mrf.mxu1  ;;  %v12007_v28 = vpop.eup %8522 }
 0xc42   : > { %v11994_v55 = vadd.f32 %v14707_v22, %v4018_v50  ;;  %v14712_v22 = vld [vmem:[#allocation122_spill] sm:$0xff] }
 0xc43   : > { %v11893_v35 = vpop.f32.mrf.mxu1  ;;  %v4471_v54 = vsub.f32 %v14713_v41, %v14712_v22 }
 0xc44   : > { %14680 = vst [vmem:[#allocation46_spill] sm:$0xff] %v11893_v35  ;;  %14708 = vst [vmem:[#allocation104_spill] sm:$0xff] %v11994_v55  ;;  %v14717_v35 = vld [vmem:[#allocation86_spill] sm:$0xff] }
 0xc45   : > { %v11895_v19 = vpop.f32.mrf.mxu1 }
 0xc47   : > { %v11899_v23 = vpop.f32.mrf.mxu1 }
 0xc48   : > { %14682 = vst [vmem:[#allocation51_spill] sm:$0xff] %v11899_v23 }
 0xc49   : > { %v11901_v31 = vpop.f32.mrf.mxu1 }
 0xc4b   : > { %v11905_v40 = vpop.f32.mrf.mxu1 }
 0xc4c   : > { %14683 = vst [vmem:[#allocation55_spill] sm:$0xff] %v11905_v40 }
 0xc4d   : > { %v11907_v63 = vpop.f32.mrf.mxu1 }
 0xc4f   : > { %v11911_v60 = vpop.f32.mrf.mxu1 }
 0xc50   : > { %14685 = vst [vmem:[#allocation62_spill] sm:$0xff] %v11911_v60 }
 0xc51   : > { %v11913_v1 = vpop.f32.mrf.mxu1 }
 0xc53   : > { %v11917_v15 = vpop.f32.mrf.mxu1 }
 0xc54   : > { %14686 = vst [vmem:[#allocation64_spill] sm:$0xff] %v11917_v15 }
 0xc55   : > { %v11919_v11 = vpop.f32.mrf.mxu1 }
 0xc57   : > { %v11923_v21 = vpop.f32.mrf.mxu1 }
 0xc58   : > { %14688 = vst [vmem:[#allocation69_spill] sm:$0xff] %v11923_v21 }
 0xc59   : > { %v11925_v7 = vpop.f32.mrf.mxu1 }
 0xc5b   : > { %v11929_v26 = vpop.f32.mrf.mxu1 }
 0xc5c   : > { %14689 = vst [vmem:[#allocation72_spill] sm:$0xff] %v11929_v26  ;;  %v14740_v26 = vld [vmem:[#allocation90_spill] sm:$0xff] }
 0xc5d   : > { %v11931_v33 = vpop.f32.mrf.mxu1 }
 0xc5f   : > { %v11935_v30 = vpop.f32.mrf.mxu1 }
 0xc61   : > { %v11937_v10 = vpop.f32.mrf.mxu1 }
 0xc63   : > { %v11941_v49 = vpop.f32.mrf.mxu1 }
 0xc65   : > { %v11943_v24 = vpop.f32.mrf.mxu1 }
 0xc67   : > { %v11947_v42 = vpop.f32.mrf.mxu1 }
 0xc68   : > { %14692 = vst [vmem:[#allocation23_spill] sm:$0xff] %v11947_v42  ;;  %v14718_v42 = vld [vmem:[#allocation172_spill] sm:$0xff] }
 0xc69   : > { %v11949_v61 = vpop.f32.mrf.mxu1  ;;  %v3999_v23 = vadd.f32 %v14719_v36, %v14718_v42  ;;  %v14724_v36 = vld [vmem:[#allocation107_spill] sm:$0xff] }
 0xc6a   : > { %v14727_v42 = vld [vmem:[#allocation27_spill] sm:$0xff] }
 0xc6b   : > { %v11953_v16 = vpop.f32.mrf.mxu1 }
 0xc6c   : > { %14693 = vst [vmem:[#allocation81_spill] sm:$0xff] %v11953_v16 }
 0xc6d   : > { %v3181_v52 = vpop.f32.mrf.mxu1 }
 0xc6f   : > { %v11957_v48 = vpop.f32.mrf.mxu1 }
 0xc71   : > { %v3187_v25 = vpop.f32.mrf.mxu1 }
 0xc73   : > { %v11961_v13 = vpop.f32.mrf.mxu1 }
 0xc75   : > { %v3193_v53 = vpop.f32.mrf.mxu1 }
 0xc76   : > { %3853 = vrot.lane.b32.xlu1 %v3193_v53, %s9276_s7  ;;  %v11981_v53 = vpop.f32.mrf.mxu0 }
 0xc77   : > { %v11966_v51 = vpop.f32.mrf.mxu1 }
 0xc78   : > { %v11983_v5 = vpop.f32.mrf.mxu0 }
 0xc79   : > { %v3199_v0 = vpop.f32.mrf.mxu1  ;;  %14701 = vst [vmem:[#allocation99_spill] sm:$0xff] %v11983_v5  ;;  %v4583_v5 = vmul.f32 1.442695, %v4453_v29 }
 0xc7a   : > { %3857 = vrot.lane.b32.xlu0 %v3199_v0, %s14696_s30  ;;  %v11985_v0 = vpop.f32.mrf.mxu0 }
 0xc7c   : > { %v11991_v58 = vpop.f32.mrf.mxu0 }
 0xc7d   : > { %14706 = vst [vmem:[#allocation102_spill] sm:$0xff] %v11991_v58  ;;  %v4017_v58 = vadd.f32 %v14717_v35, %v14716_v56  ;;  %v14725_v56 = vld [vmem:[#allocation142_spill] sm:$0xff] }
 0xc7e   : > { %v12002_v6 = vpop.f32.mrf.mxu0  ;;  %v4470_v35 = vsub.f32 %v14725_v56, %v14724_v36 }
 0xc80   : > { %v12010_v45 = vpop.f32.mrf.mxu0  ;;  %v4617_v62 = vmul.f32 1.442695, %v4470_v35 }
 0xc81   : > { %14709 = vst [vmem:[#allocation106_spill] sm:$0xff] %v12010_v45 }
 0xc82   : > { %v3396_v50 = vpop.f32.mrf.mxu0 }
 0xc84   : > { %v12013_v43 = vpop.f32.mrf.mxu0 }
 0xc85   : > { %14710 = vst [vmem:[#allocation108_spill] sm:$0xff] %v12013_v43 }
 0xc86   : > { %v3402_v27 = vpop.f32.mrf.mxu0 }
 0xc88   : > { %v12015_v39 = vpop.f32.mrf.mxu0 }
 0xc89   : > { %14711 = vst [vmem:[#allocation109_spill] sm:$0xff] %v12015_v39 }
 0xc8a   : > { %v3408_v17 = vpop.f32.mrf.mxu0 }
 0xc99   : > { %4385 = vmax.xlane.f32.xlu0 %v11994_v55  ;;  %v4619_v55 = vmul.f32 1.442695, %v4471_v54 }
 0xc9a   : > { %4349 = vmax.xlane.f32.xlu1 %v11999_v18 }
 0xc9b   : > { %8524 = vpow2.f32 %v4619_v55  ;;  %v14729_v55 = vld [vmem:[#allocation65_spill] sm:$0xff] }
 0xc9c   : > { %8526 = vpow2.f32 %v4583_v5 }
 0xc9d   : > { %4877 = vadd.xlane.f32.xlu0 %v12005_v38  ;;  %8528 = vpow2.f32 %v4617_v62 }
 0xc9e   : > { %4841 = vadd.xlane.f32.xlu1 %v12007_v28 }
 0xca8   : > { %v12037_v54 = vpop.eup %8524 }
 0xca9   : > { %v12039_v5 = vpop.eup %8526 }
 0xcaa   : > { %v12063_v56 = vpop.eup %8528 }
 0xcaf   : > { %3849 = vrot.lane.b32.xlu1 %v3187_v25, %s9274_s16  ;;  %v14720_v25 = vld [vmem:[#allocation133_spill] sm:$0xff] }
 0xcb0   : > { %v12028_v40 = vadd.f32 %v14720_v25, %v4017_v58  ;;  %v14728_v58 = vld [vmem:[#allocation91_spill] sm:$0xff]  ;;  %v14730_v25 = vld [vmem:[#allocation170_spill] sm:$0xff] }
 0xcb1   : > { %v4016_v22 = vadd.f32 %v14729_v55, %v14728_v58  ;;  %v14737_v58 = vld [vmem:[#allocation144_spill] sm:$0xff] }
 0xcb2   : > { %14721 = vst [vmem:[#allocation110_spill] sm:$0xff] %v12028_v40 }
 0xcb3   : > { %3921 = vrot.lane.b32.xlu0 %v3408_v17, %s14696_s30  ;;  %v12030_v17 = vld [vmem:[#allocation7 + $0x60] sm:$0xff] }
 0xcb4   : > { %14722 = vst [vmem:[#allocation111_spill] sm:$0xff] %v12030_v17  ;;  %v12033_v41 = vadd.f32 %v12030_v17, %v3999_v23  ;;  %v14726_v23 = vld [vmem:[#allocation103_spill] sm:$0xff] }
 0xcb5   : > { %v4452_v44 = vsub.f32 %v14727_v42, %v14726_v23 }
 0xcb6   : > { %14723 = vst [vmem:[#allocation113_spill] sm:$0xff] %v12033_v41 }
 0xcb7   : > { %v4581_v29 = vmul.f32 1.442695, %v4452_v44 }
 0xcb9   : > { %8530 = vpow2.f32 %v4581_v29  ;;  %v14736_v29 = vld [vmem:[#allocation95_spill] sm:$0xff] }
 0xcba   : > { %v4469_v55 = vsub.f32 %v14737_v58, %v14736_v29 }
 0xcbc   : > { %v4615_v60 = vmul.f32 1.442695, %v4469_v55 }
 0xcc6   : > { %v12065_v35 = vpop.eup %8530 }
 0xcd2   : > { %4383 = vmax.xlane.f32.xlu0 %v12028_v40  ;;  %v14731_v40 = vld [vmem:[#allocation183_spill] sm:$0xff] }
 0xcd3   : > { %4347 = vmax.xlane.f32.xlu1 %v12033_v41  ;;  %v3998_v45 = vadd.f32 %v14731_v40, %v14730_v25  ;;  %v14739_v25 = vld [vmem:[#allocation130_spill] sm:$0xff] }
 0xcd6   : > { %4875 = vadd.xlane.f32.xlu0 %v12037_v54 }
 0xcd7   : > { %4839 = vadd.xlane.f32.xlu1 %v12039_v5 }
 0xce8   : > { %3845 = vrot.lane.b32.xlu1 %v3181_v52, %s9273_s22  ;;  %v12054_v52 = vadd.f32 %v11996_v57, %v4016_v22  ;;  %v12071_v23 = vpop.permute.xlu1 %3853  ;;  %v14738_v22 = vld [vmem:[#allocation98_spill] sm:$0xff] }
 0xce9   : > { %14734 = vst [vmem:[#allocation139_spill] sm:$0xff] %v12071_v23  ;;  %v14741_v23 = vld [vmem:[#allocation173_spill] sm:$0xff] }
 0xcea   : > { %14732 = vst [vmem:[#allocation114_spill] sm:$0xff] %v12054_v52  ;;  %v4015_v29 = vadd.f32 %v14741_v23, %v14740_v26  ;;  %v14750_v23 = vld [vmem:[#allocation157_spill] sm:$0xff] }
 0xcec   : > { %3917 = vrot.lane.b32.xlu0 %v3402_v27, %s9276_s7  ;;  %v12056_v27 = vld [vmem:[#allocation7 + $0x58] sm:$0xff]  ;;  %v12069_v40 = vpop.permute.xlu0 %3857  ;;  %s14760_s7 = smov 329  }
 0xced   : > { %v12059_v36 = vadd.f32 %v12056_v27, %v3998_v45 }
 0xcef   : > { %14733 = vst [vmem:[#allocation117_spill] sm:$0xff] %v12059_v36 }
 0xd0b   : > { %4381 = vmax.xlane.f32.xlu0 %v12054_v52  ;;  %v4451_v52 = vsub.f32 %v14739_v25, %v14738_v22  ;;  %v14742_v22 = vld [vmem:[#allocation167_spill] sm:$0xff] }
 0xd0c   : > { %4345 = vmax.xlane.f32.xlu1 %v12059_v36  ;;  %v14743_v25 = vld [vmem:[#allocation187_spill] sm:$0xff] }
 0xd0d   : > { %v3997_v55 = vadd.f32 %v14743_v25, %v14742_v22 }
 0xd0f   : > { %4873 = vadd.xlane.f32.xlu0 %v12063_v56 }
 0xd10   : > { %4837 = vadd.xlane.f32.xlu1 %v12065_v35 }
 0xd21   : > { %3841 = vrot.lane.b32.xlu1 %v11949_v61, %s9272_s23  ;;  %v4579_v61 = vmul.f32 1.442695, %v4451_v52 }
 0xd22   : > { %v12075_v45 = vpop.xlane.xlu0 %4385 }
 0xd23   : > { %14735 = vst [vmem:[#allocation163_spill] sm:$0xff] %v12075_v45  ;;  %v12077_v42 = vpop.xlane.xlu1 %4349 }
 0xd25   : > { %3913 = vrot.lane.b32.xlu0 %v3396_v50, %s9274_s16  ;;  %s14746_s16 = smov 337  }
 0xd26   : > { %v4878_v44 = vpop.xlane.xlu0 %4877 }
 0xd27   : > { %v4842_v62 = vpop.xlane.xlu1 %4841  ;;  %8532 = vrcp.f32 %v4878_v44 }
 0xd28   : > { %8534 = vrcp.f32 %v4842_v62 }
 0xd29   : > { %8536 = vpow2.f32 %v4615_v60  ;;  %v12091_v60 = vadd.f32 %v12030_v17, %v4015_v29 }
 0xd2a   : > { %8538 = vpow2.f32 %v4579_v61 }
 0xd2b   : > { %14744 = vst [vmem:[#allocation78_spill] sm:$0xff] %v12091_v60 }
 0xd34   : > { %v8533_v16 = vpop.eup %8532 }
 0xd35   : > { %v8535_v15 = vpop.eup %8534  ;;  %v5240_v43 = vmul.f32 %v8533_v16, %v4878_v44  ;;  %v14751_v44 = vld [vmem:[#allocation88_spill] sm:$0xff] }
 0xd36   : > { %v5222_v45 = vmul.f32 %v8535_v15, %v4842_v62  ;;  %v14752_v62 = vld [vmem:[#allocation77_spill] sm:$0xff] }
 0xd37   : > { %v5368_v36 = vsub.f32 2.0, %v5240_v43  ;;  %v12093_v43 = vld [vmem:[#allocation7 + $0x50] sm:$0xff]  ;;  %v4467_v61 = vsub.f32 %v14752_v62, %v14751_v44  ;;  %v14755_v44 = vld [vmem:[#allocation165_spill] sm:$0xff]  ;;  %v14756_v62 = vld [vmem:[#allocation191_spill] sm:$0xff] }
 0xd38   : > { %v5350_v21 = vsub.f32 2.0, %v5222_v45 }
 0xd39   : > { %v5496_v50 = vmul.f32 %v8533_v16, %v5368_v36  ;;  %v12106_v16 = vpop.permute.xlu0 %3921  ;;  %v14749_v36 = vld [vmem:[#allocation100_spill] sm:$0xff] }
 0xd3a   : > { %v5478_v41 = vmul.f32 %v8535_v15, %v5350_v21  ;;  %v12096_v15 = vadd.f32 %v12093_v43, %v3997_v55  ;;  %v12100_v21 = vpop.eup %8536  ;;  %v4468_v45 = vsub.f32 %v14750_v23, %v14749_v36 }
 0xd3b   : > { %v5624_v39 = vmul.f32 %v12005_v38, %v5496_v50  ;;  %v12102_v26 = vpop.eup %8538  ;;  %v12108_v38 = vpop.permute.xlu1 %3849 }
 0xd3c   : > { %v5606_v58 = vmul.f32 %v12007_v28, %v5478_v41  ;;  %14745 = vst [vmem:[#allocation97_spill] sm:$0xff] %v12096_v15  ;;  %v4613_v29 = vmul.f32 1.442695, %v4468_v45  ;;  %v3996_v45 = vadd.f32 %v14756_v62, %v14755_v44 }
 0xd3d   : > { %7996 = vmatprep.subr.mxu0 %v5624_v39 }
 0xd3e   : > { %7965 = vmatprep.subr.mxu1 %v5606_v58  ;;  %7997 = vmatpush3.xpose.msra.mxu0 %v5624_v39 }
 0xd3f   : > { %7966 = vmatpush3.xpose.msra.mxu1 %v5606_v58  ;;  %v4611_v58 = vmul.f32 1.442695, %v4467_v61 }
 0xd44   : > { %4379 = vmax.xlane.f32.xlu0 %v12091_v60 }
 0xd45   : > { %4343 = vmax.xlane.f32.xlu1 %v12096_v15  ;;  %v14753_v15 = vld [vmem:[#allocation181_spill] sm:$0xff] }
 0xd48   : > { %4871 = vadd.xlane.f32.xlu0 %v12100_v21 }
 0xd49   : > { %4835 = vadd.xlane.f32.xlu1 %v12102_v26 }
 0xd5a   : > { %3837 = vrot.lane.b32.xlu1 %v11943_v24, %s14746_s16 }
 0xd5b   : > { %v12112_v28 = vpop.xlane.xlu0 %4383 }
 0xd5c   : > { %14747 = vst [vmem:[#allocation129_spill] sm:$0xff] %v12112_v28  ;;  %v12114_v39 = vpop.xlane.xlu1 %4347 }
 0xd5d   : > { %14748 = vst [vmem:[#allocation54_spill] sm:$0xff] %v12114_v39  ;;  %v14754_v39 = vld [vmem:[#allocation85_spill] sm:$0xff] }
 0xd5e   : > { %3909 = vrot.lane.b32.xlu0 %v12002_v6, %s9273_s22  ;;  %v4014_v36 = vadd.f32 %v14754_v39, %v14753_v15 }
 0xd5f   : > { %v4876_v41 = vpop.xlane.xlu0 %4875 }
 0xd60   : > { %v4840_v52 = vpop.xlane.xlu1 %4839  ;;  %8540 = vrcp.f32 %v4876_v41 }
 0xd61   : > { %8542 = vrcp.f32 %v4840_v52 }
 0xd62   : > { %8544 = vpow2.f32 %v4613_v29  ;;  %v14763_v29 = vld [vmem:[#allocation175_spill] sm:$0xff] }
 0xd63   : > { %8546 = vpow2.f32 %v4611_v58  ;;  %v14764_v58 = vld [vmem:[#allocation135_spill] sm:$0xff] }
 0xd6d   : > { %v8541_v50 = vpop.eup %8540 }
 0xd6e   : > { %v8543_v24 = vpop.eup %8542  ;;  %v5239_v22 = vmul.f32 %v8541_v50, %v4876_v41  ;;  %v12129_v41 = vadd.f32 %v12056_v27, %v4014_v36  ;;  %v12146_v27 = vpop.permute.xlu1 %3845 }
 0xd6f   : > { %v5221_v25 = vmul.f32 %v8543_v24, %v4840_v52  ;;  %v12131_v52 = vld [vmem:[#allocation7 + $0x48] sm:$0xff]  ;;  %14759 = vst [vmem:[#allocation140_spill] sm:$0xff] %v12146_v27 }
 0xd70   : > { %v5367_v55 = vsub.f32 2.0, %v5239_v22  ;;  %14757 = vst [vmem:[#allocation178_spill] sm:$0xff] %v12129_v41  ;;  %v14765_v22 = vld [vmem:[#allocation79_spill] sm:$0xff] }
 0xd71   : > { %v5349_v60 = vsub.f32 2.0, %v5221_v25  ;;  %v4497_v25 = vsub.f32 %v14765_v22, %v14764_v58  ;;  %v14767_v27 = vld [vmem:[#allocation143_spill] sm:$0xff]  ;;  %v14768_v58 = vld [vmem:[#allocation161_spill] sm:$0xff] }
 0xd72   : > { %v5495_v6 = vmul.f32 %v8541_v50, %v5367_v55  ;;  %v14762_v50 = vld [vmem:[#allocation92_spill] sm:$0xff]  ;;  %v14769_v22 = vld [vmem:[#allocation61_spill] sm:$0xff] }
 0xd73   : > { %v5477_v28 = vmul.f32 %v8543_v24, %v5349_v60  ;;  %v12134_v60 = vadd.f32 %v12131_v52, %v3996_v45  ;;  %v4498_v24 = vsub.f32 %v14763_v29, %v14762_v50  ;;  %v4671_v36 = vmul.f32 1.442695, %v4497_v25 }
 0xd74   : > { %v5623_v17 = vmul.f32 %v12037_v54, %v5495_v6  ;;  %v12138_v54 = vpop.eup %8544 }
 0xd75   : > { %v5605_v23 = vmul.f32 %v12039_v5, %v5477_v28  ;;  %14758 = vst [vmem:[#allocation122_spill] sm:$0xff] %v12134_v60  ;;  %v12140_v5 = vpop.eup %8546  ;;  %v4673_v6 = vmul.f32 1.442695, %v4498_v24  ;;  %v3995_v24 = vadd.f32 %v14769_v22, %v14768_v58 }
 0xd76   : > { %7998 = vmatprep.subr.mxu0 %v5623_v17 }
 0xd77   : > { %7967 = vmatprep.subr.mxu1 %v5605_v23  ;;  %7999 = vmatpush3.xpose.msra.mxu0 %v5623_v17  ;;  %v12144_v17 = vpop.permute.xlu0 %3917 }
 0xd78   : > { %7968 = vmatpush3.xpose.msra.mxu1 %v5605_v23 }
 0xd7d   : > { %4377 = vmax.xlane.f32.xlu0 %v12129_v41 }
 0xd7e   : > { %4341 = vmax.xlane.f32.xlu1 %v12134_v60  ;;  %v14766_v60 = vld [vmem:[#allocation180_spill] sm:$0xff] }
 0xd7f   : > { %v4013_v50 = vadd.f32 %v14767_v27, %v14766_v60 }
 0xd81   : > { %4869 = vadd.xlane.f32.xlu0 %v12138_v54 }
 0xd82   : > { %4867 = vadd.xlane.f32.xlu1 %v12140_v5 }
 0xd93   : > { %3833 = vrot.lane.b32.xlu1 %v11937_v10, %s14760_s7 }
 0xd94   : > { %v12150_v15 = vpop.xlane.xlu0 %4381 }
 0xd95   : > { %14761 = vst [vmem:[#allocation105_spill] sm:$0xff] %v12150_v15  ;;  %v12152_v28 = vpop.xlane.xlu1 %4345 }
 0xd97   : > { %3905 = vrot.lane.b32.xlu0 %v11985_v0, %s9272_s23  ;;  %s14798_s23 = smov 305  }
 0xd98   : > { %v4874_v39 = vpop.xlane.xlu0 %4873 }
 0xd99   : > { %v4838_v61 = vpop.xlane.xlu1 %4837  ;;  %8548 = vrcp.f32 %v4874_v39 }
 0xd9a   : > { %8550 = vrcp.f32 %v4838_v61 }
 0xd9b   : > { %8552 = vpow2.f32 %v4673_v6 }
 0xd9c   : > { %8554 = vpow2.f32 %v4671_v36  ;;  %v14776_v36 = vld [vmem:[#allocation131_spill] sm:$0xff] }
 0xd9d   : > { %v12184_v60 = vpop.permute.xlu1 %3841 }
 0xd9e   : > { %14773 = vst [vmem:[#allocation172_spill] sm:$0xff] %v12184_v60  ;;  %v14779_v60 = vld [vmem:[#allocation179_spill] sm:$0xff] }
 0xda6   : > { %v8549_v55 = vpop.eup %8548 }
 0xda7   : > { %v8551_v10 = vpop.eup %8550  ;;  %v5238_v23 = vmul.f32 %v8549_v55, %v4874_v39  ;;  %v12167_v39 = vadd.f32 %v12093_v43, %v4013_v50 }
 0xda8   : > { %v5220_v44 = vmul.f32 %v8551_v10, %v4838_v61  ;;  %v12169_v61 = vld [vmem:[#allocation7 + $0x40] sm:$0xff] }
 0xda9   : > { %v5366_v62 = vsub.f32 2.0, %v5238_v23  ;;  %14770 = vst [vmem:[#allocation80_spill] sm:$0xff] %v12167_v39  ;;  %v12172_v25 = vadd.f32 %v12169_v61, %v3995_v24 }
 0xdaa   : > { %v5348_v45 = vsub.f32 2.0, %v5220_v44  ;;  %v14777_v44 = vld [vmem:[#allocation146_spill] sm:$0xff] }
 0xdab   : > { %v5494_v0 = vmul.f32 %v8549_v55, %v5366_v62  ;;  %14771 = vst [vmem:[#allocation182_spill] sm:$0xff] %v12172_v25  ;;  %v14778_v62 = vld [vmem:[#allocation52_spill] sm:$0xff] }
 0xdac   : > { %v5476_v41 = vmul.f32 %v8551_v10, %v5348_v45  ;;  %v14775_v10 = vld [vmem:[#allocation68_spill] sm:$0xff]  ;;  %v4496_v45 = vsub.f32 %v14778_v62, %v14777_v44  ;;  %v14781_v44 = vld [vmem:[#allocation158_spill] sm:$0xff] }
 0xdad   : > { %v5622_v15 = vmul.f32 %v12063_v56, %v5494_v0  ;;  %v12176_v56 = vpop.eup %8552  ;;  %v4514_v23 = vsub.f32 %v14776_v36, %v14775_v10  ;;  %v14782_v62 = vld [vmem:[#allocation184_spill] sm:$0xff] }
 0xdae   : > { %v5604_v29 = vmul.f32 %v12065_v35, %v5476_v41  ;;  %v12178_v35 = vpop.eup %8554  ;;  %v12182_v41 = vpop.permute.xlu0 %3913 }
 0xdaf   : > { %8000 = vmatprep.subr.mxu0 %v5622_v15  ;;  %14772 = vst [vmem:[#allocation86_spill] sm:$0xff] %v12178_v35  ;;  %v4705_v50 = vmul.f32 1.442695, %v4514_v23  ;;  %v3994_v23 = vadd.f32 %v14782_v62, %v14781_v44 }
 0xdb0   : > { %7969 = vmatprep.subr.mxu1 %v5604_v29  ;;  %8001 = vmatpush3.xpose.msra.mxu0 %v5622_v15 }
 0xdb1   : > { %7970 = vmatpush3.xpose.msra.mxu1 %v5604_v29  ;;  %v4669_v29 = vmul.f32 1.442695, %v4496_v45 }
 0xdb6   : > { %4375 = vmax.xlane.f32.xlu0 %v12167_v39 }
 0xdb7   : > { %4339 = vmax.xlane.f32.xlu1 %v12172_v25  ;;  %v14780_v25 = vld [vmem:[#allocation58_spill] sm:$0xff] }
 0xdb8   : > { %v4012_v10 = vadd.f32 %v14780_v25, %v14779_v60 }
 0xdba   : > { %4929 = vadd.xlane.f32.xlu0 %v12176_v56 }
 0xdbb   : > { %4927 = vadd.xlane.f32.xlu1 %v12178_v35 }
 0xdcc   : > { %3829 = vrot.lane.b32.xlu1 %v11931_v33, %s14360_s11 }
 0xdcd   : > { %v12188_v27 = vpop.xlane.xlu0 %4379 }
 0xdce   : > { %14774 = vst [vmem:[#allocation168_spill] sm:$0xff] %v12188_v27  ;;  %v12190_v15 = vpop.xlane.xlu1 %4343 }
 0xdd0   : > { %3901 = vrot.lane.b32.xlu0 %v11981_v53, %s14746_s16 }
 0xdd1   : > { %v4872_v55 = vpop.xlane.xlu0 %4871 }
 0xdd2   : > { %v4836_v6 = vpop.xlane.xlu1 %4835  ;;  %8556 = vrcp.f32 %v4872_v55 }
 0xdd3   : > { %8558 = vrcp.f32 %v4836_v6 }
 0xdd4   : > { %8560 = vpow2.f32 %v4705_v50  ;;  %v14788_v50 = vld [vmem:[#allocation66_spill] sm:$0xff] }
 0xdd5   : > { %8562 = vpow2.f32 %v4669_v29 }
 0xdd6   : > { %v12222_v25 = vpop.permute.xlu1 %3837 }
 0xddf   : > { %v8557_v0 = vpop.eup %8556 }
 0xde0   : > { %v8559_v33 = vpop.eup %8558  ;;  %v5237_v58 = vmul.f32 %v8557_v0, %v4872_v55  ;;  %v12205_v55 = vadd.f32 %v12131_v52, %v4012_v10 }
 0xde1   : > { %v5219_v22 = vmul.f32 %v8559_v33, %v4836_v6  ;;  %v12207_v6 = vld [vmem:[#allocation7 + $0x38] sm:$0xff] }
 0xde2   : > { %v5365_v24 = vsub.f32 2.0, %v5237_v58  ;;  %14783 = vst [vmem:[#allocation133_spill] sm:$0xff] %v12205_v55  ;;  %v14790_v58 = vld [vmem:[#allocation134_spill] sm:$0xff] }
 0xde3   : > { %v5347_v35 = vsub.f32 2.0, %v5219_v22  ;;  %v14791_v22 = vld [vmem:[#allocation56_spill] sm:$0xff] }
 0xde4   : > { %v5493_v53 = vmul.f32 %v8557_v0, %v5365_v24  ;;  %v4495_v24 = vsub.f32 %v14791_v22, %v14790_v58  ;;  %v14794_v58 = vld [vmem:[#allocation154_spill] sm:$0xff]  ;;  %v14795_v22 = vld [vmem:[#allocation189_spill] sm:$0xff] }
 0xde5   : > { %v5475_v39 = vmul.f32 %v8559_v33, %v5347_v35  ;;  %v12210_v35 = vadd.f32 %v12207_v6, %v3994_v23  ;;  %v14789_v33 = vld [vmem:[#allocation87_spill] sm:$0xff] }
 0xde6   : > { %v5621_v27 = vmul.f32 %v12100_v21, %v5493_v53  ;;  %v12214_v21 = vpop.eup %8560  ;;  %v4513_v29 = vsub.f32 %v14789_v33, %v14788_v50 }
 0xde7   : > { %v5603_v36 = vmul.f32 %v12102_v26, %v5475_v39  ;;  %14784 = vst [vmem:[#allocation107_spill] sm:$0xff] %v12210_v35  ;;  %v12216_v26 = vpop.eup %8562  ;;  %v12220_v39 = vpop.permute.xlu0 %3909 }
 0xde8   : > { %8002 = vmatprep.subr.mxu0 %v5621_v27  ;;  %14785 = vst [vmem:[#allocation142_spill] sm:$0xff] %v12216_v26  ;;  %14786 = vst [vmem:[#allocation103_spill] sm:$0xff] %v12220_v39  ;;  %v4703_v10 = vmul.f32 1.442695, %v4513_v29  ;;  %v14793_v39 = vld [vmem:[#allocation57_spill] sm:$0xff]  ;;  %v3993_v29 = vadd.f32 %v14795_v22, %v14794_v58 }
 0xde9   : > { %7971 = vmatprep.subr.mxu1 %v5603_v36  ;;  %8003 = vmatpush3.xpose.msra.mxu0 %v5621_v27  ;;  %v14805_v58 = vld [vmem:[#allocation201_spill] sm:$0xff] }
 0xdea   : > { %7972 = vmatpush3.xpose.msra.mxu1 %v5603_v36  ;;  %v4667_v36 = vmul.f32 1.442695, %v4495_v24  ;;  %v14800_v24 = vld [vmem:[#allocation25_spill] sm:$0xff] }
 0xdef   : > { %4373 = vmax.xlane.f32.xlu0 %v12205_v55 }
 0xdf0   : > { %4337 = vmax.xlane.f32.xlu1 %v12210_v35 }
 0xdf3   : > { %4961 = vadd.xlane.f32.xlu0 %v12214_v21 }
 0xdf4   : > { %4925 = vadd.xlane.f32.xlu1 %v12216_v26 }
 0xe05   : > { %3825 = vrot.lane.b32.xlu1 %v11925_v7, %s14358_s6 }
 0xe06   : > { %v12226_v60 = vpop.xlane.xlu0 %4377 }
 0xe07   : > { %14787 = vst [vmem:[#allocation27_spill] sm:$0xff] %v12226_v60  ;;  %v12228_v27 = vpop.xlane.xlu1 %4341  ;;  %v14792_v60 = vld [vmem:[#allocation29_spill] sm:$0xff] }
 0xe08   : > { %v4011_v50 = vadd.f32 %v14793_v39, %v14792_v60  ;;  %v14799_v60 = vld [vmem:[#allocation136_spill] sm:$0xff] }
 0xe09   : > { %3897 = vrot.lane.b32.xlu0 %v11973_v14, %s14760_s7 }
 0xe0a   : > { %v4870_v45 = vpop.xlane.xlu0 %4869 }
 0xe0b   : > { %v4868_v0 = vpop.xlane.xlu1 %4867  ;;  %8564 = vrcp.f32 %v4870_v45 }
 0xe0c   : > { %8566 = vrcp.f32 %v4868_v0 }
 0xe0d   : > { %8568 = vpow2.f32 %v4703_v10  ;;  %v14801_v10 = vld [vmem:[#allocation149_spill] sm:$0xff] }
 0xe0e   : > { %8570 = vpow2.f32 %v4667_v36 }
 0xe18   : > { %v8565_v53 = vpop.eup %8564 }
 0xe19   : > { %v8567_v7 = vpop.eup %8566  ;;  %v5236_v44 = vmul.f32 %v8565_v53, %v4870_v45  ;;  %v12243_v45 = vadd.f32 %v12169_v61, %v4011_v50 }
 0xe1a   : > { %v5235_v62 = vmul.f32 %v8567_v7, %v4868_v0  ;;  %v12245_v0 = vld [vmem:[#allocation7 + $0x30] sm:$0xff] }
 0xe1b   : > { %v5364_v23 = vsub.f32 2.0, %v5236_v44 }
 0xe1c   : > { %v5363_v26 = vsub.f32 2.0, %v5235_v62 }
 0xe1d   : > { %v5492_v14 = vmul.f32 %v8565_v53, %v5364_v23  ;;  %v4512_v53 = vsub.f32 %v14800_v24, %v14799_v60 }
 0xe1e   : > { %v5491_v35 = vmul.f32 %v8567_v7, %v5363_v26  ;;  %v12248_v26 = vadd.f32 %v12245_v0, %v3993_v29  ;;  %v14802_v7 = vld [vmem:[#allocation125_spill] sm:$0xff] }
 0xe1f   : > { %v5620_v55 = vmul.f32 %v12138_v54, %v5492_v14  ;;  %v12252_v54 = vpop.eup %8568  ;;  %v4494_v36 = vsub.f32 %v14802_v7, %v14801_v10  ;;  %v4701_v62 = vmul.f32 1.442695, %v4512_v53  ;;  %v14806_v29 = vld [vmem:[#allocation153_spill] sm:$0xff]  ;;  %v12281_v53 = vld [vmem:[#allocation7 + $0x28] sm:$0xff] }
 0xe20   : > { %v5619_v33 = vmul.f32 %v12140_v5, %v5491_v35  ;;  %14796 = vst [vmem:[#allocation91_spill] sm:$0xff] %v12252_v54  ;;  %v12254_v5 = vpop.eup %8570 }
 0xe21   : > { %8004 = vmatprep.subr.mxu0 %v5620_v55  ;;  %14797 = vst [vmem:[#allocation65_spill] sm:$0xff] %v12254_v5  ;;  %v4665_v23 = vmul.f32 1.442695, %v4494_v36 }
 0xe22   : > { %8005 = vmatpush3.xpose.msra.mxu0 %v5620_v55  ;;  %v12258_v55 = vpop.permute.xlu0 %3905 }
 0xe23   : > { %8006 = vmatprep.subr.mxu0 %v5619_v33 }
 0xe26   : > { %8007 = vmatpush3.xpose.msra.mxu0 %v5619_v33 }
 0xe28   : > { %4371 = vmax.xlane.f32.xlu0 %v12243_v45 }
 0xe29   : > { %4335 = vmax.xlane.f32.xlu1 %v12248_v26 }
 0xe2c   : > { %4959 = vadd.xlane.f32.xlu0 %v12252_v54  ;;  %v14807_v54 = vld [vmem:[#allocation193_spill] sm:$0xff] }
 0xe2d   : > { %4923 = vadd.xlane.f32.xlu1 %v12254_v5  ;;  %v3992_v60 = vadd.f32 %v14807_v54, %v14806_v29 }
 0xe3e   : > { %3821 = vrot.lane.b32.xlu1 %v11919_v11, %s14798_s23 }
 0xe3f   : > { %v12262_v35 = vpop.xlane.xlu0 %4375 }
 0xe42   : > { %3893 = vrot.lane.b32.xlu0 %v11968_v8, %s14360_s11  ;;  %v14804_v8 = vld [vmem:[#allocation176_spill] sm:$0xff]  ;;  %s14811_s11 = smov 297  }
 0xe43   : > { %v4930_v39 = vpop.xlane.xlu0 %4929  ;;  %v4010_v22 = vadd.f32 %v14805_v58, %v14804_v8 }
 0xe44   : > { %8572 = vrcp.f32 %v4930_v39 }
 0xe45   : > { %8574 = vpow2.f32 %v4701_v62  ;;  %v12279_v24 = vadd.f32 %v12207_v6, %v4010_v22  ;;  %v14813_v62 = vld [vmem:[#allocation83_spill] sm:$0xff] }
 0xe46   : > { %8576 = vpow2.f32 %v4665_v23 }
 0xe47   : > { %v12294_v54 = vpop.permute.xlu0 %3901 }
 0xe51   : > { %v8573_v44 = vpop.eup %8572 }
 0xe52   : > { %v5266_v14 = vmul.f32 %v8573_v44, %v4930_v39  ;;  %v12284_v39 = vadd.f32 %v12281_v53, %v3992_v60 }
 0xe54   : > { %v5394_v50 = vsub.f32 2.0, %v5266_v14  ;;  %14808 = vst [vmem:[#allocation183_spill] sm:$0xff] %v12284_v39  ;;  %v14814_v14 = vld [vmem:[#allocation185_spill] sm:$0xff] }
 0xe56   : > { %v5522_v11 = vmul.f32 %v8573_v44, %v5394_v50  ;;  %v14812_v44 = vld [vmem:[#allocation148_spill] sm:$0xff]  ;;  %v14815_v50 = vld [vmem:[#allocation75_spill] sm:$0xff] }
 0xe57   : > { %v4511_v23 = vsub.f32 %v14813_v62, %v14812_v44 }
 0xe58   : > { %v12271_v33 = vmul.f32 %v12176_v56, %v5522_v11  ;;  %v12288_v56 = vpop.eup %8574  ;;  %v4493_v11 = vsub.f32 %v14815_v50, %v14814_v14  ;;  %v14825_v14 = vld [vmem:[#allocation188_spill] sm:$0xff] }
 0xe59   : > { %14809 = vst [vmem:[#allocation95_spill] sm:$0xff] %v12288_v56  ;;  %v12290_v10 = vpop.eup %8576  ;;  %v4699_v58 = vmul.f32 1.442695, %v4511_v23  ;;  %v12317_v23 = vld [vmem:[#allocation7 + $0x20] sm:$0xff]  ;;  %v14826_v50 = vld [vmem:[#allocation124_spill] sm:$0xff] }
 0xe5a   : > { %14803 = vst [vmem:[#allocation170_spill] sm:$0xff] %v12271_v33  ;;  %8011 = vmatprep.subr.mxu1 %v12271_v33  ;;  %14810 = vst [vmem:[#allocation144_spill] sm:$0xff] %v12290_v10  ;;  %v4663_v22 = vmul.f32 1.442695, %v4493_v11  ;;  %v14819_v33 = vld [vmem:[#allocation152_spill] sm:$0xff]  ;;  %v4492_v11 = vsub.f32 %v14826_v50, %v14825_v14  ;;  %v14835_v14 = vld [vmem:[#allocation63_spill] sm:$0xff] }
 0xe5b   : > { %v14836_v50 = vld [vmem:[#allocation126_spill] sm:$0xff] }
 0xe61   : > { %4369 = vmax.xlane.f32.xlu0 %v12279_v24 }
 0xe62   : > { %4333 = vmax.xlane.f32.xlu1 %v12284_v39  ;;  %v14820_v39 = vld [vmem:[#allocation195_spill] sm:$0xff] }
 0xe63   : > { %v3991_v44 = vadd.f32 %v14820_v39, %v14819_v33  ;;  %v14824_v33 = vld [vmem:[#allocation128_spill] sm:$0xff] }
 0xe65   : > { %4957 = vadd.xlane.f32.xlu0 %v12288_v56 }
 0xe66   : > { %4921 = vadd.xlane.f32.xlu1 %v12290_v10  ;;  %v14818_v10 = vld [vmem:[#allocation162_spill] sm:$0xff] }
 0xe77   : > { %3817 = vrot.lane.b32.xlu1 %v11913_v1, %s14811_s11 }
 0xe78   : > { %v12298_v7 = vpop.xlane.xlu0 %4373 }
 0xe7b   : > { %3889 = vrot.lane.b32.xlu0 %v11959_v32, %s14358_s6  ;;  %v14817_v32 = vld [vmem:[#allocation174_spill] sm:$0xff]  ;;  %s14834_s6 = smov 281  }
 0xe7c   : > { %v4962_v36 = vpop.xlane.xlu0 %4961  ;;  %v4009_v5 = vadd.f32 %v14818_v10, %v14817_v32  ;;  %v14830_v32 = vld [vmem:[#allocation197_spill] sm:$0xff] }
 0xe7d   : > { %8578 = vrcp.f32 %v4962_v36 }
 0xe7e   : > { %8580 = vpow2.f32 %v4699_v58  ;;  %v12315_v62 = vadd.f32 %v12245_v0, %v4009_v5  ;;  %v14823_v5 = vld [vmem:[#allocation82_spill] sm:$0xff]  ;;  %v4661_v58 = vmul.f32 1.442695, %v4492_v11  ;;  %v4509_v11 = vsub.f32 %v14836_v50, %v14835_v14  ;;  %v14843_v14 = vld [vmem:[#allocation120_spill] sm:$0xff] }
 0xe7f   : > { %8582 = vpow2.f32 %v4663_v22  ;;  %v4510_v39 = vsub.f32 %v14824_v33, %v14823_v5  ;;  %v14827_v22 = vld [vmem:[#allocation93_spill] sm:$0xff] }
 0xe8a   : > { %v8579_v8 = vpop.eup %8578 }
 0xe8b   : > { %v5282_v29 = vmul.f32 %v8579_v8, %v4962_v36  ;;  %v12320_v36 = vadd.f32 %v12317_v23, %v3991_v44 }
 0xe8d   : > { %v5410_v60 = vsub.f32 2.0, %v5282_v29  ;;  %v14828_v29 = vld [vmem:[#allocation138_spill] sm:$0xff] }
 0xe8f   : > { %v5538_v1 = vmul.f32 %v8579_v8, %v5410_v60  ;;  %v4697_v8 = vmul.f32 1.442695, %v4510_v39  ;;  %v4008_v60 = vadd.f32 %v14828_v29, %v14827_v22  ;;  %v14838_v22 = vld [vmem:[#allocation212_spill] sm:$0xff] }
 0xe91   : > { %v12307_v56 = vmul.f32 %v12214_v21, %v5538_v1  ;;  %v12324_v21 = vpop.eup %8580  ;;  %8584 = vpow2.f32 %v4697_v8  ;;  %v14829_v1 = vld [vmem:[#allocation151_spill] sm:$0xff]  ;;  %v4695_v8 = vmul.f32 1.442695, %v4509_v11 }
 0xe92   : > { %14821 = vst [vmem:[#allocation130_spill] sm:$0xff] %v12324_v21  ;;  %v12326_v10 = vpop.eup %8582  ;;  %8586 = vpow2.f32 %v4661_v58  ;;  %v3990_v44 = vadd.f32 %v14830_v32, %v14829_v1  ;;  %v14837_v58 = vld [vmem:[#allocation169_spill] sm:$0xff]  ;;  %v14840_v1 = vld [vmem:[#allocation216_spill] sm:$0xff]  ;;  %v14844_v11 = vld [vmem:[#allocation171_spill] sm:$0xff] }
 0xe93   : > { %14816 = vst [vmem:[#allocation98_spill] sm:$0xff] %v12307_v56  ;;  %8046 = vmatprep.subr.mxu0 %v12307_v56  ;;  %14822 = vst [vmem:[#allocation90_spill] sm:$0xff] %v12326_v10  ;;  %8588 = vpow2.f32 %v4695_v8  ;;  %v4007_v29 = vadd.f32 %v14838_v22, %v14837_v58  ;;  %v14845_v8 = vld [vmem:[#allocation76_spill] sm:$0xff] }
 0xe94   : > { %v4508_v58 = vsub.f32 %v14845_v8, %v14844_v11  ;;  %v14854_v8 = vld [vmem:[#allocation159_spill] sm:$0xff] }
 0xe9a   : > { %4367 = vmax.xlane.f32.xlu0 %v12315_v62 }
 0xe9b   : > { %4331 = vmax.xlane.f32.xlu1 %v12320_v36 }
 0xe9e   : > { %4955 = vadd.xlane.f32.xlu0 %v12324_v21  ;;  %v12352_v33 = vpop.eup %8584 }
 0xe9f   : > { %4919 = vadd.xlane.f32.xlu1 %v12326_v10  ;;  %14832 = vst [vmem:[#allocation167_spill] sm:$0xff] %v12352_v33  ;;  %v12354_v39 = vpop.eup %8586  ;;  %v12419_v10 = vld [vmem:[#allocation7] sm:$0xff] }
 0xea0   : > { %14833 = vst [vmem:[#allocation187_spill] sm:$0xff] %v12354_v39 }
 0xeb0   : > { %3813 = vrot.lane.b32.xlu1 %v11907_v63, %s14517_s27  ;;  %v12343_v63 = vadd.f32 %v12281_v53, %v4008_v60  ;;  %v14839_v60 = vld [vmem:[#allocation166_spill] sm:$0xff] }
 0xeb1   : > { %v4006_v32 = vadd.f32 %v14840_v1, %v14839_v60  ;;  %v14846_v60 = vld [vmem:[#allocation164_spill] sm:$0xff] }
 0xeb2   : > { %v4005_v1 = vadd.f32 %v11770_v2, %v14846_v60  ;;  %v14857_v60 = vld [vmem:[#allocation208_spill] sm:$0xff] }
 0xeb4   : > { %3885 = vrot.lane.b32.xlu0 %v11951_v59, %s14798_s23  ;;  %v12345_v59 = vld [vmem:[#allocation7 + $0x18] sm:$0xff] }
 0xeb5   : > { %v12348_v5 = vadd.f32 %v12345_v59, %v3990_v44  ;;  %v12369_v44 = vadd.f32 %v12317_v23, %v4007_v29  ;;  %v4693_v29 = vmul.f32 1.442695, %v4508_v58  ;;  %v14855_v58 = vld [vmem:[#allocation127_spill] sm:$0xff] }
 0xeb7   : > { %14831 = vst [vmem:[#allocation173_spill] sm:$0xff] %v12348_v5 }
 0xed3   : > { %4365 = vmax.xlane.f32.xlu0 %v12343_v63 }
 0xed4   : > { %4329 = vmax.xlane.f32.xlu1 %v12348_v5 }
 0xed7   : > { %4953 = vadd.xlane.f32.xlu0 %v12352_v33  ;;  %v12372_v33 = vadd.f32 %v12345_v59, %v4006_v32  ;;  %v14847_v32 = vld [vmem:[#allocation150_spill] sm:$0xff] }
 0xed8   : > { %4917 = vadd.xlane.f32.xlu1 %v12354_v39 }
 0xee9   : > { %3809 = vrot.lane.b32.xlu1 %v11901_v31, %s14834_s6  ;;  %v12376_v31 = vpop.eup %8588 }
 0xeea   : > { %14841 = vst [vmem:[#allocation100_spill] sm:$0xff] %v12376_v31 }
 0xeed   : > { %3881 = vrot.lane.b32.xlu0 %v11939_v46, %s14811_s11  ;;  %v14842_v46 = vld [vmem:[#allocation192_spill] sm:$0xff] }
 0xeee   : > { %v4491_v50 = vsub.f32 %v14843_v14, %v14842_v46 }
 0xef0   : > { %v4659_v22 = vmul.f32 1.442695, %v4491_v50  ;;  %v14853_v50 = vld [vmem:[#allocation123_spill] sm:$0xff] }
 0xef2   : > { %8590 = vpow2.f32 %v4659_v22  ;;  %v4490_v22 = vsub.f32 %v14855_v58, %v14854_v8  ;;  %v12430_v8 = vld [vmem:[#allocation7 + $0x8] sm:$0xff]  ;;  %v14867_v58 = vld [vmem:[#allocation190_spill] sm:$0xff] }
 0xef3   : > { %8592 = vpow2.f32 %v4693_v29  ;;  %v14856_v29 = vld [vmem:[#allocation145_spill] sm:$0xff] }
 0xeff   : > { %v12401_v14 = vpop.eup %8590 }
 0xf00   : > { %14850 = vst [vmem:[#allocation88_spill] sm:$0xff] %v12401_v14  ;;  %v12404_v2 = vpop.eup %8592 }
 0xf01   : > { %14851 = vst [vmem:[#allocation77_spill] sm:$0xff] %v12404_v2 }
 0xf0c   : > { %4363 = vmax.xlane.f32.xlu0 %v12369_v44 }
 0xf0d   : > { %4361 = vmax.xlane.f32.xlu1 %v12372_v33 }
 0xf10   : > { %4951 = vadd.xlane.f32.xlu0 %v12376_v31  ;;  %v14848_v31 = vld [vmem:[#allocation202_spill] sm:$0xff] }
 0xf11   : > { %v3989_v39 = vadd.f32 %v14848_v31, %v14847_v32  ;;  %v14852_v31 = vld [vmem:[#allocation60_spill] sm:$0xff]  ;;  %v4657_v32 = vmul.f32 1.442695, %v4490_v22  ;;  %v14868_v22 = vld [vmem:[#allocation73_spill] sm:$0xff] }
 0xf1e   : > { %3805 = vrot.lane.b32.xlu1 %v11895_v19, %s9263_s13  ;;  %v12391_v19 = vld [vmem:[#allocation7 + $0x10] sm:$0xff] }
 0xf1f   : > { %v12398_v46 = vadd.f32 %v12391_v19, %v3989_v39  ;;  %v4489_v39 = vsub.f32 %v14853_v50, %v14852_v31  ;;  %v14862_v50 = vld [vmem:[#allocation147_spill] sm:$0xff] }
 0xf21   : > { %14849 = vst [vmem:[#allocation157_spill] sm:$0xff] %v12398_v46  ;;  %v4655_v11 = vmul.f32 1.442695, %v4489_v39  ;;  %v14863_v39 = vld [vmem:[#allocation205_spill] sm:$0xff] }
 0xf23   : > { %8594 = vpow2.f32 %v4655_v11  ;;  %v3988_v11 = vadd.f32 %v14863_v39, %v14862_v50  ;;  %v14871_v50 = vld [vmem:[#allocation199_spill] sm:$0xff]  ;;  %v14872_v39 = vld [vmem:[#allocation118_spill] sm:$0xff] }
 0xf24   : > { %8596 = vpow2.f32 %v4657_v32  ;;  %v14870_v32 = vld [vmem:[#allocation214_spill] sm:$0xff] }
 0xf26   : > { %3877 = vrot.lane.b32.xlu0 %v11927_v12, %s14517_s27  ;;  %v12394_v12 = vadd.f32 %v12391_v19, %v4005_v1  ;;  %v3987_v1 = vadd.f32 %v14857_v60, %v14856_v29  ;;  %v4488_v29 = vsub.f32 %v14868_v22, %v14867_v58 }
 0xf28   : > { %v4653_v60 = vmul.f32 1.442695, %v4488_v29  ;;  %v3834_v29 = vpop.permute.xlu1 %3833 }
 0xf30   : > { %v12425_v31 = vpop.eup %8594 }
 0xf31   : > { %14861 = vst [vmem:[#allocation85_spill] sm:$0xff] %v12425_v31 }
 0xf42   : > { %4359 = vmax.xlane.f32.xlu1 %v12394_v12 }
 0xf45   : > { %4327 = vmax.xlane.f32.xlu0 %v12398_v46  ;;  %v14884_v46 = vld [vmem:[#allocation155_spill] sm:$0xff] }
 0xf49   : > { %4915 = vadd.xlane.f32.xlu0 %v12401_v14  ;;  %v14858_v14 = vld [vmem:[#allocation137_spill] sm:$0xff] }
 0xf4d   : > { %4949 = vadd.xlane.f32.xlu0 %v12404_v2  ;;  %v14859_v2 = vld [vmem:[#allocation71_spill] sm:$0xff] }
 0xf4e   : > { %v4507_v21 = vsub.f32 %v14859_v2, %v14858_v14  ;;  %v12433_v14 = vadd.f32 %v12430_v8, %v3988_v11  ;;  %v12436_v2 = vpop.eup %8596  ;;  %v4506_v11 = vsub.f32 %v14872_v39, %v14871_v50  ;;  %v14878_v39 = vld [vmem:[#allocation112_spill] sm:$0xff] }
 0xf4f   : > { %14865 = vst [vmem:[#allocation191_spill] sm:$0xff] %v12436_v2 }
 0xf50   : > { %14864 = vst [vmem:[#allocation165_spill] sm:$0xff] %v12433_v14 }
 0xf53   : > { %3801 = vrot.lane.b32.xlu1 %v11889_v34, %s14422_s15  ;;  %v12422_v34 = vadd.f32 %v12419_v10, %v3987_v1  ;;  %v14869_v1 = vld [vmem:[#allocation156_spill] sm:$0xff] }
 0xf55   : > { %14860 = vst [vmem:[#allocation181_spill] sm:$0xff] %v12422_v34 }
 0xf63   : > { %3873 = vrot.lane.b32.xlu0 %v11915_v37, %s14834_s6  ;;  %v4691_v37 = vmul.f32 1.442695, %v4507_v21  ;;  %s15175_s6 = sld [smem:[#allocation222_spill]] }
 0xf65   : > { %8598 = vpow2.f32 %v4691_v37  ;;  %v4003_v37 = vadd.f32 %v14870_v32, %v14869_v1  ;;  %v12467_v1 = vpop.xlane.xlu1 %4339 }
 0xf66   : > { %8600 = vpow2.f32 %v4653_v60 }
 0xf69   : > { %v12472_v32 = vpop.xlane.xlu1 %4927 }
 0xf72   : > { %v12439_v21 = vpop.eup %8598 }
 0xf73   : > { %14866 = vst [vmem:[#allocation92_spill] sm:$0xff] %v12439_v21 }
 0xf77   : > { %4323 = vmax.xlane.f32.xlu1 %v12422_v34  ;;  %v14881_v34 = vld [vmem:[#allocation203_spill] sm:$0xff] }
 0xf7b   : > { %4911 = vadd.xlane.f32.xlu1 %v12425_v31  ;;  %v12453_v31 = vadd.f32 %v12419_v10, %v4003_v37  ;;  %v3830_v37 = vpop.permute.xlu1 %3829 }
 0xf7d   : > { %14873 = vst [vmem:[#allocation175_spill] sm:$0xff] %v12453_v31 }
 0xf7f   : > { %v12474_v50 = vpop.xlane.xlu1 %4337 }
 0xf82   : > { %4325 = vmax.xlane.f32.xlu0 %v12433_v14  ;;  %v14883_v14 = vld [vmem:[#allocation210_spill] sm:$0xff] }
 0xf86   : > { %4913 = vadd.xlane.f32.xlu0 %v12436_v2 }
 0xf8a   : > { %4947 = vadd.xlane.f32.xlu0 %v12439_v21  ;;  %v12456_v21 = vpop.eup %8600 }
 0xf8b   : > { %14874 = vst [vmem:[#allocation135_spill] sm:$0xff] %v12456_v21 }
 0xf8c   : > { %3797 = vrot.lane.b32.xlu1 %v11883_v3, %s14468_s17  ;;  %v4689_v3 = vmul.f32 1.442695, %v4506_v11 }
 0xf8e   : > { %8602 = vpow2.f32 %v4689_v3  ;;  %v12478_v3 = vpop.xlane.xlu1 %4925 }
 0xf9b   : > { %v12465_v60 = vpop.eup %8602 }
 0xf9c   : > { %14876 = vst [vmem:[#allocation79_spill] sm:$0xff] %v12465_v60 }
 0xfa0   : > { %3869 = vrot.lane.b32.xlu0 %v11903_v4, %s9263_s13  ;;  %v14875_v4 = vld [vmem:[#allocation160_spill] sm:$0xff]  ;;  %s15176_s13 = sshll.u32 %s9537_s20, 7 }
 0xfa1   : > { %v4004_v58 = vadd.f32 %v11789_v47, %v14875_v4  ;;  %v14877_v47 = vld [vmem:[#allocation204_spill] sm:$0xff] }
 0xfa2   : > { %v4484_v11 = vsub.f32 %v14878_v39, %v14877_v47  ;;  %v14882_v47 = vld [vmem:[#allocation132_spill] sm:$0xff] }
 0xfa3   : > { %v12462_v22 = vadd.f32 %v12430_v8, %v4004_v58  ;;  %v12482_v58 = vpop.permute.xlu1 %3825  ;;  %v4505_v39 = vsub.f32 %v14882_v47, %v14881_v34  ;;  %v4034_v47 = vadd.f32 %v12069_v40, %v11966_v51  ;;  %v4528_v51 = vsub.f32 %v11999_v18, %v12077_v42 }
 0xfa4   : > { %v4645_v4 = vmul.f32 1.442695, %v4484_v11 }
 0xfa6   : > { %8604 = vpow2.f32 %v4645_v4 }
 0xfa7   : > { %v12486_v2 = vpop.xlane.xlu1 %4335 }
 0xfab   : > { %v12497_v4 = vpop.xlane.xlu1 %4923 }
 0xfb0   : > { %4355 = vmax.xlane.f32.xlu1 %v12453_v31  ;;  %v4032_v31 = vadd.f32 %v12108_v38, %v11957_v48  ;;  %v12505_v38 = vpop.permute.xlu1 %3821 }
 0xfb2   : > { %v12495_v11 = vadd.f32 %v11996_v57, %v4032_v31  ;;  %v14888_v57 = vld [vmem:[#allocation177_spill] sm:$0xff]  ;;  %v12512_v31 = vpop.permute.xlu0 %3897 }
 0xfb3   : > { %v12502_v48 = vpop.eup %8604 }
 0xfb4   : > { %4909 = vadd.xlane.f32.xlu1 %v12456_v21  ;;  %v14880_v21 = vld [vmem:[#allocation101_spill] sm:$0xff]  ;;  %14885 = vst [vmem:[#allocation180_spill] sm:$0xff] %v12495_v11  ;;  %14886 = vst [vmem:[#allocation143_spill] sm:$0xff] %v12502_v48 }
 0xfbf   : > { %4357 = vmax.xlane.f32.xlu0 %v12462_v22 }
 0xfc3   : > { %4945 = vadd.xlane.f32.xlu0 %v12465_v60  ;;  %v14879_v60 = vld [vmem:[#allocation207_spill] sm:$0xff] }
 0xfc5   : > { %3861 = vrot.lane.b32.xlu1 %v11879_v9, %s14468_s17  ;;  %v4483_v9 = vsub.f32 %v14880_v21, %v14879_v60  ;;  %v4687_v21 = vmul.f32 1.442695, %v4505_v39  ;;  %v12519_v39 = vpop.xlane.xlu1 %4333  ;;  %s7516_s17 = sshll.u32 %s9381_s24, 11  ;;  %s9277_s24 = smov [#allocation13]  }
 0xfc6   : > { %s9175_s16 = sshll.u32 %s9277_s24, 4  ;;  %s9176_s16 = int_to_ptr.vmem [resolvable:$false] %s9175_s16 }
 0xfc7   : > { %v4643_v56 = vmul.f32 1.442695, %v4483_v9  ;;  %v4029_v9 = vadd.f32 %v12222_v25, %v11941_v49  ;;  %v14891_v49 = vld [vmem:[#allocation121_spill] sm:$0xff]  ;;  %s9177_s7 = scalar_lea.vmem %s9176_s16, 4096 }
 0xfc9   : > { %8606 = vpow2.f32 %v4643_v56  ;;  %v14887_v56 = vld [vmem:[#allocation215_spill] sm:$0xff]  ;;  %v12510_v34 = vadd.f32 %v12093_v43, %v4029_v9 }
 0xfca   : > { %8608 = vpow2.f32 %v4687_v21  ;;  %v4028_v21 = vadd.f32 %v3834_v29, %v11935_v30  ;;  %v12536_v30 = vpop.xlane.xlu1 %4921 }
 0xfcb   : > { %14889 = vst [vmem:[#allocation161_spill] sm:$0xff] %v12510_v34  ;;  %14896 = vst [vmem:[#allocation131_spill] sm:$0xff] %v12536_v30 }
 0xfcc   : > { %v12534_v40 = vadd.f32 %v12131_v52, %v4028_v21  ;;  %v14901_v21 = vld [vmem:[#allocation196_spill] sm:$0xff] }
 0xfce   : > { %14895 = vst [vmem:[#allocation68_spill] sm:$0xff] %v12534_v40 }
 0xfd9   : > { %3865 = vrot.lane.b32.xlu0 %v11891_v20, %s14422_s15  ;;  %v4499_v20 = vsub.f32 %v14884_v46, %v14883_v14  ;;  %v4529_v46 = vsub.f32 %v14888_v57, %v14887_v56  ;;  %v14890_v14 = vld [vmem:[#allocation194_spill] sm:$0xff]  ;;  %v12524_v56 = vpop.xlane.xlu0 %4371  ;;  %s13906_s15 = scalar_lea.vmem [#allocation13], %s15176_s13 }
 0xfda   : > { %v4487_v25 = vsub.f32 %v14891_v49, %v14890_v14  ;;  %v14893_v57 = vld [vmem:[#allocation206_spill] sm:$0xff]  ;;  %s7236_s27 = sshll.u32 %s13906_s15, 4  ;;  %s13959_s27 = int_to_ptr.vmem [resolvable:$true] %s7236_s27 }
 0xfdb   : > { %v4675_v60 = vmul.f32 1.442695, %v4499_v20  ;;  %v4735_v20 = vmul.f32 1.442695, %v4529_v46  ;;  %s9171_s30 = scalar_lea.vmem %s13959_s27, 2048  ;;  %p9178_p5 = scmp.lt.s32.totalorder %s13959_s27, %s9176_s16 }
 0xfdc   : > { %v4651_v9 = vmul.f32 1.442695, %v4487_v25  ;;  %v4733_v25 = vmul.f32 1.442695, %v4528_v51  ;;  %p9172_p10 = scmp.ne.s32.totalorder %s13959_s27, %s9171_s30  ;;  %p9179_p9 = scmp.lt.s32.totalorder %s9177_s7, %s9171_s30 }
 0xfdd   : > { %8610 = vpow2.f32 %v4675_v60  ;;  %v12522_v60 = vpop.eup %8606  ;;  %v12545_v18 = vpop.xlane.xlu0 %4959 }
 0xfde   : > { %14892 = vst [vmem:[#allocation61_spill] sm:$0xff] %v12522_v60  ;;  %8612 = vpow2.f32 %v4735_v20  ;;  %v12542_v49 = vpop.eup %8608  ;;  %p9173_p13 = pnand %p9172_p10, %p15178_p11  ;;  %p9180_p1 = por %p9179_p9, %p9178_p5 }
 0xfdf   : > { %8614 = vpow2.f32 %v4651_v9  ;;  %14898 = vst [vmem:[#allocation146_spill] sm:$0xff] %v12542_v49 }
 0xfe0   : > { %p9174_p0 = pneg %p9173_p13 }
 0xfe2   : > { %p9181_p3 = pnand %p9180_p1, %p9174_p0 }
 0xfe9   : > { %4413 = vmax.xlane.f32.xlu1 %v12495_v11  ;;  %v8992_v11 = vld [vmem:[#allocation7 + $0x78] sm:$0xff] }
 0xfea   : > { %v12529_v14 = vadd.f32 %v8992_v11, %v4034_v47  ;;  %v14899_v47 = vld [vmem:[#allocation72_spill] sm:$0xff]  ;;  %v12547_v42 = vpop.eup %8610 }
 0xfeb   : > { %v4027_v20 = vadd.f32 %v3830_v37, %v14899_v47  ;;  %14900 = vst [vmem:[#allocation52_spill] sm:$0xff] %v12547_v42  ;;  %v14905_v37 = vld [vmem:[#allocation54_spill] sm:$0xff]  ;;  %v14906_v47 = vld [vmem:[#allocation113_spill] sm:$0xff] }
 0xfed   : > { %4901 = vadd.xlane.f32.xlu1 %v12502_v48  ;;  %v14894_v48 = vld [vmem:[#allocation116_spill] sm:$0xff]  ;;  %v12560_v30 = vadd.f32 %v12169_v61, %v4027_v20  ;;  %v12574_v20 = vpop.eup %8612 }
 0xfee   : > { %14911 = vst [vmem:[#allocation158_spill] sm:$0xff] %v12574_v20 }
 0xfef   : > { %14907 = vst [vmem:[#allocation58_spill] sm:$0xff] %v12560_v30 }
 0xff1   : > { %4407 = vmax.xlane.f32.xlu1 %v12510_v34  ;;  %v4504_v34 = vsub.f32 %v14894_v48, %v14893_v57  ;;  %v14897_v48 = vld [vmem:[#allocation139_spill] sm:$0xff] }
 0xff2   : > { %v4033_v46 = vadd.f32 %v14897_v48, %v11961_v13  ;;  %v14902_v57 = vld [vmem:[#allocation119_spill] sm:$0xff]  ;;  %v14904_v13 = vld [vmem:[#allocation109_spill] sm:$0xff]  ;;  %v3818_v48 = vpop.permute.xlu1 %3817 }
 0xff3   : > { %v4685_v29 = vmul.f32 1.442695, %v4504_v34  ;;  %v4486_v9 = vsub.f32 %v14902_v57, %v14901_v21  ;;  %v8993_v34 = vld [vmem:[#allocation7 + $0x70] sm:$0xff]  ;;  %v4050_v51 = vadd.f32 %v12106_v16, %v14904_v13  ;;  %v14909_v21 = vld [vmem:[#allocation70_spill] sm:$0xff]  ;;  %v14910_v13 = vld [vmem:[#allocation69_spill] sm:$0xff] }
 0xff5   : > { %4899 = vadd.xlane.f32.xlu1 %v12522_v60  ;;  %8616 = vpow2.f32 %v4685_v29  ;;  %v12553_v60 = vadd.f32 %v8993_v34, %v4033_v46  ;;  %v4649_v29 = vmul.f32 1.442695, %v4486_v9  ;;  %v14908_v46 = vld [vmem:[#allocation209_spill] sm:$0xff] }
 0xff6   : > { %8618 = vpow2.f32 %v4733_v25  ;;  %v4503_v57 = vsub.f32 %v14909_v21, %v14908_v46  ;;  %v12570_v16 = vpop.xlane.xlu1 %4331  ;;  %v14916_v46 = vld [vmem:[#allocation108_spill] sm:$0xff] }
 0xff7   : > { %14903 = vst [vmem:[#allocation179_spill] sm:$0xff] %v12553_v60  ;;  %8620 = vpow2.f32 %v4649_v29  ;;  %v4049_v29 = vadd.f32 %v12144_v17, %v14916_v46 }
 0xff8   : > { %4417 = vmax.xlane.f32.xlu0 %v12529_v14  ;;  %v4683_v9 = vmul.f32 1.442695, %v4503_v57 }
 0xff9   : > { %4405 = vmax.xlane.f32.xlu1 %v12534_v40  ;;  %v4527_v40 = vsub.f32 %v14906_v47, %v14905_v37  ;;  %v4026_v37 = vadd.f32 %v12482_v58, %v14910_v13 }
 0xffa   : > { %v12587_v58 = vpop.xlane.xlu1 %4919 }
 0xffb   : > { %v4731_v25 = vmul.f32 1.442695, %v4527_v40  ;;  %v12585_v40 = vadd.f32 %v12207_v6, %v4026_v37  ;;  %14915 = vst [vmem:[#allocation87_spill] sm:$0xff] %v12587_v58 }
 0xffc   : > { %4943 = vadd.xlane.f32.xlu0 %v12542_v49  ;;  %v12568_v49 = vadd.f32 %v8992_v11, %v4050_v51  ;;  %v14913_v11 = vld [vmem:[#allocation117_spill] sm:$0xff] }
 0xffd   : > { %4931 = vadd.xlane.f32.xlu1 %v12547_v42  ;;  %v12563_v42 = vpop.permute.xlu0 %3893  ;;  %8622 = vpow2.f32 %v4731_v25  ;;  %v4526_v51 = vsub.f32 %v14913_v11, %v12152_v28  ;;  %14914 = vst [vmem:[#allocation66_spill] sm:$0xff] %v12585_v40  ;;  %v14918_v25 = vld [vmem:[#allocation64_spill] sm:$0xff] }
 0xffe   : > { %8624 = vpow2.f32 %v4683_v9  ;;  %v4025_v13 = vadd.f32 %v12505_v38, %v14918_v25  ;;  %v14920_v11 = vld [vmem:[#allocation200_spill] sm:$0xff]  ;;  %v3814_v17 = vpop.permute.xlu1 %3813 }
 0xfff   : > { %v4729_v57 = vmul.f32 1.442695, %v4526_v51  ;;  %v14922_v51 = vld [vmem:[#allocation97_spill] sm:$0xff] }
0x1000   : > { %4415 = vmax.xlane.f32.xlu0 %v12553_v60  ;;  %v12580_v60 = vpop.eup %8614  ;;  %v4525_v46 = vsub.f32 %v14922_v51, %v12190_v15  ;;  %v12610_v38 = vadd.f32 %v12245_v0, %v4025_v13 }
0x1001   : > { %4403 = vmax.xlane.f32.xlu1 %v12560_v30  ;;  %v12577_v47 = vpop.xlane.xlu0 %4369  ;;  %14912 = vst [vmem:[#allocation184_spill] sm:$0xff] %v12580_v60  ;;  %8626 = vpow2.f32 %v4729_v57  ;;  %v14931_v30 = vld [vmem:[#allocation140_spill] sm:$0xff] }
0x1002   : > { %v12593_v21 = vpop.eup %8616  ;;  %14923 = vst [vmem:[#allocation29_spill] sm:$0xff] %v12610_v38  ;;  %v4727_v57 = vmul.f32 1.442695, %v4525_v46  ;;  %v14933_v46 = vld [vmem:[#allocation122_spill] sm:$0xff] }
0x1003   : > { %14917 = vst [vmem:[#allocation134_spill] sm:$0xff] %v12593_v21  ;;  %v12599_v37 = vpop.eup %8618  ;;  %v4524_v58 = vsub.f32 %v14933_v46, %v12228_v27  ;;  %v14940_v27 = vld [vmem:[#allocation55_spill] sm:$0xff] }
0x1004   : > { %4449 = vmax.xlane.f32.xlu0 %v12568_v49  ;;  %14919 = vst [vmem:[#allocation56_spill] sm:$0xff] %v12599_v37  ;;  %v4023_v46 = vadd.f32 %v3814_v17, %v14940_v27 }
0x1005   : > { %4991 = vadd.xlane.f32.xlu1 %v12574_v20  ;;  %v12597_v28 = vpop.xlane.xlu0 %4957  ;;  %v14921_v20 = vld [vmem:[#allocation115_spill] sm:$0xff] }
0x1006   : > { %v4485_v9 = vsub.f32 %v14921_v20, %v14920_v11  ;;  %v14928_v11 = vld [vmem:[#allocation62_spill] sm:$0xff] }
0x1007   : > { %v4024_v15 = vadd.f32 %v3818_v48, %v14928_v11 }
0x1008   : > { %4907 = vadd.xlane.f32.xlu0 %v12580_v60  ;;  %v14925_v60 = vld [vmem:[#allocation141_spill] sm:$0xff] }
0x1009   : > { %4401 = vmax.xlane.f32.xlu1 %v12585_v40  ;;  %v12605_v40 = vadd.f32 %v8993_v34, %v4049_v29  ;;  %v12613_v25 = vpop.permute.xlu0 %3889  ;;  %v12618_v34 = vpop.xlane.xlu1 %4329  ;;  %v12636_v48 = vadd.f32 %v12281_v53, %v4024_v15 }
0x100a   : > { %14926 = vst [vmem:[#allocation57_spill] sm:$0xff] %v12618_v34  ;;  %v12620_v29 = vpop.eup %8620 }
0x100b   : > { %14927 = vst [vmem:[#allocation154_spill] sm:$0xff] %v12620_v29  ;;  %v12623_v51 = vpop.eup %8622  ;;  %14934 = vst [vmem:[#allocation25_spill] sm:$0xff] %v12636_v48 }
0x100c   : > { %4941 = vadd.xlane.f32.xlu0 %v12593_v21  ;;  %v14924_v21 = vld [vmem:[#allocation213_spill] sm:$0xff]  ;;  %14929 = vst [vmem:[#allocation189_spill] sm:$0xff] %v12623_v51 }
0x100d   : > { %4989 = vadd.xlane.f32.xlu1 %v12599_v37  ;;  %v4647_v37 = vmul.f32 1.442695, %v4485_v9  ;;  %v4502_v20 = vsub.f32 %v14925_v60, %v14924_v21  ;;  %v12626_v13 = vpop.xlane.xlu0 %4367  ;;  %v12631_v21 = vpop.eup %8624 }
0x100e   : > { %14932 = vst [vmem:[#allocation136_spill] sm:$0xff] %v12631_v21  ;;  %v12638_v11 = vpop.xlane.xlu1 %4917  ;;  %v12650_v15 = vpop.eup %8626 }
0x100f   : > { %8628 = vpow2.f32 %v4647_v37  ;;  %v4681_v9 = vmul.f32 1.442695, %v4502_v20  ;;  %14935 = vst [vmem:[#allocation149_spill] sm:$0xff] %v12638_v11  ;;  %v14936_v37 = vld [vmem:[#allocation111_spill] sm:$0xff]  ;;  %14941 = vst [vmem:[#allocation201_spill] sm:$0xff] %v12650_v15 }
0x1010   : > { %4447 = vmax.xlane.f32.xlu0 %v12605_v40  ;;  %8630 = vpow2.f32 %v4727_v57  ;;  %v4725_v57 = vmul.f32 1.442695, %v4524_v58 }
0x1011   : > { %4399 = vmax.xlane.f32.xlu1 %v12610_v38  ;;  %v14930_v38 = vld [vmem:[#allocation81_spill] sm:$0xff]  ;;  %8632 = vpow2.f32 %v4681_v9 }
0x1012   : > { %v4031_v60 = vadd.f32 %v14931_v30, %v14930_v38  ;;  %v14938_v30 = vld [vmem:[#allocation106_spill] sm:$0xff]  ;;  %8634 = vpow2.f32 %v4725_v57 }
0x1013   : > { %v4048_v38 = vadd.f32 %v12182_v41, %v14938_v30  ;;  %v14944_v41 = vld [vmem:[#allocation182_spill] sm:$0xff]  ;;  %v12661_v30 = vadd.f32 %v12317_v23, %v4023_v46 }
0x1014   : > { %4905 = vadd.xlane.f32.xlu0 %v12620_v29  ;;  %v12643_v20 = vadd.f32 %v14936_v37, %v4031_v60  ;;  %v8994_v29 = vld [vmem:[#allocation7 + $0x68] sm:$0xff]  ;;  %v3810_v37 = vpop.permute.xlu1 %3809  ;;  %v4523_v58 = vsub.f32 %v14944_v41, %v12467_v1  ;;  %v14949_v46 = vld [vmem:[#allocation26_spill] sm:$0xff] }
0x1015   : > { %4987 = vadd.xlane.f32.xlu1 %v12623_v51  ;;  %v12647_v51 = vpop.xlane.xlu0 %4955  ;;  %v12656_v60 = vadd.f32 %v8994_v29, %v4048_v38  ;;  %14945 = vst [vmem:[#allocation153_spill] sm:$0xff] %v12661_v30  ;;  %v14950_v41 = vld [vmem:[#allocation198_spill] sm:$0xff] }
0x1016   : > { %14937 = vst [vmem:[#allocation125_spill] sm:$0xff] %v12643_v20  ;;  %14939 = vst [vmem:[#allocation176_spill] sm:$0xff] %v12647_v51  ;;  %v4723_v29 = vmul.f32 1.442695, %v4523_v58 }
0x1018   : > { %4939 = vadd.xlane.f32.xlu0 %v12631_v21  ;;  %v14942_v21 = vld [vmem:[#allocation24_spill] sm:$0xff] }
0x1019   : > { %4397 = vmax.xlane.f32.xlu1 %v12636_v48  ;;  %v14943_v48 = vld [vmem:[#allocation186_spill] sm:$0xff]  ;;  %v12664_v17 = vpop.permute.xlu0 %3885 }
0x101a   : > { %v4501_v9 = vsub.f32 %v14943_v48, %v14942_v21  ;;  %v14947_v48 = vld [vmem:[#allocation51_spill] sm:$0xff] }
0x101b   : > { %v4022_v38 = vadd.f32 %v3810_v37, %v14947_v48 }
0x101c   : > { %4411 = vmax.xlane.f32.xlu0 %v12643_v20  ;;  %v4679_v27 = vmul.f32 1.442695, %v4501_v9  ;;  %v12669_v21 = vpop.eup %8628  ;;  %v14951_v9 = vld [vmem:[#allocation23_spill] sm:$0xff]  ;;  %v14952_v20 = vld [vmem:[#allocation172_spill] sm:$0xff] }
0x101d   : > { %4985 = vadd.xlane.f32.xlu1 %v12650_v15  ;;  %v12667_v15 = vpop.xlane.xlu1 %4361  ;;  %14946 = vst [vmem:[#allocation193_spill] sm:$0xff] %v12669_v21  ;;  %v12672_v57 = vpop.eup %8630  ;;  %v4030_v11 = vadd.f32 %v14952_v20, %v14951_v9  ;;  %v12685_v37 = vadd.f32 %v12345_v59, %v4022_v38  ;;  %v14958_v20 = vld [vmem:[#allocation46_spill] sm:$0xff] }
0x101e   : > { %14948 = vst [vmem:[#allocation148_spill] sm:$0xff] %v12672_v57  ;;  %v12675_v1 = vpop.xlane.xlu0 %4365  ;;  %8636 = vpow2.f32 %v4679_v27  ;;  %v12682_v51 = vpop.eup %8632  ;;  %v14960_v38 = vld [vmem:[#allocation34_spill] sm:$0xff] }
0x101f   : > { %14953 = vst [vmem:[#allocation83_spill] sm:$0xff] %v12682_v51  ;;  %8638 = vpow2.f32 %v4723_v29  ;;  %14954 = vst [vmem:[#allocation185_spill] sm:$0xff] %v12685_v37  ;;  %v12696_v29 = vpop.eup %8634 }
0x1020   : > { %4445 = vmax.xlane.f32.xlu0 %v12656_v60  ;;  %14959 = vst [vmem:[#allocation174_spill] sm:$0xff] %v12696_v29 }
0x1021   : > { %4395 = vmax.xlane.f32.xlu1 %v12661_v30  ;;  %v4500_v30 = vsub.f32 %v14950_v41, %v14949_v46  ;;  %v3806_v58 = vpop.permute.xlu1 %3805  ;;  %v14957_v46 = vld [vmem:[#allocation103_spill] sm:$0xff] }
0x1022   : > { %v12693_v5 = vpop.xlane.xlu0 %4953  ;;  %v4021_v9 = vadd.f32 %v3806_v58, %v14958_v20 }
0x1023   : > { %v4677_v48 = vmul.f32 1.442695, %v4500_v30 }
0x1024   : > { %4903 = vadd.xlane.f32.xlu0 %v12669_v21  ;;  %v14956_v21 = vld [vmem:[#allocation102_spill] sm:$0xff]  ;;  %v12705_v34 = vadd.f32 %v12391_v19, %v4021_v9 }
0x1025   : > { %4983 = vadd.xlane.f32.xlu1 %v12672_v57  ;;  %v8995_v57 = vld [vmem:[#allocation7 + $0x58] sm:$0xff]  ;;  %v4047_v41 = vadd.f32 %v14957_v46, %v14956_v21  ;;  %8640 = vpow2.f32 %v4677_v48  ;;  %v14963_v46 = vld [vmem:[#allocation99_spill] sm:$0xff] }
0x1026   : > { %v12689_v27 = vadd.f32 %v8995_v57, %v4030_v11  ;;  %14962 = vst [vmem:[#allocation162_spill] sm:$0xff] %v12705_v34  ;;  %v12708_v21 = vpop.permute.xlu0 %3881  ;;  %v4046_v20 = vadd.f32 %v12258_v55, %v14963_v46  ;;  %v14968_v55 = vld [vmem:[#allocation96_spill] sm:$0xff] }
0x1027   : > { %v4045_v46 = vadd.f32 %v12294_v54, %v14968_v55  ;;  %v14976_v55 = vld [vmem:[#allocation114_spill] sm:$0xff] }
0x1028   : > { %4937 = vadd.xlane.f32.xlu0 %v12682_v51  ;;  %14955 = vst [vmem:[#allocation75_spill] sm:$0xff] %v12689_v27  ;;  %v8996_v51 = vld [vmem:[#allocation7 + $0x60] sm:$0xff] }
0x1029   : > { %4393 = vmax.xlane.f32.xlu1 %v12685_v37  ;;  %v14961_v37 = vld [vmem:[#allocation211_spill] sm:$0xff]  ;;  %v12702_v11 = vadd.f32 %v8996_v51, %v4047_v41  ;;  %v14967_v41 = vld [vmem:[#allocation104_spill] sm:$0xff] }
0x102a   : > { %v4530_v30 = vsub.f32 %v14961_v37, %v14960_v38  ;;  %v12718_v51 = vpop.xlane.xlu0 %4363  ;;  %v14966_v37 = vld [vmem:[#allocation163_spill] sm:$0xff]  ;;  %v12723_v38 = vadd.f32 %v8995_v57, %v4046_v20 }
0x102b   : > { %v12713_v48 = vpop.eup %8636  ;;  %v4546_v9 = vsub.f32 %v14967_v41, %v14966_v37  ;;  %v12736_v37 = vadd.f32 %v12093_v43, %v4045_v46  ;;  %v14973_v41 = vld [vmem:[#allocation94_spill] sm:$0xff]  ;;  %v14975_v43 = vld [vmem:[#allocation105_spill] sm:$0xff] }
0x102c   : > { %4409 = vmax.xlane.f32.xlu0 %v12689_v27  ;;  %v4737_v58 = vmul.f32 1.442695, %v4530_v30  ;;  %14964 = vst [vmem:[#allocation152_spill] sm:$0xff] %v12713_v48  ;;  %v4044_v54 = vadd.f32 %v12512_v31, %v14973_v41  ;;  %v4544_v46 = vsub.f32 %v14976_v55, %v14975_v43  ;;  %v906_v31 = vld [vmem:[%s14008_s4 + $0x108] sm:$0xff] }
0x102d   : > { %4981 = vadd.xlane.f32.xlu1 %v12696_v29  ;;  %v12715_v29 = vpop.eup %8638  ;;  %v4769_v30 = vmul.f32 1.442695, %v4546_v9  ;;  %14972 = vst [vmem:[#allocation128_spill] sm:$0xff] %v12736_v37 }
0x102e   : > { %14965 = vst [vmem:[#allocation195_spill] sm:$0xff] %v12715_v29  ;;  %8642 = vpow2.f32 %v4737_v58  ;;  %v12730_v27 = vpop.xlane.xlu0 %4951  ;;  %v14971_v58 = vld [vmem:[#allocation110_spill] sm:$0xff]  ;;  %v4765_v41 = vmul.f32 1.442695, %v4544_v46 }
0x102f   : > { %8644 = vpow2.f32 %v4769_v30  ;;  %v905_v30 = vld [vmem:[%s14008_s4 + $0x100] sm:$0xff] }
0x1030   : > { %4443 = vmax.xlane.f32.xlu0 %v12702_v11 }
0x1031   : > { %4391 = vmax.xlane.f32.xlu1 %v12705_v34 }
0x1032   : > { %v12728_v34 = vpop.eup %8640  ;;  %v12739_v57 = vpop.permute.xlu0 %3877 }
0x1033   : > { %14969 = vst [vmem:[#allocation82_spill] sm:$0xff] %v12728_v34 }
0x1034   : > { %4935 = vadd.xlane.f32.xlu0 %v12713_v48 }
0x1035   : > { %4979 = vadd.xlane.f32.xlu1 %v12715_v29  ;;  %v14970_v29 = vld [vmem:[#allocation129_spill] sm:$0xff] }
0x1036   : > { %v4545_v48 = vsub.f32 %v14971_v58, %v14970_v29  ;;  %v12749_v29 = vpop.xlane.xlu0 %4327  ;;  %v12754_v58 = vadd.f32 %v12131_v52, %v4044_v54  ;;  %v907_v52 = vld [vmem:[%s14008_s4 + $0x110] sm:$0xff] }
0x1037   : > { %v14980_v54 = vld [vmem:[#allocation168_spill] sm:$0xff] }
0x1038   : > { %4441 = vmax.xlane.f32.xlu0 %v12723_v38  ;;  %v4767_v20 = vmul.f32 1.442695, %v4545_v48  ;;  %14977 = vst [vmem:[#allocation124_spill] sm:$0xff] %v12754_v58  ;;  %v12759_v48 = vpop.xlane.xlu1 %4359 }
0x103a   : > { %8646 = vpow2.f32 %v4767_v20  ;;  %v12766_v43 = vpop.xlane.xlu0 %4915 }
0x103b   : > { %v12743_v9 = vpop.eup %8642  ;;  %8648 = vpow2.f32 %v4765_v41 }
0x103c   : > { %4933 = vadd.xlane.f32.xlu0 %v12728_v34  ;;  %14974 = vst [vmem:[#allocation188_spill] sm:$0xff] %v12743_v9  ;;  %v12764_v20 = vpop.eup %8644 }
0x103d   : > { %14979 = vst [vmem:[#allocation93_spill] sm:$0xff] %v12764_v20 }
0x1040   : > { %4439 = vmax.xlane.f32.xlu0 %v12736_v37 }
0x1044   : > { %4993 = vadd.xlane.f32.xlu0 %v12743_v9  ;;  %v14978_v9 = vld [vmem:[#allocation89_spill] sm:$0xff] }
0x1045   : > { %v4043_v34 = vadd.f32 %v12563_v42, %v14978_v9  ;;  %v908_v42 = vld [vmem:[%s14008_s4 + $0x118] sm:$0xff]  ;;  %v12783_v9 = vpop.xlane.xlu0 %4949 }
0x1046   : > { %1083 = vperm.xlu1 %8399, %v905_v30   ;;  %v14981_v30 = vld [vmem:[#allocation78_spill] sm:$0xff]  ;;  %14983 = vst [vmem:[#allocation151_spill] sm:$0xff] %v12783_v9 }
0x1047   : > { %v4543_v55 = vsub.f32 %v14981_v30, %v14980_v54  ;;  %v12775_v46 = vadd.f32 %v12169_v61, %v4043_v34  ;;  %v12789_v61 = vpop.eup %8646  ;;  %v909_v34 = vld [vmem:[%s14008_s4 + $0x120] sm:$0xff] }
0x1048   : > { %4437 = vmax.xlane.f32.xlu0 %v12754_v58  ;;  %v12777_v58 = vpop.permute.xlu1 %3801  ;;  %14985 = vst [vmem:[#allocation197_spill] sm:$0xff] %v12789_v61  ;;  %v14987_v54 = vld [vmem:[#allocation178_spill] sm:$0xff] }
0x1049   : > { %14982 = vst [vmem:[#allocation138_spill] sm:$0xff] %v12775_v46  ;;  %v14990_v9 = vld [vmem:[#allocation22_spill] sm:$0xff] }
0x104a   : > { %1088 = vperm.xlu1 %8399, %v906_v31   ;;  %v4763_v31 = vmul.f32 1.442695, %v4543_v55 }
0x104c   : > { %5025 = vadd.xlane.f32.xlu0 %v12764_v20  ;;  %v14984_v20 = vld [vmem:[#allocation84_spill] sm:$0xff]  ;;  %v12787_v37 = vpop.xlane.xlu1 %4323  ;;  %8650 = vpow2.f32 %v4763_v31  ;;  %v4041_v31 = vadd.f32 %v12664_v17, %v14990_v9  ;;  %v14994_v9 = vld [vmem:[#allocation74_spill] sm:$0xff] }
0x104d   : > { %v4042_v41 = vadd.f32 %v12613_v25, %v14984_v20  ;;  %v3874_v25 = vpop.permute.xlu0 %3873  ;;  %v911_v20 = vld [vmem:[%s14008_s4 + $0x130] sm:$0xff] }
0x104e   : > { %1093 = vperm.xlu1 %8399, %v907_v52   ;;  %v14986_v52 = vld [vmem:[#allocation27_spill] sm:$0xff] }
0x104f   : > { %v4542_v30 = vsub.f32 %v14987_v54, %v14986_v52  ;;  %v12798_v55 = vadd.f32 %v12207_v6, %v4042_v41  ;;  %v14992_v6 = vld [vmem:[#allocation80_spill] sm:$0xff] }
0x1050   : > { %4435 = vmax.xlane.f32.xlu0 %v12775_v46  ;;  %v4541_v41 = vsub.f32 %v14992_v6, %v12262_v35  ;;  %v14996_v35 = vld [vmem:[#allocation133_spill] sm:$0xff] }
0x1051   : > { %14988 = vst [vmem:[#allocation63_spill] sm:$0xff] %v12798_v55  ;;  %v4761_v46 = vmul.f32 1.442695, %v4542_v30  ;;  %v12810_v52 = vpop.xlane.xlu0 %4325 }
0x1052   : > { %1098 = vperm.xlu1 %8399, %v908_v42   ;;  %v12803_v42 = vpop.xlane.xlu1 %4911  ;;  %v4759_v17 = vmul.f32 1.442695, %v4541_v41  ;;  %v14998_v41 = vld [vmem:[#allocation67_spill] sm:$0xff] }
0x1053   : > { %14989 = vst [vmem:[#allocation126_spill] sm:$0xff] %v12803_v42  ;;  %8652 = vpow2.f32 %v4761_v46 }
0x1054   : > { %5023 = vadd.xlane.f32.xlu0 %v12789_v61  ;;  %v12808_v61 = vpop.eup %8648  ;;  %8654 = vpow2.f32 %v4759_v17  ;;  %v15000_v17 = vld [vmem:[#allocation107_spill] sm:$0xff] }
0x1055   : > { %14991 = vst [vmem:[#allocation169_spill] sm:$0xff] %v12808_v61  ;;  %v12819_v30 = vpop.xlane.xlu0 %4913 }
0x1056   : > { %1103 = vperm.xlu1 %8399, %v909_v34   ;;  %v12816_v34 = vadd.f32 %v12245_v0, %v4041_v31  ;;  %v3798_v54 = vpop.permute.xlu1 %3797  ;;  %v4540_v0 = vsub.f32 %v14996_v35, %v12298_v7 }
0x1058   : > { %4433 = vmax.xlane.f32.xlu0 %v12798_v55  ;;  %14993 = vst [vmem:[#allocation212_spill] sm:$0xff] %v12816_v34 }
0x1059   : > { %v12825_v42 = vpop.eup %8650  ;;  %v12833_v31 = vpop.xlane.xlu0 %4947 }
0x105a   : > { %1113 = vperm.xlu1 %8399, %v911_v20   ;;  %v4040_v20 = vadd.f32 %v12708_v21, %v14994_v9  ;;  %v12823_v55 = vpop.xlane.xlu1 %4355  ;;  %14995 = vst [vmem:[#allocation166_spill] sm:$0xff] %v12825_v42  ;;  %v4757_v21 = vmul.f32 1.442695, %v4540_v0  ;;  %v4039_v9 = vadd.f32 %v12739_v57, %v14998_v41 }
0x105c   : > { %5021 = vadd.xlane.f32.xlu0 %v12808_v61  ;;  %v12831_v46 = vadd.f32 %v12281_v53, %v4040_v20  ;;  %8656 = vpow2.f32 %v4757_v21  ;;  %v12848_v53 = vadd.f32 %v12317_v23, %v4039_v9 }
0x105d   : > { %v12845_v7 = vpop.permute.xlu0 %3869 }
0x105e   : > { %14997 = vst [vmem:[#allocation216_spill] sm:$0xff] %v12831_v46  ;;  %v12835_v6 = vpop.xlane.xlu1 %4909  ;;  %15001 = vst [vmem:[#allocation120_spill] sm:$0xff] %v12848_v53 }
0x1060   : > { %4431 = vmax.xlane.f32.xlu0 %v12816_v34  ;;  %v12840_v61 = vpop.eup %8652 }
0x1061   : > { %14999 = vst [vmem:[#allocation192_spill] sm:$0xff] %v12840_v61  ;;  %v4358_v0 = vpop.xlane.xlu0 %4357  ;;  %v12854_v34 = vpop.eup %8654 }
0x1062   : > { %v3862_v20 = vpop.permute.xlu1 %3861  ;;  %15003 = vst [vmem:[#allocation171_spill] sm:$0xff] %v12854_v34 }
0x1064   : > { %5019 = vadd.xlane.f32.xlu0 %v12825_v42  ;;  %v4522_v42 = vsub.f32 %v15000_v17, %v12474_v50  ;;  %v4521_v50 = vsub.f32 %v12248_v26, %v12486_v2  ;;  %v15005_v17 = vld [vmem:[#allocation44_spill] sm:$0xff]  ;;  %v4537_v26 = vsub.f32 %v12315_v62, %v12626_v13 }
0x1066   : > { %v4721_v35 = vmul.f32 1.442695, %v4522_v42  ;;  %v12864_v42 = vpop.xlane.xlu0 %4945  ;;  %v4719_v9 = vmul.f32 1.442695, %v4521_v50  ;;  %v4536_v50 = vsub.f32 %v12343_v63, %v12675_v1 }
0x1068   : > { %4429 = vmax.xlane.f32.xlu0 %v12831_v46  ;;  %v15002_v46 = vld [vmem:[#allocation59_spill] sm:$0xff]  ;;  %8658 = vpow2.f32 %v4721_v35 }
0x1069   : > { %v4038_v57 = vadd.f32 %v3874_v25, %v15002_v46  ;;  %v4020_v25 = vadd.f32 %v12777_v58, %v15005_v17  ;;  %v12871_v35 = vpop.eup %8656  ;;  %8660 = vpow2.f32 %v4719_v9  ;;  %v15008_v17 = vld [vmem:[#allocation39_spill] sm:$0xff] }
0x106a   : > { %15006 = vst [vmem:[#allocation164_spill] sm:$0xff] %v12871_v35  ;;  %v12879_v2 = vpop.permute.xlu0 %3865  ;;  %v4019_v9 = vadd.f32 %v3798_v54, %v15008_v17  ;;  %v4534_v54 = vsub.f32 %v12372_v33, %v12667_v15  ;;  %v15011_v17 = vld [vmem:[#allocation36_spill] sm:$0xff]  ;;  %v910_v15 = vld [vmem:[%s14008_s4 + $0x128] sm:$0xff] }
0x106b   : > { %v12860_v23 = vadd.f32 %v12345_v59, %v4038_v57  ;;  %v12876_v59 = vadd.f32 %v12430_v8, %v4020_v25  ;;  %v4751_v57 = vmul.f32 1.442695, %v4537_v26  ;;  %v4749_v25 = vmul.f32 1.442695, %v4536_v50 }
0x106c   : > { %5017 = vadd.xlane.f32.xlu0 %v12840_v61 }
0x106d   : > { %15004 = vst [vmem:[#allocation76_spill] sm:$0xff] %v12860_v23  ;;  %15007 = vst [vmem:[#allocation150_spill] sm:$0xff] %v12876_v59  ;;  %8662 = vpow2.f32 %v4751_v57  ;;  %v4035_v57 = vadd.f32 %v3862_v20, %v15011_v17 }
0x106e   : > { %8664 = vpow2.f32 %v4749_v25 }
0x1070   : > { %4427 = vmax.xlane.f32.xlu0 %v12848_v53 }
0x1072   : > { %v12852_v41 = vpop.xlane.xlu1 %4413 }
0x1074   : > { %5015 = vadd.xlane.f32.xlu0 %v12854_v34 }
0x1075   : > { %v12887_v34 = vpop.eup %8658 }
0x1076   : > { %v12862_v21 = vpop.xlane.xlu1 %4901  ;;  %15009 = vst [vmem:[#allocation202_spill] sm:$0xff] %v12887_v34  ;;  %v12905_v50 = vpop.eup %8660 }
0x1077   : > { %15012 = vst [vmem:[#allocation123_spill] sm:$0xff] %v12905_v50 }
0x1078   : > { %4425 = vmax.xlane.f32.xlu0 %v12860_v23 }
0x107a   : > { %v12869_v46 = vpop.xlane.xlu1 %4407 }
0x107c   : > { %5013 = vadd.xlane.f32.xlu0 %v12871_v35  ;;  %v12895_v35 = vadd.f32 %v12419_v10, %v4019_v9  ;;  %v4533_v9 = vsub.f32 %v12394_v12, %v12759_v48  ;;  %v912_v12 = vld [vmem:[%s14008_s4 + $0x138] sm:$0xff] }
0x107e   : > { %4389 = vmax.xlane.f32.xlu1 %v12876_v59  ;;  %v12882_v58 = vpop.xlane.xlu1 %4899  ;;  %v4535_v59 = vsub.f32 %v12369_v44, %v12718_v51  ;;  %15010 = vst [vmem:[#allocation60_spill] sm:$0xff] %v12895_v35  ;;  %v4745_v51 = vmul.f32 1.442695, %v4534_v54  ;;  %v4743_v20 = vmul.f32 1.442695, %v4533_v9  ;;  %v12924_v54 = vpop.eup %8662 }
0x107f   : > { %15014 = vst [vmem:[#allocation127_spill] sm:$0xff] %v12924_v54 }
0x1080   : > { %v4747_v1 = vmul.f32 1.442695, %v4535_v59  ;;  %v12915_v59 = vadd.f32 %v12419_v10, %v4035_v57 }
0x1081   : > { %v4418_v62 = vpop.xlane.xlu0 %4417 }
0x1082   : > { %4977 = vadd.xlane.f32.xlu1 %v12887_v34  ;;  %v12890_v13 = vpop.xlane.xlu1 %4405  ;;  %8666 = vpow2.f32 %v4747_v1  ;;  %15013 = vst [vmem:[#allocation159_spill] sm:$0xff] %v12915_v59  ;;  %v4532_v1 = vsub.f32 %v12462_v22, %v4358_v0  ;;  %v4562_v57 = vsub.f32 %v12529_v14, %v4418_v62 }
0x1083   : > { %8668 = vpow2.f32 %v4745_v51  ;;  %v12935_v51 = vpop.eup %8664 }
0x1084   : > { %8670 = vpow2.f32 %v4743_v20  ;;  %v4741_v48 = vmul.f32 1.442695, %v4532_v1  ;;  %15015 = vst [vmem:[#allocation145_spill] sm:$0xff] %v12935_v51  ;;  %v4801_v9 = vmul.f32 1.442695, %v4562_v57 }
0x1085   : > { %v12897_v26 = vpop.xlane.xlu0 %4943 }
0x1086   : > { %4387 = vmax.xlane.f32.xlu1 %v12895_v35  ;;  %v12900_v63 = vpop.xlane.xlu1 %4931  ;;  %8672 = vpow2.f32 %v4741_v48 }
0x1087   : > { %8674 = vpow2.f32 %v4801_v9 }
0x1089   : > { %v12907_v34 = vpop.xlane.xlu0 %4415 }
0x108a   : > { %4975 = vadd.xlane.f32.xlu1 %v12905_v50  ;;  %v12910_v44 = vpop.xlane.xlu1 %4403 }
0x108d   : > { %v4450_v25 = vpop.xlane.xlu0 %4449 }
0x108e   : > { %4419 = vmax.xlane.f32.xlu1 %v12915_v59  ;;  %v12918_v33 = vpop.xlane.xlu1 %4991 }
0x1091   : > { %v12926_v17 = vpop.xlane.xlu0 %4907 }
0x1092   : > { %1108 = vperm.xlu0 %8398, %v910_v15   ;;  %5007 = vadd.xlane.f32.xlu1 %v12924_v54  ;;  %v12929_v10 = vpop.xlane.xlu1 %4401  ;;  %v4578_v15 = vsub.f32 %v12568_v49, %v4450_v25  ;;  %v12943_v54 = vpop.eup %8666 }
0x1093   : > { %15016 = vst [vmem:[#allocation208_spill] sm:$0xff] %v12943_v54  ;;  %v12949_v1 = vpop.eup %8668 }
0x1094   : > { %v4833_v14 = vmul.f32 1.442695, %v4578_v15  ;;  %15018 = vst [vmem:[#allocation71_spill] sm:$0xff] %v12949_v1  ;;  %v12956_v25 = vpop.eup %8670 }
0x1095   : > { %v12937_v22 = vpop.xlane.xlu0 %4941  ;;  %15019 = vst [vmem:[#allocation147_spill] sm:$0xff] %v12956_v25 }
0x1096   : > { %1118 = vperm.xlu0 %8398, %v912_v12   ;;  %5005 = vadd.xlane.f32.xlu1 %v12935_v51  ;;  %v12940_v0 = vpop.xlane.xlu1 %4989  ;;  %8676 = vpow2.f32 %v4833_v14  ;;  %v15025_v51 = vld [vmem:[#allocation183_spill] sm:$0xff] }
0x1097   : > { %v4520_v35 = vsub.f32 %v15025_v51, %v12519_v39  ;;  %v4519_v39 = vsub.f32 %v12320_v36, %v12570_v16  ;;  %v15034_v36 = vld [vmem:[#allocation41_spill] sm:$0xff] }
0x1099   : > { %v4448_v59 = vpop.xlane.xlu0 %4447 }
0x109a   : > { %5003 = vadd.xlane.f32.xlu1 %v12943_v54  ;;  %v12946_v20 = vpop.xlane.xlu1 %4399  ;;  %v4577_v62 = vsub.f32 %v12605_v40, %v4448_v59  ;;  %v4539_v40 = vsub.f32 %v12243_v45, %v12524_v56  ;;  %v12965_v59 = vpop.eup %8672  ;;  %v4538_v56 = vsub.f32 %v12279_v24, %v12577_v47 }
0x109b   : > { %15017 = vst [vmem:[#allocation137_spill] sm:$0xff] %v12946_v20  ;;  %15021 = vst [vmem:[#allocation190_spill] sm:$0xff] %v12965_v59 }
0x109c   : > { %v4831_v49 = vmul.f32 1.442695, %v4577_v62  ;;  %v4755_v62 = vmul.f32 1.442695, %v4539_v40 }
0x109d   : > { %v12951_v12 = vpop.xlane.xlu0 %4905 }
0x109e   : > { %5001 = vadd.xlane.f32.xlu1 %v12949_v1  ;;  %v12954_v48 = vpop.xlane.xlu1 %4987  ;;  %8678 = vpow2.f32 %v4831_v49  ;;  %v12972_v1 = vpop.eup %8674 }
0x109f   : > { %15022 = vst [vmem:[#allocation73_spill] sm:$0xff] %v12972_v1  ;;  %8680 = vrcp.f32 %v12472_v32 }
0x10a0   : > { %8682 = vpow2.f32 %v4755_v62  ;;  %v15027_v62 = vld [vmem:[#allocation49_spill] sm:$0xff] }
0x10a1   : > { %v12958_v57 = vpop.xlane.xlu0 %4939  ;;  %8684 = vrcp.f32 %v12478_v3 }
0x10a2   : > { %4999 = vadd.xlane.f32.xlu1 %v12956_v25  ;;  %v12961_v9 = vpop.xlane.xlu1 %4397 }
0x10a3   : > { %15020 = vst [vmem:[#allocation205_spill] sm:$0xff] %v12961_v9 }
0x10a5   : > { %v12967_v15 = vpop.xlane.xlu0 %4411 }
0x10a6   : > { %4997 = vadd.xlane.f32.xlu1 %v12965_v59  ;;  %v12970_v14 = vpop.xlane.xlu1 %4985  ;;  %v12981_v59 = vpop.eup %8676 }
0x10a7   : > { %15024 = vst [vmem:[#allocation214_spill] sm:$0xff] %v12981_v59 }
0x10a9   : > { %v4446_v54 = vpop.xlane.xlu0 %4445 }
0x10aa   : > { %v4576_v25 = vsub.f32 %v12656_v60, %v4446_v54  ;;  %5057 = vadd.xlane.f32.xlu1 %v12972_v1  ;;  %v12977_v45 = vpop.xlane.xlu1 %4395  ;;  %v4753_v54 = vmul.f32 1.442695, %v4538_v56  ;;  %v4037_v1 = vadd.f32 %v12845_v7, %v15027_v62  ;;  %v15033_v62 = vld [vmem:[#allocation173_spill] sm:$0xff] }
0x10ab   : > { %15023 = vst [vmem:[#allocation156_spill] sm:$0xff] %v12977_v45  ;;  %v12993_v24 = vpop.eup %8678  ;;  %v15038_v45 = vld [vmem:[#allocation87_spill] sm:$0xff] }
0x10ac   : > { %v4829_v49 = vmul.f32 1.442695, %v4576_v25  ;;  %15028 = vst [vmem:[#allocation118_spill] sm:$0xff] %v12993_v24  ;;  %v4717_v25 = vmul.f32 1.442695, %v4520_v35  ;;  %v13004_v51 = vadd.f32 %v12391_v19, %v4037_v1  ;;  %v8681_v35 = vpop.eup %8680  ;;  %v4036_v19 = vadd.f32 %v12879_v2, %v15034_v36  ;;  %v15036_v1 = vld [vmem:[#allocation131_spill] sm:$0xff] }
0x10ad   : > { %v12984_v40 = vpop.xlane.xlu0 %4903  ;;  %v13017_v16 = vpop.eup %8682  ;;  %v15041_v36 = vld [vmem:[#allocation157_spill] sm:$0xff] }
0x10ae   : > { %8686 = vpow2.f32 %v4829_v49  ;;  %5089 = vadd.xlane.f32.xlu1 %v12981_v59  ;;  %v12989_v60 = vpop.xlane.xlu1 %4983  ;;  %15030 = vst [vmem:[#allocation204_spill] sm:$0xff] %v13004_v51  ;;  %v4715_v49 = vmul.f32 1.442695, %v4519_v39  ;;  %15035 = vst [vmem:[#allocation207_spill] sm:$0xff] %v13017_v16  ;;  %v15037_v59 = vld [vmem:[#allocation176_spill] sm:$0xff]  ;;  %v4517_v9 = vsub.f32 %v15041_v36, %v12749_v29  ;;  %v13032_v61 = vadd.f32 %v12430_v8, %v4036_v19  ;;  %v15044_v8 = vld [vmem:[#allocation165_spill] sm:$0xff] }
0x10af   : > { %15026 = vst [vmem:[#allocation199_spill] sm:$0xff] %v12989_v60  ;;  %8688 = vrcp.f32 %v12545_v18 }
0x10b0   : > { %8690 = vpow2.f32 %v4753_v54  ;;  %v15032_v54 = vld [vmem:[#allocation57_spill] sm:$0xff]  ;;  %15042 = vst [vmem:[#allocation132_spill] sm:$0xff] %v13032_v61  ;;  %v4711_v29 = vmul.f32 1.442695, %v4517_v9 }
0x10b1   : > { %v12995_v47 = vpop.xlane.xlu0 %4937  ;;  %8692 = vrcp.f32 %v12497_v4 }
0x10b2   : > { %5087 = vadd.xlane.f32.xlu1 %v12993_v24  ;;  %v12999_v50 = vpop.xlane.xlu1 %4393  ;;  %8694 = vpow2.f32 %v4717_v25  ;;  %v4518_v24 = vsub.f32 %v15033_v62, %v15032_v54 }
0x10b3   : > { %15029 = vst [vmem:[#allocation160_spill] sm:$0xff] %v12999_v50  ;;  %8696 = vrcp.f32 %v12597_v28  ;;  %v5265_v50 = vmul.f32 %v8681_v35, %v12472_v32 }
0x10b4   : > { %8698 = vrcp.f32 %v15036_v1  ;;  %v4713_v2 = vmul.f32 1.442695, %v4518_v24 }
0x10b5   : > { %4423 = vmax.xlane.f32.xlu0 %v13004_v51  ;;  %v13008_v7 = vpop.xlane.xlu0 %4409  ;;  %8700 = vrcp.f32 %v15037_v59  ;;  %v8685_v51 = vpop.eup %8684 }
0x10b6   : > { %v13010_v56 = vpop.xlane.xlu1 %4981  ;;  %8702 = vrcp.f32 %v15038_v45 }
0x10b7   : > { %15031 = vst [vmem:[#allocation112_spill] sm:$0xff] %v13010_v56  ;;  %8704 = vpow2.f32 %v4715_v49  ;;  %v4516_v49 = vsub.f32 %v15044_v8, %v12810_v52 }
0x10b9   : > { %5011 = vadd.xlane.f32.xlu0 %v13017_v16  ;;  %v4444_v25 = vpop.xlane.xlu0 %4443 }
0x10ba   : > { %v4575_v39 = vsub.f32 %v12702_v11, %v4444_v25  ;;  %v13025_v54 = vpop.xlane.xlu1 %4391  ;;  %v5393_v11 = vsub.f32 2.0, %v5265_v50  ;;  %v5264_v25 = vmul.f32 %v8685_v51, %v12478_v3 }
0x10bb   : > { %15039 = vst [vmem:[#allocation101_spill] sm:$0xff] %v13025_v54  ;;  %v13027_v62 = vpop.eup %8686 }
0x10bc   : > { %15040 = vst [vmem:[#allocation203_spill] sm:$0xff] %v13027_v62  ;;  %v4827_v16 = vmul.f32 1.442695, %v4575_v39  ;;  %5085 = vadd.xlane.f32.xlu1 %v13027_v62  ;;  %v13041_v24 = vpop.eup %8688  ;;  %v15046_v39 = vld [vmem:[#allocation181_spill] sm:$0xff]  ;;  %v5521_v52 = vmul.f32 %v8681_v35, %v5393_v11  ;;  %v15050_v35 = vld [vmem:[#allocation151_spill] sm:$0xff] }
0x10bd   : > { %4421 = vmax.xlane.f32.xlu0 %v13032_v61  ;;  %v13036_v32 = vpop.xlane.xlu0 %4935  ;;  %v13045_v19 = vpop.eup %8690  ;;  %v4515_v36 = vsub.f32 %v15046_v39, %v12787_v37  ;;  %v15047_v62 = vld [vmem:[#allocation149_spill] sm:$0xff]  ;;  %v5281_v61 = vmul.f32 %v13041_v24, %v12545_v18  ;;  %v4709_v37 = vmul.f32 1.442695, %v4516_v49  ;;  %v15049_v39 = vld [vmem:[#allocation30_spill] sm:$0xff]  ;;  %v15051_v11 = vld [vmem:[#allocation175_spill] sm:$0xff] }
0x10be   : > { %8706 = vpow2.f32 %v4827_v16  ;;  %v13039_v54 = vpop.xlane.xlu1 %4979  ;;  %15045 = vst [vmem:[#allocation155_spill] sm:$0xff] %v13045_v19  ;;  %v8693_v50 = vpop.eup %8692  ;;  %v5392_v16 = vsub.f32 2.0, %v5264_v25 }
0x10bf   : > { %15043 = vst [vmem:[#allocation210_spill] sm:$0xff] %v13039_v54  ;;  %8708 = vpow2.f32 %v4713_v2  ;;  %v13054_v8 = vpop.eup %8694  ;;  %v4707_v25 = vmul.f32 1.442695, %v4515_v36  ;;  %v15052_v36 = vld [vmem:[#allocation28_spill] sm:$0xff] }
0x10c0   : > { %8710 = vrcp.f32 %v12693_v5  ;;  %15048 = vst [vmem:[#allocation215_spill] sm:$0xff] %v13054_v8  ;;  %v13059_v23 = vpop.eup %8696  ;;  %v5520_v54 = vmul.f32 %v8685_v51, %v5392_v16  ;;  %v15055_v51 = vld [vmem:[#allocation126_spill] sm:$0xff] }
0x10c1   : > { %8712 = vrcp.f32 %v15047_v62  ;;  %5009 = vadd.xlane.f32.xlu0 %v13045_v19  ;;  %v4442_v3 = vpop.xlane.xlu0 %4441  ;;  %v5263_v19 = vmul.f32 %v8693_v50, %v12497_v4 }
0x10c2   : > { %8714 = vrcp.f32 %v12730_v27  ;;  %v4574_v9 = vsub.f32 %v12723_v38, %v4442_v3  ;;  %v1084_v2 = vpop.permute.xlu1 %1083  ;;  %v13063_v38 = vpop.eup %8698  ;;  %v4531_v3 = vsub.f32 %v15051_v11, %v12823_v55  ;;  %v5409_v55 = vsub.f32 2.0, %v5281_v61 }
0x10c3   : > { %8716 = vpow2.f32 %v4711_v29  ;;  %v1388_v20 = vadd.f32 %v15049_v39, %v1084_v2  ;;  %v13071_v29 = vpop.eup %8700  ;;  %v15053_v2 = vld [vmem:[#allocation86_spill] sm:$0xff]  ;;  %v5391_v11 = vsub.f32 2.0, %v5263_v19 }
0x10c4   : > { %8718 = vrcp.f32 %v12766_v43  ;;  %v4825_v53 = vmul.f32 1.442695, %v4574_v9  ;;  %v13073_v49 = vpop.eup %8702  ;;  %v5649_v39 = vmul.f32 %v15053_v2, %v5521_v52 }
0x10c5   : > { %8720 = vrcp.f32 %v15050_v35  ;;  %v13068_v18 = vpop.xlane.xlu0 %4933  ;;  %4973 = vadd.xlane.f32.xlu0 %v13054_v8  ;;  %7973 = vmatprep.mubr.f32.mxu1 %v1388_v20  ;;  %v13077_v56 = vpop.eup %8704  ;;  %v5280_v8 = vmul.f32 %v13059_v23, %v12597_v28  ;;  %v13085_v20 = vmul.f32 %v13071_v29, %v15037_v59  ;;  %v5261_v61 = vmul.f32 %v13073_v49, %v15038_v45  ;;  %v15056_v28 = vld [vmem:[#allocation58_spill] sm:$0xff] }
0x10c6   : > { %8722 = vpow2.f32 %v4825_v53  ;;  %v1089_v4 = vpop.permute.xlu1 %1088  ;;  %15054 = vst [vmem:[#allocation177_spill] sm:$0xff] %v13077_v56  ;;  %v5262_v53 = vmul.f32 %v13063_v38, %v15036_v1  ;;  %v4555_v19 = vsub.f32 %v15056_v28, %v12910_v44  ;;  %v15057_v1 = vld [vmem:[#allocation128_spill] sm:$0xff]  ;;  %v5519_v44 = vmul.f32 %v8693_v50, %v5391_v11 }
0x10c7   : > { %8724 = vpow2.f32 %v4709_v37  ;;  %v1393_v9 = vadd.f32 %v15052_v36, %v1089_v4  ;;  %v4739_v37 = vmul.f32 1.442695, %v4531_v3  ;;  %v15060_v3 = vld [vmem:[#allocation179_spill] sm:$0xff] }
0x10c8   : > { %8726 = vpow2.f32 %v4707_v25  ;;  %v15058_v25 = vld [vmem:[#allocation170_spill] sm:$0xff]  ;;  %v4561_v36 = vsub.f32 %v15060_v3, %v12907_v34 }
0x10c9   : > { %8728 = vrcp.f32 %v12819_v30  ;;  %v4440_v52 = vpop.xlane.xlu0 %4439  ;;  %4971 = vadd.xlane.f32.xlu0 %v13077_v56  ;;  %7974 = vmatmul.mubr.f32.vlgmr.msra.gmra.mxu1 %v1393_v9  ;;  %v15061_v9 = vld [vmem:[#allocation32_spill] sm:$0xff]  ;;  %v5408_v56 = vsub.f32 2.0, %v5280_v8  ;;  %v15062_v34 = vld [vmem:[#allocation142_spill] sm:$0xff]  ;;  %v5407_v8 = vsub.f32 2.0, %v13085_v20  ;;  %v15065_v20 = vld [vmem:[#allocation65_spill] sm:$0xff] }
0x10ca   : > { %8730 = vrcp.f32 %v15055_v51  ;;  %v4573_v16 = vsub.f32 %v15057_v1, %v4440_v52  ;;  %8012 = vmatpush3.xpose.msra.mxu1 %v15058_v25  ;;  %v1094_v59 = vpop.permute.xlu1 %1093  ;;  %v5537_v52 = vmul.f32 %v13041_v24, %v5409_v55  ;;  %v5390_v1 = vsub.f32 2.0, %v5262_v53  ;;  %v15063_v55 = vld [vmem:[#allocation180_spill] sm:$0xff] }
0x10cb   : > { %v13096_v4 = vpop.eup %8706  ;;  %8732 = vrcp.f32 %v12833_v31  ;;  %8013 = vmatprep.subr.mxu1 %v5649_v39  ;;  %v1398_v45 = vadd.f32 %v15061_v9, %v1094_v59  ;;  %v5648_v59 = vmul.f32 %v15062_v34, %v5520_v54  ;;  %v4787_v9 = vmul.f32 1.442695, %v4555_v19 }
0x10cc   : > { %15059 = vst [vmem:[#allocation194_spill] sm:$0xff] %v13096_v4  ;;  %v13102_v2 = vpop.eup %8708  ;;  %v4823_v60 = vmul.f32 1.442695, %v4573_v16  ;;  %5083 = vadd.xlane.f32.xlu1 %v13096_v4  ;;  %8734 = vpow2.f32 %v4739_v37  ;;  %v5389_v16 = vsub.f32 2.0, %v5261_v61  ;;  %v4560_v11 = vsub.f32 %v15063_v55, %v12852_v41  ;;  %v15064_v37 = vld [vmem:[#allocation31_spill] sm:$0xff] }
0x10cd   : > { %v13106_v28 = vpop.eup %8710  ;;  %v13108_v25 = vpop.xlane.xlu0 %4993  ;;  %4969 = vadd.xlane.f32.xlu0 %v13102_v2  ;;  %8008 = vmatprep.mubr.f32.mxu0 %v1398_v45  ;;  %v4799_v53 = vmul.f32 1.442695, %v4561_v36  ;;  %v5647_v61 = vmul.f32 %v15065_v20, %v5519_v44  ;;  %v5536_v19 = vmul.f32 %v13059_v23, %v5408_v56  ;;  %v5518_v44 = vmul.f32 %v13063_v38, %v5390_v1  ;;  %v15067_v23 = vld [vmem:[#allocation98_spill] sm:$0xff]  ;;  %v15070_v38 = vld [vmem:[#allocation35_spill] sm:$0xff] }
0x10ce   : > { %v13112_v3 = vpop.eup %8712  ;;  %8736 = vpow2.f32 %v4823_v60  ;;  %8014 = vmatpush3.xpose.msra.mxu1 %v5649_v39  ;;  %v1099_v24 = vpop.permute.xlu1 %1098  ;;  %v15066_v60 = vld [vmem:[#allocation91_spill] sm:$0xff]  ;;  %v5278_v4 = vmul.f32 %v13106_v28, %v12693_v5  ;;  %v5517_v5 = vmul.f32 %v13073_v49, %v5389_v16  ;;  %v4797_v55 = vmul.f32 1.442695, %v4560_v11  ;;  %v15071_v11 = vld [vmem:[#allocation144_spill] sm:$0xff] }
0x10cf   : > { %v13115_v50 = vpop.eup %8714  ;;  %8738 = vrcp.f32 %v12835_v6  ;;  %8015 = vmatprep.subr.mxu1 %v5648_v59  ;;  %v1403_v54 = vadd.f32 %v15064_v37, %v1099_v24  ;;  %v5665_v39 = vmul.f32 %v15066_v60, %v5537_v52  ;;  %v5260_v41 = vmul.f32 %v13112_v3, %v15047_v62  ;;  %v15069_v37 = vld [vmem:[#allocation125_spill] sm:$0xff]  ;;  %v15072_v20 = vld [vmem:[#allocation95_spill] sm:$0xff] }
0x10d0   : > { %v13121_v45 = vpop.eup %8716  ;;  %8740 = vrcp.f32 %v12864_v42  ;;  %v5535_v62 = vmul.f32 %v13071_v29, %v5407_v8  ;;  %v5406_v8 = vsub.f32 2.0, %v5278_v4 }
0x10d1   : > { %v13127_v34 = vpop.eup %8718  ;;  %8742 = vrcp.f32 %v12897_v26  ;;  %v13134_v36 = vpop.xlane.xlu0 %4437  ;;  %4967 = vadd.xlane.f32.xlu0 %v13121_v45  ;;  %8009 = vmatmul.mubr.f32.vlgmr.msra.gmra.mxu0 %v1403_v54  ;;  %v4559_v54 = vsub.f32 %v15069_v37, %v12967_v15  ;;  %v5388_v15 = vsub.f32 2.0, %v5260_v41  ;;  %v15074_v37 = vld [vmem:[#allocation130_spill] sm:$0xff] }
0x10d2   : > { %v13138_v52 = vpop.eup %8720  ;;  %8744 = vpow2.f32 %v4787_v9  ;;  %8016 = vmatpush3.xpose.msra.mxu1 %v5648_v59  ;;  %8047 = vmatpush3.xpose.msra.mxu0 %v15067_v23  ;;  %v1104_v56 = vpop.permute.xlu1 %1103  ;;  %v5277_v59 = vmul.f32 %v13115_v50, %v12730_v27  ;;  %v5259_v49 = vmul.f32 %v13127_v34, %v12766_v43  ;;  %v5664_v27 = vmul.f32 %v15072_v20, %v5536_v19  ;;  %v15073_v23 = vld [vmem:[#allocation90_spill] sm:$0xff] }
0x10d3   : > { %v13143_v24 = vpop.eup %8722  ;;  %8746 = vpow2.f32 %v4799_v53  ;;  %8017 = vmatprep.subr.mxu1 %v5647_v61  ;;  %8048 = vmatprep.subr.mxu0 %v5665_v39  ;;  %v1408_v1 = vadd.f32 %v15070_v38, %v1104_v56  ;;  %v5646_v53 = vmul.f32 %v15071_v11, %v5518_v44  ;;  %v5645_v56 = vmul.f32 %v15073_v23, %v5517_v5  ;;  %v15076_v44 = vld [vmem:[#allocation38_spill] sm:$0xff]  ;;  %v15079_v23 = vld [vmem:[#allocation167_spill] sm:$0xff] }
0x10d4   : > { %15068 = vst [vmem:[#allocation121_spill] sm:$0xff] %v13143_v24  ;;  %v13148_v9 = vpop.eup %8724  ;;  %8748 = vrcp.f32 %v12926_v17  ;;  %5081 = vadd.xlane.f32.xlu1 %v13143_v24  ;;  %v5663_v38 = vmul.f32 %v15074_v37, %v5535_v62  ;;  %v4795_v41 = vmul.f32 1.442695, %v4559_v54  ;;  %v15075_v24 = vld [vmem:[#allocation75_spill] sm:$0xff]  ;;  %v5276_v5 = vmul.f32 %v13138_v52, %v15050_v35 }
0x10d5   : > { %v13156_v29 = vpop.eup %8726  ;;  %v13158_v16 = vpop.xlane.xlu0 %5025  ;;  %4965 = vadd.xlane.f32.xlu0 %v13148_v9  ;;  %8043 = vmatprep.mubr.f32.mxu1 %v1408_v1  ;;  %8750 = vpow2.f32 %v4797_v55  ;;  %v4558_v1 = vsub.f32 %v15075_v24, %v13008_v7  ;;  %v5516_v7 = vmul.f32 %v13112_v3, %v5388_v15  ;;  %v5534_v24 = vmul.f32 %v13106_v28, %v5406_v8 }
0x10d6   : > { %v13163_v60 = vpop.eup %8728  ;;  %8018 = vmatpush3.xpose.msra.mxu1 %v5647_v61  ;;  %8049 = vmatpush3.xpose.msra.mxu0 %v5665_v39  ;;  %v1114_v43 = vpop.permute.xlu1 %1113  ;;  %v5405_v61 = vsub.f32 2.0, %v5277_v59  ;;  %v5387_v39 = vsub.f32 2.0, %v5259_v49  ;;  %8752 = vrcp.f32 %v12937_v22  ;;  %v15077_v59 = vld [vmem:[#allocation161_spill] sm:$0xff]  ;;  %v5404_v3 = vsub.f32 2.0, %v5276_v5  ;;  %v15081_v5 = vld [vmem:[#allocation88_spill] sm:$0xff] }
0x10d7   : > { %v13167_v4 = vpop.eup %8730  ;;  %8019 = vmatprep.subr.mxu1 %v5646_v53  ;;  %8050 = vmatprep.subr.mxu0 %v5664_v27  ;;  %v1418_v19 = vadd.f32 %v15076_v44, %v1114_v43  ;;  %v5258_v62 = vmul.f32 %v13163_v60, %v12819_v30  ;;  %8754 = vrcp.f32 %v12951_v12  ;;  %v4557_v49 = vsub.f32 %v15077_v59, %v12869_v46 }
0x10d8   : > { %v13172_v11 = vpop.eup %8732  ;;  %v5257_v35 = vmul.f32 %v13167_v4, %v15055_v51  ;;  %8756 = vpow2.f32 %v4795_v41  ;;  %v4793_v43 = vmul.f32 1.442695, %v4558_v1  ;;  %v5515_v46 = vmul.f32 %v13127_v34, %v5387_v39 }
0x10d9   : > { %v13180_v55 = vpop.xlane.xlu0 %4435  ;;  %4963 = vadd.xlane.f32.xlu0 %v13156_v29  ;;  %8078 = vmatprep.mubr.f32.mxu0 %v1418_v19  ;;  %v13185_v54 = vpop.eup %8734  ;;  %v5275_v20 = vmul.f32 %v13172_v11, %v12833_v31  ;;  %8758 = vrcp.f32 %v12958_v57  ;;  %v5533_v51 = vmul.f32 %v13115_v50, %v5405_v61  ;;  %v5386_v15 = vsub.f32 2.0, %v5258_v62  ;;  %v15080_v19 = vld [vmem:[#allocation68_spill] sm:$0xff] }
0x10da   : > { %8020 = vmatpush3.xpose.msra.mxu1 %v5646_v53  ;;  %8051 = vmatpush3.xpose.msra.mxu0 %v5664_v27  ;;  %8760 = vrcp.f32 %v12984_v40  ;;  %v15078_v53 = vld [vmem:[#allocation187_spill] sm:$0xff]  ;;  %v5662_v37 = vmul.f32 %v15079_v23, %v5534_v24  ;;  %v5385_v1 = vsub.f32 2.0, %v5257_v35  ;;  %v4791_v34 = vmul.f32 1.442695, %v4557_v49  ;;  %v15085_v23 = vld [vmem:[#allocation77_spill] sm:$0xff] }
0x10db   : > { %v13191_v30 = vpop.eup %8736  ;;  %8021 = vmatprep.subr.mxu1 %v5645_v56  ;;  %8052 = vmatprep.subr.mxu0 %v5663_v38  ;;  %v5644_v27 = vmul.f32 %v15078_v53, %v5516_v7  ;;  %8762 = vrcp.f32 %v12862_v21  ;;  %v5403_v44 = vsub.f32 2.0, %v5275_v20  ;;  %v4556_v61 = vsub.f32 %v15080_v19, %v12890_v13  ;;  %v15082_v7 = vld [vmem:[#allocation100_spill] sm:$0xff] }
0x10dc   : > { %v13195_v28 = vpop.eup %8738  ;;  %5079 = vadd.xlane.f32.xlu1 %v13191_v30  ;;  %8764 = vpow2.f32 %v4793_v43  ;;  %v5643_v62 = vmul.f32 %v15081_v5, %v5515_v46  ;;  %v5661_v24 = vmul.f32 %v15082_v7, %v5533_v51  ;;  %v5514_v49 = vmul.f32 %v13163_v60, %v5386_v15 }
0x10dd   : > { %v13201_v8 = vpop.eup %8740  ;;  %v13204_v31 = vpop.xlane.xlu0 %5023  ;;  %4995 = vadd.xlane.f32.xlu0 %v13185_v54  ;;  %v5256_v35 = vmul.f32 %v13195_v28, %v12835_v6  ;;  %8766 = vrcp.f32 %v12995_v47  ;;  %v4789_v20 = vmul.f32 1.442695, %v4556_v61  ;;  %v15083_v6 = vld [vmem:[#allocation124_spill] sm:$0xff] }
0x10de   : > { %v13209_v41 = vpop.eup %8742  ;;  %8022 = vmatpush3.xpose.msra.mxu1 %v5645_v56  ;;  %8053 = vmatpush3.xpose.msra.mxu0 %v5663_v38  ;;  %v5532_v56 = vmul.f32 %v13138_v52, %v5404_v3  ;;  %v5274_v13 = vmul.f32 %v13201_v8, %v12864_v42  ;;  %8768 = vpow2.f32 %v4791_v34  ;;  %v5513_v52 = vmul.f32 %v13167_v4, %v5385_v1  ;;  %v15087_v34 = vld [vmem:[#allocation92_spill] sm:$0xff] }
0x10df   : > { %v13212_v50 = vpop.eup %8744  ;;  %8023 = vmatprep.subr.mxu1 %v5644_v27  ;;  %8054 = vmatprep.subr.mxu0 %v5662_v37  ;;  %8770 = vrcp.f32 %v12882_v58  ;;  %v4572_v43 = vsub.f32 %v15083_v6, %v13134_v36  ;;  %v5531_v42 = vmul.f32 %v13172_v11, %v5403_v44  ;;  %v5273_v60 = vmul.f32 %v13209_v41, %v12897_v26  ;;  %v15084_v36 = vld [vmem:[#allocation191_spill] sm:$0xff] }
0x10e0   : > { %v13216_v39 = vpop.eup %8746  ;;  %5043 = vadd.xlane.f32.xlu1 %v13212_v50  ;;  %8772 = vrcp.f32 %v13036_v32  ;;  %v5384_v51 = vsub.f32 2.0, %v5256_v35  ;;  %v5402_v15 = vsub.f32 2.0, %v5274_v13  ;;  %v5660_v11 = vmul.f32 %v15085_v23, %v5532_v56  ;;  %v15090_v23 = vld [vmem:[#allocation184_spill] sm:$0xff] }
0x10e1   : > { %v8749_v38 = vpop.eup %8748  ;;  %v13227_v59 = vpop.xlane.xlu0 %4433  ;;  %5055 = vadd.xlane.f32.xlu0 %v13216_v39  ;;  %8774 = vpow2.f32 %v4789_v20  ;;  %v4821_v26 = vmul.f32 1.442695, %v4572_v43  ;;  %v5659_v44 = vmul.f32 %v15087_v34, %v5531_v42  ;;  %v5401_v61 = vsub.f32 2.0, %v5273_v60  ;;  %v15088_v60 = vld [vmem:[#allocation135_spill] sm:$0xff] }
0x10e2   : > { %8024 = vmatpush3.xpose.msra.mxu1 %v5644_v27  ;;  %8055 = vmatpush3.xpose.msra.mxu0 %v5662_v37  ;;  %v13236_v3 = vpop.eup %8750  ;;  %v5255_v46 = vmul.f32 %v8749_v38, %v12926_v17  ;;  %v5642_v27 = vmul.f32 %v15084_v36, %v5514_v49  ;;  %v15086_v17 = vld [vmem:[#allocation85_spill] sm:$0xff]  ;;  %8776 = vrcp.f32 %v13068_v18  ;;  %v5512_v35 = vmul.f32 %v13195_v28, %v5384_v51  ;;  %v15089_v51 = vld [vmem:[#allocation79_spill] sm:$0xff] }
0x10e3   : > { %8025 = vmatprep.subr.mxu1 %v5643_v62  ;;  %8056 = vmatprep.subr.mxu0 %v5661_v24  ;;  %v8753_v4 = vpop.eup %8752  ;;  %v5641_v1 = vmul.f32 %v15086_v17, %v5513_v52  ;;  %8778 = vrcp.f32 %v13108_v25  ;;  %v5530_v13 = vmul.f32 %v13201_v8, %v5402_v15  ;;  %v5529_v43 = vmul.f32 %v13209_v41, %v5401_v61 }
0x10e4   : > { %v8755_v37 = vpop.eup %8754  ;;  %v5383_v5 = vsub.f32 2.0, %v5255_v46  ;;  %v5272_v7 = vmul.f32 %v8753_v4, %v12937_v22  ;;  %8780 = vrcp.f32 %v12900_v63  ;;  %v5640_v46 = vmul.f32 %v15088_v60, %v5512_v35 }
0x10e5   : > { %v13242_v53 = vpop.xlane.xlu0 %5021  ;;  %5053 = vadd.xlane.f32.xlu0 %v13236_v3  ;;  %v13249_v19 = vpop.eup %8756  ;;  %8782 = vpow2.f32 %v4821_v26  ;;  %v5658_v15 = vmul.f32 %v15089_v51, %v5530_v13  ;;  %v15091_v26 = vld [vmem:[#allocation146_spill] sm:$0xff] }
0x10e6   : > { %8026 = vmatpush3.xpose.msra.mxu1 %v5643_v62  ;;  %8057 = vmatpush3.xpose.msra.mxu0 %v5661_v24  ;;  %v8759_v56 = vpop.eup %8758  ;;  %v5254_v62 = vmul.f32 %v8755_v37, %v12951_v12  ;;  %v5400_v52 = vsub.f32 2.0, %v5272_v7  ;;  %v5511_v6 = vmul.f32 %v8749_v38, %v5383_v5  ;;  %v5657_v17 = vmul.f32 %v15091_v26, %v5529_v43 }
0x10e7   : > { %8027 = vmatprep.subr.mxu1 %v5642_v27  ;;  %8058 = vmatprep.subr.mxu0 %v5660_v11  ;;  %v8761_v49 = vpop.eup %8760  ;;  %v5271_v20 = vmul.f32 %v8759_v56, %v12958_v57  ;;  %v914_v57 = vld [vmem:[%s14008_s4 + $0x148] sm:$0xff]  ;;  %8784 = vrcp.f32 %v13158_v16 }
0x10e8   : > { %v8763_v22 = vpop.eup %8762  ;;  %v5382_v28 = vsub.f32 2.0, %v5254_v62  ;;  %v5253_v8 = vmul.f32 %v8761_v49, %v12984_v40  ;;  %v5528_v34 = vmul.f32 %v8753_v4, %v5400_v52  ;;  %8786 = vrcp.f32 %v12918_v33  ;;  %v916_v4 = vld [vmem:[%s14008_s4 + $0x158] sm:$0xff] }
0x10e9   : > { %v13255_v24 = vpop.xlane.xlu0 %4431  ;;  %5051 = vadd.xlane.f32.xlu0 %v13249_v19  ;;  %v13261_v12 = vpop.eup %8764  ;;  %v5252_v41 = vmul.f32 %v8763_v22, %v12862_v21  ;;  %8788 = vrcp.f32 %v12940_v0 }
0x10ea   : > { %8028 = vmatpush3.xpose.msra.mxu1 %v5642_v27  ;;  %8059 = vmatpush3.xpose.msra.mxu0 %v5660_v11  ;;  %v8767_v36 = vpop.eup %8766  ;;  %v5399_v27 = vsub.f32 2.0, %v5271_v20  ;;  %v5639_v11 = vmul.f32 %v15090_v23, %v5511_v6  ;;  %v5510_v21 = vmul.f32 %v8755_v37, %v5382_v28  ;;  %v15092_v6 = vld [vmem:[#allocation154_spill] sm:$0xff]  ;;  %8790 = vrcp.f32 %v13204_v31 }
0x10eb   : > { %8029 = vmatprep.subr.mxu1 %v5641_v1  ;;  %8060 = vmatprep.subr.mxu0 %v5659_v44  ;;  %v13274_v38 = vpop.eup %8768  ;;  %v5380_v7 = vsub.f32 2.0, %v5252_v41  ;;  %v15093_v28 = vld [vmem:[#allocation134_spill] sm:$0xff]  ;;  %8792 = vrcp.f32 %v12954_v48 }
0x10ec   : > { %v8771_v40 = vpop.eup %8770  ;;  %v5527_v13 = vmul.f32 %v8759_v56, %v5399_v27  ;;  %v5638_v43 = vmul.f32 %v15092_v6, %v5510_v21  ;;  %8794 = vrcp.f32 %v13242_v53 }
0x10ed   : > { %v13266_v42 = vpop.xlane.xlu0 %5019  ;;  %5049 = vadd.xlane.f32.xlu0 %v13261_v12  ;;  %v8773_v61 = vpop.eup %8772  ;;  %v5251_v62 = vmul.f32 %v8771_v40, %v12882_v58  ;;  %v5508_v58 = vmul.f32 %v8763_v22, %v5380_v7  ;;  %v15097_v7 = vld [vmem:[#allocation83_spill] sm:$0xff]  ;;  %8796 = vrcp.f32 %v12970_v14 }
0x10ee   : > { %8030 = vmatpush3.xpose.msra.mxu1 %v5641_v1  ;;  %8061 = vmatpush3.xpose.msra.mxu0 %v5659_v44  ;;  %v5381_v1 = vsub.f32 2.0, %v5253_v8  ;;  %v5270_v44 = vmul.f32 %v8767_v36, %v12995_v47  ;;  %v13288_v47 = vpop.eup %8774  ;;  %v5269_v35 = vmul.f32 %v8773_v61, %v13036_v32  ;;  %v5656_v8 = vmul.f32 %v15093_v28, %v5528_v34  ;;  %v15096_v34 = vld [vmem:[#allocation143_spill] sm:$0xff] }
0x10ef   : > { %8031 = vmatprep.subr.mxu1 %v5640_v46  ;;  %8062 = vmatprep.subr.mxu0 %v5658_v15  ;;  %v8777_v52 = vpop.eup %8776  ;;  %v5379_v56 = vsub.f32 2.0, %v5251_v62  ;;  %8798 = vrcp.f32 %v13266_v42 }
0x10f0   : > { %v5398_v37 = vsub.f32 2.0, %v5270_v44  ;;  %v5509_v60 = vmul.f32 %v8761_v49, %v5381_v1  ;;  %v5268_v27 = vmul.f32 %v8777_v52, %v13068_v18  ;;  %v5636_v1 = vmul.f32 %v15096_v34, %v5508_v58 }
0x10f1   : > { %v13281_v5 = vpop.xlane.xlu0 %4429  ;;  %5047 = vadd.xlane.f32.xlu0 %v13274_v38  ;;  %1128 = vperm.xlu1 %8399, %v914_v57   ;;  %v15094_v57 = vld [vmem:[#allocation136_spill] sm:$0xff]  ;;  %v5507_v18 = vmul.f32 %v8771_v40, %v5379_v56  ;;  %v15101_v56 = vld [vmem:[#allocation199_spill] sm:$0xff] }
0x10f2   : > { %8032 = vmatpush3.xpose.msra.mxu1 %v5640_v46  ;;  %8063 = vmatpush3.xpose.msra.mxu0 %v5658_v15  ;;  %v8779_v46 = vpop.eup %8778  ;;  %v5397_v15 = vsub.f32 2.0, %v5269_v35  ;;  %v5655_v41 = vmul.f32 %v15094_v57, %v5527_v13  ;;  %v15098_v13 = vld [vmem:[#allocation61_spill] sm:$0xff]  ;;  %8800 = vrcp.f32 %v15101_v56 }
0x10f3   : > { %8033 = vmatprep.subr.mxu1 %v5639_v11  ;;  %8064 = vmatprep.subr.mxu0 %v5657_v17  ;;  %v8781_v51 = vpop.eup %8780  ;;  %v5298_v49 = vmul.f32 %v8779_v46, %v13108_v25  ;;  %v5396_v25 = vsub.f32 2.0, %v5268_v27  ;;  %v5635_v40 = vmul.f32 %v15098_v13, %v5507_v18 }
0x10f4   : > { %v13298_v32 = vpop.eup %8782  ;;  %v5267_v22 = vmul.f32 %v8781_v51, %v12900_v63  ;;  %v5525_v44 = vmul.f32 %v8773_v61, %v5397_v15  ;;  %v15099_v61 = vld [vmem:[#allocation152_spill] sm:$0xff] }
0x10f5   : > { %v13292_v20 = vpop.xlane.xlu0 %5017  ;;  %5045 = vadd.xlane.f32.xlu0 %v13288_v47  ;;  %1138 = vperm.xlu1 %8399, %v916_v4   ;;  %v5426_v21 = vsub.f32 2.0, %v5298_v49  ;;  %v8785_v62 = vpop.eup %8784  ;;  %v5524_v6 = vmul.f32 %v8777_v52, %v5396_v25 }
0x10f6   : > { %8034 = vmatpush3.xpose.msra.mxu1 %v5639_v11  ;;  %8065 = vmatpush3.xpose.msra.mxu0 %v5657_v17  ;;  %v15095_v11 = vld [vmem:[#allocation193_spill] sm:$0xff]  ;;  %v5526_v17 = vmul.f32 %v8767_v36, %v5398_v37  ;;  %v8787_v35 = vpop.eup %8786  ;;  %v5395_v63 = vsub.f32 2.0, %v5267_v22  ;;  %v5653_v37 = vmul.f32 %v15099_v61, %v5525_v44  ;;  %v5314_v28 = vmul.f32 %v8785_v62, %v13158_v16  ;;  %v15102_v16 = vld [vmem:[#allocation82_spill] sm:$0xff]  ;;  %v15105_v22 = vld [vmem:[#allocation63_spill] sm:$0xff] }
0x10f7   : > { %8035 = vmatprep.subr.mxu1 %v5638_v43  ;;  %8066 = vmatprep.subr.mxu0 %v5656_v8  ;;  %v5637_v26 = vmul.f32 %v15095_v11, %v5509_v60  ;;  %v15100_v60 = vld [vmem:[#allocation66_spill] sm:$0xff]  ;;  %v8789_v57 = vpop.eup %8788  ;;  %8802 = vrcp.f32 %v13292_v20  ;;  %v5652_v27 = vmul.f32 %v15102_v16, %v5524_v6  ;;  %v4570_v34 = vsub.f32 %v15105_v22, %v13227_v59  ;;  %v15112_v22 = vld [vmem:[#allocation216_spill] sm:$0xff] }
0x10f8   : > { %v5654_v36 = vmul.f32 %v15097_v7, %v5526_v17  ;;  %v4554_v58 = vsub.f32 %v15100_v60, %v12929_v10  ;;  %v5523_v52 = vmul.f32 %v8781_v51, %v5395_v63  ;;  %v15104_v17 = vld [vmem:[#allocation112_spill] sm:$0xff] }
0x10f9   : > { %v13304_v23 = vpop.xlane.xlu0 %4427  ;;  %5077 = vadd.xlane.f32.xlu0 %v13298_v32  ;;  %8804 = vrcp.f32 %v15104_v17  ;;  %v4817_v13 = vmul.f32 1.442695, %v4570_v34  ;;  %v4568_v34 = vsub.f32 %v15112_v22, %v13281_v5  ;;  %v15119_v22 = vld [vmem:[#allocation169_spill] sm:$0xff] }
0x10fa   : > { %8036 = vmatpush3.xpose.msra.mxu1 %v5638_v43  ;;  %8067 = vmatpush3.xpose.msra.mxu0 %v5656_v8  ;;  %v5554_v43 = vmul.f32 %v8779_v46, %v5426_v21  ;;  %v5297_v8 = vmul.f32 %v8787_v35, %v12918_v33  ;;  %v8791_v46 = vpop.eup %8790  ;;  %v15103_v33 = vld [vmem:[#allocation188_spill] sm:$0xff]  ;;  %v4785_v10 = vmul.f32 1.442695, %v4554_v58  ;;  %v15110_v58 = vld [vmem:[#allocation33_spill] sm:$0xff] }
0x10fb   : > { %8037 = vmatprep.subr.mxu1 %v5637_v26  ;;  %8068 = vmatprep.subr.mxu0 %v5655_v41  ;;  %v5313_v18 = vmul.f32 %v8791_v46, %v13204_v31  ;;  %v15106_v21 = vld [vmem:[#allocation52_spill] sm:$0xff]  ;;  %v15107_v31 = vld [vmem:[#allocation210_spill] sm:$0xff] }
0x10fc   : > { %v5682_v49 = vmul.f32 %v15103_v33, %v5554_v43  ;;  %v5425_v11 = vsub.f32 2.0, %v5297_v8  ;;  %v5651_v7 = vmul.f32 %v15106_v21, %v5523_v52  ;;  %v913_v43 = vld [vmem:[%s14008_s4 + $0x140] sm:$0xff] }
0x10fd   : > { %v13312_v4 = vpop.xlane.xlu0 %5015 }
0x10fe   : > { %8038 = vmatpush3.xpose.msra.mxu1 %v5637_v26  ;;  %8069 = vmatpush3.xpose.msra.mxu0 %v5655_v41  ;;  %v5442_v41 = vsub.f32 2.0, %v5314_v28  ;;  %v5296_v26 = vmul.f32 %v8789_v57, %v12940_v0  ;;  %8806 = vrcp.f32 %v13312_v4  ;;  %v15109_v28 = vld [vmem:[#allocation93_spill] sm:$0xff] }
0x10ff   : > { %8039 = vmatprep.subr.mxu1 %v5636_v1  ;;  %8070 = vmatprep.subr.mxu0 %v5654_v36  ;;  %8808 = vpow2.f32 %v4785_v10 }
0x1100   : > { %v5570_v44 = vmul.f32 %v8785_v62, %v5442_v41  ;;  %v5424_v63 = vsub.f32 2.0, %v5296_v26  ;;  %8810 = vrcp.f32 %v15107_v31  ;;  %v5441_v62 = vsub.f32 2.0, %v5313_v18  ;;  %v15111_v41 = vld [vmem:[#allocation158_spill] sm:$0xff]  ;;  %v915_v18 = vld [vmem:[%s14008_s4 + $0x150] sm:$0xff] }
0x1101   : > { %v13324_v15 = vpop.xlane.xlu0 %4425 }
0x1102   : > { %8040 = vmatpush3.xpose.msra.mxu1 %v5636_v1  ;;  %8071 = vmatpush3.xpose.msra.mxu0 %v5654_v36  ;;  %v8793_v1 = vpop.eup %8792  ;;  %v5553_v36 = vmul.f32 %v8787_v35, %v5425_v11  ;;  %v5698_v8 = vmul.f32 %v15109_v28, %v5570_v44  ;;  %v5569_v10 = vmul.f32 %v8791_v46, %v5441_v62 }
0x1103   : > { %8041 = vmatprep.subr.mxu1 %v5635_v40  ;;  %8072 = vmatprep.subr.mxu0 %v5653_v37  ;;  %v8795_v0 = vpop.eup %8794  ;;  %v5295_v59 = vmul.f32 %v8793_v1, %v12954_v48 }
0x1104   : > { %v8797_v61 = vpop.eup %8796  ;;  %v5312_v35 = vmul.f32 %v8795_v0, %v13242_v53  ;;  %v5681_v16 = vmul.f32 %v15111_v41, %v5553_v36  ;;  %v5552_v53 = vmul.f32 %v8789_v57, %v5424_v63  ;;  %v15113_v57 = vld [vmem:[#allocation37_spill] sm:$0xff] }
0x1105   : > { %v13337_v25 = vpop.xlane.xlu0 %5013  ;;  %v8799_v60 = vpop.eup %8798 }
0x1106   : > { %8042 = vmatpush3.xpose.msra.mxu1 %v5635_v40  ;;  %8073 = vmatpush3.xpose.msra.mxu0 %v5653_v37  ;;  %v15108_v37 = vld [vmem:[#allocation212_spill] sm:$0xff]  ;;  %8812 = vrcp.f32 %v13337_v25  ;;  %v8801_v11 = vpop.eup %8800  ;;  %v5311_v44 = vmul.f32 %v8799_v60, %v13266_v42 }
0x1107   : > { %8074 = vmatprep.subr.mxu0 %v5652_v27  ;;  %8081 = vmatprep.subr.mxu1 %v5682_v49  ;;  %v13333_v51 = vpop.xlane.xlu1 %4389  ;;  %v4569_v6 = vsub.f32 %v15108_v37, %v13255_v24  ;;  %v5294_v24 = vmul.f32 %v8797_v61, %v12970_v14  ;;  %8814 = vpow2.f32 %v4817_v13  ;;  %v5440_v14 = vsub.f32 2.0, %v5312_v35  ;;  %v15115_v42 = vld [vmem:[#allocation120_spill] sm:$0xff] }
0x1108   : > { %v5293_v63 = vmul.f32 %v8801_v11, %v15101_v56  ;;  %v5439_v28 = vsub.f32 2.0, %v5311_v44 }
0x1109   : > { %v4815_v26 = vmul.f32 1.442695, %v4569_v6  ;;  %v5422_v46 = vsub.f32 2.0, %v5294_v24  ;;  %v4813_v6 = vmul.f32 1.442695, %v4568_v34 }
0x110a   : > { %8075 = vmatpush3.xpose.msra.mxu0 %v5652_v27  ;;  %v5423_v27 = vsub.f32 2.0, %v5295_v59  ;;  %v15114_v59 = vld [vmem:[#allocation56_spill] sm:$0xff] }
0x110b   : > { %8076 = vmatprep.subr.mxu0 %v5651_v7  ;;  %v13341_v40 = vpop.xlane.xlu1 %4977  ;;  %v5680_v13 = vmul.f32 %v15114_v59, %v5552_v53  ;;  %v5550_v41 = vmul.f32 %v8797_v61, %v5422_v46  ;;  %v15118_v53 = vld [vmem:[#allocation189_spill] sm:$0xff] }
0x110c   : > { %8816 = vrcp.f32 %v13341_v40  ;;  %v5551_v62 = vmul.f32 %v8793_v1, %v5423_v27  ;;  %v5421_v1 = vsub.f32 2.0, %v5293_v63 }
0x110d   : > { %v1109_v48 = vpop.permute.xlu0 %1108  ;;  %8818 = vpow2.f32 %v4815_v26  ;;  %v5567_v26 = vmul.f32 %v8799_v60, %v5439_v28 }
0x110e   : > { %v1413_v52 = vadd.f32 %v15110_v58, %v1109_v48  ;;  %8077 = vmatpush3.xpose.msra.mxu0 %v5651_v7  ;;  %v8803_v7 = vpop.eup %8802  ;;  %v5568_v48 = vmul.f32 %v8795_v0, %v5440_v14  ;;  %v15117_v0 = vld [vmem:[#allocation76_spill] sm:$0xff] }
0x110f   : > { %8116 = vmatprep.subr.mxu0 %v5698_v8  ;;  %1123 = vperm.xlu0 %8398, %v913_v43   ;;  %v13355_v33 = vpop.xlane.xlu1 %4387  ;;  %v8805_v37 = vpop.eup %8804  ;;  %v15116_v43 = vld [vmem:[#allocation197_spill] sm:$0xff]  ;;  %v5310_v58 = vmul.f32 %v8803_v7, %v13292_v20  ;;  %v4566_v24 = vsub.f32 %v15117_v0, %v13324_v15  ;;  %v5679_v20 = vmul.f32 %v15118_v53, %v5551_v62 }
0x1110   : > { %8044 = vmatmul.mubr.f32.vlgmr.msra.gmra.mxu1 %v1413_v52  ;;  %v5697_v35 = vmul.f32 %v15116_v43, %v5569_v10  ;;  %v8807_v56 = vpop.eup %8806  ;;  %v5292_v52 = vmul.f32 %v8805_v37, %v15104_v17  ;;  %v5696_v34 = vmul.f32 %v15119_v22, %v5568_v48  ;;  %v5549_v15 = vmul.f32 %v8801_v11, %v5421_v1  ;;  %v15123_v11 = vld [vmem:[#allocation137_spill] sm:$0xff] }
0x1111   : > { %8082 = vmatpush3.xpose.msra.mxu1 %v5682_v49  ;;  %v1119_v21 = vpop.permute.xlu0 %1118  ;;  %v4567_v49 = vsub.f32 %v15115_v42, %v13304_v23  ;;  %v13375_v27 = vpop.eup %8808  ;;  %v15125_v42 = vld [vmem:[#allocation148_spill] sm:$0xff] }
0x1112   : > { %v1423_v36 = vadd.f32 %v15113_v57, %v1119_v21  ;;  %8083 = vmatprep.subr.mxu1 %v5681_v16  ;;  %v8811_v10 = vpop.eup %8810  ;;  %v5420_v61 = vsub.f32 2.0, %v5292_v52  ;;  %v15121_v21 = vld [vmem:[#allocation138_spill] sm:$0xff]  ;;  %v4809_v57 = vmul.f32 1.442695, %v4566_v24 }
0x1113   : > { %1133 = vperm.xlu0 %8398, %v915_v18   ;;  %v13366_v5 = vpop.xlane.xlu1 %4975  ;;  %v4811_v23 = vmul.f32 1.442695, %v4567_v49  ;;  %v8813_v17 = vpop.eup %8812  ;;  %v15120_v18 = vld [vmem:[#allocation201_spill] sm:$0xff]  ;;  %v5291_v60 = vmul.f32 %v8811_v10, %v15107_v31  ;;  %v15129_v24 = vld [vmem:[#allocation174_spill] sm:$0xff] }
0x1114   : > { %8079 = vmatmul.mubr.f32.vlgmr.msra.gmra.mxu0 %v1423_v36  ;;  %8820 = vrcp.f32 %v13366_v5  ;;  %v5678_v14 = vmul.f32 %v15120_v18, %v5550_v41  ;;  %v13384_v44 = vpop.eup %8814  ;;  %v5308_v59 = vmul.f32 %v8813_v17, %v13337_v25  ;;  %v5548_v49 = vmul.f32 %v8805_v37, %v5420_v61  ;;  %v15128_v37 = vld [vmem:[#allocation25_spill] sm:$0xff]  ;;  %v15131_v61 = vld [vmem:[#allocation156_spill] sm:$0xff] }
0x1115   : > { %8084 = vmatpush3.xpose.msra.mxu1 %v5681_v16  ;;  %8117 = vmatpush3.xpose.msra.mxu0 %v5698_v8  ;;  %8822 = vpow2.f32 %v4813_v6  ;;  %v5438_v16 = vsub.f32 2.0, %v5310_v58  ;;  %v5309_v8 = vmul.f32 %v8807_v56, %v13312_v4  ;;  %v4571_v4 = vsub.f32 %v15121_v21, %v13180_v55  ;;  %v15124_v6 = vld [vmem:[#allocation29_spill] sm:$0xff]  ;;  %v15126_v58 = vld [vmem:[#allocation192_spill] sm:$0xff] }
0x1116   : > { %8085 = vmatprep.subr.mxu1 %v5680_v13  ;;  %8118 = vmatprep.subr.mxu0 %v5697_v35  ;;  %8824 = vpow2.f32 %v4811_v23  ;;  %v4553_v31 = vsub.f32 %v15124_v6, %v15123_v11  ;;  %v5677_v55 = vmul.f32 %v15125_v42, %v5549_v15  ;;  %v5419_v43 = vsub.f32 2.0, %v5291_v60  ;;  %v15127_v23 = vld [vmem:[#allocation205_spill] sm:$0xff]  ;;  %v15133_v60 = vld [vmem:[#allocation195_spill] sm:$0xff] }
0x1117   : > { %v5566_v46 = vmul.f32 %v8803_v7, %v5438_v16  ;;  %v5437_v63 = vsub.f32 2.0, %v5309_v8  ;;  %8826 = vpow2.f32 %v4809_v57  ;;  %v5436_v28 = vsub.f32 2.0, %v5308_v59  ;;  %v15130_v16 = vld [vmem:[#allocation171_spill] sm:$0xff]  ;;  %v15132_v18 = vld [vmem:[#allocation153_spill] sm:$0xff] }
0x1118   : > { %v4783_v41 = vmul.f32 1.442695, %v4553_v31  ;;  %v4552_v0 = vsub.f32 %v15128_v37, %v15127_v23  ;;  %v5676_v53 = vmul.f32 %v15129_v24, %v5548_v49  ;;  %v15138_v42 = vld [vmem:[#allocation101_spill] sm:$0xff]  ;;  %v15142_v37 = vld [vmem:[#allocation60_spill] sm:$0xff]  ;;  %v15143_v24 = vld [vmem:[#allocation159_spill] sm:$0xff] }
0x1119   : > { %8086 = vmatpush3.xpose.msra.mxu1 %v5680_v13  ;;  %8119 = vmatpush3.xpose.msra.mxu0 %v5697_v35  ;;  %v8817_v36 = vpop.eup %8816  ;;  %v15122_v13 = vld [vmem:[#allocation166_spill] sm:$0xff]  ;;  %v4819_v35 = vmul.f32 1.442695, %v4571_v4  ;;  %v5565_v48 = vmul.f32 %v8807_v56, %v5437_v63  ;;  %v5694_v1 = vmul.f32 %v15126_v58, %v5566_v46  ;;  %v5564_v22 = vmul.f32 %v8813_v17, %v5436_v28  ;;  %v15134_v4 = vld [vmem:[#allocation164_spill] sm:$0xff]  ;;  %v15136_v63 = vld [vmem:[#allocation185_spill] sm:$0xff] }
0x111a   : > { %5041 = vadd.xlane.f32.xlu1 %v13375_v27  ;;  %8087 = vmatprep.subr.mxu1 %v5679_v20  ;;  %v5695_v62 = vmul.f32 %v15122_v13, %v5567_v26  ;;  %v5290_v7 = vmul.f32 %v8817_v36, %v13341_v40  ;;  %v13396_v25 = vpop.eup %8818  ;;  %v15135_v46 = vld [vmem:[#allocation160_spill] sm:$0xff]  ;;  %v15137_v13 = vld [vmem:[#allocation202_spill] sm:$0xff] }
0x111b   : > { %8120 = vmatprep.subr.mxu0 %v5696_v34  ;;  %8828 = vpow2.f32 %v4819_v35  ;;  %v5693_v8 = vmul.f32 %v15130_v16, %v5565_v48  ;;  %v5692_v57 = vmul.f32 %v15134_v4, %v5564_v22  ;;  %v4550_v59 = vsub.f32 %v15136_v63, %v15135_v46  ;;  %v15141_v58 = vld [vmem:[#allocation150_spill] sm:$0xff] }
0x111c   : > { %v5418_v40 = vsub.f32 2.0, %v5290_v7  ;;  %8830 = vpow2.f32 %v4783_v41 }
0x111d   : > { %8088 = vmatpush3.xpose.msra.mxu1 %v5679_v20  ;;  %8121 = vmatpush3.xpose.msra.mxu0 %v5696_v34  ;;  %v5547_v20 = vmul.f32 %v8811_v10, %v5419_v43  ;;  %v4781_v34 = vmul.f32 1.442695, %v4552_v0  ;;  %v4777_v31 = vmul.f32 1.442695, %v4550_v59  ;;  %v15140_v43 = vld [vmem:[#allocation123_spill] sm:$0xff]  ;;  %v4547_v0 = vsub.f32 %v15142_v37, %v13355_v33 }
0x111e   : > { %5073 = vadd.xlane.f32.xlu1 %v13384_v44  ;;  %8089 = vmatprep.subr.mxu1 %v5678_v14  ;;  %v5546_v10 = vmul.f32 %v8817_v36, %v5418_v40  ;;  %v4420_v36 = vpop.xlane.xlu1 %4419 }
0x111f   : > { %8122 = vmatprep.subr.mxu0 %v5695_v62  ;;  %8832 = vpow2.f32 %v4781_v34 }
0x1121   : > { %8090 = vmatpush3.xpose.msra.mxu1 %v5678_v14  ;;  %8123 = vmatpush3.xpose.msra.mxu0 %v5695_v62  ;;  %v8821_v52 = vpop.eup %8820  ;;  %v4551_v14 = vsub.f32 %v15132_v18, %v15131_v61  ;;  %v5674_v62 = vmul.f32 %v15137_v13, %v5546_v10 }
0x1122   : > { %5071 = vadd.xlane.f32.xlu1 %v13396_v25  ;;  %8091 = vmatprep.subr.mxu1 %v5677_v55  ;;  %v5289_v56 = vmul.f32 %v8821_v52, %v13366_v5  ;;  %v13404_v26 = vpop.eup %8822  ;;  %v5675_v5 = vmul.f32 %v15133_v60, %v5547_v20 }
0x1123   : > { %8124 = vmatprep.subr.mxu0 %v5694_v1  ;;  %v13411_v21 = vpop.eup %8824  ;;  %v4779_v17 = vmul.f32 1.442695, %v4551_v14 }
0x1124   : > { %v5417_v15 = vsub.f32 2.0, %v5289_v56  ;;  %v13418_v6 = vpop.eup %8826  ;;  %v4771_v56 = vmul.f32 1.442695, %v4547_v0 }
0x1125   : > { %8092 = vmatpush3.xpose.msra.mxu1 %v5677_v55  ;;  %8125 = vmatpush3.xpose.msra.mxu0 %v5694_v1  ;;  %8834 = vpow2.f32 %v4779_v17  ;;  %v15139_v55 = vld [vmem:[#allocation162_spill] sm:$0xff]  ;;  %v4548_v1 = vsub.f32 %v15141_v58, %v13333_v51 }
0x1126   : > { %5069 = vadd.xlane.f32.xlu1 %v13404_v26  ;;  %8093 = vmatprep.subr.mxu1 %v5676_v53  ;;  %v5545_v11 = vmul.f32 %v8821_v52, %v5417_v15  ;;  %v4549_v49 = vsub.f32 %v15139_v55, %v15138_v42  ;;  %8836 = vpow2.f32 %v4777_v31  ;;  %v5008_v52 = vpop.xlane.xlu1 %5007 }
0x1127   : > { %8126 = vmatprep.subr.mxu0 %v5693_v8  ;;  %v4773_v23 = vmul.f32 1.442695, %v4548_v1 }
0x1128   : > { %v5673_v35 = vmul.f32 %v15140_v43, %v5545_v11  ;;  %v13424_v7 = vpop.eup %8828  ;;  %v4775_v28 = vmul.f32 1.442695, %v4549_v49 }
0x1129   : > { %8094 = vmatpush3.xpose.msra.mxu1 %v5676_v53  ;;  %8127 = vmatpush3.xpose.msra.mxu0 %v5693_v8  ;;  %v13427_v48 = vpop.eup %8830  ;;  %v4563_v53 = vsub.f32 %v15143_v24, %v4420_v36  ;;  %v15144_v8 = vld [vmem:[#allocation204_spill] sm:$0xff] }
0x112a   : > { %5067 = vadd.xlane.f32.xlu1 %v13411_v21  ;;  %8095 = vmatprep.subr.mxu1 %v5675_v5  ;;  %8838 = vpow2.f32 %v4775_v28  ;;  %v5006_v40 = vpop.xlane.xlu1 %5005 }
0x112b   : > { %8128 = vmatprep.subr.mxu0 %v5692_v57  ;;  %8840 = vpow2.f32 %v4773_v23  ;;  %v4803_v51 = vmul.f32 1.442695, %v4563_v53  ;;  %v15148_v23 = vld [vmem:[#allocation207_spill] sm:$0xff] }
0x112c   : > { %v13432_v41 = vpop.eup %8832  ;;  %8842 = vpow2.f32 %v4771_v56 }
0x112d   : > { %8096 = vmatpush3.xpose.msra.mxu1 %v5675_v5  ;;  %8129 = vmatpush3.xpose.msra.mxu0 %v5692_v57  ;;  %8844 = vpow2.f32 %v4803_v51  ;;  %v15145_v5 = vld [vmem:[#allocation132_spill] sm:$0xff] }
0x112e   : > { %5065 = vadd.xlane.f32.xlu1 %v13418_v6  ;;  %8097 = vmatprep.subr.mxu1 %v5674_v62  ;;  %v13444_v61 = vpop.xlane.xlu1 %5003 }
0x1131   : > { %8098 = vmatpush3.xpose.msra.mxu1 %v5674_v62 }
0x1132   : > { %8099 = vmatprep.subr.mxu1 %v5673_v35  ;;  %5075 = vadd.xlane.f32.xlu0 %v13424_v7  ;;  %v13438_v20 = vpop.eup %8834  ;;  %v13450_v60 = vpop.xlane.xlu1 %5001 }
0x1133   : > { %v13442_v34 = vpop.eup %8836 }
0x1135   : > { %8100 = vmatpush3.xpose.msra.mxu1 %v5673_v35 }
0x1136   : > { %5039 = vadd.xlane.f32.xlu0 %v13427_v48  ;;  %v13458_v63 = vpop.xlane.xlu1 %4999 }
0x1137   : > { %v13447_v14 = vpop.eup %8838 }
0x1138   : > { %v13453_v4 = vpop.eup %8840 }
0x1139   : > { %v13456_v46 = vpop.eup %8842 }
0x113a   : > { %5037 = vadd.xlane.f32.xlu0 %v13432_v41  ;;  %v13462_v13 = vpop.eup %8844  ;;  %v13469_v55 = vpop.xlane.xlu1 %4997 }
0x113b   : > { %15146 = vst [vmem:[#allocation206_spill] sm:$0xff] %v13462_v13 }
0x113e   : > { %v4424_v16 = vpop.xlane.xlu0 %4423  ;;  %5035 = vadd.xlane.f32.xlu0 %v13438_v20  ;;  %v13475_v53 = vpop.xlane.xlu1 %5057 }
0x113f   : > { %v4565_v22 = vsub.f32 %v15144_v8, %v4424_v16 }
0x1141   : > { %v4807_v33 = vmul.f32 1.442695, %v4565_v22 }
0x1142   : > { %v5012_v18 = vpop.xlane.xlu0 %5011  ;;  %5033 = vadd.xlane.f32.xlu0 %v13442_v34 }
0x1143   : > { %8846 = vpow2.f32 %v4807_v33 }
0x1144   : > { %8848 = vrcp.f32 %v5012_v18 }
0x1145   : > { %8850 = vrcp.f32 %v5008_v52 }
0x1146   : > { %v4422_v15 = vpop.xlane.xlu0 %4421  ;;  %5031 = vadd.xlane.f32.xlu0 %v13447_v14  ;;  %8852 = vrcp.f32 %v5006_v40 }
0x1147   : > { %v4564_v10 = vsub.f32 %v15145_v5, %v4422_v15 }
0x1149   : > { %v4805_v57 = vmul.f32 1.442695, %v4564_v10 }
0x114a   : > { %v5010_v17 = vpop.xlane.xlu0 %5009  ;;  %5029 = vadd.xlane.f32.xlu0 %v13453_v4 }
0x114b   : > { %8854 = vpow2.f32 %v4805_v57 }
0x114c   : > { %8856 = vrcp.f32 %v5010_v17 }
0x114d   : > { %8858 = vrcp.f32 %v13444_v61 }
0x114e   : > { %v4974_v59 = vpop.xlane.xlu0 %4973  ;;  %5027 = vadd.xlane.f32.xlu0 %v13456_v46 }
0x114f   : > { %8860 = vrcp.f32 %v4974_v59 }
0x1150   : > { %v13464_v62 = vpop.eup %8846  ;;  %8862 = vrcp.f32 %v13450_v60 }
0x1151   : > { %v8849_v11 = vpop.eup %8848  ;;  %5063 = vadd.xlane.f32.xlu1 %v13464_v62 }
0x1152   : > { %v8851_v36 = vpop.eup %8850  ;;  %v5307_v31 = vmul.f32 %v8849_v11, %v5012_v18  ;;  %v4972_v42 = vpop.xlane.xlu0 %4971  ;;  %5059 = vadd.xlane.f32.xlu0 %v13462_v13 }
0x1153   : > { %8864 = vrcp.f32 %v4972_v42  ;;  %v5305_v43 = vmul.f32 %v8851_v36, %v5008_v52  ;;  %v8853_v58 = vpop.eup %8852 }
0x1154   : > { %v5435_v49 = vsub.f32 2.0, %v5307_v31  ;;  %8866 = vrcp.f32 %v13458_v63  ;;  %v5304_v56 = vmul.f32 %v8853_v58, %v5006_v40 }
0x1155   : > { %v5433_v24 = vsub.f32 2.0, %v5305_v43 }
0x1156   : > { %v5563_v35 = vmul.f32 %v8849_v11, %v5435_v49  ;;  %v4970_v28 = vpop.xlane.xlu0 %4969  ;;  %v5432_v15 = vsub.f32 2.0, %v5304_v56  ;;  %v13481_v11 = vpop.xlane.xlu1 %5089  ;;  %v15149_v49 = vld [vmem:[#allocation155_spill] sm:$0xff] }
0x1157   : > { %8868 = vrcp.f32 %v4970_v28  ;;  %v5561_v18 = vmul.f32 %v8851_v36, %v5433_v24  ;;  %v15151_v56 = vld [vmem:[#allocation215_spill] sm:$0xff] }
0x1158   : > { %v13472_v1 = vpop.eup %8854  ;;  %v5691_v37 = vmul.f32 %v15148_v23, %v5563_v35  ;;  %8870 = vrcp.f32 %v13469_v55  ;;  %v5560_v36 = vmul.f32 %v8853_v58, %v5432_v15  ;;  %v15152_v15 = vld [vmem:[#allocation145_spill] sm:$0xff] }
0x1159   : > { %15147 = vst [vmem:[#allocation116_spill] sm:$0xff] %v13472_v1  ;;  %v8857_v0 = vpop.eup %8856  ;;  %5061 = vadd.xlane.f32.xlu1 %v13472_v1 }
0x115a   : > { %v5306_v52 = vmul.f32 %v8857_v0, %v5010_v17  ;;  %8130 = vmatprep.subr.mxu0 %v5691_v37  ;;  %v4968_v51 = vpop.xlane.xlu0 %4967  ;;  %v8859_v16 = vpop.eup %8858 }
0x115b   : > { %8872 = vrcp.f32 %v4968_v51  ;;  %8131 = vmatpush3.xpose.msra.mxu0 %v5691_v37  ;;  %v5303_v5 = vmul.f32 %v8859_v16, %v13444_v61  ;;  %v15150_v37 = vld [vmem:[#allocation127_spill] sm:$0xff] }
0x115c   : > { %v8861_v8 = vpop.eup %8860  ;;  %v5434_v22 = vsub.f32 2.0, %v5306_v52  ;;  %8874 = vrcp.f32 %v13475_v53  ;;  %v5689_v52 = vmul.f32 %v15150_v37, %v5561_v18 }
0x115d   : > { %v5288_v33 = vmul.f32 %v8861_v8, %v4974_v59  ;;  %v8863_v40 = vpop.eup %8862  ;;  %v5431_v13 = vsub.f32 2.0, %v5303_v5 }
0x115e   : > { %v5562_v10 = vmul.f32 %v8857_v0, %v5434_v22  ;;  %v4966_v57 = vpop.xlane.xlu0 %4965  ;;  %v5302_v59 = vmul.f32 %v8863_v40, %v13450_v60  ;;  %v918_v60 = vld [vmem:[%s14008_s4 + $0x168] sm:$0xff] }
0x115f   : > { %v5416_v17 = vsub.f32 2.0, %v5288_v33  ;;  %8876 = vrcp.f32 %v4966_v57 }
0x1160   : > { %v8865_v31 = vpop.eup %8864  ;;  %v5690_v43 = vmul.f32 %v15149_v49, %v5562_v10  ;;  %8878 = vrcp.f32 %v13481_v11  ;;  %v5430_v18 = vsub.f32 2.0, %v5302_v59  ;;  %v5688_v10 = vmul.f32 %v15152_v15, %v5560_v36 }
0x1161   : > { %v5544_v35 = vmul.f32 %v8861_v8, %v5416_v17  ;;  %v5287_v23 = vmul.f32 %v8865_v31, %v4972_v42  ;;  %v8867_v0 = vpop.eup %8866  ;;  %v5559_v17 = vmul.f32 %v8859_v16, %v5431_v13 }
0x1162   : > { %8132 = vmatprep.subr.mxu0 %v5690_v43  ;;  %v13487_v61 = vpop.xlane.xlu0 %4963  ;;  %v5301_v5 = vmul.f32 %v8867_v0, %v13458_v63 }
0x1163   : > { %v5415_v24 = vsub.f32 2.0, %v5287_v23  ;;  %8880 = vrcp.f32 %v13487_v61  ;;  %8133 = vmatpush3.xpose.msra.mxu0 %v5690_v43  ;;  %v5672_v22 = vmul.f32 %v15151_v56, %v5544_v35  ;;  %v917_v35 = vld [vmem:[%s14008_s4 + $0x160] sm:$0xff]  ;;  %v5558_v56 = vmul.f32 %v8863_v40, %v5430_v18  ;;  %v15155_v40 = vld [vmem:[#allocation71_spill] sm:$0xff] }
0x1164   : > { %v8869_v8 = vpop.eup %8868  ;;  %8134 = vmatprep.subr.mxu0 %v5689_v52  ;;  %v5429_v36 = vsub.f32 2.0, %v5301_v5 }
0x1165   : > { %v5543_v42 = vmul.f32 %v8865_v31, %v5415_v24  ;;  %v5286_v33 = vmul.f32 %v8869_v8, %v4970_v28  ;;  %8101 = vmatprep.subr.mxu1 %v5672_v22  ;;  %v8871_v49 = vpop.eup %8870  ;;  %v15153_v28 = vld [vmem:[#allocation177_spill] sm:$0xff]  ;;  %v5686_v18 = vmul.f32 %v15155_v40, %v5558_v56 }
0x1166   : > { %v13495_v58 = vpop.xlane.xlu0 %4995  ;;  %8102 = vmatpush3.xpose.msra.mxu1 %v5672_v22  ;;  %v5300_v13 = vmul.f32 %v8871_v49, %v13469_v55  ;;  %v13507_v22 = vpop.xlane.xlu1 %5087 }
0x1167   : > { %v5414_v43 = vsub.f32 2.0, %v5286_v33  ;;  %8882 = vrcp.f32 %v13495_v58  ;;  %8135 = vmatpush3.xpose.msra.mxu0 %v5689_v52  ;;  %v5671_v31 = vmul.f32 %v15153_v28, %v5543_v42  ;;  %v15154_v52 = vld [vmem:[#allocation208_spill] sm:$0xff] }
0x1168   : > { %v8873_v23 = vpop.eup %8872  ;;  %8136 = vmatprep.subr.mxu0 %v5688_v10  ;;  %1148 = vperm.xlu0 %8398, %v918_v60   ;;  %v5687_v24 = vmul.f32 %v15154_v52, %v5559_v17  ;;  %v5428_v15 = vsub.f32 2.0, %v5300_v13 }
0x1169   : > { %v5542_v63 = vmul.f32 %v8869_v8, %v5414_v43  ;;  %v5285_v37 = vmul.f32 %v8873_v23, %v4968_v51  ;;  %8103 = vmatprep.subr.mxu1 %v5671_v31  ;;  %v8875_v59 = vpop.eup %8874  ;;  %v919_v51 = vld [vmem:[%s14008_s4 + $0x170] sm:$0xff] }
0x116a   : > { %v13504_v16 = vpop.xlane.xlu0 %5055  ;;  %1143 = vperm.xlu1 %8399, %v917_v35   ;;  %8104 = vmatpush3.xpose.msra.mxu1 %v5671_v31  ;;  %v5330_v55 = vmul.f32 %v8875_v59, %v13475_v53  ;;  %v13517_v43 = vpop.xlane.xlu1 %5085  ;;  %v920_v53 = vld [vmem:[%s14008_s4 + $0x178] sm:$0xff]  ;;  %v5556_v13 = vmul.f32 %v8871_v49, %v5428_v15  ;;  %v15157_v49 = vld [vmem:[#allocation190_spill] sm:$0xff] }
0x116b   : > { %v5413_v42 = vsub.f32 2.0, %v5285_v37  ;;  %8137 = vmatpush3.xpose.msra.mxu0 %v5688_v10  ;;  %v5670_v33 = vmul.f32 %v13102_v2, %v5542_v63  ;;  %v5557_v10 = vmul.f32 %v8867_v0, %v5429_v36  ;;  %8884 = vrcp.f32 %v13504_v16 }
0x116c   : > { %v8877_v8 = vpop.eup %8876  ;;  %8138 = vmatprep.subr.mxu0 %v5687_v24  ;;  %v5458_v35 = vsub.f32 2.0, %v5330_v55  ;;  %8886 = vrcp.f32 %v13507_v22  ;;  %v5684_v55 = vmul.f32 %v15157_v49, %v5556_v13 }
0x116d   : > { %v5541_v60 = vmul.f32 %v8873_v23, %v5413_v42  ;;  %v5284_v5 = vmul.f32 %v8877_v8, %v4966_v57  ;;  %8105 = vmatprep.subr.mxu1 %v5670_v33  ;;  %v8879_v2 = vpop.eup %8878 }
0x116e   : > { %v13514_v17 = vpop.xlane.xlu0 %5053  ;;  %1153 = vperm.xlu1 %8399, %v919_v51   ;;  %8106 = vmatpush3.xpose.msra.mxu1 %v5670_v33  ;;  %v5346_v0 = vmul.f32 %v8879_v2, %v13481_v11  ;;  %v13529_v52 = vpop.xlane.xlu1 %5083 }
0x116f   : > { %v5412_v28 = vsub.f32 2.0, %v5284_v5  ;;  %8139 = vmatpush3.xpose.msra.mxu0 %v5687_v24  ;;  %v5669_v31 = vmul.f32 %v13121_v45, %v5541_v60  ;;  %v15156_v45 = vld [vmem:[#allocation147_spill] sm:$0xff]  ;;  %8888 = vrcp.f32 %v13514_v17 }
0x1170   : > { %v8881_v57 = vpop.eup %8880  ;;  %8140 = vmatprep.subr.mxu0 %v5686_v18  ;;  %v5685_v36 = vmul.f32 %v15156_v45, %v5557_v10  ;;  %v5474_v51 = vsub.f32 2.0, %v5346_v0  ;;  %8890 = vrcp.f32 %v13517_v43 }
0x1171   : > { %v5540_v23 = vmul.f32 %v8877_v8, %v5412_v28  ;;  %v5283_v63 = vmul.f32 %v8881_v57, %v13487_v61  ;;  %8107 = vmatprep.subr.mxu1 %v5669_v31  ;;  %v5586_v61 = vmul.f32 %v8875_v59, %v5458_v35 }
0x1172   : > { %v13526_v37 = vpop.xlane.xlu0 %5051  ;;  %1158 = vperm.xlu1 %8399, %v920_v53   ;;  %8108 = vmatpush3.xpose.msra.mxu1 %v5669_v31  ;;  %v13538_v60 = vpop.xlane.xlu1 %5081  ;;  %v5602_v40 = vmul.f32 %v8879_v2, %v5474_v51 }
0x1173   : > { %v5411_v24 = vsub.f32 2.0, %v5283_v63  ;;  %8141 = vmatpush3.xpose.msra.mxu0 %v5686_v18  ;;  %v5668_v56 = vmul.f32 %v13148_v9, %v5540_v23  ;;  %8892 = vrcp.f32 %v13526_v37 }
0x1174   : > { %v8883_v42 = vpop.eup %8882  ;;  %8142 = vmatprep.subr.mxu0 %v5685_v36  ;;  %8894 = vrcp.f32 %v13529_v52 }
0x1175   : > { %v5539_v11 = vmul.f32 %v8881_v57, %v5411_v24  ;;  %v5299_v33 = vmul.f32 %v8883_v42, %v13495_v58  ;;  %8109 = vmatprep.subr.mxu1 %v5668_v56  ;;  %v15158_v58 = vld [vmem:[#allocation73_spill] sm:$0xff] }
0x1176   : > { %v13535_v8 = vpop.xlane.xlu0 %5049  ;;  %8110 = vmatpush3.xpose.msra.mxu1 %v5668_v56  ;;  %v5714_v15 = vmul.f32 %v15158_v58, %v5586_v61  ;;  %v13546_v10 = vpop.xlane.xlu1 %5079 }
0x1177   : > { %v5427_v9 = vsub.f32 2.0, %v5299_v33  ;;  %8143 = vmatpush3.xpose.msra.mxu0 %v5685_v36  ;;  %v5667_v59 = vmul.f32 %v13156_v29, %v5539_v11  ;;  %8896 = vrcp.f32 %v13535_v8  ;;  %v15159_v29 = vld [vmem:[#allocation214_spill] sm:$0xff] }
0x1178   : > { %8144 = vmatprep.subr.mxu0 %v5684_v55  ;;  %v13552_v31 = vmul.f32 %v15159_v29, %v5602_v40  ;;  %v8885_v2 = vpop.eup %8884  ;;  %8898 = vrcp.f32 %v13538_v60 }
0x1179   : > { %v5555_v5 = vmul.f32 %v8883_v42, %v5427_v9  ;;  %8111 = vmatprep.subr.mxu1 %v5667_v59  ;;  %v8887_v35 = vpop.eup %8886 }
0x117a   : > { %v13544_v18 = vpop.xlane.xlu0 %5047  ;;  %8112 = vmatpush3.xpose.msra.mxu1 %v5667_v59  ;;  %v13558_v57 = vpop.xlane.xlu1 %5043  ;;  %v5345_v63 = vmul.f32 %v8887_v35, %v13507_v22 }
0x117b   : > { %8145 = vmatpush3.xpose.msra.mxu0 %v5684_v55  ;;  %8151 = vmatprep.subr.mxu1 %v5714_v15  ;;  %v5683_v28 = vmul.f32 %v13185_v54, %v5555_v5  ;;  %v5329_v54 = vmul.f32 %v8885_v2, %v13504_v16  ;;  %8900 = vrcp.f32 %v13544_v18  ;;  %v15160_v55 = vld [vmem:[#allocation42_spill] sm:$0xff]  ;;  %v15161_v5 = vld [vmem:[#allocation40_spill] sm:$0xff] }
0x117c   : > { %v8889_v23 = vpop.eup %8888  ;;  %8902 = vrcp.f32 %v13546_v10  ;;  %v5473_v42 = vsub.f32 2.0, %v5345_v63 }
0x117d   : > { %8146 = vmatprep.subr.mxu0 %v5683_v28  ;;  %v8891_v0 = vpop.eup %8890  ;;  %v5457_v45 = vsub.f32 2.0, %v5329_v54  ;;  %v5328_v36 = vmul.f32 %v8889_v23, %v13514_v17 }
0x117e   : > { %v13554_v53 = vpop.xlane.xlu0 %5045  ;;  %v1129_v56 = vpop.permute.xlu1 %1128  ;;  %v5344_v16 = vmul.f32 %v8891_v0, %v13517_v43  ;;  %v5601_v40 = vmul.f32 %v8887_v35, %v5473_v42 }
0x117f   : > { %8147 = vmatpush3.xpose.msra.mxu0 %v5683_v28  ;;  %8904 = vrcp.f32 %v13554_v53  ;;  %v5585_v22 = vmul.f32 %v8885_v2, %v5457_v45  ;;  %v5456_v33 = vsub.f32 2.0, %v5328_v36  ;;  %v1433_v58 = vadd.f32 %v15161_v5, %v1129_v56  ;;  %v15163_v56 = vld [vmem:[#allocation43_spill] sm:$0xff] }
0x1180   : > { %8186 = vmatprep.subr.mxu0 %v13552_v31  ;;  %v8893_v24 = vpop.eup %8892  ;;  %8906 = vrcp.f32 %v13558_v57  ;;  %v5472_v43 = vsub.f32 2.0, %v5344_v16  ;;  %v15165_v5 = vld [vmem:[#allocation203_spill] sm:$0xff] }
0x1181   : > { %v8895_v11 = vpop.eup %8894  ;;  %v5327_v51 = vmul.f32 %v8893_v24, %v13526_v37  ;;  %v5584_v54 = vmul.f32 %v8889_v23, %v5456_v33  ;;  %v5713_v36 = vmul.f32 %v13216_v39, %v5585_v22  ;;  %v15164_v33 = vld [vmem:[#allocation118_spill] sm:$0xff] }
0x1182   : > { %v13566_v13 = vpop.xlane.xlu0 %5077  ;;  %v5343_v28 = vmul.f32 %v8895_v11, %v13529_v52  ;;  %v1139_v29 = vpop.permute.xlu1 %1138  ;;  %v5600_v52 = vmul.f32 %v8891_v0, %v5472_v43 }
0x1183   : > { %8908 = vrcp.f32 %v13566_v13  ;;  %v5455_v63 = vsub.f32 2.0, %v5327_v51  ;;  %v1443_v35 = vadd.f32 %v15163_v56, %v1139_v29 }
0x1184   : > { %v8897_v49 = vpop.eup %8896  ;;  %v5471_v42 = vsub.f32 2.0, %v5343_v28 }
0x1185   : > { %v8899_v2 = vpop.eup %8898  ;;  %v5326_v37 = vmul.f32 %v8897_v49, %v13535_v8  ;;  %v5729_v8 = vmul.f32 %v15164_v33, %v5601_v40 }
0x1186   : > { %v5342_v16 = vmul.f32 %v8899_v2, %v13538_v60  ;;  %v5599_v60 = vmul.f32 %v8895_v11, %v5471_v42 }
0x1189   : > { %v7975_v61 = vpop.f32.mrf.mxu1 }
0x118a   : > { %v1124_v17 = vpop.permute.xlu0 %1123 }
0x118b   : > { %v1428_v9 = vadd.f32 %v15160_v55, %v1124_v17  ;;  %v5797_v59 = vpop.f32.mrf.mxu1  ;;  %v8901_v17 = vpop.eup %8900  ;;  %v15162_v55 = vld [vmem:[#allocation45_spill] sm:$0xff] }
0x118c   : > { %6331 = vxpose.xlu0.b32.start [1/16] %v5797_v59, 128  ;;  %v8903_v51 = vpop.eup %8902  ;;  %v5454_v59 = vsub.f32 2.0, %v5326_v37  ;;  %v5325_v39 = vmul.f32 %v8901_v17, %v13544_v18 }
0x118d   : > { %8113 = vmatprep.mubr.f32.mxu1 %v1428_v9  ;;  %v5583_v9 = vmul.f32 %v8893_v24, %v5455_v63  ;;  %v8905_v22 = vpop.eup %8904  ;;  %v5728_v24 = vmul.f32 %v15165_v5, %v5600_v52 }
0x118e   : > { %v1134_v45 = vpop.permute.xlu0 %1133  ;;  %8114 = vmatmul.mubr.f32.vlgmr.msra.gmra.mxu1 %v1433_v58  ;;  %v8907_v58 = vpop.eup %8906  ;;  %v5582_v40 = vmul.f32 %v8897_v49, %v5454_v59  ;;  %v5453_v18 = vsub.f32 2.0, %v5325_v39  ;;  %v5324_v43 = vmul.f32 %v8905_v22, %v13554_v53 }
0x118f   : > { %v1438_v1 = vadd.f32 %v15162_v55, %v1134_v45  ;;  %8152 = vmatpush3.xpose.msra.mxu1 %v5714_v15  ;;  %v5712_v15 = vmul.f32 %v13236_v3, %v5584_v54  ;;  %v5711_v3 = vmul.f32 %v13249_v19, %v5583_v9  ;;  %v5323_v29 = vmul.f32 %v8907_v58, %v13558_v57  ;;  %v15167_v45 = vld [vmem:[#allocation121_spill] sm:$0xff] }
0x1190   : > { %8153 = vmatprep.subr.mxu1 %v5713_v36  ;;  %6332 = vxpose.xlu0.b32.cont [2/16] %v7975_v61, 128  ;;  %v5470_v61 = vsub.f32 2.0, %v5342_v16  ;;  %v8909_v28 = vpop.eup %8908  ;;  %v5581_v63 = vmul.f32 %v8901_v17, %v5453_v18  ;;  %v5452_v37 = vsub.f32 2.0, %v5324_v43  ;;  %v5710_v53 = vmul.f32 %v13261_v12, %v5582_v40 }
0x1191   : > { %v8010_v23 = vpop.f32.mrf.mxu0  ;;  %8148 = vmatprep.mubr.f32.mxu0 %v1438_v1  ;;  %v5341_v1 = vmul.f32 %v8903_v51, %v13546_v10  ;;  %v15166_v10 = vld [vmem:[#allocation194_spill] sm:$0xff]  ;;  %v5340_v49 = vmul.f32 %v8909_v28, %v13566_v13 }
0x1192   : > { %8149 = vmatmul.mubr.f32.vlgmr.msra.gmra.mxu0 %v1443_v35  ;;  %v5727_v54 = vmul.f32 %v15166_v10, %v5599_v60  ;;  %v5580_v55 = vmul.f32 %v8905_v22, %v5452_v37  ;;  %v5709_v57 = vmul.f32 %v13274_v38, %v5581_v63 }
0x1193   : > { %8154 = vmatpush3.xpose.msra.mxu1 %v5713_v36  ;;  %8187 = vmatpush3.xpose.msra.mxu0 %v13552_v31  ;;  %v5872_v0 = vpop.f32.mrf.mxu0  ;;  %v5598_v31 = vmul.f32 %v8899_v2, %v5470_v61  ;;  %v5469_v11 = vsub.f32 2.0, %v5341_v1  ;;  %v5451_v2 = vsub.f32 2.0, %v5323_v29  ;;  %v5468_v56 = vsub.f32 2.0, %v5340_v49 }
0x1194   : > { %8155 = vmatprep.subr.mxu1 %v5712_v15  ;;  %8188 = vmatprep.subr.mxu0 %v5729_v8  ;;  %v5708_v12 = vmul.f32 %v13288_v47, %v5580_v55 }
0x1195   : > { %6333 = vxpose.xlu0.b32.cont [3/16] %v5872_v0, 128  ;;  %v5597_v19 = vmul.f32 %v8903_v51, %v5469_v11  ;;  %v5726_v36 = vmul.f32 %v15167_v45, %v5598_v31  ;;  %v5579_v17 = vmul.f32 %v8907_v58, %v5451_v2  ;;  %v5596_v13 = vmul.f32 %v8909_v28, %v5468_v56 }
0x1197   : > { %8156 = vmatpush3.xpose.msra.mxu1 %v5712_v15  ;;  %8189 = vmatpush3.xpose.msra.mxu0 %v5729_v8  ;;  %v5725_v35 = vmul.f32 %v13191_v30, %v5597_v19  ;;  %v5707_v42 = vmul.f32 %v13212_v50, %v5579_v17  ;;  %v5724_v38 = vmul.f32 %v13298_v32, %v5596_v13 }
0x1198   : > { %8157 = vmatprep.subr.mxu1 %v5711_v3  ;;  %8190 = vmatprep.subr.mxu0 %v5728_v24 }
0x1199   : > { %6334 = vxpose.xlu0.b32.cont [4/16] %v8010_v23, 128 }
0x119b   : > { %8158 = vmatpush3.xpose.msra.mxu1 %v5711_v3  ;;  %8191 = vmatpush3.xpose.msra.mxu0 %v5728_v24 }
0x119c   : > { %8159 = vmatprep.subr.mxu1 %v5710_v53  ;;  %8192 = vmatprep.subr.mxu0 %v5727_v54 }
0x119f   : > { %8160 = vmatpush3.xpose.msra.mxu1 %v5710_v53  ;;  %8193 = vmatpush3.xpose.msra.mxu0 %v5727_v54 }
0x11a0   : > { %8161 = vmatprep.subr.mxu1 %v5709_v57  ;;  %8194 = vmatprep.subr.mxu0 %v5726_v36 }
0x11a3   : > { %8162 = vmatpush3.xpose.msra.mxu1 %v5709_v57  ;;  %8195 = vmatpush3.xpose.msra.mxu0 %v5726_v36  ;;  %v5042_v52 = vpop.xlane.xlu1 %5041 }
0x11a4   : > { %8910 = vrcp.f32 %v5042_v52  ;;  %8163 = vmatprep.subr.mxu1 %v5708_v12  ;;  %8196 = vmatprep.subr.mxu0 %v5725_v35 }
0x11a7   : > { %8164 = vmatpush3.xpose.msra.mxu1 %v5708_v12  ;;  %8197 = vmatpush3.xpose.msra.mxu0 %v5725_v35  ;;  %v5074_v16 = vpop.xlane.xlu1 %5073 }
0x11a8   : > { %8165 = vmatprep.subr.mxu1 %v5707_v42  ;;  %8198 = vmatprep.subr.mxu0 %v5724_v38  ;;  %8912 = vrcp.f32 %v5074_v16 }
0x11ab   : > { %8166 = vmatpush3.xpose.msra.mxu1 %v5707_v42  ;;  %8199 = vmatpush3.xpose.msra.mxu0 %v5724_v38  ;;  %v5072_v30 = vpop.xlane.xlu1 %5071 }
0x11ac   : > { %8914 = vrcp.f32 %v5072_v30 }
0x11af   : > { %v5070_v51 = vpop.xlane.xlu1 %5069 }
0x11b1   : > { %v8911_v47 = vpop.eup %8910 }
0x11b2   : > { %v5322_v23 = vmul.f32 %v8911_v47, %v5042_v52 }
0x11b3   : > { %v5068_v32 = vpop.xlane.xlu1 %5067 }
0x11b4   : > { %v5450_v33 = vsub.f32 2.0, %v5322_v23 }
0x11b5   : > { %v8913_v39 = vpop.eup %8912 }
0x11b6   : > { %v5578_v8 = vmul.f32 %v8911_v47, %v5450_v33  ;;  %v5338_v0 = vmul.f32 %v8913_v39, %v5074_v16 }
0x11b7   : > { %v5066_v22 = vpop.xlane.xlu1 %5065 }
0x11b8   : > { %v5706_v9 = vmul.f32 %v13375_v27, %v5578_v8  ;;  %v5466_v1 = vsub.f32 2.0, %v5338_v0 }
0x11b9   : > { %v8915_v61 = vpop.eup %8914 }
0x11ba   : > { %8167 = vmatprep.subr.mxu1 %v5706_v9  ;;  %v5337_v24 = vmul.f32 %v8915_v61, %v5072_v30  ;;  %v5594_v3 = vmul.f32 %v8913_v39, %v5466_v1 }
0x11bb   : > { %8168 = vmatpush3.xpose.msra.mxu1 %v5706_v9  ;;  %v5076_v50 = vpop.xlane.xlu0 %5075 }
0x11bc   : > { %8916 = vrcp.f32 %v5076_v50  ;;  %v5465_v11 = vsub.f32 2.0, %v5337_v24  ;;  %v5722_v2 = vmul.f32 %v13384_v44, %v5594_v3 }
0x11bd   : > { %8918 = vrcp.f32 %v5070_v51 }
0x11be   : > { %v5593_v55 = vmul.f32 %v8915_v61, %v5465_v11  ;;  %v15168_v11 = vld [vmem:[#allocation48_spill] sm:$0xff] }
0x11bf   : > { %v5040_v59 = vpop.xlane.xlu0 %5039 }
0x11c0   : > { %8920 = vrcp.f32 %v5040_v59  ;;  %v5721_v30 = vmul.f32 %v13396_v25, %v5593_v55 }
0x11c1   : > { %8922 = vrcp.f32 %v5068_v32 }
0x11c3   : > { %v5038_v15 = vpop.xlane.xlu0 %5037 }
0x11c4   : > { %8924 = vrcp.f32 %v5038_v15 }
0x11c5   : > { %8926 = vrcp.f32 %v5066_v22 }
0x11c7   : > { %v5036_v60 = vpop.xlane.xlu0 %5035 }
0x11c8   : > { %8928 = vrcp.f32 %v5036_v60 }
0x11c9   : > { %v8917_v27 = vpop.eup %8916 }
0x11ca   : > { %v5339_v5 = vmul.f32 %v8917_v27, %v5076_v50  ;;  %v8919_v40 = vpop.eup %8918 }
0x11cb   : > { %v5034_v58 = vpop.xlane.xlu0 %5033  ;;  %v5336_v29 = vmul.f32 %v8919_v40, %v5070_v51 }
0x11cc   : > { %v5467_v18 = vsub.f32 2.0, %v5339_v5  ;;  %8930 = vrcp.f32 %v5034_v58 }
0x11cd   : > { %v8921_v43 = vpop.eup %8920  ;;  %v5464_v56 = vsub.f32 2.0, %v5336_v29 }
0x11ce   : > { %v5595_v28 = vmul.f32 %v8917_v27, %v5467_v18  ;;  %v5321_v31 = vmul.f32 %v8921_v43, %v5040_v59  ;;  %v8923_v54 = vpop.eup %8922 }
0x11cf   : > { %v5032_v10 = vpop.xlane.xlu0 %5031  ;;  %v5335_v57 = vmul.f32 %v8923_v54, %v5068_v32  ;;  %v5592_v16 = vmul.f32 %v8919_v40, %v5464_v56 }
0x11d0   : > { %v5449_v63 = vsub.f32 2.0, %v5321_v31  ;;  %8932 = vrcp.f32 %v5032_v10  ;;  %v8045_v37 = vpop.f32.mrf.mxu1  ;;  %v5723_v49 = vmul.f32 %v13424_v7, %v5595_v28 }
0x11d1   : > { %v8925_v53 = vpop.eup %8924  ;;  %v5463_v47 = vsub.f32 2.0, %v5335_v57  ;;  %v5720_v25 = vmul.f32 %v13404_v26, %v5592_v16  ;;  %v15172_v16 = vld [vmem:[#allocation206_spill] sm:$0xff] }
0x11d2   : > { %v5577_v19 = vmul.f32 %v8921_v43, %v5449_v63  ;;  %v5320_v45 = vmul.f32 %v8925_v53, %v5038_v15  ;;  %v5947_v36 = vpop.f32.mrf.mxu1  ;;  %8200 = vmatprep.subr.mxu0 %v5723_v49  ;;  %v8927_v13 = vpop.eup %8926 }
0x11d3   : > { %v5030_v17 = vpop.xlane.xlu0 %5029  ;;  %6335 = vxpose.xlu0.b32.cont [5/16] %v5947_v36, 128  ;;  %8201 = vmatpush3.xpose.msra.mxu0 %v5723_v49  ;;  %v5334_v44 = vmul.f32 %v8927_v13, %v5066_v22  ;;  %v5591_v59 = vmul.f32 %v8923_v54, %v5463_v47 }
0x11d4   : > { %v5448_v12 = vsub.f32 2.0, %v5320_v45  ;;  %8934 = vrcp.f32 %v5030_v17  ;;  %8202 = vmatprep.subr.mxu0 %v5722_v2  ;;  %v5705_v35 = vmul.f32 %v13427_v48, %v5577_v19  ;;  %v8080_v38 = vpop.f32.mrf.mxu0  ;;  %v15169_v19 = vld [vmem:[#allocation53_spill] sm:$0xff] }
0x11d5   : > { %v8929_v7 = vpop.eup %8928  ;;  %v5462_v39 = vsub.f32 2.0, %v5334_v44  ;;  %v5719_v1 = vmul.f32 %v13411_v21, %v5591_v59  ;;  %v6373_v59 = vld [vmem:[#allocation8 + $0x50] sm:$0xff] }
0x11d6   : > { %v5576_v52 = vmul.f32 %v8925_v53, %v5448_v12  ;;  %v5319_v42 = vmul.f32 %v8929_v7, %v5036_v60  ;;  %8169 = vmatprep.subr.mxu1 %v5705_v35  ;;  %v6022_v50 = vpop.f32.mrf.mxu0 }
0x11d7   : > { %v5028_v23 = vpop.xlane.xlu0 %5027  ;;  %6336 = vxpose.xlu0.b32.cont [6/16] %v8045_v37, 128  ;;  %8170 = vmatpush3.xpose.msra.mxu1 %v5705_v35  ;;  %v5590_v27 = vmul.f32 %v8927_v13, %v5462_v39  ;;  %v6372_v39 = vld [vmem:[#allocation8 + $0x48] sm:$0xff] }
0x11d8   : > { %v5447_v33 = vsub.f32 2.0, %v5319_v42  ;;  %8936 = vrcp.f32 %v5028_v23  ;;  %8203 = vmatpush3.xpose.msra.mxu0 %v5722_v2  ;;  %v5704_v8 = vmul.f32 %v13432_v41, %v5576_v52 }
0x11d9   : > { %v8931_v51 = vpop.eup %8930  ;;  %8204 = vmatprep.subr.mxu0 %v5721_v30  ;;  %v5718_v18 = vmul.f32 %v13418_v6, %v5590_v27  ;;  %v6366_v27 = vld [vmem:[#allocation8 + $0x18] sm:$0xff] }
0x11da   : > { %v5575_v48 = vmul.f32 %v8929_v7, %v5447_v33  ;;  %v5318_v9 = vmul.f32 %v8931_v51, %v5034_v58  ;;  %8171 = vmatprep.subr.mxu1 %v5704_v8  ;;  %v5064_v32 = vpop.xlane.xlu1 %5063  ;;  %v6378_v33 = vld [vmem:[#allocation8 + $0x78] sm:$0xff] }
0x11db   : > { %8938 = vrcp.f32 %v5064_v32  ;;  %6337 = vxpose.xlu0.b32.cont [7/16] %v6022_v50, 128  ;;  %v5060_v15 = vpop.xlane.xlu0 %5059  ;;  %8172 = vmatpush3.xpose.msra.mxu1 %v5704_v8  ;;  %v6377_v8 = vld [vmem:[#allocation8 + $0x70] sm:$0xff]  ;;  %v6374_v50 = vld [vmem:[#allocation8 + $0x58] sm:$0xff] }
0x11dc   : > { %v5446_v22 = vsub.f32 2.0, %v5318_v9  ;;  %8205 = vmatpush3.xpose.msra.mxu0 %v5721_v30  ;;  %v5703_v0 = vmul.f32 %v13438_v20, %v5575_v48  ;;  %8940 = vrcp.f32 %v5060_v15  ;;  %v15174_v30 = vmov 0.0   ;;  %v6375_v48 = vld [vmem:[#allocation8 + $0x60] sm:$0xff] }
0x11dd   : > { %v8933_v41 = vpop.eup %8932  ;;  %8206 = vmatprep.subr.mxu0 %v5720_v25 }
0x11de   : > { %v5574_v60 = vmul.f32 %v8931_v51, %v5446_v22  ;;  %v5317_v61 = vmul.f32 %v8933_v41, %v5032_v10  ;;  %8173 = vmatprep.subr.mxu1 %v5703_v0  ;;  %v6376_v51 = vld [vmem:[#allocation8 + $0x68] sm:$0xff]  ;;  %v6370_v22 = vld [vmem:[#allocation8 + $0x38] sm:$0xff] }
0x11df   : > { %6338 = vxpose.xlu0.b32.cont [8/16] %v8080_v38, 128  ;;  %8174 = vmatpush3.xpose.msra.mxu1 %v5703_v0 }
0x11e0   : > { %v5445_v5 = vsub.f32 2.0, %v5317_v61  ;;  %8207 = vmatpush3.xpose.msra.mxu0 %v5720_v25  ;;  %v5702_v24 = vmul.f32 %v13442_v34, %v5574_v60  ;;  %v6371_v25 = vld [vmem:[#allocation8 + $0x40] sm:$0xff]  ;;  %v6368_v60 = vld [vmem:[#allocation8 + $0x28] sm:$0xff] }
0x11e1   : > { %v8935_v26 = vpop.eup %8934  ;;  %8208 = vmatprep.subr.mxu0 %v5719_v1  ;;  %v6367_v61 = vld [vmem:[#allocation8 + $0x20] sm:$0xff] }
0x11e2   : > { %v5573_v58 = vmul.f32 %v8933_v41, %v5445_v5  ;;  %v5316_v40 = vmul.f32 %v8935_v26, %v5030_v17  ;;  %8175 = vmatprep.subr.mxu1 %v5702_v24  ;;  %v5062_v20 = vpop.xlane.xlu1 %5061  ;;  %v15170_v17 = vld [vmem:[#allocation47_spill] sm:$0xff]  ;;  %v6369_v41 = vld [vmem:[#allocation8 + $0x30] sm:$0xff] }
0x11e3   : > { %8942 = vrcp.f32 %v5062_v20  ;;  %8176 = vmatpush3.xpose.msra.mxu1 %v5702_v24  ;;  %v1149_v56 = vpop.permute.xlu0 %1148  ;;  %v6364_v5 = vld [vmem:[#allocation8 + $0x8] sm:$0xff]  ;;  %v6363_v24 = vld [vmem:[#allocation8] sm:$0xff] }
0x11e4   : > { %v5444_v43 = vsub.f32 2.0, %v5316_v40  ;;  %8209 = vmatpush3.xpose.msra.mxu0 %v5719_v1  ;;  %v5701_v3 = vmul.f32 %v13447_v14, %v5573_v58  ;;  %v1453_v13 = vadd.f32 %v15170_v17, %v1149_v56  ;;  %v6365_v1 = vld [vmem:[#allocation8 + $0x10] sm:$0xff] }
0x11e5   : > { %v8937_v28 = vpop.eup %8936  ;;  %8210 = vmatprep.subr.mxu0 %v5718_v18 }
0x11e6   : > { %v5572_v21 = vmul.f32 %v8935_v26, %v5444_v43  ;;  %v5315_v31 = vmul.f32 %v8937_v28, %v5028_v23  ;;  %8177 = vmatprep.subr.mxu1 %v5701_v3  ;;  %v1144_v34 = vpop.permute.xlu1 %1143 }
0x11e7   : > { %v1448_v29 = vadd.f32 %v15168_v11, %v1144_v34  ;;  %8178 = vmatpush3.xpose.msra.mxu1 %v5701_v3 }
0x11e8   : > { %v8939_v10 = vpop.eup %8938  ;;  %v5443_v54 = vsub.f32 2.0, %v5315_v31  ;;  %8211 = vmatpush3.xpose.msra.mxu0 %v5718_v18  ;;  %v5700_v63 = vmul.f32 %v13453_v4, %v5572_v21 }
0x11e9   : > { %v5333_v37 = vmul.f32 %v8939_v10, %v5064_v32  ;;  %8183 = vmatprep.mubr.f32.mxu1 %v1448_v29  ;;  %v8941_v6 = vpop.eup %8940 }
0x11ea   : > { %v5571_v49 = vmul.f32 %v8937_v28, %v5443_v54  ;;  %8179 = vmatprep.subr.mxu1 %v5700_v63  ;;  %v1154_v14 = vpop.permute.xlu1 %1153  ;;  %v5331_v55 = vmul.f32 %v8941_v6, %v5060_v15 }
0x11eb   : > { %v5461_v53 = vsub.f32 2.0, %v5333_v37  ;;  %v1458_v45 = vadd.f32 %v15169_v19, %v1154_v14  ;;  %8180 = vmatpush3.xpose.msra.mxu1 %v5700_v63  ;;  %v13623_v19 = vld [vmem:[%s14012_s8] ss:$0 sm:$0xff] }
0x11ec   : > { %v5699_v36 = vmul.f32 %v13456_v46, %v5571_v49  ;;  %v5459_v12 = vsub.f32 2.0, %v5331_v55  ;;  %v15171_v46 = vld [vmem:[#allocation116_spill] sm:$0xff]  ;;  %v8997_v55 = vld [vmem:[%s9543_s28] sm:$0xff] }
0x11ed   : > { %v5589_v2 = vmul.f32 %v8939_v10, %v5461_v53  ;;  %8218 = vmatprep.mubr.f32.mxu0 %v1458_v45 }
0x11ee   : > { %8181 = vmatprep.subr.mxu1 %v5699_v36  ;;  %v5587_v52 = vmul.f32 %v8941_v6, %v5459_v12  ;;  %v1159_v44 = vpop.permute.xlu1 %1158 }
0x11ef   : > { %8182 = vmatpush3.xpose.msra.mxu1 %v5699_v36  ;;  %v5717_v4 = vmul.f32 %v13464_v62, %v5589_v2  ;;  %v15173_v62 = vld [vmem:[#allocation50_spill] sm:$0xff] }
0x11f0   : > { %v8943_v57 = vpop.eup %8942  ;;  %v5715_v47 = vmul.f32 %v15172_v16, %v5587_v52  ;;  %v1463_v23 = vadd.f32 %v15173_v62, %v1159_v44  ;;  %8221 = vmatprep.subr.mxu1 %v6378_v33  ;;  %v9001_v62 = vld [vmem:[%s9543_s28 + $0x20] sm:$0xff] }
0x11f1   : > { %v5332_v35 = vmul.f32 %v8943_v57, %v5062_v20  ;;  %8212 = vmatprep.subr.mxu0 %v5717_v4 }
0x11f2   : > { %8184 = vmatmul.mubr.f32.vlgmr.msra.gmra.mxu1 %v1453_v13  ;;  %8213 = vmatpush3.xpose.msra.mxu0 %v5717_v4 }
0x11f3   : > { %v5460_v7 = vsub.f32 2.0, %v5332_v35  ;;  %8222 = vmatpush3.msra.mxu1 %v6378_v33 }
0x11f4   : > { %8223 = vmatprep.subr.mxu1 %v6377_v8 }
0x11f5   : > { %v5588_v42 = vmul.f32 %v8943_v57, %v5460_v7  ;;  %8224 = vmatpush3.msra.mxu1 %v6377_v8  ;;  %v8998_v57 = vld [vmem:[%s9543_s28 + $0x8] sm:$0xff]  ;;  %v8999_v7 = vld [vmem:[%s9543_s28 + $0x10] sm:$0xff] }
0x11f6   : > { %8225 = vmatprep.subr.mxu1 %v6376_v51  ;;  %v9002_v8 = vld [vmem:[%s9543_s28 + $0x28] sm:$0xff] }
0x11f7   : > { %v5716_v38 = vmul.f32 %v15171_v46, %v5588_v42  ;;  %8226 = vmatpush3.msra.mxu1 %v6376_v51  ;;  %v9000_v46 = vld [vmem:[%s9543_s28 + $0x18] sm:$0xff] }
0x11f8   : > { %8227 = vmatprep.subr.mxu1 %v6375_v48 }
0x11f9   : > { %8214 = vmatprep.subr.mxu0 %v5716_v38  ;;  %8228 = vmatpush3.msra.mxu1 %v6375_v48 }
0x11fa   : > { %8215 = vmatpush3.xpose.msra.mxu0 %v5716_v38  ;;  %8229 = vmatprep.subr.mxu1 %v6374_v50 }
0x11fb   : > { %8216 = vmatprep.subr.mxu0 %v5715_v47  ;;  %8230 = vmatpush3.msra.mxu1 %v6374_v50 }
0x11fc   : > { %8231 = vmatprep.subr.mxu1 %v6373_v59 }
0x11fd   : > { %8232 = vmatpush3.msra.mxu1 %v6373_v59 }
0x11fe   : > { %8217 = vmatpush3.xpose.msra.mxu0 %v5715_v47  ;;  %8233 = vmatprep.subr.mxu1 %v6372_v39 }
0x11ff   : > { %8234 = vmatpush3.msra.mxu1 %v6372_v39 }
0x1200   : > { %8235 = vmatprep.subr.mxu1 %v6371_v25 }
0x1201   : > { %8219 = vmatmul.mubr.f32.vlgmr.msra.gmra.mxu0 %v1463_v23  ;;  %8236 = vmatpush3.msra.mxu1 %v6371_v25 }
0x1202   : > { %6877 = vmatprep.mubr.f32.mxu0 %v15174_v30  ;;  %8237 = vmatprep.subr.mxu1 %v6370_v22 }
0x1203   : > { %8238 = vmatpush3.msra.mxu1 %v6370_v22 }
0x1204   : > { %8239 = vmatprep.subr.mxu1 %v6369_v41 }
0x1205   : > { %8240 = vmatpush3.msra.mxu1 %v6369_v41 }
0x1206   : > { %8241 = vmatprep.subr.mxu1 %v6368_v60 }
0x1207   : > { %8242 = vmatpush3.msra.mxu1 %v6368_v60  ;;  %v9005_v60 = vld [vmem:[%s9543_s28 + $0x40] sm:$0xff] }
0x1208   : > { %8243 = vmatprep.subr.mxu1 %v6367_v61 }
0x1209   : > { %8244 = vmatpush3.msra.mxu1 %v6367_v61 }
0x120a   : > { %8245 = vmatprep.subr.mxu1 %v6366_v27 }
0x120b   : > { %8246 = vmatpush3.msra.mxu1 %v6366_v27 }
0x120c   : > { %8247 = vmatprep.subr.mxu1 %v6365_v1 }
0x120d   : > { %8248 = vmatpush3.msra.mxu1 %v6365_v1  ;;  %v9006_v1 = vld [vmem:[%s9543_s28 + $0x48] sm:$0xff] }
0x120e   : > { %8249 = vmatprep.subr.mxu1 %v6364_v5 }
0x120f   : > { %8250 = vmatpush3.msra.mxu1 %v6364_v5 }
0x1210   : > { %8251 = vmatprep.subr.mxu1 %v6363_v24 }
0x1211   : > { %8252 = vmatpush3.msra.mxu1 %v6363_v24 }
0x124e   : > { %v8115_v9 = vpop.f32.mrf.mxu1 }
0x1250   : > { %v6097_v32 = vpop.f32.mrf.mxu1 }
0x1251   : > { %6339 = vxpose.xlu0.b32.cont [9/16] %v6097_v32, 128  ;;  %v9003_v32 = vld [vmem:[%s9543_s28 + $0x30] sm:$0xff] }
0x1252   : > { %v8150_v15 = vpop.f32.mrf.mxu0 }
0x1254   : > { %v6172_v0 = vpop.f32.mrf.mxu0 }
0x1255   : > { %6340 = vxpose.xlu0.b32.cont [10/16] %v8115_v9, 128 }
0x1259   : > { %6341 = vxpose.xlu0.b32.cont [11/16] %v6172_v0, 128 }
0x125d   : > { %6342 = vxpose.xlu0.b32.cont [12/16] %v8150_v15, 128  ;;  %v9004_v15 = vld [vmem:[%s9543_s28 + $0x38] sm:$0xff] }
0x12b2   : > { %v8185_v26 = vpop.f32.mrf.mxu1 }
0x12b4   : > { %v6247_v58 = vpop.f32.mrf.mxu1 }
0x12b5   : > { %6343 = vxpose.xlu0.b32.cont [13/16] %v6247_v58, 128 }
0x12b9   : > { %6344 = vxpose.xlu0.b32.cont [14/16] %v8185_v26, 128 }
0x12c1   : > { %v8220_v40 = vpop.f32.mrf.mxu0 }
0x12c3   : > { %v6322_v20 = vpop.f32.mrf.mxu0 }
0x12c4   : > { %6345 = vxpose.xlu0.b32.cont [15/16] %v6322_v20, 128 }
0x12c8   : > { %6346 = vxpose.xlu0.b32.end [16/16] %v8220_v40, 128  ;;  %v9007_v40 = vld [vmem:[%s9543_s28 + $0x50] sm:$0xff] }
0x1308   : > { %v6347_v18 = vpop.trf.xlu0 }
0x1309   : > { %8253 = vmatprep.mubr.f32.mxu1 %v6347_v18 }
0x130c   : > { %v6348_v43 = vpop.trf.xlu0 }
0x130d   : > { %8254 = vmatmul.mubr.f32.vlgmr.msra.gmra.mxu1 %v6348_v43  ;;  %v9008_v43 = vld [vmem:[%s9543_s28 + $0x58] sm:$0xff] }
0x1310   : > { %v6349_v3 = vpop.trf.xlu0 }
0x1311   : > { %8256 = vmatprep.mubr.f32.mxu1 %v6349_v3 }
0x1314   : > { %v6350_v28 = vpop.trf.xlu0 }
0x1315   : > { %8257 = vmatmul.mubr.f32.gmra.mxu1 %v6350_v28 }
0x1318   : > { %v6351_v21 = vpop.trf.xlu0 }
0x1319   : > { %8259 = vmatprep.mubr.f32.mxu1 %v6351_v21 }
0x131c   : > { %v6352_v31 = vpop.trf.xlu0 }
0x131d   : > { %8260 = vmatmul.mubr.f32.gmra.mxu1 %v6352_v31 }
0x1320   : > { %v6353_v34 = vpop.trf.xlu0 }
0x1321   : > { %8262 = vmatprep.mubr.f32.mxu1 %v6353_v34  ;;  %v9009_v34 = vld [vmem:[%s9543_s28 + $0x60] sm:$0xff] }
0x1324   : > { %v6354_v11 = vpop.trf.xlu0 }
0x1325   : > { %8263 = vmatmul.mubr.f32.gmra.mxu1 %v6354_v11 }
0x1328   : > { %v6355_v29 = vpop.trf.xlu0 }
0x1329   : > { %8265 = vmatprep.mubr.f32.mxu1 %v6355_v29 }
0x132c   : > { %v6356_v10 = vpop.trf.xlu0 }
0x132d   : > { %8266 = vmatmul.mubr.f32.gmra.mxu1 %v6356_v10  ;;  %v9010_v10 = vld [vmem:[%s9543_s28 + $0x68] sm:$0xff] }
0x1330   : > { %v6357_v54 = vpop.trf.xlu0 }
0x1331   : > { %8268 = vmatprep.mubr.f32.mxu1 %v6357_v54 }
0x1334   : > { %v6358_v63 = vpop.trf.xlu0 }
0x1335   : > { %8269 = vmatmul.mubr.f32.gmra.mxu1 %v6358_v63 }
0x1338   : > { %v6359_v37 = vpop.trf.xlu0 }
0x1339   : > { %8271 = vmatprep.mubr.f32.mxu1 %v6359_v37 }
0x133c   : > { %v6360_v6 = vpop.trf.xlu0 }
0x133d   : > { %8272 = vmatmul.mubr.f32.gmra.mxu1 %v6360_v6 }
0x1340   : > { %v6361_v49 = vpop.trf.xlu0 }
0x1341   : > { %8274 = vmatprep.mubr.f32.mxu1 %v6361_v49  ;;  %v9011_v49 = vld [vmem:[%s9543_s28 + $0x78] sm:$0xff] }
0x1344   : > { %v6362_v14 = vpop.trf.xlu0 }
0x1345   : > { %8275 = vmatmul.mubr.f32.gmra.mxu1 %v6362_v14 }
0x13cd   : > { %v8255_v53 = vpop.f32.mrf.mxu1 }
0x13ce   : > { %v6458_v2 = vadd.f32 %v8255_v53, %v13623_v19  ;;  %v9012_v53 = vld [vmem:[%s9543_s28 + $0x70] sm:$0xff]  ;;  %s15177_s28 = sld [smem:[#allocation223_spill]] }
0x13cf   : > { %v6452_v45 = vpop.f32.mrf.mxu1 }
0x13d0   : > { %v6453_v36 = vadd.f32 %v13623_v19, %v6452_v45  ;;  %v13632_v17 = vadd.f32 %v8998_v57, %v6458_v2  ;;  %v6799_v2 = vld [vmem:[#allocation10 + $0xf0] sm:$0xff]  ;;  %v6796_v57 = vld [vmem:[#allocation10 + $0xd8] sm:$0xff] }
0x13d2   : > { %v13628_v56 = vadd.f32 %v8997_v55, %v6453_v36  ;;  %v6800_v36 = vld [vmem:[#allocation10 + $0xf8] sm:$0xff]  ;;  %v6798_v55 = vld [vmem:[#allocation10 + $0xe8] sm:$0xff] }
0x13d3   : > { %6813 = vmatprep.subr.mxu0 %v6800_v36 }
0x13d4   : > { %6549 = vadd.xlane.f32.xlu1 %v13628_v56  ;;  %6814 = vmatpush1.msra.mxu0 %v6799_v2  ;;  %s13957_s25 = scalar_lea.hbm %s15177_s28, %s7516_s17 }
0x13d5   : > { %v8258_v4 = vpop.f32.mrf.mxu1  ;;  %6815 = vmatprep.subr.mxu0 %v6798_v55  ;;  %v6781_v55 = vld [vmem:[#allocation10 + $0x60] sm:$0xff] }
0x13d6   : > { %v6468_v35 = vadd.f32 %v8258_v4, %v13623_v19  ;;  %v6797_v4 = vld [vmem:[#allocation10 + $0xe0] sm:$0xff] }
0x13d7   : > { %v6462_v13 = vpop.f32.mrf.mxu1  ;;  %6816 = vmatpush1.msra.mxu0 %v6797_v4  ;;  %v6780_v4 = vld [vmem:[#allocation10 + $0x58] sm:$0xff] }
0x13d8   : > { %v6463_v12 = vadd.f32 %v13623_v19, %v6462_v13  ;;  %6551 = vadd.xlane.f32.xlu1 %v13632_v17  ;;  %v13642_v38 = vadd.f32 %v9000_v46, %v6468_v35  ;;  %v6794_v13 = vld [vmem:[#allocation10 + $0xc8] sm:$0xff]  ;;  %6817 = vmatprep.subr.mxu0 %v6796_v57 }
0x13da   : > { %v13638_v52 = vadd.f32 %v8999_v7, %v6463_v12  ;;  %v6793_v12 = vld [vmem:[#allocation10 + $0xc0] sm:$0xff] }
0x13dc   : > { %6553 = vadd.xlane.f32.xlu1 %v13638_v52 }
0x13dd   : > { %v8261_v42 = vpop.f32.mrf.mxu1 }
0x13de   : > { %v6478_v44 = vadd.f32 %v8261_v42, %v13623_v19 }
0x13df   : > { %v6472_v16 = vpop.f32.mrf.mxu1 }
0x13e0   : > { %v6473_v47 = vadd.f32 %v13623_v19, %v6472_v16  ;;  %6555 = vadd.xlane.f32.xlu1 %v13642_v38  ;;  %v13652_v51 = vadd.f32 %v9002_v8, %v6478_v44 }
0x13e2   : > { %v13648_v23 = vadd.f32 %v9001_v62, %v6473_v47 }
0x13e4   : > { %6557 = vadd.xlane.f32.xlu1 %v13648_v23 }
0x13e5   : > { %v8264_v33 = vpop.f32.mrf.mxu1 }
0x13e6   : > { %v6488_v50 = vadd.f32 %v8264_v33, %v13623_v19 }
0x13e7   : > { %v6482_v48 = vpop.f32.mrf.mxu1 }
0x13e8   : > { %v6483_v9 = vadd.f32 %v13623_v19, %v6482_v48  ;;  %6559 = vadd.xlane.f32.xlu1 %v13652_v51  ;;  %v13662_v25 = vadd.f32 %v9004_v15, %v6488_v50 }
0x13ea   : > { %v13658_v59 = vadd.f32 %v9003_v32, %v6483_v9 }
0x13ec   : > { %6561 = vadd.xlane.f32.xlu1 %v13658_v59 }
0x13ed   : > { %v8267_v39 = vpop.f32.mrf.mxu1 }
0x13ee   : > { %v6498_v41 = vadd.f32 %v8267_v39, %v13623_v19 }
0x13ef   : > { %v6492_v22 = vpop.f32.mrf.mxu1 }
0x13f0   : > { %v6493_v0 = vadd.f32 %v13623_v19, %v6492_v22  ;;  %6563 = vadd.xlane.f32.xlu1 %v13662_v25  ;;  %v13672_v5 = vadd.f32 %v9006_v1, %v6498_v41  ;;  %v6792_v41 = vld [vmem:[#allocation10 + $0xb8] sm:$0xff] }
0x13f2   : > { %v13668_v61 = vadd.f32 %v9005_v60, %v6493_v0 }
0x13f4   : > { %6565 = vadd.xlane.f32.xlu1 %v13668_v61 }
0x13f5   : > { %v8270_v27 = vpop.f32.mrf.mxu1 }
0x13f6   : > { %v6508_v58 = vadd.f32 %v8270_v27, %v13623_v19  ;;  %v6791_v27 = vld [vmem:[#allocation10 + $0xb0] sm:$0xff] }
0x13f7   : > { %v6502_v24 = vpop.f32.mrf.mxu1 }
0x13f8   : > { %v6503_v26 = vadd.f32 %v13623_v19, %v6502_v24  ;;  %6567 = vadd.xlane.f32.xlu1 %v13672_v5  ;;  %v13682_v3 = vadd.f32 %v9008_v43, %v6508_v58  ;;  %v6790_v24 = vld [vmem:[#allocation10 + $0xa8] sm:$0xff] }
0x13fa   : > { %v13678_v20 = vadd.f32 %v9007_v40, %v6503_v26  ;;  %v6789_v40 = vld [vmem:[#allocation10 + $0xa0] sm:$0xff] }
0x13fc   : > { %6569 = vadd.xlane.f32.xlu1 %v13678_v20 }
0x13fd   : > { %v8273_v18 = vpop.f32.mrf.mxu1 }
0x13fe   : > { %v6518_v31 = vadd.f32 %v8273_v18, %v13623_v19  ;;  %v6788_v18 = vld [vmem:[#allocation10 + $0x98] sm:$0xff] }
0x13ff   : > { %v6512_v28 = vpop.f32.mrf.mxu1 }
0x1400   : > { %v6513_v21 = vadd.f32 %v13623_v19, %v6512_v28  ;;  %6571 = vadd.xlane.f32.xlu1 %v13682_v3  ;;  %v13692_v54 = vadd.f32 %v9010_v10, %v6518_v31  ;;  %v6787_v28 = vld [vmem:[#allocation10 + $0x90] sm:$0xff]  ;;  %v6786_v31 = vld [vmem:[#allocation10 + $0x88] sm:$0xff]  ;;  %v6785_v10 = vld [vmem:[#allocation10 + $0x80] sm:$0xff] }
0x1402   : > { %v13688_v11 = vadd.f32 %v9009_v34, %v6513_v21 }
0x1404   : > { %6573 = vadd.xlane.f32.xlu1 %v13688_v11 }
0x1405   : > { %v8276_v29 = vpop.f32.mrf.mxu1 }
0x1406   : > { %v6528_v63 = vadd.f32 %v8276_v29, %v13623_v19 }
0x1407   : > { %v6522_v37 = vpop.f32.mrf.mxu1 }
0x1408   : > { %v6523_v6 = vadd.f32 %v13623_v19, %v6522_v37  ;;  %6575 = vadd.xlane.f32.xlu1 %v13692_v54  ;;  %v13698_v14 = vadd.f32 %v9011_v49, %v6528_v63  ;;  %v6795_v19 = vld [vmem:[#allocation10 + $0xd0] sm:$0xff]  ;;  %v6784_v63 = vld [vmem:[#allocation10 + $0x78] sm:$0xff] }
0x1409   : > { %6818 = vmatpush1.msra.mxu0 %v6795_v19  ;;  %v6779_v19 = vld [vmem:[#allocation10 + $0x50] sm:$0xff] }
0x140a   : > { %v13701_v45 = vadd.f32 %v9012_v53, %v6523_v6  ;;  %6819 = vmatprep.subr.mxu0 %v6794_v13  ;;  %v6783_v6 = vld [vmem:[#allocation10 + $0x70] sm:$0xff]  ;;  %v6782_v53 = vld [vmem:[#allocation10 + $0x68] sm:$0xff] }
0x140b   : > { %6820 = vmatpush1.msra.mxu0 %v6793_v12  ;;  %v6778_v12 = vld [vmem:[#allocation10 + $0x48] sm:$0xff] }
0x140c   : > { %6579 = vadd.xlane.f32.xlu1 %v13698_v14  ;;  %6577 = vadd.xlane.f32.xlu0 %v13701_v45 }
0x140d   : > { %6821 = vmatprep.subr.mxu0 %v6792_v41 }
0x140e   : > { %6822 = vmatpush1.msra.mxu0 %v6791_v27  ;;  %v6770_v27 = vld [vmem:[#allocation10 + $0x8] sm:$0xff] }
0x140f   : > { %6823 = vmatprep.subr.mxu0 %v6790_v24 }
0x1410   : > { %6824 = vmatpush1.msra.mxu0 %v6789_v40 }
0x1411   : > { %6825 = vmatprep.subr.mxu0 %v6788_v18 }
0x1412   : > { %6826 = vmatpush1.msra.mxu0 %v6787_v28 }
0x1413   : > { %6827 = vmatprep.subr.mxu0 %v6786_v31 }
0x1414   : > { %6828 = vmatpush1.msra.mxu0 %v6785_v10 }
0x1415   : > { %6829 = vmatprep.subr.mxu0 %v6784_v63 }
0x1416   : > { %6830 = vmatpush1.msra.mxu0 %v6783_v6 }
0x1417   : > { %6831 = vmatprep.subr.mxu0 %v6782_v53 }
0x1418   : > { %6832 = vmatpush1.msra.mxu0 %v6781_v55 }
0x1419   : > { %6833 = vmatprep.subr.mxu0 %v6780_v4 }
0x141a   : > { %6834 = vmatpush1.msra.mxu0 %v6779_v19 }
0x141b   : > { %6835 = vmatprep.subr.mxu0 %v6778_v12 }
0x145d   : > { %v6550_v35 = vpop.xlane.xlu1 %6549 }
0x145e   : > { %v6581_v7 = vmul.f32 0.0078125, %v6550_v35 }
0x1460   : > { %v13706_v42 = vsub.f32 %v13628_v56, %v6581_v7 }
0x1461   : > { %v6552_v46 = vpop.xlane.xlu1 %6551 }
0x1462   : > { %v6582_v16 = vmul.f32 0.0078125, %v6552_v46  ;;  %v6613_v47 = vmul.f32 %v13706_v42, %v13706_v42  ;;  %v6777_v46 = vld [vmem:[#allocation10 + $0x40] sm:$0xff] }
0x1463   : > { %6836 = vmatpush1.msra.mxu0 %v6777_v46  ;;  %v7037_v46 = vld [vmem:[#allocation11 + $0xf8] sm:$0xff] }
0x1464   : > { %v13711_v44 = vsub.f32 %v13632_v17, %v6582_v16  ;;  %6629 = vadd.xlane.f32.xlu1 %v6613_v47  ;;  %v6776_v16 = vld [vmem:[#allocation10 + $0x38] sm:$0xff]  ;;  %7757 = vmatprep.subr.mxu1 %v7037_v46 }
0x1465   : > { %v6554_v62 = vpop.xlane.xlu1 %6553  ;;  %6837 = vmatprep.subr.mxu0 %v6776_v16  ;;  %v7021_v16 = vld [vmem:[#allocation11 + $0x78] sm:$0xff] }
0x1466   : > { %v6583_v33 = vmul.f32 0.0078125, %v6554_v62  ;;  %v6614_v8 = vmul.f32 %v13711_v44, %v13711_v44  ;;  %v6775_v62 = vld [vmem:[#allocation10 + $0x30] sm:$0xff]  ;;  %7758 = vmatpush3.msra.mxu1 %v7021_v16 }
0x1467   : > { %6838 = vmatpush1.msra.mxu0 %v6775_v62  ;;  %v7036_v62 = vld [vmem:[#allocation11 + $0xf0] sm:$0xff] }
0x1468   : > { %v13716_v48 = vsub.f32 %v13638_v52, %v6583_v33  ;;  %6631 = vadd.xlane.f32.xlu1 %v6614_v8  ;;  %v6774_v8 = vld [vmem:[#allocation10 + $0x28] sm:$0xff]  ;;  %7759 = vmatprep.subr.mxu1 %v7036_v62 }
0x1469   : > { %v6556_v9 = vpop.xlane.xlu1 %6555  ;;  %6839 = vmatprep.subr.mxu0 %v6774_v8  ;;  %v7035_v8 = vld [vmem:[#allocation11 + $0xe8] sm:$0xff] }
0x146a   : > { %v6584_v50 = vmul.f32 0.0078125, %v6556_v9  ;;  %v6615_v32 = vmul.f32 %v13716_v48, %v13716_v48 }
0x146c   : > { %v13721_v39 = vsub.f32 %v13642_v38, %v6584_v50  ;;  %6633 = vadd.xlane.f32.xlu1 %v6615_v32  ;;  %v6773_v32 = vld [vmem:[#allocation10 + $0x20] sm:$0xff] }
0x146d   : > { %v6558_v15 = vpop.xlane.xlu1 %6557  ;;  %6840 = vmatpush1.msra.mxu0 %v6773_v32  ;;  %v7018_v32 = vld [vmem:[#allocation11 + $0x60] sm:$0xff] }
0x146e   : > { %v6585_v22 = vmul.f32 0.0078125, %v6558_v15  ;;  %v6616_v0 = vmul.f32 %v13721_v39, %v13721_v39  ;;  %v6772_v15 = vld [vmem:[#allocation10 + $0x18] sm:$0xff] }
0x146f   : > { %6841 = vmatprep.subr.mxu0 %v6772_v15  ;;  %v7033_v15 = vld [vmem:[#allocation11 + $0xd8] sm:$0xff] }
0x1470   : > { %v13726_v60 = vsub.f32 %v13648_v23, %v6585_v22  ;;  %6635 = vadd.xlane.f32.xlu1 %v6616_v0  ;;  %v6771_v0 = vld [vmem:[#allocation10 + $0x10] sm:$0xff] }
0x1471   : > { %v6560_v1 = vpop.xlane.xlu1 %6559  ;;  %6842 = vmatpush1.msra.mxu0 %v6771_v0  ;;  %v7017_v0 = vld [vmem:[#allocation11 + $0x58] sm:$0xff] }
0x1472   : > { %v6586_v26 = vmul.f32 0.0078125, %v6560_v1  ;;  %v6617_v58 = vmul.f32 %v13726_v60, %v13726_v60  ;;  %6843 = vmatprep.subr.mxu0 %v6770_v27  ;;  %v7016_v27 = vld [vmem:[#allocation11 + $0x50] sm:$0xff] }
0x1474   : > { %v13731_v43 = vsub.f32 %v13652_v51, %v6586_v26  ;;  %6637 = vadd.xlane.f32.xlu1 %v6617_v58  ;;  %v6769_v26 = vld [vmem:[#allocation10] sm:$0xff] }
0x1475   : > { %v6562_v21 = vpop.xlane.xlu1 %6561  ;;  %6844 = vmatpush1.msra.mxu0 %v6769_v26  ;;  %v7030_v26 = vld [vmem:[#allocation11 + $0xc0] sm:$0xff] }
0x1476   : > { %v6587_v34 = vmul.f32 0.0078125, %v6562_v21  ;;  %v6618_v29 = vmul.f32 %v13731_v43, %v13731_v43 }
0x1478   : > { %v13736_v37 = vsub.f32 %v13658_v59, %v6587_v34  ;;  %6639 = vadd.xlane.f32.xlu1 %v6618_v29 }
0x1479   : > { %v6564_v49 = vpop.xlane.xlu1 %6563 }
0x147a   : > { %v6588_v36 = vmul.f32 0.0078125, %v6564_v49  ;;  %v6619_v2 = vmul.f32 %v13736_v37, %v13736_v37 }
0x147c   : > { %v13741_v57 = vsub.f32 %v13662_v25, %v6588_v36  ;;  %6641 = vadd.xlane.f32.xlu1 %v6619_v2 }
0x147d   : > { %v6566_v13 = vpop.xlane.xlu1 %6565 }
0x147e   : > { %v6589_v35 = vmul.f32 0.0078125, %v6566_v13  ;;  %v6620_v7 = vmul.f32 %v13741_v57, %v13741_v57 }
0x1480   : > { %v13746_v47 = vsub.f32 %v13668_v61, %v6589_v35  ;;  %6643 = vadd.xlane.f32.xlu1 %v6620_v7 }
0x1481   : > { %v6568_v33 = vpop.xlane.xlu1 %6567 }
0x1482   : > { %v6590_v9 = vmul.f32 0.0078125, %v6568_v33  ;;  %v6621_v50 = vmul.f32 %v13746_v47, %v13746_v47  ;;  %v7020_v33 = vld [vmem:[#allocation11 + $0x70] sm:$0xff] }
0x1483   : > { %7760 = vmatpush3.msra.mxu1 %v7020_v33 }
0x1484   : > { %v13751_v22 = vsub.f32 %v13672_v5, %v6590_v9  ;;  %6645 = vadd.xlane.f32.xlu1 %v6621_v50  ;;  %v7019_v9 = vld [vmem:[#allocation11 + $0x68] sm:$0xff]  ;;  %v7034_v50 = vld [vmem:[#allocation11 + $0xe0] sm:$0xff]  ;;  %7761 = vmatprep.subr.mxu1 %v7035_v8 }
0x1485   : > { %v6570_v41 = vpop.xlane.xlu1 %6569  ;;  %7762 = vmatpush3.msra.mxu1 %v7019_v9 }
0x1486   : > { %v6591_v1 = vmul.f32 0.0078125, %v6570_v41  ;;  %v6622_v24 = vmul.f32 %v13751_v22, %v13751_v22  ;;  %7763 = vmatprep.subr.mxu1 %v7034_v50  ;;  %v7032_v41 = vld [vmem:[#allocation11 + $0xd0] sm:$0xff] }
0x1487   : > { %7764 = vmatpush3.msra.mxu1 %v7018_v32 }
0x1488   : > { %v13756_v58 = vsub.f32 %v13678_v20, %v6591_v1  ;;  %6647 = vadd.xlane.f32.xlu1 %v6622_v24  ;;  %7765 = vmatprep.subr.mxu1 %v7033_v15  ;;  %v7031_v1 = vld [vmem:[#allocation11 + $0xc8] sm:$0xff]  ;;  %v13788_v15 = vld [vmem:[%s14013_s9] ss:$0 sm:$0xff] }
0x1489   : > { %v6572_v40 = vpop.xlane.xlu1 %6571  ;;  %7766 = vmatpush3.msra.mxu1 %v7017_v0  ;;  %v7015_v24 = vld [vmem:[#allocation11 + $0x48] sm:$0xff] }
0x148a   : > { %v6592_v18 = vmul.f32 0.0078125, %v6572_v40  ;;  %v6623_v28 = vmul.f32 %v13756_v58, %v13756_v58  ;;  %7767 = vmatprep.subr.mxu1 %v7032_v41  ;;  %v7014_v40 = vld [vmem:[#allocation11 + $0x40] sm:$0xff] }
0x148b   : > { %7768 = vmatpush3.msra.mxu1 %v7016_v27 }
0x148c   : > { %v13761_v21 = vsub.f32 %v13682_v3, %v6592_v18  ;;  %6649 = vadd.xlane.f32.xlu1 %v6623_v28  ;;  %7769 = vmatprep.subr.mxu1 %v7031_v1  ;;  %v7029_v18 = vld [vmem:[#allocation11 + $0xb8] sm:$0xff]  ;;  %v13794_v1 = vld [vmem:[%s14014_s10] ss:$0 sm:$0xff] }
0x148d   : > { %v6574_v31 = vpop.xlane.xlu1 %6573  ;;  %7770 = vmatpush3.msra.mxu1 %v7015_v24  ;;  %v7013_v28 = vld [vmem:[#allocation11 + $0x38] sm:$0xff] }
0x148e   : > { %v6593_v34 = vmul.f32 0.0078125, %v6574_v31  ;;  %v6624_v29 = vmul.f32 %v13761_v21, %v13761_v21  ;;  %7771 = vmatprep.subr.mxu1 %v7030_v26  ;;  %v7028_v31 = vld [vmem:[#allocation11 + $0xb0] sm:$0xff] }
0x148f   : > { %7772 = vmatpush3.msra.mxu1 %v7014_v40 }
0x1490   : > { %v13766_v10 = vsub.f32 %v13688_v11, %v6593_v34  ;;  %6651 = vadd.xlane.f32.xlu0 %v6624_v29  ;;  %7773 = vmatprep.subr.mxu1 %v7029_v18  ;;  %v7012_v34 = vld [vmem:[#allocation11 + $0x30] sm:$0xff]  ;;  %v7027_v29 = vld [vmem:[#allocation11 + $0xa8] sm:$0xff] }
0x1491   : > { %v6576_v63 = vpop.xlane.xlu1 %6575  ;;  %7774 = vmatpush3.msra.mxu1 %v7013_v28 }
0x1492   : > { %v6594_v6 = vmul.f32 0.0078125, %v6576_v63  ;;  %v6625_v49 = vmul.f32 %v13766_v10, %v13766_v10  ;;  %7775 = vmatprep.subr.mxu1 %v7028_v31  ;;  %v7011_v63 = vld [vmem:[#allocation11 + $0x28] sm:$0xff] }
0x1493   : > { %7776 = vmatpush3.msra.mxu1 %v7012_v34 }
0x1494   : > { %v13771_v53 = vsub.f32 %v13692_v54, %v6594_v6  ;;  %6653 = vadd.xlane.f32.xlu1 %v6625_v49  ;;  %v7026_v6 = vld [vmem:[#allocation11 + $0xa0] sm:$0xff]  ;;  %7777 = vmatprep.subr.mxu1 %v7027_v29 }
0x1495   : > { %v6580_v36 = vpop.xlane.xlu1 %6579  ;;  %v6578_v2 = vpop.xlane.xlu0 %6577  ;;  %v7010_v49 = vld [vmem:[#allocation11 + $0x20] sm:$0xff]  ;;  %7778 = vmatpush3.msra.mxu1 %v7011_v63 }
0x1496   : > { %v6596_v55 = vmul.f32 0.0078125, %v6580_v36  ;;  %v6595_v4 = vmul.f32 0.0078125, %v6578_v2  ;;  %v6626_v19 = vmul.f32 %v13771_v53, %v13771_v53  ;;  %7779 = vmatprep.subr.mxu1 %v7026_v6 }
0x1497   : > { %7780 = vmatpush3.msra.mxu1 %v7010_v49 }
0x1498   : > { %v13776_v13 = vsub.f32 %v13698_v14, %v6596_v55  ;;  %v13779_v12 = vsub.f32 %v13701_v45, %v6595_v4  ;;  %6655 = vadd.xlane.f32.xlu0 %v6626_v19 }
0x149a   : > { %v6628_v35 = vmul.f32 %v13776_v13, %v13776_v13  ;;  %v6627_v7 = vmul.f32 %v13779_v12, %v13779_v12 }
0x149c   : > { %6659 = vadd.xlane.f32.xlu0 %v6628_v35  ;;  %6657 = vadd.xlane.f32.xlu1 %v6627_v7 }
0x14ed   : > { %v6630_v36 = vpop.xlane.xlu1 %6629 }
0x14ee   : > { %v6661_v2 = vmul.f32 0.0078125, %v6630_v36 }
0x14f0   : > { %v6677_v55 = vadd.f32 1e-06, %v6661_v2 }
0x14f1   : > { %v6632_v4 = vpop.xlane.xlu1 %6631 }
0x14f2   : > { %8944 = vrsqrt.f32 %v6677_v55  ;;  %v6662_v19 = vmul.f32 0.0078125, %v6632_v4 }
0x14f4   : > { %v6678_v35 = vadd.f32 1e-06, %v6662_v19 }
0x14f5   : > { %v6634_v7 = vpop.xlane.xlu1 %6633 }
0x14f6   : > { %8946 = vrsqrt.f32 %v6678_v35  ;;  %v6663_v46 = vmul.f32 0.0078125, %v6634_v7 }
0x14f8   : > { %v6679_v16 = vadd.f32 1e-06, %v6663_v46 }
0x14f9   : > { %v6636_v62 = vpop.xlane.xlu1 %6635 }
0x14fa   : > { %8948 = vrsqrt.f32 %v6679_v16  ;;  %v6664_v33 = vmul.f32 0.0078125, %v6636_v62 }
0x14fc   : > { %v6680_v8 = vadd.f32 1e-06, %v6664_v33 }
0x14fd   : > { %v6638_v9 = vpop.xlane.xlu1 %6637 }
0x14fe   : > { %8950 = vrsqrt.f32 %v6680_v8  ;;  %v6665_v50 = vmul.f32 0.0078125, %v6638_v9 }
0x14ff   : > { %v8945_v32 = vpop.eup %8944 }
0x1500   : > { %v6709_v0 = vmul.f32 %v8945_v32, %v13706_v42  ;;  %v6681_v41 = vadd.f32 1e-06, %v6665_v50 }
0x1501   : > { %v6640_v27 = vpop.xlane.xlu1 %6639 }
0x1502   : > { %8952 = vrsqrt.f32 %v6681_v41  ;;  %v6666_v24 = vmul.f32 0.0078125, %v6640_v27  ;;  %v6731_v26 = vmul.f32 %v13788_v15, %v6709_v0 }
0x1503   : > { %v8947_v40 = vpop.eup %8946 }
0x1504   : > { %v6682_v18 = vadd.f32 1e-06, %v6666_v24  ;;  %v6753_v28 = vadd.f32 %v13794_v1, %v6731_v26  ;;  %v6710_v31 = vmul.f32 %v8947_v40, %v13711_v44 }
0x1505   : > { %v6642_v34 = vpop.xlane.xlu1 %6641 }
0x1506   : > { %8954 = vrsqrt.f32 %v6682_v18  ;;  %v6667_v42 = vmul.f32 0.0078125, %v6642_v34  ;;  %6878 = vmatmul.mubr.f32.vlgmr.msra.gmra.mxu0 %v6753_v28  ;;  %v6732_v29 = vmul.f32 %v13788_v15, %v6710_v31 }
0x1507   : > { %v8949_v63 = vpop.eup %8948  ;;  %6883 = vmatprep.mubr.f32.mxu0 %v15174_v30 }
0x1508   : > { %v6683_v6 = vadd.f32 1e-06, %v6667_v42  ;;  %v6754_v49 = vadd.f32 %v13794_v1, %v6732_v29  ;;  %v6711_v36 = vmul.f32 %v8949_v63, %v13716_v48 }
0x1509   : > { %v6644_v2 = vpop.xlane.xlu1 %6643 }
0x150a   : > { %8956 = vrsqrt.f32 %v6683_v6  ;;  %v6668_v55 = vmul.f32 0.0078125, %v6644_v2  ;;  %6884 = vmatmul.mubr.f32.gmra.mxu0 %v6754_v49  ;;  %v6733_v44 = vmul.f32 %v13788_v15, %v6711_v36 }
0x150b   : > { %v8951_v4 = vpop.eup %8950  ;;  %6889 = vmatprep.mubr.f32.mxu0 %v15174_v30 }
0x150c   : > { %v6684_v19 = vadd.f32 1e-06, %v6668_v55  ;;  %v6755_v35 = vadd.f32 %v13794_v1, %v6733_v44  ;;  %v6712_v7 = vmul.f32 %v8951_v4, %v13721_v39 }
0x150d   : > { %v6646_v46 = vpop.xlane.xlu1 %6645 }
0x150e   : > { %8958 = vrsqrt.f32 %v6684_v19  ;;  %v6669_v16 = vmul.f32 0.0078125, %v6646_v46  ;;  %6890 = vmatmul.mubr.f32.gmra.mxu0 %v6755_v35  ;;  %v6734_v48 = vmul.f32 %v13788_v15, %v6712_v7 }
0x150f   : > { %v8953_v62 = vpop.eup %8952  ;;  %6895 = vmatprep.mubr.f32.mxu0 %v15174_v30 }
0x1510   : > { %v6685_v33 = vadd.f32 1e-06, %v6669_v16  ;;  %v6756_v8 = vadd.f32 %v13794_v1, %v6734_v48  ;;  %v6713_v9 = vmul.f32 %v8953_v62, %v13726_v60 }
0x1511   : > { %v6648_v50 = vpop.xlane.xlu1 %6647 }
0x1512   : > { %8960 = vrsqrt.f32 %v6685_v33  ;;  %v6670_v32 = vmul.f32 0.0078125, %v6648_v50  ;;  %6896 = vmatmul.mubr.f32.gmra.mxu0 %v6756_v8  ;;  %v6735_v39 = vmul.f32 %v13788_v15, %v6713_v9 }
0x1513   : > { %v8955_v0 = vpop.eup %8954  ;;  %6901 = vmatprep.mubr.f32.mxu0 %v15174_v30 }
0x1514   : > { %v6686_v41 = vadd.f32 1e-06, %v6670_v32  ;;  %v6757_v27 = vadd.f32 %v13794_v1, %v6735_v39  ;;  %v6714_v24 = vmul.f32 %v8955_v0, %v13731_v43 }
0x1515   : > { %v6650_v26 = vpop.xlane.xlu1 %6649 }
0x1516   : > { %8962 = vrsqrt.f32 %v6686_v41  ;;  %v6671_v40 = vmul.f32 0.0078125, %v6650_v26  ;;  %6902 = vmatmul.mubr.f32.gmra.mxu0 %v6757_v27  ;;  %v6736_v60 = vmul.f32 %v13788_v15, %v6714_v24 }
0x1517   : > { %v8957_v18 = vpop.eup %8956  ;;  %6907 = vmatprep.mubr.f32.mxu0 %v15174_v30 }
0x1518   : > { %v6687_v28 = vadd.f32 1e-06, %v6671_v40  ;;  %v6758_v31 = vadd.f32 %v13794_v1, %v6736_v60  ;;  %v6715_v34 = vmul.f32 %v8957_v18, %v13736_v37 }
0x1519   : > { %v6652_v42 = vpop.xlane.xlu0 %6651 }
0x151a   : > { %8964 = vrsqrt.f32 %v6687_v28  ;;  %v6672_v29 = vmul.f32 0.0078125, %v6652_v42  ;;  %6908 = vmatmul.mubr.f32.gmra.mxu0 %v6758_v31  ;;  %v6737_v43 = vmul.f32 %v13788_v15, %v6715_v34 }
0x151b   : > { %v8959_v63 = vpop.eup %8958  ;;  %6913 = vmatprep.mubr.f32.mxu0 %v15174_v30 }
0x151c   : > { %v6688_v6 = vadd.f32 1e-06, %v6672_v29  ;;  %v6759_v49 = vadd.f32 %v13794_v1, %v6737_v43  ;;  %v6716_v36 = vmul.f32 %v8959_v63, %v13741_v57 }
0x151d   : > { %v6654_v2 = vpop.xlane.xlu1 %6653 }
0x151e   : > { %8966 = vrsqrt.f32 %v6688_v6  ;;  %v6673_v55 = vmul.f32 0.0078125, %v6654_v2  ;;  %6914 = vmatmul.mubr.f32.gmra.mxu0 %v6759_v49  ;;  %v6738_v37 = vmul.f32 %v13788_v15, %v6716_v36 }
0x151f   : > { %v8961_v44 = vpop.eup %8960  ;;  %6919 = vmatprep.mubr.f32.mxu0 %v15174_v30 }
0x1520   : > { %v6689_v4 = vadd.f32 1e-06, %v6673_v55  ;;  %v6760_v19 = vadd.f32 %v13794_v1, %v6738_v37  ;;  %v6717_v35 = vmul.f32 %v8961_v44, %v13746_v47  ;;  %v7025_v44 = vld [vmem:[#allocation11 + $0x98] sm:$0xff] }
0x1521   : > { %v6656_v7 = vpop.xlane.xlu0 %6655  ;;  %7781 = vmatprep.subr.mxu1 %v7025_v44 }
0x1522   : > { %8968 = vrsqrt.f32 %v6689_v4  ;;  %v6674_v46 = vmul.f32 0.0078125, %v6656_v7  ;;  %6920 = vmatmul.mubr.f32.gmra.mxu0 %v6760_v19  ;;  %v6739_v57 = vmul.f32 %v13788_v15, %v6717_v35  ;;  %v7008_v4 = vld [vmem:[#allocation11 + $0x10] sm:$0xff]  ;;  %v7023_v19 = vld [vmem:[#allocation11 + $0x88] sm:$0xff]  ;;  %v7022_v7 = vld [vmem:[#allocation11 + $0x80] sm:$0xff] }
0x1523   : > { %v8963_v16 = vpop.eup %8962  ;;  %6925 = vmatprep.mubr.f32.mxu0 %v15174_v30  ;;  %v7007_v35 = vld [vmem:[#allocation11 + $0x8] sm:$0xff] }
0x1524   : > { %v6690_v48 = vadd.f32 1e-06, %v6674_v46  ;;  %v6761_v62 = vadd.f32 %v13794_v1, %v6739_v57  ;;  %v6718_v33 = vmul.f32 %v8963_v16, %v13751_v22  ;;  %v6801_v57 = vld [vmem:[%s14016_s12] sm:$0x3] }
0x1525   : > { %v6658_v8 = vpop.xlane.xlu1 %6657  ;;  %v6660_v9 = vpop.xlane.xlu0 %6659 }
0x1526   : > { %8970 = vrsqrt.f32 %v6690_v48  ;;  %v6675_v50 = vmul.f32 0.0078125, %v6658_v8  ;;  %v6676_v32 = vmul.f32 0.0078125, %v6660_v9  ;;  %6926 = vmatmul.mubr.f32.gmra.mxu0 %v6761_v62  ;;  %v6740_v47 = vmul.f32 %v13788_v15, %v6718_v33 }
0x1527   : > { %v8965_v39 = vpop.eup %8964  ;;  %6931 = vmatprep.mubr.f32.mxu0 %v15174_v30 }
0x1528   : > { %v6691_v0 = vadd.f32 1e-06, %v6675_v50  ;;  %v6692_v41 = vadd.f32 1e-06, %v6676_v32  ;;  %v6762_v27 = vadd.f32 %v13794_v1, %v6740_v47  ;;  %v6719_v24 = vmul.f32 %v8965_v39, %v13756_v58 }
0x152a   : > { %8972 = vrsqrt.f32 %v6691_v0  ;;  %6932 = vmatmul.mubr.f32.gmra.mxu0 %v6762_v27  ;;  %v6741_v22 = vmul.f32 %v13788_v15, %v6719_v24 }
0x152b   : > { %v8967_v26 = vpop.eup %8966  ;;  %8974 = vrsqrt.f32 %v6692_v41  ;;  %6937 = vmatprep.mubr.f32.mxu0 %v15174_v30 }
0x152c   : > { %v6763_v40 = vadd.f32 %v13794_v1, %v6741_v22  ;;  %v6720_v60 = vmul.f32 %v8967_v26, %v13761_v21 }
0x152e   : > { %6938 = vmatmul.mubr.f32.gmra.mxu0 %v6763_v40  ;;  %v6742_v18 = vmul.f32 %v13788_v15, %v6720_v60 }
0x152f   : > { %v8969_v28 = vpop.eup %8968  ;;  %6943 = vmatprep.mubr.f32.mxu0 %v15174_v30 }
0x1530   : > { %v6764_v58 = vadd.f32 %v13794_v1, %v6742_v18  ;;  %v6721_v31 = vmul.f32 %v8969_v28, %v13766_v10 }
0x1532   : > { %6944 = vmatmul.mubr.f32.gmra.mxu0 %v6764_v58  ;;  %v6743_v34 = vmul.f32 %v13788_v15, %v6721_v31 }
0x1533   : > { %v8971_v42 = vpop.eup %8970  ;;  %6949 = vmatprep.mubr.f32.mxu0 %v15174_v30 }
0x1534   : > { %v6765_v29 = vadd.f32 %v13794_v1, %v6743_v34  ;;  %v6722_v21 = vmul.f32 %v8971_v42, %v13771_v53 }
0x1536   : > { %6950 = vmatmul.mubr.f32.gmra.mxu0 %v6765_v29  ;;  %v6744_v43 = vmul.f32 %v13788_v15, %v6722_v21 }
0x1537   : > { %v8973_v63 = vpop.eup %8972  ;;  %6955 = vmatprep.mubr.f32.mxu0 %v15174_v30 }
0x1538   : > { %v8975_v6 = vpop.eup %8974  ;;  %v6766_v49 = vadd.f32 %v13794_v1, %v6744_v43  ;;  %v6723_v10 = vmul.f32 %v8973_v63, %v13779_v12  ;;  %v7009_v12 = vld [vmem:[#allocation11 + $0x18] sm:$0xff] }
0x1539   : > { %v6724_v36 = vmul.f32 %v8975_v6, %v13776_v13  ;;  %7782 = vmatpush3.msra.mxu1 %v7009_v12  ;;  %v7024_v13 = vld [vmem:[#allocation11 + $0x90] sm:$0xff] }
0x153a   : > { %6956 = vmatmul.mubr.f32.gmra.mxu0 %v6766_v49  ;;  %v6745_v2 = vmul.f32 %v13788_v15, %v6723_v10  ;;  %7783 = vmatprep.subr.mxu1 %v7024_v13 }
0x153b   : > { %6961 = vmatprep.mubr.f32.mxu0 %v15174_v30  ;;  %v6746_v55 = vmul.f32 %v13788_v15, %v6724_v36  ;;  %7784 = vmatpush3.msra.mxu1 %v7008_v4  ;;  %v7006_v15 = vld [vmem:[#allocation11] sm:$0xff] }
0x153c   : > { %v6767_v53 = vadd.f32 %v13794_v1, %v6745_v2  ;;  %7785 = vmatprep.subr.mxu1 %v7023_v19 }
0x153d   : > { %v6768_v37 = vadd.f32 %v13794_v1, %v6746_v55  ;;  %7786 = vmatpush3.msra.mxu1 %v7007_v35 }
0x153e   : > { %6962 = vmatmul.mubr.f32.gmra.mxu0 %v6767_v53  ;;  %7787 = vmatprep.subr.mxu1 %v7022_v7 }
0x153f   : > { %6967 = vmatprep.mubr.f32.mxu0 %v15174_v30  ;;  %7788 = vmatpush3.msra.mxu1 %v7006_v15  ;;  %v6803_v30 = vlaneseq }
0x1541   : > { %v6804_v46 = vshrl.u32 %v6803_v30, 7 }
0x1542   : > { %6968 = vmatmul.mubr.f32.gmra.mxu0 %v6768_v37 }
0x1543   : > { %v6805_v1 = vsub.s32 0, %v6804_v46  ;;  %v6809_v16 = vsub.s32 1, %v6804_v46 }
0x1545   : > { %v13861_v48 = vrot.slane %v6801_v57, %v6805_v1  ;;  %v13863_v62 = vrot.slane %v6801_v57, %v6809_v16 }
0x15c6   : > { %v6879_v33 = vpop.f32.mrf.mxu0 }
0x15c7   : > { %v6880_v8 = vadd.f32 %v6879_v33, %v13861_v48 }
0x15c8   : > { %v6881_v9 = vpop.f32.mrf.mxu0 }
0x15c9   : > { %v6882_v50 = vadd.f32 %v6881_v9, %v13863_v62  ;;  %v6974_v39 = vmax.f32 %v6880_v8, 0.0 }
0x15ca   : > { %v6885_v32 = vpop.f32.mrf.mxu0 }
0x15cb   : > { %v6975_v47 = vmax.f32 %v6882_v50, 0.0  ;;  %v6886_v0 = vadd.f32 %v6885_v32, %v13861_v48 }
0x15cc   : > { %v6887_v41 = vpop.f32.mrf.mxu0 }
0x15cd   : > { %v6888_v27 = vadd.f32 %v6887_v41, %v13863_v62  ;;  %7109 = vmatprep.mubr.f32.mxu1 %v6975_v47  ;;  %v6976_v26 = vmax.f32 %v6886_v0, 0.0 }
0x15ce   : > { %v6891_v24 = vpop.f32.mrf.mxu0  ;;  %7110 = vmatmul.mubr.f32.vlgmr.msra.gmra.mxu1 %v6974_v39 }
0x15cf   : > { %v6977_v22 = vmax.f32 %v6888_v27, 0.0  ;;  %v6892_v40 = vadd.f32 %v6891_v24, %v13861_v48 }
0x15d0   : > { %v6893_v60 = vpop.f32.mrf.mxu0 }
0x15d1   : > { %v6894_v18 = vadd.f32 %v6893_v60, %v13863_v62  ;;  %7114 = vmatprep.mubr.f32.mxu1 %v6977_v22  ;;  %v6978_v31 = vmax.f32 %v6892_v40, 0.0 }
0x15d2   : > { %v6897_v28 = vpop.f32.mrf.mxu0  ;;  %7115 = vmatmul.mubr.f32.gmra.mxu1 %v6976_v26 }
0x15d3   : > { %v6979_v58 = vmax.f32 %v6894_v18, 0.0  ;;  %v6898_v34 = vadd.f32 %v6897_v28, %v13861_v48 }
0x15d4   : > { %v6899_v42 = vpop.f32.mrf.mxu0 }
0x15d5   : > { %v6900_v29 = vadd.f32 %v6899_v42, %v13863_v62  ;;  %7119 = vmatprep.mubr.f32.mxu1 %v6979_v58  ;;  %v6980_v63 = vmax.f32 %v6898_v34, 0.0 }
0x15d6   : > { %v6903_v21 = vpop.f32.mrf.mxu0  ;;  %7120 = vmatmul.mubr.f32.gmra.mxu1 %v6978_v31 }
0x15d7   : > { %v6981_v43 = vmax.f32 %v6900_v29, 0.0  ;;  %v6904_v6 = vadd.f32 %v6903_v21, %v13861_v48 }
0x15d8   : > { %v6905_v49 = vpop.f32.mrf.mxu0 }
0x15d9   : > { %v6906_v10 = vadd.f32 %v6905_v49, %v13863_v62  ;;  %7124 = vmatprep.mubr.f32.mxu1 %v6981_v43  ;;  %v6982_v53 = vmax.f32 %v6904_v6, 0.0 }
0x15da   : > { %v6909_v36 = vpop.f32.mrf.mxu0  ;;  %7125 = vmatmul.mubr.f32.gmra.mxu1 %v6980_v63 }
0x15db   : > { %v6983_v2 = vmax.f32 %v6906_v10, 0.0  ;;  %v6910_v55 = vadd.f32 %v6909_v36, %v13861_v48 }
0x15dc   : > { %v6911_v37 = vpop.f32.mrf.mxu0 }
0x15dd   : > { %v6912_v44 = vadd.f32 %v6911_v37, %v13863_v62  ;;  %7129 = vmatprep.mubr.f32.mxu1 %v6983_v2  ;;  %v6984_v4 = vmax.f32 %v6910_v55, 0.0 }
0x15de   : > { %v6915_v12 = vpop.f32.mrf.mxu0  ;;  %7130 = vmatmul.mubr.f32.gmra.mxu1 %v6982_v53 }
0x15df   : > { %v6985_v13 = vmax.f32 %v6912_v44, 0.0  ;;  %v6916_v19 = vadd.f32 %v6915_v12, %v13861_v48 }
0x15e0   : > { %v6917_v35 = vpop.f32.mrf.mxu0 }
0x15e1   : > { %v6918_v7 = vadd.f32 %v6917_v35, %v13863_v62  ;;  %7134 = vmatprep.mubr.f32.mxu1 %v6985_v13  ;;  %v6986_v46 = vmax.f32 %v6916_v19, 0.0 }
0x15e2   : > { %v6921_v15 = vpop.f32.mrf.mxu0  ;;  %7135 = vmatmul.mubr.f32.gmra.mxu1 %v6984_v4 }
0x15e3   : > { %v6987_v30 = vmax.f32 %v6918_v7, 0.0  ;;  %v6922_v1 = vadd.f32 %v6921_v15, %v13861_v48 }
0x15e4   : > { %v6923_v57 = vpop.f32.mrf.mxu0 }
0x15e5   : > { %v6924_v16 = vadd.f32 %v6923_v57, %v13863_v62  ;;  %7139 = vmatprep.mubr.f32.mxu1 %v6987_v30  ;;  %v6988_v9 = vmax.f32 %v6922_v1, 0.0 }
0x15e6   : > { %v6927_v33 = vpop.f32.mrf.mxu0  ;;  %7140 = vmatmul.mubr.f32.gmra.mxu1 %v6986_v46 }
0x15e7   : > { %v6989_v8 = vmax.f32 %v6924_v16, 0.0  ;;  %v6928_v50 = vadd.f32 %v6927_v33, %v13861_v48 }
0x15e8   : > { %v6929_v32 = vpop.f32.mrf.mxu0 }
0x15e9   : > { %v6930_v47 = vadd.f32 %v6929_v32, %v13863_v62  ;;  %7144 = vmatprep.mubr.f32.mxu1 %v6989_v8  ;;  %v6990_v41 = vmax.f32 %v6928_v50, 0.0 }
0x15ea   : > { %v6933_v39 = vpop.f32.mrf.mxu0  ;;  %7145 = vmatmul.mubr.f32.gmra.mxu1 %v6988_v9 }
0x15eb   : > { %v6991_v0 = vmax.f32 %v6930_v47, 0.0  ;;  %v6934_v27 = vadd.f32 %v6933_v39, %v13861_v48  ;;  %v13900_v47 = vld [vmem:[%s15175_s6] ss:$0 sm:$0xff] }
0x15ec   : > { %v6935_v24 = vpop.f32.mrf.mxu0 }
0x15ed   : > { %v6936_v22 = vadd.f32 %v6935_v24, %v13863_v62  ;;  %7149 = vmatprep.mubr.f32.mxu1 %v6991_v0  ;;  %v6992_v60 = vmax.f32 %v6934_v27, 0.0 }
0x15ee   : > { %v6939_v26 = vpop.f32.mrf.mxu0  ;;  %7150 = vmatmul.mubr.f32.gmra.mxu1 %v6990_v41 }
0x15ef   : > { %v6993_v40 = vmax.f32 %v6936_v22, 0.0  ;;  %v6940_v18 = vadd.f32 %v6939_v26, %v13861_v48 }
0x15f0   : > { %v6941_v28 = vpop.f32.mrf.mxu0 }
0x15f1   : > { %v6942_v58 = vadd.f32 %v6941_v28, %v13863_v62  ;;  %7154 = vmatprep.mubr.f32.mxu1 %v6993_v40  ;;  %v6994_v42 = vmax.f32 %v6940_v18, 0.0 }
0x15f2   : > { %v6945_v31 = vpop.f32.mrf.mxu0  ;;  %7155 = vmatmul.mubr.f32.gmra.mxu1 %v6992_v60 }
0x15f3   : > { %v6995_v34 = vmax.f32 %v6942_v58, 0.0  ;;  %v6946_v29 = vadd.f32 %v6945_v31, %v13861_v48 }
0x15f4   : > { %v6947_v21 = vpop.f32.mrf.mxu0 }
0x15f5   : > { %v6948_v43 = vadd.f32 %v6947_v21, %v13863_v62  ;;  %7159 = vmatprep.mubr.f32.mxu1 %v6995_v34  ;;  %v6996_v49 = vmax.f32 %v6946_v29, 0.0 }
0x15f6   : > { %v6951_v63 = vpop.f32.mrf.mxu0  ;;  %7160 = vmatmul.mubr.f32.gmra.mxu1 %v6994_v42 }
0x15f7   : > { %v6997_v6 = vmax.f32 %v6948_v43, 0.0  ;;  %v6952_v10 = vadd.f32 %v6951_v63, %v13861_v48 }
0x15f8   : > { %v6953_v36 = vpop.f32.mrf.mxu0 }
0x15f9   : > { %v6954_v2 = vadd.f32 %v6953_v36, %v13863_v62  ;;  %7164 = vmatprep.mubr.f32.mxu1 %v6997_v6  ;;  %v6998_v37 = vmax.f32 %v6952_v10, 0.0 }
0x15fa   : > { %v6957_v53 = vpop.f32.mrf.mxu0  ;;  %7165 = vmatmul.mubr.f32.gmra.mxu1 %v6996_v49 }
0x15fb   : > { %v6999_v55 = vmax.f32 %v6954_v2, 0.0  ;;  %v6958_v44 = vadd.f32 %v6957_v53, %v13861_v48 }
0x15fc   : > { %v6959_v12 = vpop.f32.mrf.mxu0 }
0x15fd   : > { %v6960_v13 = vadd.f32 %v6959_v12, %v13863_v62  ;;  %7169 = vmatprep.mubr.f32.mxu1 %v6999_v55  ;;  %v7000_v35 = vmax.f32 %v6958_v44, 0.0 }
0x15fe   : > { %v6963_v4 = vpop.f32.mrf.mxu0  ;;  %7170 = vmatmul.mubr.f32.gmra.mxu1 %v6998_v37 }
0x15ff   : > { %v7001_v19 = vmax.f32 %v6960_v13, 0.0  ;;  %v6964_v7 = vadd.f32 %v6963_v4, %v13861_v48 }
0x1600   : > { %v6965_v15 = vpop.f32.mrf.mxu0 }
0x1601   : > { %v6966_v30 = vadd.f32 %v6965_v15, %v13863_v62  ;;  %7174 = vmatprep.mubr.f32.mxu1 %v7001_v19  ;;  %v7002_v57 = vmax.f32 %v6964_v7, 0.0 }
0x1602   : > { %v6969_v46 = vpop.f32.mrf.mxu0  ;;  %7175 = vmatmul.mubr.f32.gmra.mxu1 %v7000_v35 }
0x1603   : > { %v7003_v1 = vmax.f32 %v6966_v30, 0.0  ;;  %v6970_v16 = vadd.f32 %v6969_v46, %v13861_v48 }
0x1604   : > { %v6971_v33 = vpop.f32.mrf.mxu0 }
0x1605   : > { %v6972_v8 = vadd.f32 %v6971_v33, %v13863_v62  ;;  %7179 = vmatprep.mubr.f32.mxu1 %v7003_v1  ;;  %v7004_v50 = vmax.f32 %v6970_v16, 0.0 }
0x1606   : > { %7180 = vmatmul.mubr.f32.gmra.mxu1 %v7002_v57 }
0x1607   : > { %v7005_v9 = vmax.f32 %v6972_v8, 0.0 }
0x1609   : > { %7184 = vmatprep.mubr.f32.mxu1 %v7005_v9 }
0x160a   : > { %7185 = vmatmul.mubr.f32.gmra.mxu1 %v7004_v50 }
0x168e   : > { %v7789_v32 = vpop.f32.mrf.mxu1 }
0x1690   : > { %v7790_v39 = vpop.f32.mrf.mxu1 }
0x1691   : > { %v7791_v0 = vadd.f32 %v7790_v39, %v7789_v32 }
0x1692   : > { %v7792_v41 = vpop.f32.mrf.mxu1 }
0x1693   : > { %v7112_v48 = vadd.f32 %v7791_v0, %v13900_v47 }
0x1694   : > { %v7793_v27 = vpop.f32.mrf.mxu1 }
0x1695   : > { %v7190_v62 = vadd.f32 %v7112_v48, %v13628_v56  ;;  %v7794_v24 = vadd.f32 %v7793_v27, %v7792_v41 }
0x1696   : > { %v7795_v22 = vpop.f32.mrf.mxu1 }
0x1697   : > { %7206 = vst [vmem:[%s13906_s15] sm:$0xff] %v7190_v62  ;;  %v7117_v26 = vadd.f32 %v7794_v24, %v13900_v47 }
0x1698   : > { %v7796_v40 = vpop.f32.mrf.mxu1 }
0x1699   : > { %v7191_v60 = vadd.f32 %v7117_v26, %v13632_v17  ;;  %v7797_v18 = vadd.f32 %v7796_v40, %v7795_v22 }
0x169a   : > { %v7798_v28 = vpop.f32.mrf.mxu1 }
0x169b   : > { %7207 = vst [vmem:[%s13906_s15 + $0x8] sm:$0xff] %v7191_v60  ;;  %v7122_v56 = vadd.f32 %v7797_v18, %v13900_v47 }
0x169c   : > { %v7799_v58 = vpop.f32.mrf.mxu1 }
0x169d   : > { %v7192_v31 = vadd.f32 %v7122_v56, %v13638_v52  ;;  %v7800_v34 = vadd.f32 %v7799_v58, %v7798_v28 }
0x169e   : > { %v7801_v42 = vpop.f32.mrf.mxu1 }
0x169f   : > { %7208 = vst [vmem:[%s13906_s15 + $0x10] sm:$0xff] %v7192_v31  ;;  %v7127_v29 = vadd.f32 %v7800_v34, %v13900_v47 }
0x16a0   : > { %v7802_v21 = vpop.f32.mrf.mxu1 }
0x16a1   : > { %v7193_v43 = vadd.f32 %v7127_v29, %v13642_v38  ;;  %v7803_v63 = vadd.f32 %v7802_v21, %v7801_v42 }
0x16a2   : > { %v7804_v17 = vpop.f32.mrf.mxu1 }
0x16a3   : > { %7209 = vst [vmem:[%s13906_s15 + $0x18] sm:$0xff] %v7193_v43  ;;  %v7132_v6 = vadd.f32 %v7803_v63, %v13900_v47 }
0x16a4   : > { %v7805_v49 = vpop.f32.mrf.mxu1 }
0x16a5   : > { %v7194_v10 = vadd.f32 %v7132_v6, %v13648_v23  ;;  %v7806_v36 = vadd.f32 %v7805_v49, %v7804_v17 }
0x16a6   : > { %v7807_v52 = vpop.f32.mrf.mxu1 }
0x16a7   : > { %7210 = vst [vmem:[%s13906_s15 + $0x20] sm:$0xff] %v7194_v10  ;;  %v7137_v2 = vadd.f32 %v7806_v36, %v13900_v47 }
0x16a8   : > { %v7808_v53 = vpop.f32.mrf.mxu1 }
0x16a9   : > { %v7195_v55 = vadd.f32 %v7137_v2, %v13652_v51  ;;  %v7809_v37 = vadd.f32 %v7808_v53, %v7807_v52 }
0x16aa   : > { %v7810_v38 = vpop.f32.mrf.mxu1 }
0x16ab   : > { %7211 = vst [vmem:[%s13906_s15 + $0x28] sm:$0xff] %v7195_v55  ;;  %v7142_v44 = vadd.f32 %v7809_v37, %v13900_v47 }
0x16ac   : > { %v7811_v12 = vpop.f32.mrf.mxu1 }
0x16ad   : > { %v7196_v13 = vadd.f32 %v7142_v44, %v13658_v59  ;;  %v7812_v4 = vadd.f32 %v7811_v12, %v7810_v38 }
0x16ae   : > { %v7813_v23 = vpop.f32.mrf.mxu1 }
0x16af   : > { %7212 = vst [vmem:[%s13906_s15 + $0x30] sm:$0xff] %v7196_v13  ;;  %v7147_v19 = vadd.f32 %v7812_v4, %v13900_v47 }
0x16b0   : > { %v7814_v35 = vpop.f32.mrf.mxu1 }
0x16b1   : > { %v7197_v7 = vadd.f32 %v7147_v19, %v13662_v25  ;;  %v7815_v15 = vadd.f32 %v7814_v35, %v7813_v23 }
0x16b2   : > { %v7816_v51 = vpop.f32.mrf.mxu1 }
0x16b3   : > { %7213 = vst [vmem:[%s13906_s15 + $0x38] sm:$0xff] %v7197_v7  ;;  %v7152_v30 = vadd.f32 %v7815_v15, %v13900_v47 }
0x16b4   : > { %v7817_v46 = vpop.f32.mrf.mxu1 }
0x16b5   : > { %v7198_v1 = vadd.f32 %v7152_v30, %v13668_v61  ;;  %v7818_v57 = vadd.f32 %v7817_v46, %v7816_v51 }
0x16b6   : > { %v7819_v59 = vpop.f32.mrf.mxu1 }
0x16b7   : > { %7214 = vst [vmem:[%s13906_s15 + $0x40] sm:$0xff] %v7198_v1  ;;  %v7157_v16 = vadd.f32 %v7818_v57, %v13900_v47 }
0x16b8   : > { %v7820_v33 = vpop.f32.mrf.mxu1 }
0x16b9   : > { %v7199_v8 = vadd.f32 %v7157_v16, %v13672_v5  ;;  %v7821_v9 = vadd.f32 %v7820_v33, %v7819_v59 }
0x16ba   : > { %v7822_v25 = vpop.f32.mrf.mxu1 }
0x16bb   : > { %7215 = vst [vmem:[%s13906_s15 + $0x48] sm:$0xff] %v7199_v8  ;;  %v7162_v50 = vadd.f32 %v7821_v9, %v13900_v47 }
0x16bc   : > { %v7823_v32 = vpop.f32.mrf.mxu1 }
0x16bd   : > { %v7200_v39 = vadd.f32 %v7162_v50, %v13678_v20  ;;  %v7824_v0 = vadd.f32 %v7823_v32, %v7822_v25 }
0x16be   : > { %v7825_v61 = vpop.f32.mrf.mxu1 }
0x16bf   : > { %7216 = vst [vmem:[%s13906_s15 + $0x50] sm:$0xff] %v7200_v39  ;;  %v7167_v41 = vadd.f32 %v7824_v0, %v13900_v47 }
0x16c0   : > { %v7826_v48 = vpop.f32.mrf.mxu1 }
0x16c1   : > { %v7201_v27 = vadd.f32 %v7167_v41, %v13682_v3  ;;  %v7827_v62 = vadd.f32 %v7826_v48, %v7825_v61 }
0x16c2   : > { %v7828_v5 = vpop.f32.mrf.mxu1 }
0x16c3   : > { %7217 = vst [vmem:[%s13906_s15 + $0x58] sm:$0xff] %v7201_v27  ;;  %v7172_v24 = vadd.f32 %v7827_v62, %v13900_v47 }
0x16c4   : > { %v7829_v22 = vpop.f32.mrf.mxu1 }
0x16c5   : > { %v7202_v26 = vadd.f32 %v7172_v24, %v13688_v11  ;;  %v7830_v20 = vadd.f32 %v7829_v22, %v7828_v5 }
0x16c6   : > { %v7831_v40 = vpop.f32.mrf.mxu1 }
0x16c7   : > { %7218 = vst [vmem:[%s13906_s15 + $0x60] sm:$0xff] %v7202_v26  ;;  %v7177_v60 = vadd.f32 %v7830_v20, %v13900_v47 }
0x16c8   : > { %v7832_v18 = vpop.f32.mrf.mxu1 }
0x16c9   : > { %v7203_v3 = vadd.f32 %v7177_v60, %v13692_v54  ;;  %v7833_v28 = vadd.f32 %v7832_v18, %v7831_v40 }
0x16ca   : > { %v7834_v56 = vpop.f32.mrf.mxu1 }
0x16cb   : > { %7219 = vst [vmem:[%s13906_s15 + $0x68] sm:$0xff] %v7203_v3  ;;  %v7182_v58 = vadd.f32 %v7833_v28, %v13900_v47 }
0x16cc   : > { %v7835_v31 = vpop.f32.mrf.mxu1 }
0x16cd   : > { %v7204_v11 = vadd.f32 %v7182_v58, %v13701_v45  ;;  %v7836_v34 = vadd.f32 %v7835_v31, %v7834_v56 }
0x16cf   : > { %7220 = vst [vmem:[%s13906_s15 + $0x70] sm:$0xff] %v7204_v11  ;;  %v7187_v42 = vadd.f32 %v7836_v34, %v13900_v47 }
0x16d1   : > { %v7205_v54 = vadd.f32 %v7187_v42, %v13698_v14 }
0x16d3   : > { %7221 = vst [vmem:[%s13906_s15 + $0x78] sm:$0xff] %v7205_v54 }
0x16d4   : > { %9184 = shalt.err (!%p9181_p3)
}
0x16d5   : > { %s9185_s23 = scalar_lea.hbm %s13957_s25, 2048  ;;  %s9189_s13 = scalar_lea.hbm %s15177_s28, 4096 }
0x16d6   : > { %p9186_p4 = scmp.ne.s32.totalorder %s13957_s25, %s9185_s23  ;;  %p9190_p2 = scmp.lt.s32.totalorder %s13957_s25, %s15177_s28 }
0x16d7   : > { %p9191_p7 = scmp.lt.s32.totalorder %s9189_s13, %s9185_s23 }
0x16d8   : > { %p9187_p12 = pnand %p9186_p4, %p15178_p11 }
0x16d9   : > { %p9192_p8 = por %p9191_p7, %p9190_p2 }
0x16da   : > { %p9188_p6 = pneg %p9187_p12 }
0x16dc   : > { %p9193_p10 = pnand %p9192_p8, %p9188_p6 }
0x16de   : > { %9196 = shalt.err (!%p9193_p10)
}
0x16df   : > { %s9278_s22 = smov 128   ;;  %s9279_s5 = smov 8  }
0x16e0   : > { %8299 = dma.vmem_to_hbm [thread:$0]  (%p15178_p11), %s13959_s27, 2048, %s13957_s25, %s7223_s26, %s9278_s22, %s9278_s22, %s9279_s5  }
0x16e1 PF: > { %s7251_s30 = sand.u32 1, %s9235_s18   ;;  %p15179_p13 = scmp.ne.s32.totalorder %s14265_s14, 0 }
0x16e2   : > { %p15180_p0 = scmp.ge.s32.totalorder %s9247_s21, 2  ;;  %s7252_s24 = scalar_lea.sflag [#allocation4], %s7251_s30 }
0x16e4   : > { %p8322_p5 = pnand %p15180_p0, %p15179_p13 }
0x16e6   : > { %p8323_p9 = pneg %p8322_p5 }
0x16e8   : > { %9230 = dma.done.wait (%p8323_p9), %s7252_s24, 2048  }
0x16e9   : > { %9232 = vsyncadd (%p8323_p9), %s7252_s24, 4294965248  ;;  %s15181_s21 = sld [smem:[#allocation20_spill]]  ;;  %s15184_s18 = smov %s9239_s19 }
0x16ea   : > { %s15182_s16 = sld [smem:[#allocation19_spill]] }
0x16eb   : > { %s15183_s20 = sld [smem:[#allocation21_spill]] }
0x16ef   : > { %p31_p1 = scmp.ge.s32.totalorder %s15181_s21, 4  }
0x16f0   : > { %s15185_s19 = smov %s15182_s16 }
0x16f1   :  { %33 = sbr.rel (!%p31_p1) target bundleno = 16 (0x10), region = 145 }
0x16f6   :  { %7257 = vsyncpa [#allocation3], 1 }
0x16f7   :  { %7259 = vsyncpa [#allocation3 + $0x1], 1 }
0x16f8   :  { %7260 = vsyncpa [#allocation6], 1 }
0x16f9   :  { %7261 = vsyncpa [#allocation9], 1 }
0x16fa   :  { %7262 = vsyncpa [#allocation12], 1 }
0x16fb   :  { %7263 = vsyncpa [#allocation4], 1 }
0x16fc   :  { %7265 = vsyncpa [#allocation4 + $0x1], 1 }

</bundles_post_ra>
